<compile_context>
chip_gen: v7x
topology: tpu7x:2x2x1
jax: 0.10.0
libtpu: 0.0.40
codegen_flags: <defaults>
</compile_context>

<pallas_src>
import functools

import jax
import jax.numpy as jnp
from jax import lax
from jax.experimental import pallas as pl
from jax.experimental.pallas import tpu as pltpu


# ----------------------------------------------------------------------------
# Pallas kernels
# ----------------------------------------------------------------------------
def _conv1x1_bias_kernel(x_ref, w_ref, b_ref, o_ref):
    """o = x @ w + b for one row tile.  x/w are bf16, accumulation and bias are f32."""
    acc = jnp.dot(x_ref[...], w_ref[...], preferred_element_type=jnp.float32)
    o_ref[...] = (acc + b_ref[...]).astype(o_ref.dtype)


def _conv3x3_bn_relu_kernel(zp_ref, w_ref, gamma_ref, beta_ref, o_ref):
    """Fused 3x3 conv (pad=1) + training-mode BatchNorm + ReLU.

    zp_ref     : (N, H+2, W+2, C) zero-padded input, bf16.
    w_ref      : (9, C, Cout) conv taps (tap index = dy*3 + dx), bf16.
    gamma/beta : (1, Cout) BN affine params, f32.
    o_ref      : (N*H*W, Cout) activation, f32.

    The conv is 9 accumulated MXU matmuls over shifted windows of the padded input
    held in VMEM (no im2col in HBM).  BN uses single-pass batch statistics
    (sum & sum-of-squares); the conv bias is omitted because the batch-mean
    subtraction cancels any per-channel constant exactly.
    """
    n, hp, wp, c = zp_ref.shape
    h, w = hp - 2, wp - 2
    m, cout = o_ref.shape

    acc = jnp.zeros((m, cout), jnp.float32)
    for dy in range(3):
        for dx in range(3):
            a = zp_ref[:, dy:dy + h, dx:dx + w, :].reshape(m, c)
            acc = acc + jnp.dot(a, w_ref[dy * 3 + dx],
                                preferred_element_type=jnp.float32)

    inv_m = 1.0 / m
    s1 = jnp.sum(acc, axis=0, keepdims=True)
    s2 = jnp.sum(acc * acc, axis=0, keepdims=True)
    mean = s1 * inv_m
    var = s2 * inv_m - mean * mean                 # biased variance, as PyTorch BN
    scale = gamma_ref[...] * lax.rsqrt(var + 1e-5)
    shift = beta_ref[...] - mean * scale
    o_ref[...] = jnp.maximum(acc * scale + shift, 0.0).astype(o_ref.dtype)


# ----------------------------------------------------------------------------
# Kernel wrappers
# ----------------------------------------------------------------------------
def _row_tile(m):
    """Largest x8 row tile giving >=2 grid blocks (megacore / v7x dual-TC), else full M."""
    for cand in (512, 256, 128, 64, 32, 16, 8):
        if m % cand == 0 and m // cand >= 2:
            return cand
    return m


def conv1x1_bias(x, w, b):
    """x: (N,H,W,Cin) f32, w: (Cin,Cout), b: (Cout,) -> (N,H,W,Cout) f32."""
    n, h, wd, cin = x.shape
    cout = w.shape[-1]
    m = n * h * wd
    a = x.reshape(m, cin).astype(jnp.bfloat16)
    tm = _row_tile(m)
    out = pl.pallas_call(
        _conv1x1_bias_kernel,
        out_shape=jax.ShapeDtypeStruct((m, cout), jnp.float32),
        grid_spec=pltpu.PrefetchScalarGridSpec(
            num_scalar_prefetch=0,
            grid=(m // tm,),
            in_specs=[
                pl.BlockSpec((tm, cin), lambda i: (i, 0)),
                pl.BlockSpec((cin, cout), lambda i: (0, 0)),
                pl.BlockSpec((1, cout), lambda i: (0, 0)),
            ],
            out_specs=pl.BlockSpec((tm, cout), lambda i: (i, 0)),
        ),
        compiler_params=pltpu.CompilerParams(dimension_semantics=("parallel",)),
    )(a, w.astype(jnp.bfloat16), b.reshape(1, cout).astype(jnp.float32))
    return out.reshape(n, h, wd, cout)


def conv3x3_bn_relu(z, w9, gamma, beta):
    """z: (N,H,W,C) f32; w9: (9,C,Cout); gamma/beta: (Cout,) -> ReLU(BN(conv3x3(z)))."""
    # TODO(synk): for large N*H*W the fused BN statistics need a gridded two-pass
    # (per-block partial sums) variant; the whole-tensor-in-VMEM kernel is sized for
    # the small shapes exercised here (a few hundred KiB of VMEM).
    n, h, wd, c = z.shape
    cout = w9.shape[-1]
    m = n * h * wd
    zp = jnp.pad(z, ((0, 0), (1, 1), (1, 1), (0, 0))).astype(jnp.bfloat16)
    out = pl.pallas_call(
        _conv3x3_bn_relu_kernel,
        out_shape=jax.ShapeDtypeStruct((m, cout), jnp.float32),
    )(zp, w9.astype(jnp.bfloat16),
      gamma.reshape(1, cout).astype(jnp.float32),
      beta.reshape(1, cout).astype(jnp.float32))
    return out.reshape(n, h, wd, cout)


# ----------------------------------------------------------------------------
# Module forward functions (mirror the PyTorch module structure)
# ----------------------------------------------------------------------------
def recurrent_block(x, p, t=2):
    # Note: the conv bias p["b"] is kept in the params for PyTorch parity but is not
    # used in compute -- it cancels exactly under the train-mode BatchNorm that follows.
    def cbr(z):
        return conv3x3_bn_relu(z, p["w"], p["gamma"], p["beta"])

    x1 = None
    for i in range(t):
        if i == 0:
            x1 = cbr(x)
        x1 = cbr(x + x1)
    return x1


def rrcnn_block(x, p, t=2):
    x = conv1x1_bias(x, p["w1x1"], p["b1x1"])
    x1 = recurrent_block(x, p["rec1"], t=t)
    x1 = recurrent_block(x1, p["rec2"], t=t)
    return x + x1


def rrcnn_forward(params, x_nchw, t=2):
    x = jnp.transpose(x_nchw, (0, 2, 3, 1))        # NCHW -> NHWC (channels on lanes)
    y = rrcnn_block(x, params, t=t)
    return jnp.transpose(y, (0, 3, 1, 2))          # NHWC -> NCHW


# ----------------------------------------------------------------------------
# Deterministic parameter initialization (PyTorch-style uniform fan-in bounds)
# ----------------------------------------------------------------------------
def _init_conv(key, kh, kw, cin, cout):
    kw_, kb_ = jax.random.split(key)
    fan_in = kh * kw * cin
    bound = 1.0 / (fan_in ** 0.5)
    w = jax.random.uniform(kw_, (kh, kw, cin, cout), jnp.float32, -bound, bound)
    b = jax.random.uniform(kb_, (cout,), jnp.float32, -bound, bound)
    return w, b


def _init_recurrent(key, ch_out):
    w, b = _init_conv(key, 3, 3, ch_out, ch_out)
    return {"w": w.reshape(9, ch_out, ch_out),     # tap-major layout: idx = dy*3 + dx
            "b": b,                                # unused (cancels under train-mode BN)
            "gamma": jnp.ones((ch_out,), jnp.float32),
            "beta": jnp.zeros((ch_out,), jnp.float32)}


def init_rrcnn_params(key, ch_in, ch_out):
    k1, k2, k3 = jax.random.split(key, 3)
    w1, b1 = _init_conv(k1, 1, 1, ch_in, ch_out)
    return {"w1x1": w1.reshape(ch_in, ch_out), "b1x1": b1,
            "rec1": _init_recurrent(k2, ch_out),
            "rec2": _init_recurrent(k3, ch_out)}
# TODO(synk): BatchNorm running-stat updates (running_mean/var, num_batches_tracked) are
# a training-time side effect and are not modeled; the forward output uses batch
# statistics exactly like a freshly-constructed nn.BatchNorm2d in train mode.


# ----------------------------------------------------------------------------
# Main
# ----------------------------------------------------------------------------
if __name__ == "__main__":
    key = jax.random.PRNGKey(0)
    k_param, k_x = jax.random.split(key)

    ch_in, ch_out, t = 4, 32, 2
    params = init_rrcnn_params(k_param, ch_in, ch_out)
    x = jax.random.normal(k_x, (2, ch_in, 16, 16), dtype=jnp.float32)

    fwd = jax.jit(functools.partial(rrcnn_forward, t=t))
    out = fwd(params, x)
    jax.block_until_ready(out)

    assert out.shape == (2, ch_out, 16, 16), out.shape
    assert out.dtype == jnp.float32
    assert bool(jnp.all(jnp.isfinite(out)))
    print("KERNEL_OK")
</pallas_src>

<mosaic_0001>
module attributes {stable_mosaic.version = 11 : i64} {
  func.func @_conv1x1_bias_kernel(%arg0: i32, %arg1: memref<256x4xbf16, #tpu.memory_space<vmem>>, %arg2: memref<4x32xbf16, #tpu.memory_space<vmem>>, %arg3: memref<1x32xf32, #tpu.memory_space<vmem>>, %arg4: memref<256x32xf32, #tpu.memory_space<vmem>>) attributes {dimension_semantics = [#tpu.dimension_semantics<parallel>], iteration_bounds = array<i64: 2>, scalar_prefetch = 0 : i64, scratch_operands = 0 : i64, tpu.core_type = #tpu.core_type<tc>, window_params = [{transform_indices = @transform_0, window_bounds = array<i64: 256, 4>}, {pipeline_mode = #tpu.pipeline_mode<synchronous>, transform_indices = @transform_1, window_bounds = array<i64: 4, 32>}, {pipeline_mode = #tpu.pipeline_mode<synchronous>, transform_indices = @transform_2, window_bounds = array<i64: 1, 32>}, {transform_indices = @transform_3, window_bounds = array<i64: 256, 32>}]} {
    %c0 = arith.constant 0 : index
    %c0_0 = arith.constant 0 : index
    %0 = vector.load %arg1[%c0, %c0_0] : memref<256x4xbf16, #tpu.memory_space<vmem>>, vector<256x4xbf16>
    %c0_1 = arith.constant 0 : index
    %c0_2 = arith.constant 0 : index
    %1 = vector.load %arg2[%c0_1, %c0_2] : memref<4x32xbf16, #tpu.memory_space<vmem>>, vector<4x32xbf16>
    %cst = arith.constant dense<0.000000e+00> : vector<256x32xf32>
    %2 = tpu.matmul %0, %1, %cst {dimension_numbers = #tpu.dot_dimension_numbers<[1], [0], [0], [1], [0, 0, 1, 1], [], []>} : vector<256x4xbf16>, vector<4x32xbf16>, vector<256x32xf32> -> vector<256x32xf32>
    %c0_3 = arith.constant 0 : index
    %c0_4 = arith.constant 0 : index
    %3 = vector.load %arg3[%c0_3, %c0_4] : memref<1x32xf32, #tpu.memory_space<vmem>>, vector<1x32xf32>
    %4 = vector.broadcast %3 : vector<1x32xf32> to vector<256x32xf32>
    %5 = arith.addf %2, %4 : vector<256x32xf32>
    %c0_5 = arith.constant 0 : index
    %c0_6 = arith.constant 0 : index
    %6 = vector.load %arg4[%c0_5, %c0_6] : memref<256x32xf32, #tpu.memory_space<vmem>>, vector<256x32xf32>
    tpu.vector_store %arg4[%c0_5, %c0_6], %5 {strides = array<i32>} : memref<256x32xf32, #tpu.memory_space<vmem>>, vector<256x32xf32>,
    return
  }
  func.func @transform_0(%arg0: i32) -> (i32, i32) {
    %c0_i32 = arith.constant 0 : i32
    %c0_i32_0 = arith.constant 0 : i32
    return %arg0, %c0_i32 : i32, i32
  }
  func.func @transform_1(%arg0: i32) -> (i32, i32) {
    %c0_i32 = arith.constant 0 : i32
    %c0_i32_0 = arith.constant 0 : i32
    %c0_i32_1 = arith.constant 0 : i32
    return %c0_i32, %c0_i32_0 : i32, i32
  }
  func.func @transform_2(%arg0: i32) -> (i32, i32) {
    %c0_i32 = arith.constant 0 : i32
    %c0_i32_0 = arith.constant 0 : i32
    %c0_i32_1 = arith.constant 0 : i32
    return %c0_i32, %c0_i32_0 : i32, i32
  }
  func.func @transform_3(%arg0: i32) -> (i32, i32) {
    %c0_i32 = arith.constant 0 : i32
    %c0_i32_0 = arith.constant 0 : i32
    return %arg0, %c0_i32 : i32, i32
  }
}

module attributes {stable_mosaic.version = 11 : i64} {
  func.func @_conv3x3_bn_relu_kernel(%arg0: memref<2x18x18x32xbf16, #tpu.memory_space<vmem>>, %arg1: memref<9x32x32xbf16, #tpu.memory_space<vmem>>, %arg2: memref<1x32xf32, #tpu.memory_space<vmem>>, %arg3: memref<1x32xf32, #tpu.memory_space<vmem>>, %arg4: memref<512x32xf32, #tpu.memory_space<vmem>>) attributes {dimension_semantics = [], scalar_prefetch = 0 : i64, scratch_operands = 0 : i64, tpu.core_type = #tpu.core_type<tc>} {
    %cst = arith.constant 0.000000e+00 : f32
    %0 = vector.broadcast %cst : f32 to vector<512x32xf32>
    %c0 = arith.constant 0 : index
    %c0_0 = arith.constant 0 : index
    %c0_1 = arith.constant 0 : index
    %c0_2 = arith.constant 0 : index
    %1 = vector.load %arg0[%c0, %c0_0, %c0_1, %c0_2] : memref<2x18x18x32xbf16, #tpu.memory_space<vmem>>, vector<2x16x16x32xbf16>
    %2 = vector.shape_cast %1 : vector<2x16x16x32xbf16> to vector<512x32xbf16>
    %c0_3 = arith.constant 0 : index
    %c0_4 = arith.constant 0 : index
    %c0_5 = arith.constant 0 : index
    %3 = vector.load %arg1[%c0_3, %c0_4, %c0_5] : memref<9x32x32xbf16, #tpu.memory_space<vmem>>, vector<1x32x32xbf16>
    %4 = vector.shape_cast %3 : vector<1x32x32xbf16> to vector<32x32xbf16>
    %cst_6 = arith.constant dense<0.000000e+00> : vector<512x32xf32>
    %5 = tpu.matmul %2, %4, %cst_6 {dimension_numbers = #tpu.dot_dimension_numbers<[1], [0], [0], [1], [0, 0, 1, 1], [], []>} : vector<512x32xbf16>, vector<32x32xbf16>, vector<512x32xf32> -> vector<512x32xf32>
    %6 = arith.addf %0, %5 : vector<512x32xf32>
    %c0_7 = arith.constant 0 : index
    %c0_8 = arith.constant 0 : index
    %c1 = arith.constant 1 : index
    %c0_9 = arith.constant 0 : index
    %7 = vector.load %arg0[%c0_7, %c0_8, %c1, %c0_9] : memref<2x18x18x32xbf16, #tpu.memory_space<vmem>>, vector<2x16x16x32xbf16>
    %8 = vector.shape_cast %7 : vector<2x16x16x32xbf16> to vector<512x32xbf16>
    %c1_10 = arith.constant 1 : index
    %c0_11 = arith.constant 0 : index
    %c0_12 = arith.constant 0 : index
    %9 = vector.load %arg1[%c1_10, %c0_11, %c0_12] : memref<9x32x32xbf16, #tpu.memory_space<vmem>>, vector<1x32x32xbf16>
    %10 = vector.shape_cast %9 : vector<1x32x32xbf16> to vector<32x32xbf16>
    %cst_13 = arith.constant dense<0.000000e+00> : vector<512x32xf32>
    %11 = tpu.matmul %8, %10, %cst_13 {dimension_numbers = #tpu.dot_dimension_numbers<[1], [0], [0], [1], [0, 0, 1, 1], [], []>} : vector<512x32xbf16>, vector<32x32xbf16>, vector<512x32xf32> -> vector<512x32xf32>
    %12 = arith.addf %6, %11 : vector<512x32xf32>
    %c0_14 = arith.constant 0 : index
    %c0_15 = arith.constant 0 : index
    %c2 = arith.constant 2 : index
    %c0_16 = arith.constant 0 : index
    %13 = vector.load %arg0[%c0_14, %c0_15, %c2, %c0_16] : memref<2x18x18x32xbf16, #tpu.memory_space<vmem>>, vector<2x16x16x32xbf16>
    %14 = vector.shape_cast %13 : vector<2x16x16x32xbf16> to vector<512x32xbf16>
    %c2_17 = arith.constant 2 : index
    %c0_18 = arith.constant 0 : index
    %c0_19 = arith.constant 0 : index
    %15 = vector.load %arg1[%c2_17, %c0_18, %c0_19] : memref<9x32x32xbf16, #tpu.memory_space<vmem>>, vector<1x32x32xbf16>
    %16 = vector.shape_cast %15 : vector<1x32x32xbf16> to vector<32x32xbf16>
    %cst_20 = arith.constant dense<0.000000e+00> : vector<512x32xf32>
    %17 = tpu.matmul %14, %16, %cst_20 {dimension_numbers = #tpu.dot_dimension_numbers<[1], [0], [0], [1], [0, 0, 1, 1], [], []>} : vector<512x32xbf16>, vector<32x32xbf16>, vector<512x32xf32> -> vector<512x32xf32>
    %18 = arith.addf %12, %17 : vector<512x32xf32>
    %c0_21 = arith.constant 0 : index
    %c1_22 = arith.constant 1 : index
    %c0_23 = arith.constant 0 : index
    %c0_24 = arith.constant 0 : index
    %19 = vector.load %arg0[%c0_21, %c1_22, %c0_23, %c0_24] : memref<2x18x18x32xbf16, #tpu.memory_space<vmem>>, vector<2x16x16x32xbf16>
    %20 = vector.shape_cast %19 : vector<2x16x16x32xbf16> to vector<512x32xbf16>
    %c3 = arith.constant 3 : index
    %c0_25 = arith.constant 0 : index
    %c0_26 = arith.constant 0 : index
    %21 = vector.load %arg1[%c3, %c0_25, %c0_26] : memref<9x32x32xbf16, #tpu.memory_space<vmem>>, vector<1x32x32xbf16>
    %22 = vector.shape_cast %21 : vector<1x32x32xbf16> to vector<32x32xbf16>
    %cst_27 = arith.constant dense<0.000000e+00> : vector<512x32xf32>
    %23 = tpu.matmul %20, %22, %cst_27 {dimension_numbers = #tpu.dot_dimension_numbers<[1], [0], [0], [1], [0, 0, 1, 1], [], []>} : vector<512x32xbf16>, vector<32x32xbf16>, vector<512x32xf32> -> vector<512x32xf32>
    %24 = arith.addf %18, %23 : vector<512x32xf32>
    %c0_28 = arith.constant 0 : index
    %c1_29 = arith.constant 1 : index
    %c1_30 = arith.constant 1 : index
    %c0_31 = arith.constant 0 : index
    %25 = vector.load %arg0[%c0_28, %c1_29, %c1_30, %c0_31] : memref<2x18x18x32xbf16, #tpu.memory_space<vmem>>, vector<2x16x16x32xbf16>
    %26 = vector.shape_cast %25 : vector<2x16x16x32xbf16> to vector<512x32xbf16>
    %c4 = arith.constant 4 : index
    %c0_32 = arith.constant 0 : index
    %c0_33 = arith.constant 0 : index
    %27 = vector.load %arg1[%c4, %c0_32, %c0_33] : memref<9x32x32xbf16, #tpu.memory_space<vmem>>, vector<1x32x32xbf16>
    %28 = vector.shape_cast %27 : vector<1x32x32xbf16> to vector<32x32xbf16>
    %cst_34 = arith.constant dense<0.000000e+00> : vector<512x32xf32>
    %29 = tpu.matmul %26, %28, %cst_34 {dimension_numbers = #tpu.dot_dimension_numbers<[1], [0], [0], [1], [0, 0, 1, 1], [], []>} : vector<512x32xbf16>, vector<32x32xbf16>, vector<512x32xf32> -> vector<512x32xf32>
    %30 = arith.addf %24, %29 : vector<512x32xf32>
    %c0_35 = arith.constant 0 : index
    %c1_36 = arith.constant 1 : index
    %c2_37 = arith.constant 2 : index
    %c0_38 = arith.constant 0 : index
    %31 = vector.load %arg0[%c0_35, %c1_36, %c2_37, %c0_38] : memref<2x18x18x32xbf16, #tpu.memory_space<vmem>>, vector<2x16x16x32xbf16>
    %32 = vector.shape_cast %31 : vector<2x16x16x32xbf16> to vector<512x32xbf16>
    %c5 = arith.constant 5 : index
    %c0_39 = arith.constant 0 : index
    %c0_40 = arith.constant 0 : index
    %33 = vector.load %arg1[%c5, %c0_39, %c0_40] : memref<9x32x32xbf16, #tpu.memory_space<vmem>>, vector<1x32x32xbf16>
    %34 = vector.shape_cast %33 : vector<1x32x32xbf16> to vector<32x32xbf16>
    %cst_41 = arith.constant dense<0.000000e+00> : vector<512x32xf32>
    %35 = tpu.matmul %32, %34, %cst_41 {dimension_numbers = #tpu.dot_dimension_numbers<[1], [0], [0], [1], [0, 0, 1, 1], [], []>} : vector<512x32xbf16>, vector<32x32xbf16>, vector<512x32xf32> -> vector<512x32xf32>
    %36 = arith.addf %30, %35 : vector<512x32xf32>
    %c0_42 = arith.constant 0 : index
    %c2_43 = arith.constant 2 : index
    %c0_44 = arith.constant 0 : index
    %c0_45 = arith.constant 0 : index
    %37 = vector.load %arg0[%c0_42, %c2_43, %c0_44, %c0_45] : memref<2x18x18x32xbf16, #tpu.memory_space<vmem>>, vector<2x16x16x32xbf16>
    %38 = vector.shape_cast %37 : vector<2x16x16x32xbf16> to vector<512x32xbf16>
    %c6 = arith.constant 6 : index
    %c0_46 = arith.constant 0 : index
    %c0_47 = arith.constant 0 : index
    %39 = vector.load %arg1[%c6, %c0_46, %c0_47] : memref<9x32x32xbf16, #tpu.memory_space<vmem>>, vector<1x32x32xbf16>
    %40 = vector.shape_cast %39 : vector<1x32x32xbf16> to vector<32x32xbf16>
    %cst_48 = arith.constant dense<0.000000e+00> : vector<512x32xf32>
    %41 = tpu.matmul %38, %40, %cst_48 {dimension_numbers = #tpu.dot_dimension_numbers<[1], [0], [0], [1], [0, 0, 1, 1], [], []>} : vector<512x32xbf16>, vector<32x32xbf16>, vector<512x32xf32> -> vector<512x32xf32>
    %42 = arith.addf %36, %41 : vector<512x32xf32>
    %c0_49 = arith.constant 0 : index
    %c2_50 = arith.constant 2 : index
    %c1_51 = arith.constant 1 : index
    %c0_52 = arith.constant 0 : index
    %43 = vector.load %arg0[%c0_49, %c2_50, %c1_51, %c0_52] : memref<2x18x18x32xbf16, #tpu.memory_space<vmem>>, vector<2x16x16x32xbf16>
    %44 = vector.shape_cast %43 : vector<2x16x16x32xbf16> to vector<512x32xbf16>
    %c7 = arith.constant 7 : index
    %c0_53 = arith.constant 0 : index
    %c0_54 = arith.constant 0 : index
    %45 = vector.load %arg1[%c7, %c0_53, %c0_54] : memref<9x32x32xbf16, #tpu.memory_space<vmem>>, vector<1x32x32xbf16>
    %46 = vector.shape_cast %45 : vector<1x32x32xbf16> to vector<32x32xbf16>
    %cst_55 = arith.constant dense<0.000000e+00> : vector<512x32xf32>
    %47 = tpu.matmul %44, %46, %cst_55 {dimension_numbers = #tpu.dot_dimension_numbers<[1], [0], [0], [1], [0, 0, 1, 1], [], []>} : vector<512x32xbf16>, vector<32x32xbf16>, vector<512x32xf32> -> vector<512x32xf32>
    %48 = arith.addf %42, %47 : vector<512x32xf32>
    %c0_56 = arith.constant 0 : index
    %c2_57 = arith.constant 2 : index
    %c2_58 = arith.constant 2 : index
    %c0_59 = arith.constant 0 : index
    %49 = vector.load %arg0[%c0_56, %c2_57, %c2_58, %c0_59] : memref<2x18x18x32xbf16, #tpu.memory_space<vmem>>, vector<2x16x16x32xbf16>
    %50 = vector.shape_cast %49 : vector<2x16x16x32xbf16> to vector<512x32xbf16>
    %c8 = arith.constant 8 : index
    %c0_60 = arith.constant 0 : index
    %c0_61 = arith.constant 0 : index
    %51 = vector.load %arg1[%c8, %c0_60, %c0_61] : memref<9x32x32xbf16, #tpu.memory_space<vmem>>, vector<1x32x32xbf16>
    %52 = vector.shape_cast %51 : vector<1x32x32xbf16> to vector<32x32xbf16>
    %cst_62 = arith.constant dense<0.000000e+00> : vector<512x32xf32>
    %53 = tpu.matmul %50, %52, %cst_62 {dimension_numbers = #tpu.dot_dimension_numbers<[1], [0], [0], [1], [0, 0, 1, 1], [], []>} : vector<512x32xbf16>, vector<32x32xbf16>, vector<512x32xf32> -> vector<512x32xf32>
    %54 = arith.addf %48, %53 : vector<512x32xf32>
    %cst_63 = arith.constant dense<0.000000e+00> : vector<32xf32>
    %55 = vector.multi_reduction <add>, %54, %cst_63 [0] : vector<512x32xf32> to vector<32xf32>
    %56 = vector.shape_cast %55 : vector<32xf32> to vector<1x32xf32>
    %57 = arith.mulf %54, %54 : vector<512x32xf32>
    %cst_64 = arith.constant dense<0.000000e+00> : vector<32xf32>
    %58 = vector.multi_reduction <add>, %57, %cst_64 [0] : vector<512x32xf32> to vector<32xf32>
    %59 = vector.shape_cast %58 : vector<32xf32> to vector<1x32xf32>
    %cst_65 = arith.constant 0.001953125 : f32
    %60 = vector.broadcast %cst_65 : f32 to vector<1x32xf32>
    %61 = arith.mulf %56, %60 : vector<1x32xf32>
    %cst_66 = arith.constant 0.001953125 : f32
    %62 = vector.broadcast %cst_66 : f32 to vector<1x32xf32>
    %63 = arith.mulf %59, %62 : vector<1x32xf32>
    %64 = arith.mulf %61, %61 : vector<1x32xf32>
    %65 = arith.subf %63, %64 : vector<1x32xf32>
    %c0_67 = arith.constant 0 : index
    %c0_68 = arith.constant 0 : index
    %66 = vector.load %arg2[%c0_67, %c0_68] : memref<1x32xf32, #tpu.memory_space<vmem>>, vector<1x32xf32>
    %cst_69 = arith.constant 9.99999974E-6 : f32
    %67 = vector.broadcast %cst_69 : f32 to vector<1x32xf32>
    %68 = arith.addf %65, %67 : vector<1x32xf32>
    %69 = math.rsqrt %68 : vector<1x32xf32>
    %70 = arith.mulf %66, %69 : vector<1x32xf32>
    %c0_70 = arith.constant 0 : index
    %c0_71 = arith.constant 0 : index
    %71 = vector.load %arg3[%c0_70, %c0_71] : memref<1x32xf32, #tpu.memory_space<vmem>>, vector<1x32xf32>
    %72 = arith.mulf %61, %70 : vector<1x32xf32>
    %73 = arith.subf %71, %72 : vector<1x32xf32>
    %74 = vector.broadcast %70 : vector<1x32xf32> to vector<512x32xf32>
    %75 = arith.mulf %54, %74 : vector<512x32xf32>
    %76 = vector.broadcast %73 : vector<1x32xf32> to vector<512x32xf32>
    %77 = arith.addf %75, %76 : vector<512x32xf32>
    %cst_72 = arith.constant 0.000000e+00 : f32
    %78 = vector.broadcast %cst_72 : f32 to vector<512x32xf32>
    %79 = arith.maximumf %77, %78 : vector<512x32xf32>
    %c0_73 = arith.constant 0 : index
    %c0_74 = arith.constant 0 : index
    %80 = vector.load %arg4[%c0_73, %c0_74] : memref<512x32xf32, #tpu.memory_space<vmem>>, vector<512x32xf32>
    tpu.vector_store %arg4[%c0_73, %c0_74], %79 {strides = array<i32>} : memref<512x32xf32, #tpu.memory_space<vmem>>, vector<512x32xf32>,
    return
  }
}

</mosaic_0001>

<bundles_post_ra>
// kernel: rrcnn_forward.7
= control target key start
LH: loop header
LB: loop body
LE: loop exit
PB: predicated region body
PF: predicated region fallthrough
CT: control target
= control target key end

     0   :  { %s749_s12 = smov 0   ;;  %s910_s0 = inlined_call_operand.vmem [shape: bf16[512,4], index: 0, kind: input, shape index: {}]   ;;  %s911_s1 = inlined_call_operand.vmem [shape: bf16[4,32], index: 1, kind: input, shape index: {}]   ;;  %s912_s2 = inlined_call_operand.vmem [shape: f32[1,32], index: 2, kind: input, shape index: {}]   ;;  %s913_s3 = inlined_call_operand.vmem [shape: f32[512,32], index: 3, kind: output, shape index: {}]  }
   0x1 LB: > { %s598_s13 = sadd.s32 4294967295, %s727_s12   ;;  %p602_p0 = scmp.ge.s32.totalorder %s727_s12, 1  ;;  %s727_s12 = sphi %s749_s12, %s13_s12  }
   0x2   : > { %p138_p1 = scmp.lt.s32.totalorder %s727_s12, 3 }
   0x4   : > { %p139_p2 = pnand %p602_p0, %p138_p1 }
   0x5   : > { %v207_v0 = vld [vmem:[%s911_s1] sm:$0x3] (!%p139_p2)  ;;  %vm344_vm0 = vcmask (!%p139_p2), 1041408   ;;  %s603_s16 = sshll.u32 (!%p139_p2), %s598_s13, 5  ;;  %vm295_vm1 = vcmask (!%p139_p2), 31744   ;;  %vm509_vm2 = vcmask (!%p139_p2), 261120  }
   0x6   : > { %142 = sbr.rel (%p139_p2) target bundleno = 261 (0x105), region = 32  ;;  %695 = vmatprep.subr.msk.bf16.mxu0 (!%p139_p2), %vm344_vm0, %v207_v0  ;;  %696 = vmatprep.subr.msk.bf16.mxu1 (!%p139_p2), %vm344_vm0, %v207_v0  ;;  %v346_v1 = vsel (!%p139_p2), %vm344_vm0, %v207_v0, 0  ;;  %p163_p3 = scmp.lt.s32.totalorder (!%p139_p2), %s603_s16, 63  ;;  %v804_v18 = vld [vmem:[%s912_s2] ss:$0 sm:$0xff] (!%p139_p2) }
   0x7   : > { %660 = vmatpush3.bf16.msra.mxu0 (!%p139_p2), %v346_v1  ;;  %694 = vmatpush3.bf16.msra.mxu1 (!%p139_p2), %v346_v1 }
   0xd   : > { %s915_s16 = smov (!%p163_p3, %s603_s16), 63 }
   0xe   : > { %s604_s17 = sshll.u32 %s915_s16, 2  ;;  %s606_s21 = sshll.u32 %s915_s16, 3 }
   0xf   : > { %s766_s20 = scalar_lea.vmem %s910_s0, %s604_s17  ;;  %s809_s26 = scalar_lea.vmem %s913_s3, %s606_s21 }
  0x10   : > { %v705_v2 = vld [vmem:[%s766_s20] sm:$0xff]   ;;  %v707_v4 = vld [vmem:[%s766_s20 + $0x8] sm:$0xff]   ;;  %v709_v6 = vld [vmem:[%s766_s20 + $0x10] sm:$0xff]  }
  0x11   : > { %v706_v3 = vld [vmem:[%s766_s20 + $0x40] sm:$0xff]   ;;  %661 = vmatprep.mubr.msk.bf16.mxu0 %vm295_vm1, %v705_v2  ;;  %v708_v5 = vld [vmem:[%s766_s20 + $0x48] sm:$0xff]   ;;  %v710_v7 = vld [vmem:[%s766_s20 + $0x50] sm:$0xff]  }
  0x12   : > { %677 = vmatprep.mubr.msk.bf16.mxu1 %vm295_vm1, %v706_v3  ;;  %662 = vmatmul.mubr.msk.bf16.vlgmr.msra.gmra.mrb[0].mxu0 %vm295_vm1, %v707_v4  ;;  %v711_v8 = vld [vmem:[%s766_s20 + $0x18] sm:$0xff]   ;;  %v713_v10 = vld [vmem:[%s766_s20 + $0x20] sm:$0xff]   ;;  %v715_v12 = vld [vmem:[%s766_s20 + $0x28] sm:$0xff]  }
  0x13   : > { %678 = vmatmul.mubr.msk.bf16.vlgmr.msra.gmra.mrb[0].mxu1 %vm295_vm1, %v708_v5  ;;  %665 = vmatprep.mubr.msk.bf16.mxu0 %vm295_vm1, %v709_v6  ;;  %v712_v9 = vld [vmem:[%s766_s20 + $0x58] sm:$0xff]   ;;  %v714_v11 = vld [vmem:[%s766_s20 + $0x60] sm:$0xff]   ;;  %v716_v13 = vld [vmem:[%s766_s20 + $0x68] sm:$0xff]  }
  0x14   : > { %681 = vmatprep.mubr.msk.bf16.mxu1 %vm295_vm1, %v710_v7  ;;  %v717_v14 = vld [vmem:[%s766_s20 + $0x30] sm:$0xff]   ;;  %v719_v16 = vld [vmem:[%s766_s20 + $0x38] sm:$0xff]  }
  0x15   : > { %v718_v15 = vld [vmem:[%s766_s20 + $0x70] sm:$0xff]   ;;  %v720_v17 = vld [vmem:[%s766_s20 + $0x78] sm:$0xff]  }
  0x1a   : > { %666 = vmatmul.mubr.msk.bf16.gmra.mrb[4].mxu0 %vm295_vm1, %v711_v8 }
  0x1b   : > { %682 = vmatmul.mubr.msk.bf16.gmra.mrb[4].mxu1 %vm295_vm1, %v712_v9  ;;  %669 = vmatprep.mubr.msk.bf16.mxu0 %vm295_vm1, %v713_v10 }
  0x1c   : > { %685 = vmatprep.mubr.msk.bf16.mxu1 %vm295_vm1, %v714_v11 }
  0x22   : > { %670 = vmatmul.mubr.msk.bf16.gmra.mrb[8].mxu0 %vm295_vm1, %v715_v12 }
  0x23   : > { %686 = vmatmul.mubr.msk.bf16.gmra.mrb[8].mxu1 %vm295_vm1, %v716_v13  ;;  %673 = vmatprep.mubr.msk.bf16.mxu0 %vm295_vm1, %v717_v14 }
  0x24   : > { %689 = vmatprep.mubr.msk.bf16.mxu1 %vm295_vm1, %v718_v15 }
  0x2a   : > { %674 = vmatmul.mubr.msk.bf16.gmra.mrb[12].mxu0 %vm295_vm1, %v719_v16 }
  0x2b   : > { %690 = vmatmul.mubr.msk.bf16.gmra.mrb[12].mxu1 %vm295_vm1, %v720_v17 }
  0xe5   : > { %v663_v19 = vpop.f32.mrb[0].mxu0 }
  0xe6   : > { %v391_v20 = vadd.f32 %v663_v19, %v804_v18  ;;  %v679_v21 = vpop.f32.mrb[0].mxu1  ;;  %v382_v22 = vpop.f32.mrb[1].mxu0 }
  0xe7   : > { %v455_v23 = vadd.f32 %v679_v21, %v804_v18  ;;  %v383_v24 = vadd.f32 %v804_v18, %v382_v22  ;;  %v446_v25 = vpop.f32.mrb[1].mxu1  ;;  %v664_v26 = vpop.f32.mrb[2].mxu0 }
  0xe8   : > { %512 = vst.msk [vmem:[%s809_s26 + $0x10] sm:$0xff] %vm509_vm2, %v391_v20  ;;  %v447_v27 = vadd.f32 %v804_v18, %v446_v25  ;;  %v394_v28 = vadd.f32 %v664_v26, %v804_v18  ;;  %v680_v29 = vpop.f32.mrb[2].mxu1  ;;  %v385_v30 = vpop.f32.mrb[3].mxu0 }
  0xe9   : > { %528 = vst.msk [vmem:[%s809_s26 + $0x90] sm:$0xff] %vm509_vm2, %v455_v23  ;;  %510 = vst.msk [vmem:[%s809_s26] sm:$0xff] %vm509_vm2, %v383_v24  ;;  %v458_v31 = vadd.f32 %v680_v29, %v804_v18  ;;  %v386_v32 = vadd.f32 %v804_v18, %v385_v30  ;;  %v449_v33 = vpop.f32.mrb[3].mxu1 }
  0xea   : > { %526 = vst.msk [vmem:[%s809_s26 + $0x80] sm:$0xff] %vm509_vm2, %v447_v27  ;;  %513 = vst.msk [vmem:[%s809_s26 + $0x18] sm:$0xff] %vm509_vm2, %v394_v28  ;;  %v450_v34 = vadd.f32 %v804_v18, %v449_v33 }
  0xeb   : > { %529 = vst.msk [vmem:[%s809_s26 + $0x98] sm:$0xff] %vm509_vm2, %v458_v31  ;;  %511 = vst.msk [vmem:[%s809_s26 + $0x8] sm:$0xff] %vm509_vm2, %v386_v32 }
  0xec   : > { %527 = vst.msk [vmem:[%s809_s26 + $0x88] sm:$0xff] %vm509_vm2, %v450_v34 }
  0xed   : > { %v667_v35 = vpop.f32.mrb[4].mxu0 }
  0xee   : > { %v407_v36 = vadd.f32 %v667_v35, %v804_v18  ;;  %v683_v37 = vpop.f32.mrb[4].mxu1  ;;  %v398_v38 = vpop.f32.mrb[5].mxu0 }
  0xef   : > { %v471_v39 = vadd.f32 %v683_v37, %v804_v18  ;;  %v399_v40 = vadd.f32 %v804_v18, %v398_v38  ;;  %v462_v41 = vpop.f32.mrb[5].mxu1  ;;  %v668_v42 = vpop.f32.mrb[6].mxu0 }
  0xf0   : > { %516 = vst.msk [vmem:[%s809_s26 + $0x30] sm:$0xff] %vm509_vm2, %v407_v36  ;;  %v463_v43 = vadd.f32 %v804_v18, %v462_v41  ;;  %v410_v44 = vadd.f32 %v668_v42, %v804_v18  ;;  %v684_v45 = vpop.f32.mrb[6].mxu1  ;;  %v401_v46 = vpop.f32.mrb[7].mxu0 }
  0xf1   : > { %532 = vst.msk [vmem:[%s809_s26 + $0xb0] sm:$0xff] %vm509_vm2, %v471_v39  ;;  %514 = vst.msk [vmem:[%s809_s26 + $0x20] sm:$0xff] %vm509_vm2, %v399_v40  ;;  %v474_v47 = vadd.f32 %v684_v45, %v804_v18  ;;  %v402_v48 = vadd.f32 %v804_v18, %v401_v46  ;;  %v465_v49 = vpop.f32.mrb[7].mxu1 }
  0xf2   : > { %530 = vst.msk [vmem:[%s809_s26 + $0xa0] sm:$0xff] %vm509_vm2, %v463_v43  ;;  %517 = vst.msk [vmem:[%s809_s26 + $0x38] sm:$0xff] %vm509_vm2, %v410_v44  ;;  %v466_v50 = vadd.f32 %v804_v18, %v465_v49 }
  0xf3   : > { %533 = vst.msk [vmem:[%s809_s26 + $0xb8] sm:$0xff] %vm509_vm2, %v474_v47  ;;  %515 = vst.msk [vmem:[%s809_s26 + $0x28] sm:$0xff] %vm509_vm2, %v402_v48 }
  0xf4   : > { %531 = vst.msk [vmem:[%s809_s26 + $0xa8] sm:$0xff] %vm509_vm2, %v466_v50 }
  0xf5   : > { %v671_v51 = vpop.f32.mrb[8].mxu0 }
  0xf6   : > { %v423_v52 = vadd.f32 %v671_v51, %v804_v18  ;;  %v687_v53 = vpop.f32.mrb[8].mxu1  ;;  %v414_v54 = vpop.f32.mrb[9].mxu0 }
  0xf7   : > { %v487_v55 = vadd.f32 %v687_v53, %v804_v18  ;;  %v415_v56 = vadd.f32 %v804_v18, %v414_v54  ;;  %v478_v57 = vpop.f32.mrb[9].mxu1  ;;  %v672_v58 = vpop.f32.mrb[10].mxu0 }
  0xf8   : > { %520 = vst.msk [vmem:[%s809_s26 + $0x50] sm:$0xff] %vm509_vm2, %v423_v52  ;;  %v479_v59 = vadd.f32 %v804_v18, %v478_v57  ;;  %v426_v60 = vadd.f32 %v672_v58, %v804_v18  ;;  %v688_v61 = vpop.f32.mrb[10].mxu1  ;;  %v417_v62 = vpop.f32.mrb[11].mxu0 }
  0xf9   : > { %536 = vst.msk [vmem:[%s809_s26 + $0xd0] sm:$0xff] %vm509_vm2, %v487_v55  ;;  %518 = vst.msk [vmem:[%s809_s26 + $0x40] sm:$0xff] %vm509_vm2, %v415_v56  ;;  %v490_v63 = vadd.f32 %v688_v61, %v804_v18  ;;  %v418_v0 = vadd.f32 %v804_v18, %v417_v62  ;;  %v481_v1 = vpop.f32.mrb[11].mxu1 }
  0xfa   : > { %534 = vst.msk [vmem:[%s809_s26 + $0xc0] sm:$0xff] %vm509_vm2, %v479_v59  ;;  %521 = vst.msk [vmem:[%s809_s26 + $0x58] sm:$0xff] %vm509_vm2, %v426_v60  ;;  %v482_v2 = vadd.f32 %v804_v18, %v481_v1 }
  0xfb   : > { %537 = vst.msk [vmem:[%s809_s26 + $0xd8] sm:$0xff] %vm509_vm2, %v490_v63  ;;  %519 = vst.msk [vmem:[%s809_s26 + $0x48] sm:$0xff] %vm509_vm2, %v418_v0 }
  0xfc   : > { %535 = vst.msk [vmem:[%s809_s26 + $0xc8] sm:$0xff] %vm509_vm2, %v482_v2 }
  0xfd   : > { %v675_v3 = vpop.f32.mrb[12].mxu0 }
  0xfe   : > { %v439_v4 = vadd.f32 %v675_v3, %v804_v18  ;;  %v691_v5 = vpop.f32.mrb[12].mxu1  ;;  %v430_v6 = vpop.f32.mrb[13].mxu0 }
  0xff   : > { %v503_v7 = vadd.f32 %v691_v5, %v804_v18  ;;  %v431_v8 = vadd.f32 %v804_v18, %v430_v6  ;;  %v494_v9 = vpop.f32.mrb[13].mxu1  ;;  %v676_v10 = vpop.f32.mrb[14].mxu0 }
 0x100   : > { %524 = vst.msk [vmem:[%s809_s26 + $0x70] sm:$0xff] %vm509_vm2, %v439_v4  ;;  %v495_v11 = vadd.f32 %v804_v18, %v494_v9  ;;  %v442_v12 = vadd.f32 %v676_v10, %v804_v18  ;;  %v692_v13 = vpop.f32.mrb[14].mxu1  ;;  %v433_v14 = vpop.f32.mrb[15].mxu0 }
 0x101   : > { %540 = vst.msk [vmem:[%s809_s26 + $0xf0] sm:$0xff] %vm509_vm2, %v503_v7  ;;  %522 = vst.msk [vmem:[%s809_s26 + $0x60] sm:$0xff] %vm509_vm2, %v431_v8  ;;  %v506_v15 = vadd.f32 %v692_v13, %v804_v18  ;;  %v434_v16 = vadd.f32 %v804_v18, %v433_v14  ;;  %v497_v17 = vpop.f32.mrb[15].mxu1 }
 0x102   : > { %538 = vst.msk [vmem:[%s809_s26 + $0xe0] sm:$0xff] %vm509_vm2, %v495_v11  ;;  %525 = vst.msk [vmem:[%s809_s26 + $0x78] sm:$0xff] %vm509_vm2, %v442_v12  ;;  %v498_v19 = vadd.f32 %v804_v18, %v497_v17 }
 0x103   : > { %541 = vst.msk [vmem:[%s809_s26 + $0xf8] sm:$0xff] %vm509_vm2, %v506_v15  ;;  %523 = vst.msk [vmem:[%s809_s26 + $0x68] sm:$0xff] %vm509_vm2, %v434_v16 }
 0x104   : > { %539 = vst.msk [vmem:[%s809_s26 + $0xe8] sm:$0xff] %vm509_vm2, %v498_v19 }
 0x105 PF: > { %s13_s12 = sadd.s32 1, %s727_s12  }
 0x106   : > { %p10_p4 = scmp.ge.s32.totalorder %s13_s12, 4  }
 0x108   :  { %12 = sbr.rel (!%p10_p4) target bundleno = 1 (0x1), region = 62 }

// kernel: rrcnn_forward.8
= control target key start
LH: loop header
LB: loop body
LE: loop exit
PB: predicated region body
PF: predicated region fallthrough
CT: control target
= control target key end

     0   :  { %vm118_vm0 = vsmask.f32 3328  ;;  %vm119_vm1 = vsmask.f32 7440  ;;  %vm1002_vm3 = vcmask 261120   ;;  %vm2041_vm4 = vcmask 1042432   ;;  %s17996_s1 = inlined_call_operand.vmem [shape: bf16[9,32,32], index: 1, kind: input, shape index: {}]   ;;  %s17997_s0 = inlined_call_operand.vmem [shape: bf16[2,18,18,32], index: 0, kind: input, shape index: {}]   ;;  %s17998_s2 = inlined_call_operand.vmem [shape: f32[1,32], index: 2, kind: input, shape index: {}]   ;;  %s17999_s3 = inlined_call_operand.vmem [shape: f32[1,32], index: 3, kind: input, shape index: {}]   ;;  %s18000_s4 = inlined_call_operand.vmem [shape: f32[512,32], index: 4, kind: output, shape index: {}]  }
   0x1   :  { %v12045_v0 = vld [vmem:[%s17996_s1 + $0x10] sm:$0xff]   ;;  %v12046_v1 = vld [vmem:[%s17996_s1 + $0x40] sm:$0xff]   ;;  %v12047_v2 = vld [vmem:[%s17996_s1 + $0x18] sm:$0xff]   ;;  %vm2042_vm5 = vcmask 1046532  }
   0x2   :  { %10917 = vmatprep.subr.bf16.mxu1 %v12045_v0  ;;  %11189 = vmatprep.subr.bf16.mxu0 %v12046_v1  ;;  %v12048_v3 = vld [vmem:[%s17996_s1 + $0x48] sm:$0xff]   ;;  %v18_v4 = vld [vmem:[%s17997_s0] sm:$0xf]  ;;  %v19_v5 = vld [vmem:[%s17997_s0 + $0x4] sm:$0xf] }
   0x3   :  { %10918 = vmatpush3.bf16.msra.mxu1 %v12045_v0  ;;  %11190 = vmatpush3.bf16.msra.mxu0 %v12046_v1  ;;  %v86_v6 = vld [vmem:[%s17997_s0 + $0x8] sm:$0x1]  ;;  %v122_v7 = vshrl.u32 %v18_v4, 16  ;;  %v125_v8 = vshll.u32 %v18_v4, 16  ;;  %v131_v9 = vshll.u32 %v19_v5, 16  ;;  %v135_v10 = vshrl.u32 %v19_v5, 16  ;;  %vm12458_vm2 = vmor %vm118_vm0, %vm119_vm1 }
   0x4   :  { %10919 = vmatprep.subr.bf16.mxu1 %v12047_v2  ;;  %11191 = vmatprep.subr.bf16.mxu0 %v12048_v3  ;;  %v141_v11 = vshll.u32 %v86_v6, 16  ;;  %v12433_v12 = vld [vmem:[%s17996_s1] sm:$0xff]   ;;  %v12438_v13 = vld [vmem:[%s17996_s1 + $0x50] sm:$0xff]   ;;  %v9877_v18 = vld [vmem:[%s17997_s0 + $0xc] sm:$0xf] }
   0x5   :  { %v124_v14 = vrot.slane %v122_v7, 4  ;;  %v127_v15 = vrot.slane %v125_v8, 5  ;;  %v133_v16 = vrot.slane %v131_v9, 5  ;;  %v137_v17 = vrot.slane %v135_v10, 4  ;;  %v12447_v20 = vld [vmem:[%s17997_s0 + $0x10] sm:$0xf]  ;;  %vm12935_vm6 = vmor %vm2041_vm4, %vm2042_vm5 }
   0x6   :  { %v143_v19 = vrot.slane %v141_v11, 5  ;;  %v12452_v21 = vld [vmem:[%s17997_s0 + $0x14] sm:$0x1]  ;;  %v3618_v22 = vshrl.u32 %v9877_v18, 16  ;;  %v3621_v25 = vshll.u32 %v9877_v18, 16  ;;  %v3627_v26 = vshll.u32 %v12447_v20, 16 }
   0x7   :  { %10920 = vmatpush3.bf16.msra.mxu1 %v12047_v2  ;;  %11192 = vmatpush3.bf16.msra.mxu0 %v12048_v3  ;;  %v128_v23 = vor.u32 %v127_v15, %v124_v14  ;;  %v138_v24 = vor.u32 %v137_v17, %v133_v16  ;;  %v3631_v29 = vshrl.u32 %v12447_v20, 16  ;;  %v3637_v30 = vshll.u32 %v12452_v21, 16  ;;  %v20_v31 = vld [vmem:[%s17997_s0 + $0xc] sm:$0xf]  ;;  %v21_v36 = vld [vmem:[%s17997_s0 + $0x10] sm:$0xf] }
   0x8   :  { %10985 = vmatprep.subr.bf16.mxu1 %v12433_v12  ;;  %11257 = vmatprep.subr.bf16.mxu0 %v12438_v13  ;;  %v3620_v28 = vrot.slane %v3618_v22, 4  ;;  %v3623_v34 = vrot.slane %v3621_v25, 5  ;;  %v3629_v35 = vrot.slane %v3627_v26, 5  ;;  %v87_v39 = vld [vmem:[%s17997_s0 + $0x14] sm:$0x1]  ;;  %v146_v40 = vshrl.u32 %v20_v31, 16 }
   0x9   :  { %v129_v32 = vrot.slane %v128_v23, 4  ;;  %v139_v33 = vrot.slane %v138_v24, 4  ;;  %v3633_v37 = vrot.slane %v3631_v29, 4  ;;  %v3639_v38 = vrot.slane %v3637_v30, 5  ;;  %v9880_v49 = vld [vmem:[%s17997_s0 + $0x18] sm:$0xf] }
   0xa   :  { %v3624_v43 = vor.u32 %v3623_v34, %v3620_v28  ;;  %v149_v44 = vshll.u32 %v20_v31, 16  ;;  %v148_v47 = vrot.slane %v146_v40, 4  ;;  %v155_v48 = vshll.u32 %v21_v36, 16  ;;  %v12483_v54 = vld [vmem:[%s17997_s0 + $0x1c] sm:$0xf] }
   0xb   :  { %v134_v41 = vsel %vm12458_vm2, %v129_v32, %v133_v16  ;;  %v144_v42 = vsel %vm12458_vm2, %v139_v33, %v143_v19  ;;  %v3634_v46 = vor.u32 %v3633_v37, %v3629_v35  ;;  %v159_v52 = vshrl.u32 %v21_v36, 16  ;;  %v12493_v63 = vld [vmem:[%s17997_s0 + $0x20] sm:$0x1]  ;;  %v22_v8 = vld [vmem:[%s17997_s0 + $0x18] sm:$0xf] }
   0xc   :  { %v9509_v45 = vcombine.low %v134_v41, %v144_v42  ;;  %v3625_v50 = vrot.slane %v3624_v43, 4  ;;  %v151_v51 = vrot.slane %v149_v44, 5  ;;  %v165_v53 = vshll.u32 %v87_v39, 16  ;;  %v23_v19 = vld [vmem:[%s17997_s0 + $0x1c] sm:$0xf] }
   0xd   :  { %v3635_v55 = vrot.slane %v3634_v46, 4  ;;  %v5077_v56 = vrot.slane %v12447_v20, 5  ;;  %v5080_v57 = vrot.slane %v12452_v21, 5  ;;  %v157_v58 = vrot.slane %v155_v48, 5  ;;  %v88_v25 = vld [vmem:[%s17997_s0 + $0x20] sm:$0x1] }
   0xe   :  { %10921 = vmatprep.mubr.msk.bf16.mxu1 %vm1002_vm3, %v9509_v45  ;;  %v3630_v59 = vsel %vm12458_vm2, %v3625_v50, %v3629_v35  ;;  %v152_v60 = vor.u32 %v151_v51, %v148_v47  ;;  %v161_v61 = vrot.slane %v159_v52, 4  ;;  %v167_v62 = vrot.slane %v165_v53, 5  ;;  %v9883_v32 = vld [vmem:[%s17997_s0 + $0x24] sm:$0xf]  ;;  %v9884_v41 = vld [vmem:[%s17997_s0 + $0x28] sm:$0xf] }
   0xf   :  { %v3640_v0 = vsel %vm12458_vm2, %v3635_v55, %v3639_v38  ;;  %v3642_v1 = vshrl.u32 %v9880_v49, 16  ;;  %v3645_v2 = vshll.u32 %v9880_v49, 16  ;;  %v3651_v3 = vshll.u32 %v12483_v54, 16  ;;  %v9885_v44 = vld [vmem:[%s17997_s0 + $0x2c] sm:$0x1] }
  0x10   :  { %v9977_v4 = vcombine.low %v3630_v59, %v3640_v0  ;;  %v153_v5 = vrot.slane %v152_v60, 4  ;;  %v162_v6 = vor.u32 %v161_v61, %v157_v58  ;;  %v3655_v7 = vshrl.u32 %v12483_v54, 16  ;;  %v24_v51 = vld [vmem:[%s17997_s0 + $0x24] sm:$0xf]  ;;  %v12051_v59 = vld [vmem:[%s17996_s1 + $0x58] sm:$0xff]  }
  0x11   :  { %v3644_v9 = vrot.slane %v3642_v1, 4  ;;  %v3647_v10 = vrot.slane %v3645_v2, 5  ;;  %v3653_v11 = vrot.slane %v3651_v3, 5  ;;  %v3661_v14 = vshll.u32 %v12493_v63, 16  ;;  %v25_v1 = vld [vmem:[%s17997_s0 + $0x28] sm:$0xf] }
  0x12   :  { %11193 = vmatprep.mubr.msk.bf16.mxu0 %vm1002_vm3, %v9977_v4  ;;  %v158_v15 = vsel %vm12458_vm2, %v153_v5, %v157_v58  ;;  %v163_v16 = vrot.slane %v162_v6, 4  ;;  %v3657_v17 = vrot.slane %v3655_v7, 4  ;;  %v5084_v18 = vrot.slane %v12483_v54, 5  ;;  %v89_v4 = vld [vmem:[%s17997_s0 + $0x2c] sm:$0x1] }
  0x13   :  { %v3648_v22 = vor.u32 %v3647_v10, %v3644_v9  ;;  %v3663_v23 = vrot.slane %v3661_v14, 5  ;;  %v5087_v24 = vrot.slane %v12493_v63, 5  ;;  %v170_v26 = vshrl.u32 %v22_v8, 16  ;;  %v54_v20 = vld [vmem:[%s17997_s0 + $0xf0] sm:$0xf] }
  0x14   :  { %v168_v28 = vsel %vm12458_vm2, %v163_v16, %v167_v62  ;;  %v3658_v29 = vor.u32 %v3657_v17, %v3653_v11  ;;  %v12518_v30 = vrot.slane %v5084_v18, 4  ;;  %v173_v31 = vshll.u32 %v22_v8, 16  ;;  %v56_v54 = vld [vmem:[%s17997_s0 + $0xfc] sm:$0xf] }
  0x15   :  { %v9510_v33 = vcombine.low %v158_v15, %v168_v28  ;;  %v3649_v34 = vrot.slane %v3648_v22, 4  ;;  %v172_v35 = vrot.slane %v170_v26, 4  ;;  %v179_v36 = vshll.u32 %v23_v19, 16  ;;  %v9887_v26 = vld [vmem:[%s17997_s0 + $0x34] sm:$0xf] }
  0x16   :  { %v3659_v37 = vrot.slane %v3658_v29, 4  ;;  %v175_v38 = vrot.slane %v173_v31, 5  ;;  %v183_v39 = vshrl.u32 %v23_v19, 16  ;;  %v189_v40 = vshll.u32 %v88_v25, 16 }
  0x17   :  { %10922 = vmatmul.mubr.msk.bf16.vlgmr.msra.gmra.mrb[0].mxu1 %vm1002_vm3, %v9510_v33  ;;  %v3654_v42 = vsel %vm12458_vm2, %v3649_v34, %v3653_v11  ;;  %v181_v43 = vrot.slane %v179_v36, 5  ;;  %v3666_v45 = vshrl.u32 %v9883_v32, 16  ;;  %v3669_v46 = vshll.u32 %v9883_v32, 16  ;;  %v9886_v11 = vld [vmem:[%s17997_s0 + $0x30] sm:$0xf] }
  0x18   :  { %10986 = vmatpush3.bf16.msra.mxu1 %v12433_v12  ;;  %v3664_v47 = vsel %vm12458_vm2, %v3659_v37, %v3663_v23  ;;  %v176_v48 = vor.u32 %v175_v38, %v172_v35  ;;  %v185_v49 = vrot.slane %v183_v39, 4  ;;  %v191_v50 = vrot.slane %v189_v40, 5  ;;  %v12052_v12 = vld [vmem:[%s17996_s1 + $0x8] sm:$0xff]   ;;  %v9888_v33 = vld [vmem:[%s17997_s0 + $0x38] sm:$0x1] }
  0x19   :  { %v9978_v52 = vcombine.low %v3654_v42, %v3664_v47  ;;  %v3668_v53 = vrot.slane %v3666_v45, 4  ;;  %v3671_v55 = vrot.slane %v3669_v46, 5  ;;  %v3675_v58 = vshll.u32 %v9884_v41, 16  ;;  %10987 = vmatprep.subr.bf16.mxu1 %v12052_v12  ;;  %v26_v42 = vld [vmem:[%s17997_s0 + $0x30] sm:$0xf] }
  0x1a   :  { %v177_v60 = vrot.slane %v176_v48, 4  ;;  %v186_v61 = vor.u32 %v185_v49, %v181_v43  ;;  %v3679_v62 = vshrl.u32 %v9884_v41, 16  ;;  %v3685_v0 = vshll.u32 %v9885_v44, 16  ;;  %v27_v47 = vld [vmem:[%s17997_s0 + $0x34] sm:$0xf] }
  0x1b   :  { %11194 = vmatmul.mubr.msk.bf16.vlgmr.msra.gmra.mrb[0].mxu0 %vm1002_vm3, %v9978_v52  ;;  %v3672_v2 = vor.u32 %v3671_v55, %v3668_v53  ;;  %v3677_v3 = vrot.slane %v3675_v58, 5  ;;  %v194_v5 = vshrl.u32 %v24_v51, 16  ;;  %v197_v6 = vshll.u32 %v24_v51, 16  ;;  %v90_v52 = vld [vmem:[%s17997_s0 + $0x38] sm:$0x1] }
  0x1c   :  { %11258 = vmatpush3.bf16.msra.mxu0 %v12438_v13  ;;  %v182_v7 = vsel %vm12458_vm2, %v177_v60, %v181_v43  ;;  %v187_v8 = vrot.slane %v186_v61, 4  ;;  %v3681_v9 = vrot.slane %v3679_v62, 4  ;;  %v3687_v10 = vrot.slane %v3685_v0, 5  ;;  %10988 = vmatpush3.bf16.msra.mxu1 %v12052_v12  ;;  %v12053_v13 = vld [vmem:[%s17996_s1 + $0x60] sm:$0xff]   ;;  %v9889_v0 = vld [vmem:[%s17997_s0 + $0x3c] sm:$0xf] }
  0x1d   :  { %v3673_v14 = vrot.slane %v3672_v2, 4  ;;  %v196_v15 = vrot.slane %v194_v5, 4  ;;  %v199_v16 = vrot.slane %v197_v6, 5  ;;  %v203_v17 = vshll.u32 %v25_v1, 16  ;;  %11259 = vmatprep.subr.bf16.mxu0 %v12051_v59  ;;  %v9890_v5 = vld [vmem:[%s17997_s0 + $0x40] sm:$0xf] }
  0x1e   :  { %v192_v19 = vsel %vm12458_vm2, %v187_v8, %v191_v50  ;;  %v3682_v22 = vor.u32 %v3681_v9, %v3677_v3  ;;  %v207_v23 = vshrl.u32 %v25_v1, 16  ;;  %v213_v25 = vshll.u32 %v89_v4, 16 }
  0x1f   :  { %v9511_v28 = vcombine.low %v182_v7, %v192_v19  ;;  %v3678_v29 = vsel %vm12458_vm2, %v3673_v14, %v3677_v3  ;;  %v200_v31 = vor.u32 %v199_v16, %v196_v15  ;;  %v205_v32 = vrot.slane %v203_v17, 5 }
  0x20   :  { %v3683_v34 = vrot.slane %v3682_v22, 4  ;;  %v209_v35 = vrot.slane %v207_v23, 4  ;;  %v215_v36 = vrot.slane %v213_v25, 5  ;;  %v3690_v37 = vshrl.u32 %v9886_v11, 16  ;;  %11260 = vmatpush3.bf16.msra.mxu0 %v12051_v59  ;;  %v28_v23 = vld [vmem:[%s17997_s0 + $0x3c] sm:$0xf] }
  0x21   :  { %10925 = vmatprep.mubr.msk.bf16.mxu1 %vm1002_vm3, %v9511_v28  ;;  %v201_v38 = vrot.slane %v200_v31, 4  ;;  %v3693_v39 = vshll.u32 %v9886_v11, 16  ;;  %v3699_v40 = vshll.u32 %v9887_v26, 16  ;;  %v3703_v41 = vshrl.u32 %v9887_v26, 16  ;;  %11325 = vmatprep.subr.bf16.mxu0 %v12053_v13  ;;  %v9891_v13 = vld [vmem:[%s17997_s0 + $0x44] sm:$0x1] }
  0x22   :  { %v3688_v43 = vsel %vm12458_vm2, %v3683_v34, %v3687_v10  ;;  %v210_v44 = vor.u32 %v209_v35, %v205_v32  ;;  %v3692_v45 = vrot.slane %v3690_v37, 4  ;;  %v3709_v46 = vshll.u32 %v9888_v33, 16  ;;  %v29_v31 = vld [vmem:[%s17997_s0 + $0x40] sm:$0xf] }
  0x23   :  { %v9979_v48 = vcombine.low %v3678_v29, %v3688_v43  ;;  %v206_v49 = vsel %vm12458_vm2, %v201_v38, %v205_v32  ;;  %v3695_v50 = vrot.slane %v3693_v39, 5  ;;  %v3701_v51 = vrot.slane %v3699_v40, 5 }
  0x24   :  { %v211_v53 = vrot.slane %v210_v44, 4  ;;  %v3705_v55 = vrot.slane %v3703_v41, 4  ;;  %v3711_v58 = vrot.slane %v3709_v46, 5  ;;  %v218_v59 = vshrl.u32 %v26_v42, 16 }
  0x25   :  { %11197 = vmatprep.mubr.msk.bf16.mxu0 %vm1002_vm3, %v9979_v48  ;;  %v3696_v12 = vor.u32 %v3695_v50, %v3692_v45  ;;  %v221_v60 = vshll.u32 %v26_v42, 16  ;;  %v227_v61 = vshll.u32 %v27_v47, 16  ;;  %v231_v62 = vshrl.u32 %v27_v47, 16  ;;  %v91_v42 = vld [vmem:[%s17997_s0 + $0x44] sm:$0x1] }
  0x26   :  { %v216_v1 = vsel %vm12458_vm2, %v211_v53, %v215_v36  ;;  %v3706_v2 = vor.u32 %v3705_v55, %v3701_v51  ;;  %v220_v3 = vrot.slane %v218_v59, 4  ;;  %v237_v4 = vshll.u32 %v90_v52, 16  ;;  %v9892_v45 = vld [vmem:[%s17997_s0 + $0x48] sm:$0xf]  ;;  %v9893_v50 = vld [vmem:[%s17997_s0 + $0x4c] sm:$0xf] }
  0x27   :  { %v9512_v6 = vcombine.low %v206_v49, %v216_v1  ;;  %v3697_v7 = vrot.slane %v3696_v12, 4  ;;  %v223_v8 = vrot.slane %v221_v60, 5  ;;  %v229_v9 = vrot.slane %v227_v61, 5 }
  0x28   :  { %v3707_v10 = vrot.slane %v3706_v2, 4  ;;  %v233_v11 = vrot.slane %v231_v62, 4  ;;  %v239_v14 = vrot.slane %v237_v4, 5  ;;  %v3714_v15 = vshrl.u32 %v9889_v0, 16 }
  0x29   :  { %10926 = vmatmul.mubr.msk.bf16.gmra.mrb[4].mxu1 %vm1002_vm3, %v9512_v6  ;;  %v3702_v16 = vsel %vm12458_vm2, %v3697_v7, %v3701_v51  ;;  %v224_v17 = vor.u32 %v223_v8, %v220_v3  ;;  %v3717_v19 = vshll.u32 %v9889_v0, 16  ;;  %v3723_v22 = vshll.u32 %v9890_v5, 16  ;;  %v9894_v0 = vld [vmem:[%s17997_s0 + $0x50] sm:$0x1]  ;;  %v30_v3 = vld [vmem:[%s17997_s0 + $0x48] sm:$0xf] }
  0x2a   :  { %v3712_v25 = vsel %vm12458_vm2, %v3707_v10, %v3711_v58  ;;  %v234_v26 = vor.u32 %v233_v11, %v229_v9  ;;  %v3716_v28 = vrot.slane %v3714_v15, 4  ;;  %v3727_v29 = vshrl.u32 %v9890_v5, 16  ;;  %v31_v8 = vld [vmem:[%s17997_s0 + $0x4c] sm:$0xf] }
  0x2b   :  { %v9980_v32 = vcombine.low %v3702_v16, %v3712_v25  ;;  %v225_v33 = vrot.slane %v224_v17, 4  ;;  %v3719_v34 = vrot.slane %v3717_v19, 5  ;;  %v3725_v35 = vrot.slane %v3723_v22, 5 }
  0x2c   :  { %v235_v36 = vrot.slane %v234_v26, 4  ;;  %v3729_v37 = vrot.slane %v3727_v29, 4  ;;  %v3733_v38 = vshll.u32 %v9891_v13, 16  ;;  %v242_v39 = vshrl.u32 %v28_v23, 16 }
  0x2d   :  { %11198 = vmatmul.mubr.msk.bf16.gmra.mrb[4].mxu0 %vm1002_vm3, %v9980_v32  ;;  %v230_v40 = vsel %vm12458_vm2, %v225_v33, %v229_v9  ;;  %v3720_v41 = vor.u32 %v3719_v34, %v3716_v28  ;;  %v245_v43 = vshll.u32 %v28_v23, 16  ;;  %v251_v44 = vshll.u32 %v29_v31, 16  ;;  %v92_v23 = vld [vmem:[%s17997_s0 + $0x50] sm:$0x1]  ;;  %v9895_v28 = vld [vmem:[%s17997_s0 + $0x54] sm:$0xf] }
  0x2e   :  { %v240_v46 = vsel %vm12458_vm2, %v235_v36, %v239_v14  ;;  %v3730_v47 = vor.u32 %v3729_v37, %v3725_v35  ;;  %v3735_v48 = vrot.slane %v3733_v38, 5  ;;  %v244_v49 = vrot.slane %v242_v39, 4 }
  0x2f   :  { %v9513_v51 = vcombine.low %v230_v40, %v240_v46  ;;  %v3721_v52 = vrot.slane %v3720_v41, 4  ;;  %v247_v53 = vrot.slane %v245_v43, 5  ;;  %v253_v55 = vrot.slane %v251_v44, 5  ;;  %v9896_v41 = vld [vmem:[%s17997_s0 + $0x58] sm:$0xf] }
  0x30   :  { %v3731_v58 = vrot.slane %v3730_v47, 4  ;;  %v255_v59 = vshrl.u32 %v29_v31, 16  ;;  %v261_v12 = vshll.u32 %v91_v42, 16  ;;  %v3738_v60 = vshrl.u32 %v9892_v45, 16  ;;  %v9897_v47 = vld [vmem:[%s17997_s0 + $0x5c] sm:$0x1] }
  0x31   :  { %10929 = vmatprep.mubr.msk.bf16.mxu1 %vm1002_vm3, %v9513_v51  ;;  %v3726_v61 = vsel %vm12458_vm2, %v3721_v52, %v3725_v35  ;;  %v248_v62 = vor.u32 %v247_v53, %v244_v49  ;;  %v3741_v1 = vshll.u32 %v9892_v45, 16  ;;  %v3747_v2 = vshll.u32 %v9893_v50, 16 }
  0x32   :  { %v3736_v4 = vsel %vm12458_vm2, %v3731_v58, %v3735_v48  ;;  %v257_v5 = vrot.slane %v255_v59, 4  ;;  %v263_v6 = vrot.slane %v261_v12, 5  ;;  %v3740_v7 = vrot.slane %v3738_v60, 4  ;;  %v32_v48 = vld [vmem:[%s17997_s0 + $0x54] sm:$0xf] }
  0x33   :  { %v9981_v9 = vcombine.low %v3726_v61, %v3736_v4  ;;  %v249_v10 = vrot.slane %v248_v62, 4  ;;  %v3743_v11 = vrot.slane %v3741_v1, 5  ;;  %v3749_v14 = vrot.slane %v3747_v2, 5  ;;  %v33_v62 = vld [vmem:[%s17997_s0 + $0x58] sm:$0xf] }
  0x34   :  { %v258_v15 = vor.u32 %v257_v5, %v253_v55  ;;  %v3751_v16 = vshrl.u32 %v9893_v50, 16  ;;  %v3757_v17 = vshll.u32 %v9894_v0, 16  ;;  %v266_v13 = vshrl.u32 %v30_v3, 16  ;;  %v93_v5 = vld [vmem:[%s17997_s0 + $0x5c] sm:$0x1] }
  0x35   :  { %11201 = vmatprep.mubr.msk.bf16.mxu0 %vm1002_vm3, %v9981_v9  ;;  %v254_v19 = vsel %vm12458_vm2, %v249_v10, %v253_v55  ;;  %v3744_v22 = vor.u32 %v3743_v11, %v3740_v7  ;;  %v269_v25 = vshll.u32 %v30_v3, 16  ;;  %v275_v26 = vshll.u32 %v31_v8, 16  ;;  %v9898_v10 = vld [vmem:[%s17997_s0 + $0x60] sm:$0xf] }
  0x36   :  { %v259_v29 = vrot.slane %v258_v15, 4  ;;  %v3753_v31 = vrot.slane %v3751_v16, 4  ;;  %v3759_v32 = vrot.slane %v3757_v17, 5  ;;  %v268_v33 = vrot.slane %v266_v13, 4 }
  0x37   :  { %v3745_v34 = vrot.slane %v3744_v22, 4  ;;  %v271_v35 = vrot.slane %v269_v25, 5  ;;  %v277_v36 = vrot.slane %v275_v26, 5  ;;  %v279_v37 = vshrl.u32 %v31_v8, 16 }
  0x38   :  { %v264_v38 = vsel %vm12458_vm2, %v259_v29, %v263_v6  ;;  %v3754_v39 = vor.u32 %v3753_v31, %v3749_v14  ;;  %v285_v40 = vshll.u32 %v92_v23, 16  ;;  %v3762_v42 = vshrl.u32 %v9895_v28, 16  ;;  %v9899_v23 = vld [vmem:[%s17997_s0 + $0x64] sm:$0xf]  ;;  %v9900_v29 = vld [vmem:[%s17997_s0 + $0x68] sm:$0x1] }
  0x39   :  { %v9514_v43 = vcombine.low %v254_v19, %v264_v38  ;;  %v3750_v44 = vsel %vm12458_vm2, %v3745_v34, %v3749_v14  ;;  %v272_v45 = vor.u32 %v271_v35, %v268_v33  ;;  %v281_v46 = vrot.slane %v279_v37, 4 }
  0x3a   :  { %v3755_v49 = vrot.slane %v3754_v39, 4  ;;  %v287_v50 = vrot.slane %v285_v40, 5  ;;  %v3764_v51 = vrot.slane %v3762_v42, 4  ;;  %v3765_v52 = vshll.u32 %v9895_v28, 16  ;;  %v34_v40 = vld [vmem:[%s17997_s0 + $0x60] sm:$0xf] }
  0x3b   :  { %10930 = vmatmul.mubr.msk.bf16.gmra.mrb[8].mxu1 %vm1002_vm3, %v9514_v43  ;;  %v273_v53 = vrot.slane %v272_v45, 4  ;;  %v282_v55 = vor.u32 %v281_v46, %v277_v36  ;;  %v3771_v58 = vshll.u32 %v9896_v41, 16  ;;  %v3775_v59 = vshrl.u32 %v9896_v41, 16  ;;  %v35_v45 = vld [vmem:[%s17997_s0 + $0x64] sm:$0xf] }
  0x3c   :  { %v3760_v12 = vsel %vm12458_vm2, %v3755_v49, %v3759_v32  ;;  %v3767_v60 = vrot.slane %v3765_v52, 5  ;;  %v3781_v61 = vshll.u32 %v9897_v47, 16  ;;  %v290_v0 = vshrl.u32 %v32_v48, 16 }
  0x3d   :  { %v9982_v1 = vcombine.low %v3750_v44, %v3760_v12  ;;  %v278_v2 = vsel %vm12458_vm2, %v273_v53, %v277_v36  ;;  %v283_v3 = vrot.slane %v282_v55, 4  ;;  %v3773_v4 = vrot.slane %v3771_v58, 5  ;;  %v94_v53 = vld [vmem:[%s17997_s0 + $0x68] sm:$0x1] }
  0x3e   :  { %v3768_v6 = vor.u32 %v3767_v60, %v3764_v51  ;;  %v3777_v7 = vrot.slane %v3775_v59, 4  ;;  %v3783_v8 = vrot.slane %v3781_v61, 5  ;;  %v292_v9 = vrot.slane %v290_v0, 4  ;;  %v9901_v61 = vld [vmem:[%s17997_s0 + $0x6c] sm:$0xf] }
  0x3f   :  { %11202 = vmatmul.mubr.msk.bf16.gmra.mrb[8].mxu0 %vm1002_vm3, %v9982_v1  ;;  %v288_v11 = vsel %vm12458_vm2, %v283_v3, %v287_v50  ;;  %v293_v14 = vshll.u32 %v32_v48, 16  ;;  %v299_v15 = vshll.u32 %v33_v62, 16  ;;  %v303_v16 = vshrl.u32 %v33_v62, 16  ;;  %v9902_v3 = vld [vmem:[%s17997_s0 + $0x70] sm:$0xf] }
  0x40   :  { %v9515_v17 = vcombine.low %v278_v2, %v288_v11  ;;  %v3769_v13 = vrot.slane %v3768_v6, 4  ;;  %v3778_v19 = vor.u32 %v3777_v7, %v3773_v4  ;;  %v309_v22 = vshll.u32 %v93_v5, 16 }
  0x41   :  { %v295_v25 = vrot.slane %v293_v14, 5  ;;  %v301_v26 = vrot.slane %v299_v15, 5  ;;  %v305_v28 = vrot.slane %v303_v16, 4  ;;  %v3786_v31 = vshrl.u32 %v9898_v10, 16 }
  0x42   :  { %10933 = vmatprep.mubr.msk.bf16.mxu1 %vm1002_vm3, %v9515_v17  ;;  %v3774_v32 = vsel %vm12458_vm2, %v3769_v13, %v3773_v4  ;;  %v3779_v33 = vrot.slane %v3778_v19, 4  ;;  %v311_v34 = vrot.slane %v309_v22, 5  ;;  %v3789_v35 = vshll.u32 %v9898_v10, 16  ;;  %v9903_v10 = vld [vmem:[%s17997_s0 + $0x74] sm:$0x1] }
  0x43   :  { %v296_v36 = vor.u32 %v295_v25, %v292_v9  ;;  %v306_v37 = vor.u32 %v305_v28, %v301_v26  ;;  %v3788_v38 = vrot.slane %v3786_v31, 4  ;;  %v3795_v39 = vshll.u32 %v9899_v23, 16  ;;  %v36_v19 = vld [vmem:[%s17997_s0 + $0x6c] sm:$0xf]  ;;  %v37_v28 = vld [vmem:[%s17997_s0 + $0x70] sm:$0xf] }
  0x44   :  { %v3784_v41 = vsel %vm12458_vm2, %v3779_v33, %v3783_v8  ;;  %v3791_v42 = vrot.slane %v3789_v35, 5  ;;  %v3799_v43 = vshrl.u32 %v9899_v23, 16  ;;  %v3805_v44 = vshll.u32 %v9900_v29, 16 }
  0x45   :  { %v9983_v46 = vcombine.low %v3774_v32, %v3784_v41  ;;  %v297_v47 = vrot.slane %v296_v36, 4  ;;  %v307_v48 = vrot.slane %v306_v37, 4  ;;  %v3797_v49 = vrot.slane %v3795_v39, 5  ;;  %v9904_v39 = vld [vmem:[%s17997_s0 + $0x78] sm:$0xf] }
  0x46   :  { %v3792_v50 = vor.u32 %v3791_v42, %v3788_v38  ;;  %v3801_v51 = vrot.slane %v3799_v43, 4  ;;  %v3807_v52 = vrot.slane %v3805_v44, 5  ;;  %v314_v55 = vshrl.u32 %v34_v40, 16  ;;  %v9905_v44 = vld [vmem:[%s17997_s0 + $0x7c] sm:$0xf] }
  0x47   :  { %11205 = vmatprep.mubr.msk.bf16.mxu0 %vm1002_vm3, %v9983_v46  ;;  %v302_v58 = vsel %vm12458_vm2, %v297_v47, %v301_v26  ;;  %v312_v59 = vsel %vm12458_vm2, %v307_v48, %v311_v34  ;;  %v317_v12 = vshll.u32 %v34_v40, 16  ;;  %v323_v60 = vshll.u32 %v35_v45, 16  ;;  %v95_v34 = vld [vmem:[%s17997_s0 + $0x74] sm:$0x1] }
  0x48   :  { %v9516_v62 = vcombine.low %v302_v58, %v312_v59  ;;  %v3793_v0 = vrot.slane %v3792_v50, 4  ;;  %v3802_v1 = vor.u32 %v3801_v51, %v3797_v49  ;;  %v316_v2 = vrot.slane %v314_v55, 4 }
  0x49   :  { %v319_v4 = vrot.slane %v317_v12, 5  ;;  %v325_v5 = vrot.slane %v323_v60, 5  ;;  %v327_v6 = vshrl.u32 %v35_v45, 16  ;;  %v333_v7 = vshll.u32 %v94_v53, 16 }
  0x4a   :  { %10934 = vmatmul.mubr.msk.bf16.gmra.mrb[12].mxu1 %vm1002_vm3, %v9516_v62  ;;  %v3798_v8 = vsel %vm12458_vm2, %v3793_v0, %v3797_v49  ;;  %v3803_v9 = vrot.slane %v3802_v1, 4  ;;  %v3810_v11 = vshrl.u32 %v9901_v61, 16  ;;  %v3813_v14 = vshll.u32 %v9901_v61, 16  ;;  %v9906_v61 = vld [vmem:[%s17997_s0 + $0x80] sm:$0x1] }
  0x4b   :  { %v320_v15 = vor.u32 %v319_v4, %v316_v2  ;;  %v329_v16 = vrot.slane %v327_v6, 4  ;;  %v335_v17 = vrot.slane %v333_v7, 5  ;;  %v3819_v13 = vshll.u32 %v9902_v3, 16 }
  0x4c   :  { %v3808_v22 = vsel %vm12458_vm2, %v3803_v9, %v3807_v52  ;;  %v3812_v23 = vrot.slane %v3810_v11, 4  ;;  %v3815_v25 = vrot.slane %v3813_v14, 5  ;;  %v3823_v26 = vshrl.u32 %v9902_v3, 16 }
  0x4d   :  { %v9984_v29 = vcombine.low %v3798_v8, %v3808_v22  ;;  %v321_v31 = vrot.slane %v320_v15, 4  ;;  %v330_v32 = vor.u32 %v329_v16, %v325_v5  ;;  %v3821_v33 = vrot.slane %v3819_v13, 5 }
  0x4e   :  { %v3816_v35 = vor.u32 %v3815_v25, %v3812_v23  ;;  %v3825_v36 = vrot.slane %v3823_v26, 4  ;;  %v3829_v37 = vshll.u32 %v9903_v10, 16  ;;  %v338_v38 = vshrl.u32 %v36_v19, 16  ;;  %v39_v10 = vld [vmem:[%s17997_s0 + $0x7c] sm:$0xf] }
  0x4f   :  { %11206 = vmatmul.mubr.msk.bf16.gmra.mrb[12].mxu0 %vm1002_vm3, %v9984_v29  ;;  %v326_v40 = vsel %vm12458_vm2, %v321_v31, %v325_v5  ;;  %v331_v41 = vrot.slane %v330_v32, 4  ;;  %v341_v42 = vshll.u32 %v36_v19, 16  ;;  %v347_v43 = vshll.u32 %v37_v28, 16  ;;  %v38_v5 = vld [vmem:[%s17997_s0 + $0x78] sm:$0xf] }
  0x50   :  { %v3817_v45 = vrot.slane %v3816_v35, 4  ;;  %v3826_v46 = vor.u32 %v3825_v36, %v3821_v33  ;;  %v3831_v47 = vrot.slane %v3829_v37, 5  ;;  %v340_v48 = vrot.slane %v338_v38, 4  ;;  %v9907_v31 = vld [vmem:[%s17997_s0 + $0x84] sm:$0xf] }
  0x51   :  { %v336_v49 = vsel %vm12458_vm2, %v331_v41, %v335_v17  ;;  %v343_v50 = vrot.slane %v341_v42, 5  ;;  %v349_v51 = vrot.slane %v347_v43, 5  ;;  %v351_v52 = vshrl.u32 %v37_v28, 16  ;;  %v96_v28 = vld [vmem:[%s17997_s0 + $0x80] sm:$0x1] }
  0x52   :  { %v9517_v53 = vcombine.low %v326_v40, %v336_v49  ;;  %v3822_v55 = vsel %vm12458_vm2, %v3817_v45, %v3821_v33  ;;  %v3827_v58 = vrot.slane %v3826_v46, 4  ;;  %v357_v59 = vshll.u32 %v95_v34, 16  ;;  %v9908_v36 = vld [vmem:[%s17997_s0 + $0x88] sm:$0xf] }
  0x53   :  { %v344_v12 = vor.u32 %v343_v50, %v340_v48  ;;  %v353_v60 = vrot.slane %v351_v52, 4  ;;  %v3834_v62 = vshrl.u32 %v9904_v39, 16  ;;  %v3837_v0 = vshll.u32 %v9904_v39, 16  ;;  %v40_v50 = vld [vmem:[%s17997_s0 + $0x84] sm:$0xf] }
  0x54   :  { %10937 = vmatprep.mubr.msk.bf16.mxu1 %vm1002_vm3, %v9517_v53  ;;  %v3832_v1 = vsel %vm12458_vm2, %v3827_v58, %v3831_v47  ;;  %v359_v2 = vrot.slane %v357_v59, 5  ;;  %v3843_v3 = vshll.u32 %v9905_v44, 16  ;;  %v3847_v4 = vshrl.u32 %v9905_v44, 16  ;;  %v9909_v47 = vld [vmem:[%s17997_s0 + $0x8c] sm:$0x1] }
  0x55   :  { %v9985_v6 = vcombine.low %v3822_v55, %v3832_v1  ;;  %v345_v7 = vrot.slane %v344_v12, 4  ;;  %v354_v8 = vor.u32 %v353_v60, %v349_v51  ;;  %v3836_v9 = vrot.slane %v3834_v62, 4  ;;  %v41_v58 = vld [vmem:[%s17997_s0 + $0x88] sm:$0xf] }
  0x56   :  { %v3839_v11 = vrot.slane %v3837_v0, 5  ;;  %v3845_v14 = vrot.slane %v3843_v3, 5  ;;  %v3849_v15 = vrot.slane %v3847_v4, 4  ;;  %v3853_v16 = vshll.u32 %v9906_v61, 16 }
  0x57   :  { %11209 = vmatprep.mubr.msk.bf16.mxu0 %vm1002_vm3, %v9985_v6  ;;  %v350_v17 = vsel %vm12458_vm2, %v345_v7, %v349_v51  ;;  %v355_v13 = vrot.slane %v354_v8, 4  ;;  %v362_v19 = vshrl.u32 %v38_v5, 16  ;;  %v365_v22 = vshll.u32 %v38_v5, 16  ;;  %v9910_v8 = vld [vmem:[%s17997_s0 + $0x90] sm:$0xf] }
  0x58   :  { %v3840_v23 = vor.u32 %v3839_v11, %v3836_v9  ;;  %v3850_v25 = vor.u32 %v3849_v15, %v3845_v14  ;;  %v3855_v26 = vrot.slane %v3853_v16, 5  ;;  %v371_v29 = vshll.u32 %v39_v10, 16 }
  0x59   :  { %v360_v32 = vsel %vm12458_vm2, %v355_v13, %v359_v2  ;;  %v364_v33 = vrot.slane %v362_v19, 4  ;;  %v367_v34 = vrot.slane %v365_v22, 5  ;;  %v375_v35 = vshrl.u32 %v39_v10, 16  ;;  %v97_v2 = vld [vmem:[%s17997_s0 + $0x8c] sm:$0x1] }
  0x5a   :  { %v9518_v37 = vcombine.low %v350_v17, %v360_v32  ;;  %v3841_v38 = vrot.slane %v3840_v23, 4  ;;  %v3851_v39 = vrot.slane %v3850_v25, 4  ;;  %v373_v40 = vrot.slane %v371_v29, 5  ;;  %v9911_v19 = vld [vmem:[%s17997_s0 + $0x94] sm:$0xf] }
  0x5b   :  { %v368_v41 = vor.u32 %v367_v34, %v364_v33  ;;  %v377_v42 = vrot.slane %v375_v35, 4  ;;  %v381_v43 = vshll.u32 %v96_v28, 16  ;;  %v3858_v44 = vshrl.u32 %v9907_v31, 16  ;;  %v9912_v32 = vld [vmem:[%s17997_s0 + $0x98] sm:$0x1] }
  0x5c   :  { %10938 = vmatmul.mubr.msk.bf16.gmra.mrb[16].mxu1 %vm1002_vm3, %v9518_v37  ;;  %v3846_v45 = vsel %vm12458_vm2, %v3841_v38, %v3845_v14  ;;  %v3856_v46 = vsel %vm12458_vm2, %v3851_v39, %v3855_v26  ;;  %v3861_v48 = vshll.u32 %v9907_v31, 16  ;;  %v3867_v49 = vshll.u32 %v9908_v36, 16  ;;  %v42_v38 = vld [vmem:[%s17997_s0 + $0x90] sm:$0xf] }
  0x5d   :  { %v9986_v51 = vcombine.low %v3846_v45, %v3856_v46  ;;  %v369_v52 = vrot.slane %v368_v41, 4  ;;  %v378_v53 = vor.u32 %v377_v42, %v373_v40  ;;  %v383_v55 = vrot.slane %v381_v43, 5  ;;  %v43_v43 = vld [vmem:[%s17997_s0 + $0x94] sm:$0xf] }
  0x5e   :  { %v3860_v59 = vrot.slane %v3858_v44, 4  ;;  %v3863_v12 = vrot.slane %v3861_v48, 5  ;;  %v3869_v60 = vrot.slane %v3867_v49, 5  ;;  %v3871_v61 = vshrl.u32 %v9908_v36, 16 }
  0x5f   :  { %11210 = vmatmul.mubr.msk.bf16.gmra.mrb[16].mxu0 %vm1002_vm3, %v9986_v51  ;;  %v374_v62 = vsel %vm12458_vm2, %v369_v52, %v373_v40  ;;  %v379_v0 = vrot.slane %v378_v53, 4  ;;  %v3877_v1 = vshll.u32 %v9909_v47, 16  ;;  %v386_v3 = vshrl.u32 %v40_v50, 16  ;;  %v98_v51 = vld [vmem:[%s17997_s0 + $0x98] sm:$0x1] }
  0x60   :  { %v3864_v4 = vor.u32 %v3863_v12, %v3860_v59  ;;  %v3873_v5 = vrot.slane %v3871_v61, 4  ;;  %v389_v6 = vshll.u32 %v40_v50, 16  ;;  %v395_v7 = vshll.u32 %v41_v58, 16  ;;  %v9913_v12 = vld [vmem:[%s17997_s0 + $0x9c] sm:$0xf] }
  0x61   :  { %v384_v9 = vsel %vm12458_vm2, %v379_v0, %v383_v55  ;;  %v3879_v10 = vrot.slane %v3877_v1, 5  ;;  %v388_v11 = vrot.slane %v386_v3, 4  ;;  %v399_v14 = vshrl.u32 %v41_v58, 16  ;;  %v9914_v1 = vld [vmem:[%s17997_s0 + $0xa0] sm:$0xf] }
  0x62   :  { %v9519_v15 = vcombine.low %v374_v62, %v384_v9  ;;  %v3865_v16 = vrot.slane %v3864_v4, 4  ;;  %v3874_v17 = vor.u32 %v3873_v5, %v3869_v60  ;;  %v391_v13 = vrot.slane %v389_v6, 5 }
  0x63   :  { %v397_v22 = vrot.slane %v395_v7, 5  ;;  %v401_v23 = vrot.slane %v399_v14, 4  ;;  %v405_v25 = vshll.u32 %v97_v2, 16  ;;  %v3882_v26 = vshrl.u32 %v9910_v8, 16 }
  0x64   :  { %10941 = vmatprep.mubr.msk.bf16.mxu1 %vm1002_vm3, %v9519_v15  ;;  %v3870_v28 = vsel %vm12458_vm2, %v3865_v16, %v3869_v60  ;;  %v3875_v29 = vrot.slane %v3874_v17, 4  ;;  %v392_v31 = vor.u32 %v391_v13, %v388_v11  ;;  %v3885_v33 = vshll.u32 %v9910_v8, 16  ;;  %v9915_v8 = vld [vmem:[%s17997_s0 + $0xa4] sm:$0x1]  ;;  %v44_v17 = vld [vmem:[%s17997_s0 + $0x9c] sm:$0xf] }
  0x65   :  { %v402_v34 = vor.u32 %v401_v23, %v397_v22  ;;  %v407_v35 = vrot.slane %v405_v25, 5  ;;  %v3884_v36 = vrot.slane %v3882_v26, 4  ;;  %v3891_v37 = vshll.u32 %v9911_v19, 16  ;;  %v45_v25 = vld [vmem:[%s17997_s0 + $0xa0] sm:$0xf] }
  0x66   :  { %v3880_v39 = vsel %vm12458_vm2, %v3875_v29, %v3879_v10  ;;  %v393_v40 = vrot.slane %v392_v31, 4  ;;  %v3887_v41 = vrot.slane %v3885_v33, 5  ;;  %v3895_v42 = vshrl.u32 %v9911_v19, 16 }
  0x67   :  { %v9987_v44 = vcombine.low %v3870_v28, %v3880_v39  ;;  %v403_v45 = vrot.slane %v402_v34, 4  ;;  %v3893_v46 = vrot.slane %v3891_v37, 5  ;;  %v3901_v47 = vshll.u32 %v9912_v32, 16  ;;  %v99_v39 = vld [vmem:[%s17997_s0 + $0xa4] sm:$0x1] }
  0x68   :  { %v398_v48 = vsel %vm12458_vm2, %v393_v40, %v397_v22  ;;  %v3888_v49 = vor.u32 %v3887_v41, %v3884_v36  ;;  %v3897_v50 = vrot.slane %v3895_v42, 4  ;;  %v410_v52 = vshrl.u32 %v42_v38, 16  ;;  %v12055_v36 = vld [vmem:[%s17996_s1 + $0x20] sm:$0xff]  }
  0x69   :  { %11213 = vmatprep.mubr.msk.bf16.mxu0 %vm1002_vm3, %v9987_v44  ;;  %v408_v53 = vsel %vm12458_vm2, %v403_v45, %v407_v35  ;;  %v3903_v55 = vrot.slane %v3901_v47, 5  ;;  %v413_v58 = vshll.u32 %v42_v38, 16  ;;  %v419_v59 = vshll.u32 %v43_v43, 16  ;;  %11053 = vmatprep.subr.bf16.mxu1 %v12055_v36 }
  0x6a   :  { %v9520_v60 = vcombine.low %v398_v48, %v408_v53  ;;  %v3889_v61 = vrot.slane %v3888_v49, 4  ;;  %v3898_v62 = vor.u32 %v3897_v50, %v3893_v46  ;;  %v412_v0 = vrot.slane %v410_v52, 4 }
  0x6b   :  { %v415_v2 = vrot.slane %v413_v58, 5  ;;  %v421_v3 = vrot.slane %v419_v59, 5  ;;  %v423_v4 = vshrl.u32 %v43_v43, 16  ;;  %v429_v5 = vshll.u32 %v98_v51, 16  ;;  %v9917_v51 = vld [vmem:[%s17997_s0 + $0xac] sm:$0xf] }
  0x6c   :  { %10942 = vmatmul.mubr.msk.bf16.gmra.mrb[20].mxu1 %vm1002_vm3, %v9520_v60  ;;  %v3894_v6 = vsel %vm12458_vm2, %v3889_v61, %v3893_v46  ;;  %v3899_v7 = vrot.slane %v3898_v62, 4  ;;  %v3906_v9 = vshrl.u32 %v9913_v12, 16  ;;  %v3909_v10 = vshll.u32 %v9913_v12, 16  ;;  %v9916_v46 = vld [vmem:[%s17997_s0 + $0xa8] sm:$0xf] }
  0x6d   :  { %v416_v11 = vor.u32 %v415_v2, %v412_v0  ;;  %v425_v14 = vrot.slane %v423_v4, 4  ;;  %v431_v15 = vrot.slane %v429_v5, 5  ;;  %v3915_v16 = vshll.u32 %v9914_v1, 16  ;;  %v9918_v60 = vld [vmem:[%s17997_s0 + $0xb0] sm:$0x1] }
  0x6e   :  { %v3904_v13 = vsel %vm12458_vm2, %v3899_v7, %v3903_v55  ;;  %v3908_v19 = vrot.slane %v3906_v9, 4  ;;  %v3911_v22 = vrot.slane %v3909_v10, 5  ;;  %v3919_v23 = vshrl.u32 %v9914_v1, 16  ;;  %v46_v4 = vld [vmem:[%s17997_s0 + $0xa8] sm:$0xf] }
  0x6f   :  { %v9988_v26 = vcombine.low %v3894_v6, %v3904_v13  ;;  %v417_v28 = vrot.slane %v416_v11, 4  ;;  %v426_v29 = vor.u32 %v425_v14, %v421_v3  ;;  %v3917_v31 = vrot.slane %v3915_v16, 5  ;;  %v47_v9 = vld [vmem:[%s17997_s0 + $0xac] sm:$0xf] }
  0x70   :  { %v3912_v32 = vor.u32 %v3911_v22, %v3908_v19  ;;  %v3921_v33 = vrot.slane %v3919_v23, 4  ;;  %v3925_v34 = vshll.u32 %v9915_v8, 16  ;;  %v434_v35 = vshrl.u32 %v44_v17, 16 }
  0x71   :  { %11214 = vmatmul.mubr.msk.bf16.gmra.mrb[20].mxu0 %vm1002_vm3, %v9988_v26  ;;  %v422_v37 = vsel %vm12458_vm2, %v417_v28, %v421_v3  ;;  %v427_v38 = vrot.slane %v426_v29, 4  ;;  %v437_v40 = vshll.u32 %v44_v17, 16  ;;  %v443_v41 = vshll.u32 %v45_v25, 16  ;;  %v100_v26 = vld [vmem:[%s17997_s0 + $0xb0] sm:$0x1] }
  0x72   :  { %v3913_v42 = vrot.slane %v3912_v32, 4  ;;  %v3922_v43 = vor.u32 %v3921_v33, %v3917_v31  ;;  %v3927_v44 = vrot.slane %v3925_v34, 5  ;;  %v436_v45 = vrot.slane %v434_v35, 4  ;;  %v9919_v29 = vld [vmem:[%s17997_s0 + $0xb4] sm:$0xf] }
  0x73   :  { %v432_v47 = vsel %vm12458_vm2, %v427_v38, %v431_v15  ;;  %v439_v48 = vrot.slane %v437_v40, 5  ;;  %v445_v49 = vrot.slane %v443_v41, 5  ;;  %v447_v50 = vshrl.u32 %v45_v25, 16  ;;  %v9920_v35 = vld [vmem:[%s17997_s0 + $0xb8] sm:$0xf] }
  0x74   :  { %v9521_v52 = vcombine.low %v422_v37, %v432_v47  ;;  %v3918_v53 = vsel %vm12458_vm2, %v3913_v42, %v3917_v31  ;;  %v3923_v55 = vrot.slane %v3922_v43, 4  ;;  %v453_v58 = vshll.u32 %v99_v39, 16 }
  0x75   :  { %v440_v59 = vor.u32 %v439_v48, %v436_v45  ;;  %v449_v12 = vrot.slane %v447_v50, 4  ;;  %v3930_v61 = vshrl.u32 %v9916_v46, 16  ;;  %v3933_v62 = vshll.u32 %v9916_v46, 16  ;;  %v9921_v46 = vld [vmem:[%s17997_s0 + $0xbc] sm:$0x1] }
  0x76   :  { %10945 = vmatprep.mubr.msk.bf16.mxu1 %vm1002_vm3, %v9521_v52  ;;  %v3928_v0 = vsel %vm12458_vm2, %v3923_v55, %v3927_v44  ;;  %v455_v1 = vrot.slane %v453_v58, 5  ;;  %v3939_v2 = vshll.u32 %v9917_v51, 16  ;;  %v3943_v3 = vshrl.u32 %v9917_v51, 16  ;;  %v49_v55 = vld [vmem:[%s17997_s0 + $0xb8] sm:$0xf] }
  0x77   :  { %v9989_v5 = vcombine.low %v3918_v53, %v3928_v0  ;;  %v441_v6 = vrot.slane %v440_v59, 4  ;;  %v450_v7 = vor.u32 %v449_v12, %v445_v49  ;;  %v3932_v8 = vrot.slane %v3930_v61, 4 }
  0x78   :  { %v3935_v10 = vrot.slane %v3933_v62, 5  ;;  %v3941_v11 = vrot.slane %v3939_v2, 5  ;;  %v3945_v14 = vrot.slane %v3943_v3, 4  ;;  %v3949_v15 = vshll.u32 %v9918_v60, 16 }
  0x79   :  { %11217 = vmatprep.mubr.msk.bf16.mxu0 %vm1002_vm3, %v9989_v5  ;;  %v446_v16 = vsel %vm12458_vm2, %v441_v6, %v445_v49  ;;  %v451_v17 = vrot.slane %v450_v7, 4  ;;  %v458_v13 = vshrl.u32 %v46_v4, 16  ;;  %v461_v19 = vshll.u32 %v46_v4, 16  ;;  %v48_v49 = vld [vmem:[%s17997_s0 + $0xb4] sm:$0xf] }
  0x7a   :  { %v3936_v22 = vor.u32 %v3935_v10, %v3932_v8  ;;  %v3946_v23 = vor.u32 %v3945_v14, %v3941_v11  ;;  %v3951_v25 = vrot.slane %v3949_v15, 5  ;;  %v467_v28 = vshll.u32 %v47_v9, 16  ;;  %v9922_v7 = vld [vmem:[%s17997_s0 + $0xc0] sm:$0xf]  ;;  %v9923_v14 = vld [vmem:[%s17997_s0 + $0xc4] sm:$0xf] }
  0x7b   :  { %v456_v31 = vsel %vm12458_vm2, %v451_v17, %v455_v1  ;;  %v460_v32 = vrot.slane %v458_v13, 4  ;;  %v463_v33 = vrot.slane %v461_v19, 5  ;;  %v471_v34 = vshrl.u32 %v47_v9, 16  ;;  %v101_v1 = vld [vmem:[%s17997_s0 + $0xbc] sm:$0x1] }
  0x7c   :  { %v9522_v36 = vcombine.low %v446_v16, %v456_v31  ;;  %v3937_v37 = vrot.slane %v3936_v22, 4  ;;  %v3947_v38 = vrot.slane %v3946_v23, 4  ;;  %v469_v39 = vrot.slane %v467_v28, 5  ;;  %v9924_v31 = vld [vmem:[%s17997_s0 + $0xc8] sm:$0x1] }
  0x7d   :  { %v464_v40 = vor.u32 %v463_v33, %v460_v32  ;;  %v473_v41 = vrot.slane %v471_v34, 4  ;;  %v477_v42 = vshll.u32 %v100_v26, 16  ;;  %v3954_v43 = vshrl.u32 %v9919_v29, 16 }
  0x7e   :  { %10946 = vmatmul.mubr.msk.bf16.gmra.mrb[24].mxu1 %vm1002_vm3, %v9522_v36  ;;  %v3942_v44 = vsel %vm12458_vm2, %v3937_v37, %v3941_v11  ;;  %v3952_v45 = vsel %vm12458_vm2, %v3947_v38, %v3951_v25  ;;  %v3957_v47 = vshll.u32 %v9919_v29, 16  ;;  %v3963_v48 = vshll.u32 %v9920_v35, 16  ;;  %v50_v37 = vld [vmem:[%s17997_s0 + $0xd8] sm:$0xf] }
  0x7f   :  { %v9990_v50 = vcombine.low %v3942_v44, %v3952_v45  ;;  %v465_v51 = vrot.slane %v464_v40, 4  ;;  %v474_v52 = vor.u32 %v473_v41, %v469_v39  ;;  %v479_v53 = vrot.slane %v477_v42, 5  ;;  %v51_v42 = vld [vmem:[%s17997_s0 + $0xdc] sm:$0xf] }
  0x80   :  { %v3956_v58 = vrot.slane %v3954_v43, 4  ;;  %v3959_v59 = vrot.slane %v3957_v47, 5  ;;  %v3965_v12 = vrot.slane %v3963_v48, 5  ;;  %v3967_v60 = vshrl.u32 %v9920_v35, 16 }
  0x81   :  { %11218 = vmatmul.mubr.msk.bf16.gmra.mrb[24].mxu0 %vm1002_vm3, %v9990_v50  ;;  %v470_v61 = vsel %vm12458_vm2, %v465_v51, %v469_v39  ;;  %v475_v62 = vrot.slane %v474_v52, 4  ;;  %v3973_v0 = vshll.u32 %v9921_v46, 16  ;;  %v482_v2 = vshrl.u32 %v48_v49, 16  ;;  %v102_v50 = vld [vmem:[%s17997_s0 + $0xe0] sm:$0x1] }
  0x82   :  { %v3960_v3 = vor.u32 %v3959_v59, %v3956_v58  ;;  %v3969_v4 = vrot.slane %v3967_v60, 4  ;;  %v485_v5 = vshll.u32 %v48_v49, 16  ;;  %v491_v6 = vshll.u32 %v49_v55, 16 }
  0x83   :  { %v480_v8 = vsel %vm12458_vm2, %v475_v62, %v479_v53  ;;  %v3975_v9 = vrot.slane %v3973_v0, 5  ;;  %v484_v10 = vrot.slane %v482_v2, 4  ;;  %v495_v11 = vshrl.u32 %v49_v55, 16  ;;  %v10043_v62 = vld [vmem:[%s17997_s0 + $0xc] sm:$0xe] }
  0x84   :  { %v9523_v15 = vcombine.low %v470_v61, %v480_v8  ;;  %v3961_v16 = vrot.slane %v3960_v3, 4  ;;  %v3970_v17 = vor.u32 %v3969_v4, %v3965_v12  ;;  %v487_v13 = vrot.slane %v485_v5, 5  ;;  %v52_v4 = vld [vmem:[%s17997_s0 + $0xe4] sm:$0xf] }
  0x85   :  { %v493_v19 = vrot.slane %v491_v6, 5  ;;  %v497_v22 = vrot.slane %v495_v11, 4  ;;  %v501_v23 = vshll.u32 %v101_v1, 16  ;;  %v3978_v25 = vshrl.u32 %v9922_v7, 16 }
  0x86   :  { %10949 = vmatprep.mubr.msk.bf16.mxu1 %vm1002_vm3, %v9523_v15  ;;  %v3966_v26 = vsel %vm12458_vm2, %v3961_v16, %v3965_v12  ;;  %v3971_v28 = vrot.slane %v3970_v17, 4  ;;  %v488_v29 = vor.u32 %v487_v13, %v484_v10  ;;  %v3981_v32 = vshll.u32 %v9922_v7, 16 }
  0x87   :  { %v498_v33 = vor.u32 %v497_v22, %v493_v19  ;;  %v503_v34 = vrot.slane %v501_v23, 5  ;;  %v3980_v35 = vrot.slane %v3978_v25, 4  ;;  %v3987_v36 = vshll.u32 %v9923_v14, 16 }
  0x88   :  { %v3976_v38 = vsel %vm12458_vm2, %v3971_v28, %v3975_v9  ;;  %v489_v39 = vrot.slane %v488_v29, 4  ;;  %v3983_v40 = vrot.slane %v3981_v32, 5  ;;  %v3991_v41 = vshrl.u32 %v9923_v14, 16  ;;  %v53_v14 = vld [vmem:[%s17997_s0 + $0xe8] sm:$0xf] }
  0x89   :  { %v9991_v43 = vcombine.low %v3966_v26, %v3976_v38  ;;  %v499_v44 = vrot.slane %v498_v33, 4  ;;  %v3989_v45 = vrot.slane %v3987_v36, 5  ;;  %v3997_v46 = vshll.u32 %v9924_v31, 16  ;;  %v103_v26 = vld [vmem:[%s17997_s0 + $0xec] sm:$0x1] }
  0x8a   :  { %v494_v47 = vsel %vm12458_vm2, %v489_v39, %v493_v19  ;;  %v3984_v48 = vor.u32 %v3983_v40, %v3980_v35  ;;  %v3993_v49 = vrot.slane %v3991_v41, 4  ;;  %v506_v51 = vshrl.u32 %v50_v37, 16  ;;  %v10044_v28 = vld [vmem:[%s17997_s0 + $0x18] sm:$0xe] }
  0x8b   :  { %11221 = vmatprep.mubr.msk.bf16.mxu0 %vm1002_vm3, %v9991_v43  ;;  %v504_v52 = vsel %vm12458_vm2, %v499_v44, %v503_v34  ;;  %v3999_v53 = vrot.slane %v3997_v46, 5  ;;  %v509_v55 = vshll.u32 %v50_v37, 16  ;;  %v515_v58 = vshll.u32 %v51_v42, 16  ;;  %v104_v43 = vld [vmem:[%s17997_s0 + $0xf8] sm:$0x1] }
  0x8c   :  { %v9524_v59 = vcombine.low %v494_v47, %v504_v52  ;;  %v3985_v12 = vrot.slane %v3984_v48, 4  ;;  %v3994_v60 = vor.u32 %v3993_v49, %v3989_v45  ;;  %v508_v61 = vrot.slane %v506_v51, 4 }
  0x8d   :  { %v511_v0 = vrot.slane %v509_v55, 5  ;;  %v517_v1 = vrot.slane %v515_v58, 5  ;;  %v519_v2 = vshrl.u32 %v51_v42, 16  ;;  %v525_v3 = vshll.u32 %v102_v50, 16  ;;  %v55_v42 = vld [vmem:[%s17997_s0 + $0xf4] sm:$0xf] }
  0x8e   :  { %10950 = vmatmul.mubr.msk.bf16.gmra.mrb[28].mxu1 %vm1002_vm3, %v9524_v59  ;;  %v3990_v5 = vsel %vm12458_vm2, %v3985_v12, %v3989_v45  ;;  %v3995_v6 = vrot.slane %v3994_v60, 4  ;;  %v10075_v11 = vrot.slane %v10043_v62, 9  ;;  %v5079_v16 = vrot.slane %v5077_v56, 4  ;;  %v12161_v12 = vld [vmem:[%s17997_s0 + $0x28] sm:$0xf] }
  0x8f   :  { %v512_v7 = vor.u32 %v511_v0, %v508_v61  ;;  %v521_v8 = vrot.slane %v519_v2, 4  ;;  %v527_v9 = vrot.slane %v525_v3, 5  ;;  %v530_v17 = vshrl.u32 %v52_v4, 16  ;;  %v12056_v61 = vld [vmem:[%s17996_s1 + $0x68] sm:$0xff]  }
  0x90   :  { %v4000_v15 = vsel %vm12458_vm2, %v3995_v6, %v3999_v53  ;;  %v533_v13 = vshll.u32 %v52_v4, 16  ;;  %v5078_v25 = vsel %vm12935_vm6, %v10075_v11, %v5077_v56  ;;  %v5081_v29 = vsel %vm12935_vm6, %v5079_v16, %v5080_v57  ;;  %v12162_v2 = vld [vmem:[%s17997_s0 + $0x2c] sm:$0x1]  ;;  %v57_v4 = vld [vmem:[%s17997_s0 + $0x100] sm:$0xf] }
  0x91   :  { %v9992_v19 = vcombine.low %v3990_v5, %v4000_v15  ;;  %v513_v22 = vrot.slane %v512_v7, 4  ;;  %v522_v23 = vor.u32 %v521_v8, %v517_v1  ;;  %v532_v31 = vrot.slane %v530_v17, 4 }
  0x92   :  { %v535_v32 = vrot.slane %v533_v13, 5  ;;  %v539_v33 = vshll.u32 %v53_v14, 16  ;;  %v10111_v35 = vcombine.low %v5078_v25, %v5081_v29  ;;  %v543_v36 = vshrl.u32 %v53_v14, 16  ;;  %v12163_v14 = vld [vmem:[%s17996_s1 + $0x60] sm:$0xff]   ;;  %v10046_v13 = vld [vmem:[%s17997_s0 + $0x30] sm:$0xe] }
  0x93   :  { %11222 = vmatmul.mubr.msk.bf16.gmra.mrb[28].mxu0 %vm1002_vm3, %v9992_v19  ;;  %v518_v56 = vsel %vm12458_vm2, %v513_v22, %v517_v1  ;;  %v523_v34 = vrot.slane %v522_v23, 4  ;;  %v549_v38 = vshll.u32 %v103_v26, 16  ;;  %v10076_v39 = vrot.slane %v10044_v28, 9 }
  0x94   :  { %v536_v37 = vor.u32 %v535_v32, %v532_v31  ;;  %v541_v21 = vrot.slane %v539_v33, 5  ;;  %11261 = vmatprep.mubr.msk.bf16.mxu0 %vm1002_vm3, %v10111_v35  ;;  %v545_v40 = vrot.slane %v543_v36, 4  ;;  %v5088_v41 = vsel %vm12935_vm6, %v12518_v30, %v5087_v24  ;;  %v10045_v24 = vld [vmem:[%s17997_s0 + $0x24] sm:$0xe] }
  0x95   :  { %v528_v57 = vsel %vm12458_vm2, %v523_v34, %v527_v9  ;;  %v554_v44 = vshrl.u32 %v54_v20, 16  ;;  %v551_v47 = vrot.slane %v549_v38, 5  ;;  %v5085_v63 = vsel %vm12935_vm6, %v10076_v39, %v5084_v18  ;;  %v105_v9 = vld [vmem:[%s17997_s0 + $0x104] sm:$0x1]  ;;  %v58_v34 = vld [vmem:[%s17997_s0 + $0x108] sm:$0xf] }
  0x96   :  { %v9525_v45 = vcombine.low %v518_v56, %v528_v57  ;;  %v537_v46 = vrot.slane %v536_v37, 4  ;;  %v546_v30 = vor.u32 %v545_v40, %v541_v21  ;;  %v10112_v48 = vcombine.low %v5085_v63, %v5088_v41  ;;  %v59_v39 = vld [vmem:[%s17997_s0 + $0x10c] sm:$0xf]  ;;  %v106_v57 = vld [vmem:[%s17997_s0 + $0x110] sm:$0x1] }
  0x97   :  { %v556_v49 = vrot.slane %v554_v44, 4  ;;  %v557_v50 = vshll.u32 %v54_v20, 16  ;;  %v563_v52 = vshll.u32 %v55_v42, 16  ;;  %v567_v53 = vshrl.u32 %v55_v42, 16 }
  0x98   :  { %10953 = vmatprep.mubr.msk.bf16.mxu1 %vm1002_vm3, %v9525_v45  ;;  %v542_v51 = vsel %vm12458_vm2, %v537_v46, %v541_v21  ;;  %v573_v55 = vshll.u32 %v104_v43, 16  ;;  %v547_v18 = vrot.slane %v546_v30, 4  ;;  %v10077_v59 = vrot.slane %v10045_v24, 9  ;;  %v12164_v21 = vld [vmem:[%s17997_s0 + $0x34] sm:$0xf] }
  0x99   :  { %v559_v58 = vrot.slane %v557_v50, 5  ;;  %v5091_v60 = vrot.slane %v12161_v12, 5  ;;  %v565_v62 = vrot.slane %v563_v52, 5  ;;  %v569_v0 = vrot.slane %v567_v53, 4  ;;  %v12165_v43 = vld [vmem:[%s17997_s0 + $0x38] sm:$0x1] }
  0x9a   :  { %v575_v1 = vrot.slane %v573_v55, 5  ;;  %v5094_v3 = vrot.slane %v12162_v2, 5  ;;  %v552_v5 = vsel %vm12458_vm2, %v547_v18, %v551_v47  ;;  %v578_v16 = vshrl.u32 %v56_v54, 16  ;;  %v10047_v45 = vld [vmem:[%s17997_s0 + $0x3c] sm:$0xe] }
  0x9b   :  { %11262 = vmatmul.mubr.msk.bf16.vlgmr.msra.gmra.mrb[0].mxu0 %vm1002_vm3, %v10112_v48  ;;  %v560_v6 = vor.u32 %v559_v58, %v556_v49  ;;  %v5092_v7 = vsel %vm12935_vm6, %v10077_v59, %v5091_v60  ;;  %v5093_v8 = vrot.slane %v5091_v60, 4  ;;  %v9526_v11 = vcombine.low %v542_v51, %v552_v5  ;;  %v60_v30 = vld [vmem:[%s17997_s0 + $0x114] sm:$0xf]  ;;  %v61_v52 = vld [vmem:[%s17997_s0 + $0x118] sm:$0xf] }
  0x9c   :  { %11326 = vmatpush3.bf16.msra.mxu0 %v12163_v14  ;;  %v570_v15 = vor.u32 %v569_v0, %v565_v62  ;;  %v581_v17 = vshll.u32 %v56_v54, 16  ;;  %v587_v23 = vshll.u32 %v57_v4, 16  ;;  %v591_v25 = vshrl.u32 %v57_v4, 16  ;;  %v12167_v5 = vld [vmem:[%s17997_s0 + $0x44] sm:$0x1] }
  0x9d   :  { %v561_v19 = vrot.slane %v560_v6, 4  ;;  %v5095_v22 = vsel %vm12935_vm6, %v5093_v8, %v5094_v3  ;;  %11327 = vmatprep.subr.bf16.mxu0 %v12056_v61  ;;  %10954 = vmatmul.mubr.msk.bf16.gmra.mrb[32].mxu1 %vm1002_vm3, %v9526_v11  ;;  %v580_v29 = vrot.slane %v578_v16, 4  ;;  %v597_v56 = vshll.u32 %v105_v9, 16  ;;  %v12166_v3 = vld [vmem:[%s17997_s0 + $0x40] sm:$0xf] }
  0x9e   :  { %v571_v26 = vrot.slane %v570_v15, 4  ;;  %v10113_v28 = vcombine.low %v5092_v7, %v5095_v22  ;;  %v583_v31 = vrot.slane %v581_v17, 5  ;;  %v589_v33 = vrot.slane %v587_v23, 5  ;;  %v107_v7 = vld [vmem:[%s17997_s0 + $0x11c] sm:$0x1] }
  0x9f   :  { %v566_v32 = vsel %vm12458_vm2, %v561_v19, %v565_v62  ;;  %v593_v20 = vrot.slane %v591_v25, 4  ;;  %v10078_v37 = vrot.slane %v10046_v13, 9  ;;  %v5098_v38 = vrot.slane %v12164_v21, 5  ;;  %v10048_v16 = vld [vmem:[%s17997_s0 + $0x48] sm:$0xe] }
  0xa0   :  { %v576_v35 = vsel %vm12458_vm2, %v571_v26, %v575_v1  ;;  %11265 = vmatprep.mubr.msk.bf16.mxu0 %vm1002_vm3, %v10113_v28  ;;  %v584_v36 = vor.u32 %v583_v31, %v580_v29  ;;  %11328 = vmatpush3.bf16.msra.mxu0 %v12056_v61  ;;  %v599_v42 = vrot.slane %v597_v56, 5  ;;  %v5101_v44 = vrot.slane %v12165_v43, 5  ;;  %v63_v56 = vld [vmem:[%s17997_s0 + $0x124] sm:$0xf]  ;;  %v10049_v43 = vld [vmem:[%s17997_s0 + $0x54] sm:$0xe] }
  0xa1   :  { %v9527_v40 = vcombine.low %v566_v32, %v576_v35  ;;  %v594_v41 = vor.u32 %v593_v20, %v589_v33  ;;  %v5099_v47 = vsel %vm12935_vm6, %v10078_v37, %v5098_v38  ;;  %v5100_v63 = vrot.slane %v5098_v38, 4  ;;  %v62_v20 = vld [vmem:[%s17997_s0 + $0x120] sm:$0xf] }
  0xa2   :  { %v585_v46 = vrot.slane %v584_v36, 4  ;;  %v602_v24 = vshrl.u32 %v58_v34, 16  ;;  %v605_v49 = vshll.u32 %v58_v34, 16  ;;  %v611_v50 = vshll.u32 %v59_v39, 16 }
  0xa3   :  { %10957 = vmatprep.mubr.msk.bf16.mxu1 %vm1002_vm3, %v9527_v40  ;;  %v595_v48 = vrot.slane %v594_v41, 4  ;;  %v615_v51 = vshrl.u32 %v59_v39, 16  ;;  %v5102_v55 = vsel %vm12935_vm6, %v5100_v63, %v5101_v44  ;;  %v621_v18 = vshll.u32 %v106_v57, 16  ;;  %v12168_v39 = vld [vmem:[%s17997_s0 + $0x4c] sm:$0xf] }
  0xa4   :  { %v590_v53 = vsel %vm12458_vm2, %v585_v46, %v589_v33  ;;  %v604_v54 = vrot.slane %v602_v24, 4  ;;  %v10114_v59 = vcombine.low %v5099_v47, %v5102_v55  ;;  %v607_v12 = vrot.slane %v605_v49, 5  ;;  %v12169_v40 = vld [vmem:[%s17997_s0 + $0x50] sm:$0x1]  ;;  %v64_v63 = vld [vmem:[%s17997_s0 + $0x12c] sm:$0xf] }
  0xa5   :  { %v600_v58 = vsel %vm12458_vm2, %v595_v48, %v599_v42  ;;  %v613_v60 = vrot.slane %v611_v50, 5  ;;  %v617_v62 = vrot.slane %v615_v51, 4  ;;  %v623_v0 = vrot.slane %v621_v18, 5  ;;  %v108_v42 = vld [vmem:[%s17997_s0 + $0x128] sm:$0x1] }
  0xa6   :  { %v9528_v61 = vcombine.low %v590_v53, %v600_v58  ;;  %v10079_v1 = vrot.slane %v10047_v45, 9  ;;  %11266 = vmatmul.mubr.msk.bf16.gmra.mrb[4].mxu0 %vm1002_vm3, %v10114_v59  ;;  %v608_v2 = vor.u32 %v607_v12, %v604_v54  ;;  %v5105_v4 = vrot.slane %v12166_v3, 5  ;;  %v65_v55 = vld [vmem:[%s17997_s0 + $0x130] sm:$0xf] }
  0xa7   :  { %v5108_v6 = vrot.slane %v12167_v5, 5  ;;  %v626_v8 = vshrl.u32 %v60_v30, 16  ;;  %v618_v9 = vor.u32 %v617_v62, %v613_v60  ;;  %v629_v11 = vshll.u32 %v60_v30, 16  ;;  %v12075_v12 = vld [vmem:[%s17996_s1 + $0x70] sm:$0xff]  }
  0xa8   :  { %10958 = vmatmul.mubr.msk.bf16.gmra.mrb[36].mxu1 %vm1002_vm3, %v9528_v61  ;;  %v635_v14 = vshll.u32 %v61_v52, 16  ;;  %v639_v15 = vshrl.u32 %v61_v52, 16  ;;  %v609_v17 = vrot.slane %v608_v2, 4  ;;  %v5106_v13 = vsel %vm12935_vm6, %v10079_v1, %v5105_v4  ;;  %v109_v1 = vld [vmem:[%s17997_s0 + $0x134] sm:$0x1]  ;;  %11393 = vmatprep.subr.bf16.mxu0 %v12075_v12 }
  0xa9   :  { %v5107_v19 = vrot.slane %v5105_v4, 4  ;;  %v628_v22 = vrot.slane %v626_v8, 4  ;;  %v619_v23 = vrot.slane %v618_v9, 4  ;;  %v631_v25 = vrot.slane %v629_v11, 5  ;;  %v10050_v2 = vld [vmem:[%s17997_s0 + $0x60] sm:$0xe] }
  0xaa   :  { %v637_v26 = vrot.slane %v635_v14, 5  ;;  %v641_v28 = vrot.slane %v639_v15, 4  ;;  %v614_v29 = vsel %vm12458_vm2, %v609_v17, %v613_v60  ;;  %v645_v32 = vshll.u32 %v107_v7, 16  ;;  %v12170_v4 = vld [vmem:[%s17997_s0 + $0x58] sm:$0xf] }
  0xab   :  { %v5109_v31 = vsel %vm12935_vm6, %v5107_v19, %v5108_v6  ;;  %v10080_v33 = vrot.slane %v10048_v16, 9  ;;  %v624_v34 = vsel %vm12458_vm2, %v619_v23, %v623_v0  ;;  %v632_v36 = vor.u32 %v631_v25, %v628_v22  ;;  %v12171_v6 = vld [vmem:[%s17997_s0 + $0x5c] sm:$0x1]  ;;  %v66_v16 = vld [vmem:[%s17997_s0 + $0x138] sm:$0xf] }
  0xac   :  { %v10115_v35 = vcombine.low %v5106_v13, %v5109_v31  ;;  %v642_v37 = vor.u32 %v641_v28, %v637_v26  ;;  %v9529_v21 = vcombine.low %v614_v29, %v624_v34  ;;  %v647_v38 = vrot.slane %v645_v32, 5  ;;  %v67_v23 = vld [vmem:[%s17997_s0 + $0x13c] sm:$0xf] }
  0xad   :  { %v5112_v57 = vrot.slane %v12168_v39, 5  ;;  %v5115_v41 = vrot.slane %v12169_v40, 5  ;;  %v633_v44 = vrot.slane %v632_v36, 4  ;;  %v650_v46 = vshrl.u32 %v62_v20, 16 }
  0xae   :  { %11269 = vmatprep.mubr.msk.bf16.mxu0 %vm1002_vm3, %v10115_v35  ;;  %v643_v45 = vrot.slane %v642_v37, 4  ;;  %v653_v47 = vshll.u32 %v62_v20, 16  ;;  %10961 = vmatprep.mubr.msk.bf16.mxu1 %vm1002_vm3, %v9529_v21  ;;  %v659_v48 = vshll.u32 %v63_v56, 16  ;;  %v663_v49 = vshrl.u32 %v63_v56, 16  ;;  %v110_v37 = vld [vmem:[%s17997_s0 + $0x140] sm:$0x1] }
  0xaf   :  { %v5113_v24 = vsel %vm12935_vm6, %v10080_v33, %v5112_v57  ;;  %v5114_v30 = vrot.slane %v5112_v57, 4  ;;  %v638_v50 = vsel %vm12458_vm2, %v633_v44, %v637_v26  ;;  %v652_v52 = vrot.slane %v650_v46, 4  ;;  %v12173_v57 = vld [vmem:[%s17997_s0 + $0x68] sm:$0x1] }
  0xb0   :  { %v648_v51 = vsel %vm12458_vm2, %v643_v45, %v647_v38  ;;  %v655_v53 = vrot.slane %v653_v47, 5  ;;  %v661_v58 = vrot.slane %v659_v48, 5  ;;  %v665_v59 = vrot.slane %v663_v49, 4  ;;  %v12172_v38 = vld [vmem:[%s17997_s0 + $0x64] sm:$0xf] }
  0xb1   :  { %v9530_v54 = vcombine.low %v638_v50, %v648_v51  ;;  %v5116_v18 = vsel %vm12935_vm6, %v5114_v30, %v5115_v41  ;;  %v669_v62 = vshll.u32 %v108_v42, 16  ;;  %v10081_v0 = vrot.slane %v10049_v43, 9  ;;  %v10051_v42 = vld [vmem:[%s17997_s0 + $0x6c] sm:$0xe]  ;;  %v68_v48 = vld [vmem:[%s17997_s0 + $0x144] sm:$0xf] }
  0xb2   :  { %v10116_v60 = vcombine.low %v5113_v24, %v5116_v18  ;;  %v656_v61 = vor.u32 %v655_v53, %v652_v52  ;;  %v666_v3 = vor.u32 %v665_v59, %v661_v58  ;;  %v5119_v5 = vrot.slane %v12170_v4, 5  ;;  %v69_v53 = vld [vmem:[%s17997_s0 + $0x148] sm:$0xf]  ;;  %v111_v59 = vld [vmem:[%s17997_s0 + $0x14c] sm:$0x1] }
  0xb3   :  { %10962 = vmatmul.mubr.msk.bf16.gmra.mrb[40].mxu1 %vm1002_vm3, %v9530_v54  ;;  %v5122_v7 = vrot.slane %v12171_v6, 5  ;;  %v674_v8 = vshrl.u32 %v64_v63, 16  ;;  %v671_v11 = vrot.slane %v669_v62, 5  ;;  %v677_v14 = vshll.u32 %v64_v63, 16  ;;  %v12174_v62 = vld [vmem:[%s17997_s0 + $0x70] sm:$0xf] }
  0xb4   :  { %11270 = vmatmul.mubr.msk.bf16.gmra.mrb[8].mxu0 %vm1002_vm3, %v10116_v60  ;;  %v657_v9 = vrot.slane %v656_v61, 4  ;;  %v683_v15 = vshll.u32 %v65_v55, 16  ;;  %v667_v17 = vrot.slane %v666_v3, 4  ;;  %v5120_v13 = vsel %vm12935_vm6, %v10081_v0, %v5119_v5  ;;  %v12175_v4 = vld [vmem:[%s17997_s0 + $0x74] sm:$0x1] }
  0xb5   :  { %v5121_v19 = vrot.slane %v5119_v5, 4  ;;  %v676_v22 = vrot.slane %v674_v8, 4  ;;  %v679_v26 = vrot.slane %v677_v14, 5  ;;  %v687_v29 = vshrl.u32 %v65_v55, 16  ;;  %v10052_v6 = vld [vmem:[%s17997_s0 + $0x78] sm:$0xe] }
  0xb6   :  { %v662_v25 = vsel %vm12458_vm2, %v657_v9, %v661_v58  ;;  %v685_v28 = vrot.slane %v683_v15, 5  ;;  %v672_v31 = vsel %vm12458_vm2, %v667_v17, %v671_v11  ;;  %v693_v33 = vshll.u32 %v109_v1, 16  ;;  %v70_v14 = vld [vmem:[%s17997_s0 + $0x150] sm:$0xf] }
  0xb7   :  { %v5123_v32 = vsel %vm12935_vm6, %v5121_v19, %v5122_v7  ;;  %v10082_v20 = vrot.slane %v10050_v2, 9  ;;  %v9531_v56 = vcombine.low %v662_v25, %v672_v31  ;;  %v680_v35 = vor.u32 %v679_v26, %v676_v22  ;;  %v71_v19 = vld [vmem:[%s17997_s0 + $0x154] sm:$0xf] }
  0xb8   :  { %v10117_v34 = vcombine.low %v5120_v13, %v5123_v32  ;;  %v689_v36 = vrot.slane %v687_v29, 4  ;;  %v695_v21 = vrot.slane %v693_v33, 5  ;;  %v5126_v39 = vrot.slane %v12172_v38, 5 }
  0xb9   :  { %v5129_v40 = vrot.slane %v12173_v57, 5  ;;  %v698_v41 = vshrl.u32 %v66_v16, 16  ;;  %10965 = vmatprep.mubr.msk.bf16.mxu1 %vm1002_vm3, %v9531_v56  ;;  %v681_v43 = vrot.slane %v680_v35, 4  ;;  %v701_v45 = vshll.u32 %v66_v16, 16  ;;  %v112_v35 = vld [vmem:[%s17997_s0 + $0x158] sm:$0x1] }
  0xba   :  { %11273 = vmatprep.mubr.msk.bf16.mxu0 %vm1002_vm3, %v10117_v34  ;;  %v690_v44 = vor.u32 %v689_v36, %v685_v28  ;;  %v707_v46 = vshll.u32 %v67_v23, 16  ;;  %v5127_v47 = vsel %vm12935_vm6, %v10082_v20, %v5126_v39  ;;  %v5128_v63 = vrot.slane %v5126_v39, 4  ;;  %v10053_v36 = vld [vmem:[%s17997_s0 + $0x84] sm:$0xe]  ;;  %v12177_v39 = vld [vmem:[%s17997_s0 + $0x80] sm:$0x1] }
  0xbb   :  { %v700_v24 = vrot.slane %v698_v41, 4  ;;  %v711_v30 = vshrl.u32 %v67_v23, 16  ;;  %v686_v49 = vsel %vm12458_vm2, %v681_v43, %v685_v28  ;;  %v703_v51 = vrot.slane %v701_v45, 5 }
  0xbc   :  { %v691_v50 = vrot.slane %v690_v44, 4  ;;  %v709_v52 = vrot.slane %v707_v46, 5  ;;  %v5130_v55 = vsel %vm12935_vm6, %v5128_v63, %v5129_v40  ;;  %v717_v18 = vshll.u32 %v110_v37, 16 }
  0xbd   :  { %v713_v54 = vrot.slane %v711_v30, 4  ;;  %v10083_v58 = vrot.slane %v10051_v42, 9  ;;  %v10118_v60 = vcombine.low %v5127_v47, %v5130_v55  ;;  %v704_v61 = vor.u32 %v703_v51, %v700_v24  ;;  %v72_v24 = vld [vmem:[%s17997_s0 + $0x15c] sm:$0xf]  ;;  %v73_v51 = vld [vmem:[%s17997_s0 + $0x160] sm:$0xf] }
  0xbe   :  { %v696_v12 = vsel %vm12458_vm2, %v691_v50, %v695_v21  ;;  %v5133_v0 = vrot.slane %v12174_v62, 5  ;;  %v719_v3 = vrot.slane %v717_v18, 5  ;;  %v5136_v5 = vrot.slane %v12175_v4, 5  ;;  %v12176_v21 = vld [vmem:[%s17997_s0 + $0x7c] sm:$0xf] }
  0xbf   :  { %v9532_v1 = vcombine.low %v686_v49, %v696_v12  ;;  %v714_v2 = vor.u32 %v713_v54, %v709_v52  ;;  %11274 = vmatmul.mubr.msk.bf16.gmra.mrb[12].mxu0 %vm1002_vm3, %v10118_v60  ;;  %v705_v7 = vrot.slane %v704_v61, 4  ;;  %v722_v11 = vshrl.u32 %v68_v48, 16  ;;  %v12178_v62 = vld [vmem:[%s17997_s0 + $0x88] sm:$0xf]  ;;  %v10054_v4 = vld [vmem:[%s17997_s0 + $0x90] sm:$0xe] }
  0xc0   :  { %v5134_v8 = vsel %vm12935_vm6, %v10083_v58, %v5133_v0  ;;  %v5135_v9 = vrot.slane %v5133_v0, 4  ;;  %v725_v16 = vshll.u32 %v68_v48, 16  ;;  %v731_v17 = vshll.u32 %v69_v53, 16 }
  0xc1   :  { %10966 = vmatmul.mubr.msk.bf16.gmra.mrb[44].mxu1 %vm1002_vm3, %v9532_v1  ;;  %v715_v15 = vrot.slane %v714_v2, 4  ;;  %v735_v13 = vshrl.u32 %v69_v53, 16  ;;  %v710_v22 = vsel %vm12458_vm2, %v705_v7, %v709_v52  ;;  %v724_v25 = vrot.slane %v722_v11, 4  ;;  %v12179_v1 = vld [vmem:[%s17997_s0 + $0x8c] sm:$0x1] }
  0xc2   :  { %v5137_v23 = vsel %vm12935_vm6, %v5135_v9, %v5136_v5  ;;  %v741_v26 = vshll.u32 %v111_v59, 16  ;;  %v727_v31 = vrot.slane %v725_v16, 5  ;;  %v733_v32 = vrot.slane %v731_v17, 5  ;;  %v74_v9 = vld [vmem:[%s17997_s0 + $0x168] sm:$0xf] }
  0xc3   :  { %v720_v28 = vsel %vm12458_vm2, %v715_v15, %v719_v3  ;;  %v10119_v29 = vcombine.low %v5134_v8, %v5137_v23  ;;  %v737_v20 = vrot.slane %v735_v13, 4  ;;  %v10084_v34 = vrot.slane %v10052_v6, 9  ;;  %v113_v3 = vld [vmem:[%s17997_s0 + $0x164] sm:$0x1]  ;;  %v75_v23 = vld [vmem:[%s17997_s0 + $0x16c] sm:$0xf] }
  0xc4   :  { %v9533_v33 = vcombine.low %v710_v22, %v720_v28  ;;  %v743_v56 = vrot.slane %v741_v26, 5  ;;  %v728_v37 = vor.u32 %v727_v31, %v724_v25  ;;  %v5140_v38 = vrot.slane %v12176_v21, 5  ;;  %v12181_v21 = vld [vmem:[%s17997_s0 + $0x98] sm:$0x1] }
  0xc5   :  { %11277 = vmatprep.mubr.msk.bf16.mxu0 %vm1002_vm3, %v10119_v29  ;;  %v5143_v57 = vrot.slane %v12177_v39, 5  ;;  %v746_v40 = vshrl.u32 %v70_v14, 16  ;;  %v738_v41 = vor.u32 %v737_v20, %v733_v32  ;;  %v749_v42 = vshll.u32 %v70_v14, 16 }
  0xc6   :  { %10969 = vmatprep.mubr.msk.bf16.mxu1 %vm1002_vm3, %v9533_v33  ;;  %v755_v43 = vshll.u32 %v71_v19, 16  ;;  %v759_v44 = vshrl.u32 %v71_v19, 16  ;;  %v729_v45 = vrot.slane %v728_v37, 4  ;;  %v5141_v46 = vsel %vm12935_vm6, %v10084_v34, %v5140_v38  ;;  %v10055_v34 = vld [vmem:[%s17997_s0 + $0x9c] sm:$0xe] }
  0xc7   :  { %v5142_v47 = vrot.slane %v5140_v38, 4  ;;  %v748_v63 = vrot.slane %v746_v40, 4  ;;  %v739_v30 = vrot.slane %v738_v41, 4  ;;  %v751_v48 = vrot.slane %v749_v42, 5 }
  0xc8   :  { %v757_v49 = vrot.slane %v755_v43, 5  ;;  %v761_v50 = vrot.slane %v759_v44, 4  ;;  %v734_v52 = vsel %vm12458_vm2, %v729_v45, %v733_v32  ;;  %v765_v55 = vshll.u32 %v112_v35, 16  ;;  %v13276_v43 = vld [vmem:[%s17997_s0 + $0x174] sm:$0xf] }
  0xc9   :  { %v5144_v53 = vsel %vm12935_vm6, %v5142_v47, %v5143_v57  ;;  %v10085_v54 = vrot.slane %v10053_v36, 9  ;;  %v744_v18 = vsel %vm12458_vm2, %v739_v30, %v743_v56  ;;  %v752_v59 = vor.u32 %v751_v48, %v748_v63  ;;  %v114_v56 = vld [vmem:[%s17997_s0 + $0x170] sm:$0x1]  ;;  %v12180_v36 = vld [vmem:[%s17997_s0 + $0x94] sm:$0xf] }
  0xca   :  { %v10120_v58 = vcombine.low %v5141_v46, %v5144_v53  ;;  %v762_v12 = vor.u32 %v761_v50, %v757_v49  ;;  %v9534_v60 = vcombine.low %v734_v52, %v744_v18  ;;  %v767_v61 = vrot.slane %v765_v55, 5  ;;  %v13283_v63 = vld [vmem:[%s17997_s0 + $0x178] sm:$0xf] }
  0xcb   :  { %v5147_v0 = vrot.slane %v12178_v62, 5  ;;  %v5150_v2 = vrot.slane %v12179_v1, 5  ;;  %v753_v5 = vrot.slane %v752_v59, 4  ;;  %v770_v7 = vshrl.u32 %v72_v24, 16  ;;  %v115_v59 = vld [vmem:[%s17997_s0 + $0x17c] sm:$0x1] }
  0xcc   :  { %11278 = vmatmul.mubr.msk.bf16.gmra.mrb[16].mxu0 %vm1002_vm3, %v10120_v58  ;;  %v763_v6 = vrot.slane %v762_v12, 4  ;;  %v773_v8 = vshll.u32 %v72_v24, 16  ;;  %10970 = vmatmul.mubr.msk.bf16.gmra.mrb[48].mxu1 %vm1002_vm3, %v9534_v60  ;;  %v779_v15 = vshll.u32 %v73_v51, 16  ;;  %v783_v16 = vshrl.u32 %v73_v51, 16  ;;  %v10056_v12 = vld [vmem:[%s17997_s0 + $0xa8] sm:$0xe] }
  0xcd   :  { %v5148_v11 = vsel %vm12935_vm6, %v10085_v54, %v5147_v0  ;;  %v5149_v14 = vrot.slane %v5147_v0, 4  ;;  %v758_v17 = vsel %vm12458_vm2, %v753_v5, %v757_v49  ;;  %v772_v19 = vrot.slane %v770_v7, 4  ;;  %v12183_v0 = vld [vmem:[%s17997_s0 + $0xa4] sm:$0x1] }
  0xce   :  { %v768_v13 = vsel %vm12458_vm2, %v763_v6, %v767_v61  ;;  %v775_v22 = vrot.slane %v773_v8, 5  ;;  %v781_v28 = vrot.slane %v779_v15, 5  ;;  %v785_v29 = vrot.slane %v783_v16, 4  ;;  %v12182_v61 = vld [vmem:[%s17997_s0 + $0xa0] sm:$0xf] }
  0xcf   :  { %v9535_v25 = vcombine.low %v758_v17, %v768_v13  ;;  %v5151_v26 = vsel %vm12935_vm6, %v5149_v14, %v5150_v2  ;;  %v789_v33 = vshll.u32 %v113_v3, 16  ;;  %v10086_v20 = vrot.slane %v10054_v4, 9  ;;  %v13314_v14 = vld [vmem:[%s17997_s0 + $0x180] sm:$0xf] }
  0xd0   :  { %v10121_v31 = vcombine.low %v5148_v11, %v5151_v26  ;;  %v776_v32 = vor.u32 %v775_v22, %v772_v19  ;;  %v786_v35 = vor.u32 %v785_v29, %v781_v28  ;;  %v5154_v37 = vrot.slane %v12180_v36, 5  ;;  %v13321_v19 = vld [vmem:[%s17997_s0 + $0x184] sm:$0xf]  ;;  %v12185_v36 = vld [vmem:[%s17997_s0 + $0xb0] sm:$0x1] }
  0xd1   :  { %10973 = vmatprep.mubr.msk.bf16.mxu1 %vm1002_vm3, %v9535_v25  ;;  %v5157_v38 = vrot.slane %v12181_v21, 5  ;;  %v794_v39 = vshrl.u32 %v74_v9, 16  ;;  %v791_v40 = vrot.slane %v789_v33, 5  ;;  %v797_v41 = vshll.u32 %v74_v9, 16  ;;  %v12184_v33 = vld [vmem:[%s17997_s0 + $0xac] sm:$0xf] }
  0xd2   :  { %11281 = vmatprep.mubr.msk.bf16.mxu0 %vm1002_vm3, %v10121_v31  ;;  %v777_v57 = vrot.slane %v776_v32, 4  ;;  %v803_v42 = vshll.u32 %v75_v23, 16  ;;  %v787_v44 = vrot.slane %v786_v35, 4  ;;  %v5155_v45 = vsel %vm12935_vm6, %v10086_v20, %v5154_v37  ;;  %v10057_v21 = vld [vmem:[%s17997_s0 + $0xb4] sm:$0xe] }
  0xd3   :  { %v5156_v46 = vrot.slane %v5154_v37, 4  ;;  %v796_v47 = vrot.slane %v794_v39, 4  ;;  %v799_v30 = vrot.slane %v797_v41, 5  ;;  %v807_v49 = vshrl.u32 %v75_v23, 16  ;;  %v13346_v41 = vld [vmem:[%s17997_s0 + $0x18c] sm:$0xf] }
  0xd4   :  { %v782_v24 = vsel %vm12458_vm2, %v777_v57, %v781_v28  ;;  %v805_v48 = vrot.slane %v803_v42, 5  ;;  %v792_v50 = vsel %vm12458_vm2, %v787_v44, %v791_v40  ;;  %v813_v52 = vshll.u32 %v114_v56, 16  ;;  %v116_v28 = vld [vmem:[%s17997_s0 + $0x188] sm:$0x1] }
  0xd5   :  { %v5158_v51 = vsel %vm12935_vm6, %v5156_v46, %v5157_v38  ;;  %v10087_v53 = vrot.slane %v10055_v34, 9  ;;  %v9536_v55 = vcombine.low %v782_v24, %v792_v50  ;;  %v800_v18 = vor.u32 %v799_v30, %v796_v47 }
  0xd6   :  { %v10122_v54 = vcombine.low %v5155_v45, %v5158_v51  ;;  %v809_v58 = vrot.slane %v807_v49, 4  ;;  %v815_v60 = vrot.slane %v813_v52, 5  ;;  %v5161_v62 = vrot.slane %v12182_v61, 5  ;;  %v13359_v49 = vld [vmem:[%s17997_s0 + $0x190] sm:$0xf] }
  0xd7   :  { %v5164_v1 = vrot.slane %v12183_v0, 5  ;;  %v818_v2 = vshrl.u32 %v13276_v43, 16  ;;  %10974 = vmatmul.mubr.msk.bf16.gmra.mrb[52].mxu1 %vm1002_vm3, %v9536_v55  ;;  %v801_v3 = vrot.slane %v800_v18, 4  ;;  %v821_v5 = vshll.u32 %v13276_v43, 16  ;;  %v12186_v61 = vld [vmem:[%s17997_s0 + $0xb8] sm:$0xf] }
  0xd8   :  { %11282 = vmatmul.mubr.msk.bf16.gmra.mrb[20].mxu0 %vm1002_vm3, %v10122_v54  ;;  %v810_v4 = vor.u32 %v809_v58, %v805_v48  ;;  %v827_v6 = vshll.u32 %v13283_v63, 16  ;;  %v5162_v7 = vsel %vm12935_vm6, %v10087_v53, %v5161_v62  ;;  %v5163_v8 = vrot.slane %v5161_v62, 4  ;;  %v12187_v0 = vld [vmem:[%s17997_s0 + $0xbc] sm:$0x1] }
  0xd9   :  { %v820_v9 = vrot.slane %v818_v2, 4  ;;  %v831_v11 = vshrl.u32 %v13283_v63, 16  ;;  %v806_v15 = vsel %vm12458_vm2, %v801_v3, %v805_v48  ;;  %v823_v17 = vrot.slane %v821_v5, 5 }
  0xda   :  { %v811_v16 = vrot.slane %v810_v4, 4  ;;  %v829_v13 = vrot.slane %v827_v6, 5  ;;  %v5165_v22 = vsel %vm12935_vm6, %v5163_v8, %v5164_v1  ;;  %v837_v25 = vshll.u32 %v115_v59, 16  ;;  %v117_v59 = vld [vmem:[%s17997_s0 + $0x194] sm:$0x1] }
  0xdb   :  { %v833_v23 = vrot.slane %v831_v11, 4  ;;  %v10088_v26 = vrot.slane %v10056_v12, 9  ;;  %v10123_v31 = vcombine.low %v5162_v7, %v5165_v22  ;;  %v824_v32 = vor.u32 %v823_v17, %v820_v9  ;;  %v10058_v12 = vld [vmem:[%s17997_s0 + $0xc0] sm:$0xe]  ;;  %v9926_v22 = vld [vmem:[%s17997_s0 + $0xe8] sm:$0xf] }
  0xdc   :  { %v816_v29 = vsel %vm12458_vm2, %v811_v16, %v815_v60  ;;  %v5168_v20 = vrot.slane %v12184_v33, 5  ;;  %v839_v35 = vrot.slane %v837_v25, 5  ;;  %v5171_v37 = vrot.slane %v12185_v36, 5  ;;  %v12188_v36 = vld [vmem:[%s17997_s0 + $0xc4] sm:$0xf] }
  0xdd   :  { %v9537_v56 = vcombine.low %v806_v15, %v816_v29  ;;  %v834_v34 = vor.u32 %v833_v23, %v829_v13  ;;  %11285 = vmatprep.mubr.msk.bf16.mxu0 %vm1002_vm3, %v10123_v31  ;;  %v825_v38 = vrot.slane %v824_v32, 4  ;;  %v842_v40 = vshrl.u32 %v13314_v14, 16  ;;  %v10059_v23 = vld [vmem:[%s17997_s0 + $0xe4] sm:$0xe] }
  0xde   :  { %v5169_v39 = vsel %vm12935_vm6, %v10088_v26, %v5168_v20  ;;  %v5170_v57 = vrot.slane %v5168_v20, 4  ;;  %v845_v44 = vshll.u32 %v13314_v14, 16  ;;  %v851_v45 = vshll.u32 %v13321_v19, 16 }
  0xdf   :  { %10977 = vmatprep.mubr.msk.bf16.mxu1 %vm1002_vm3, %v9537_v56  ;;  %v835_v42 = vrot.slane %v834_v34, 4  ;;  %v855_v46 = vshrl.u32 %v13321_v19, 16  ;;  %v830_v47 = vsel %vm12458_vm2, %v825_v38, %v829_v13  ;;  %v844_v30 = vrot.slane %v842_v40, 4  ;;  %v9927_v56 = vld [vmem:[%s17997_s0 + $0xec] sm:$0x1] }
  0xe0   :  { %v5172_v24 = vsel %vm12935_vm6, %v5170_v57, %v5171_v37  ;;  %v861_v48 = vshll.u32 %v116_v28, 16  ;;  %v847_v52 = vrot.slane %v845_v44, 5  ;;  %v853_v53 = vrot.slane %v851_v45, 5  ;;  %v13413_v44 = vld [vmem:[%s17997_s0 + $0xf8] sm:$0x1] }
  0xe1   :  { %v840_v50 = vsel %vm12458_vm2, %v835_v42, %v839_v35  ;;  %v10124_v51 = vcombine.low %v5169_v39, %v5172_v24  ;;  %v857_v54 = vrot.slane %v855_v46, 4  ;;  %v10089_v58 = vrot.slane %v10057_v21, 9  ;;  %v12189_v21 = vld [vmem:[%s17997_s0 + $0xc8] sm:$0x1]  ;;  %v13408_v42 = vld [vmem:[%s17997_s0 + $0xf4] sm:$0xf] }
  0xe2   :  { %v9538_v55 = vcombine.low %v830_v47, %v840_v50  ;;  %v863_v18 = vrot.slane %v861_v48, 5  ;;  %v848_v60 = vor.u32 %v847_v52, %v844_v30  ;;  %v5175_v62 = vrot.slane %v12186_v61, 5  ;;  %18037 = vst [vmem:[#allocation2_spill] sm:$0xff] %v13413_v44  ;;  %v10060_v45 = vld [vmem:[%s17997_s0 + $0xf0] sm:$0xe] }
  0xe3   :  { %11286 = vmatmul.mubr.msk.bf16.gmra.mrb[24].mxu0 %vm1002_vm3, %v10124_v51  ;;  %v5178_v1 = vrot.slane %v12187_v0, 5  ;;  %v866_v2 = vshrl.u32 %v13346_v41, 16  ;;  %v858_v3 = vor.u32 %v857_v54, %v853_v53  ;;  %v869_v4 = vshll.u32 %v13346_v41, 16  ;;  %v12190_v51 = vld [vmem:[%s17997_s0] sm:$0xf] }
  0xe4   :  { %10978 = vmatmul.mubr.msk.bf16.gmra.mrb[56].mxu1 %vm1002_vm3, %v9538_v55  ;;  %v875_v5 = vshll.u32 %v13359_v49, 16  ;;  %v879_v6 = vshrl.u32 %v13359_v49, 16  ;;  %v849_v7 = vrot.slane %v848_v60, 4  ;;  %v5176_v8 = vsel %vm12935_vm6, %v10089_v58, %v5175_v62  ;;  %v13431_v52 = vld [vmem:[%s17997_s0 + $0x4] sm:$0xf] }
  0xe5   :  { %v5177_v9 = vrot.slane %v5175_v62, 4  ;;  %v868_v11 = vrot.slane %v866_v2, 4  ;;  %v859_v15 = vrot.slane %v858_v3, 4  ;;  %v871_v16 = vrot.slane %v869_v4, 5  ;;  %v9932_v55 = vld [vmem:[%s17997_s0 + $0x100] sm:$0xf] }
  0xe6   :  { %v877_v17 = vrot.slane %v875_v5, 5  ;;  %v881_v13 = vrot.slane %v879_v6, 4  ;;  %v854_v25 = vsel %vm12458_vm2, %v849_v7, %v853_v53  ;;  %v885_v28 = vshll.u32 %v117_v59, 16  ;;  %v9933_v60 = vld [vmem:[%s17997_s0 + $0x104] sm:$0x1] }
  0xe7   :  { %v5179_v26 = vsel %vm12935_vm6, %v5177_v9, %v5178_v1  ;;  %v10090_v29 = vrot.slane %v10058_v12, 9  ;;  %v864_v31 = vsel %vm12458_vm2, %v859_v15, %v863_v18  ;;  %v872_v33 = vor.u32 %v871_v16, %v868_v11  ;;  %v10061_v61 = vld [vmem:[%s17997_s0 + $0xfc] sm:$0xe]  ;;  %v9935_v4 = vld [vmem:[%s17997_s0 + $0x10c] sm:$0xf] }
  0xe8   :  { %v10125_v32 = vcombine.low %v5176_v8, %v5179_v26  ;;  %v882_v20 = vor.u32 %v881_v13, %v877_v17  ;;  %v9539_v34 = vcombine.low %v854_v25, %v864_v31  ;;  %v887_v35 = vrot.slane %v885_v28, 5  ;;  %v9936_v5 = vld [vmem:[%s17997_s0 + $0x110] sm:$0x1]  ;;  %v10062_v6 = vld [vmem:[%s17997_s0 + $0x108] sm:$0xe] }
  0xe9   :  { %v5182_v37 = vrot.slane %v12188_v36, 5  ;;  %v5185_v38 = vrot.slane %v12189_v21, 5  ;;  %v873_v39 = vrot.slane %v872_v33, 4  ;;  %v10091_v40 = vrot.slane %v10059_v23, 9  ;;  %v9938_v15 = vld [vmem:[%s17997_s0 + $0x118] sm:$0xf] }
  0xea   :  { %11289 = vmatprep.mubr.msk.bf16.mxu0 %vm1002_vm3, %v10125_v32  ;;  %v883_v57 = vrot.slane %v882_v20, 4  ;;  %10981 = vmatprep.mubr.msk.bf16.mxu1 %vm1002_vm3, %v9539_v34  ;;  %v5189_v24 = vrot.slane %v9926_v22, 5  ;;  %v5192_v30 = vrot.slane %v9927_v56, 5  ;;  %v9575_v53 = vcombine.low %v12190_v51, %v13431_v52  ;;  %v9939_v16 = vld [vmem:[%s17997_s0 + $0x11c] sm:$0x1] }
  0xeb   :  { %v5183_v46 = vsel %vm12935_vm6, %v10090_v29, %v5182_v37  ;;  %v5184_v47 = vrot.slane %v5182_v37, 4  ;;  %v878_v48 = vsel %vm12458_vm2, %v873_v39, %v877_v17  ;;  %v10092_v0 = vrot.slane %v10060_v45, 9  ;;  %v10063_v17 = vld [vmem:[%s17997_s0 + $0x114] sm:$0xe]  ;;  %v12192_v13 = vld [vmem:[%s17997_s0 + $0xc] sm:$0xf] }
  0xec   :  { %v888_v50 = vsel %vm12458_vm2, %v883_v57, %v887_v35  ;;  %v5190_v58 = vsel %vm12935_vm6, %v10091_v40, %v5189_v24  ;;  %v5191_v59 = vrot.slane %v5189_v24, 4  ;;  %v5196_v1 = vrot.slane %v13408_v42, 5  ;;  %v13481_v22 = vld [vmem:[%s17997_s0 + $0x10] sm:$0xf]  ;;  %v9941_v20 = vld [vmem:[%s17997_s0 + $0x124] sm:$0xf] }
  0xed   :  { %v9540_v54 = vcombine.low %v878_v48, %v888_v50  ;;  %v5186_v18 = vsel %vm12935_vm6, %v5184_v47, %v5185_v38  ;;  %v5199_v2 = vrot.slane %v13413_v44, 5  ;;  %v10093_v9 = vrot.slane %v10061_v61, 9  ;;  %v12194_v56 = vld [vmem:[%s17997_s0 + $0x18] sm:$0xf]  ;;  %v13497_v34 = vld [vmem:[%s17997_s0 + $0x1c] sm:$0xf] }
  0xee   :  { %v10126_v12 = vcombine.low %v5183_v46, %v5186_v18  ;;  %v5193_v62 = vsel %vm12935_vm6, %v5191_v59, %v5192_v30  ;;  %v5197_v7 = vsel %vm12935_vm6, %v10092_v0, %v5196_v1  ;;  %v5198_v8 = vrot.slane %v5196_v1, 4  ;;  %v12073_v45 = vld [vmem:[%s17996_s1 + $0x28] sm:$0xff]   ;;  %v9944_v46 = vld [vmem:[%s17997_s0 + $0x130] sm:$0xf]  ;;  %v12196_v47 = vld [vmem:[%s17996_s1 + $0x20] sm:$0xff]  }
  0xef   :  { %10982 = vmatmul.mubr.msk.bf16.gmra.mrb[60].mxu1 %vm1002_vm3, %v9540_v54  ;;  %v10127_v3 = vcombine.low %v5190_v58, %v5193_v62  ;;  %v5203_v11 = vrot.slane %v9932_v55, 5  ;;  %v9576_v23 = vcombine.low %v12192_v13, %v13481_v22  ;;  %v5206_v25 = vrot.slane %v9933_v60, 5  ;;  %v9942_v30 = vld [vmem:[%s17997_s0 + $0x128] sm:$0x1]  ;;  %v10064_v51 = vld [vmem:[%s17997_s0 + $0x120] sm:$0xe] }
  0xf0   :  { %11290 = vmatmul.mubr.msk.bf16.gmra.mrb[28].mxu0 %vm1002_vm3, %v10126_v12  ;;  %10989 = vmatprep.mubr.msk.bf16.mxu1 %vm1002_vm3, %v9575_v53  ;;  %v5200_v26 = vsel %vm12935_vm6, %v5198_v8, %v5199_v2  ;;  %v5210_v31 = vrot.slane %v9935_v4, 5  ;;  %v10094_v33 = vrot.slane %v10062_v6, 9  ;;  %v9577_v35 = vcombine.low %v12194_v56, %v13497_v34  ;;  %v10065_v55 = vld [vmem:[%s17997_s0 + $0x12c] sm:$0xe]  ;;  %v13531_v54 = vld [vmem:[%s17996_s1 + $0x30] sm:$0xff]  }
  0xf1   :  { %11293 = vmatprep.mubr.msk.bf16.mxu0 %vm1002_vm3, %v10127_v3  ;;  %v5204_v28 = vsel %vm12935_vm6, %v10093_v9, %v5203_v11  ;;  %v5205_v29 = vrot.slane %v5203_v11, 4  ;;  %v10128_v32 = vcombine.low %v5197_v7, %v5200_v26  ;;  %v5213_v21 = vrot.slane %v9936_v5, 5  ;;  %v12197_v12 = vld [vmem:[%s17997_s0 + $0x24] sm:$0xf]  ;;  %v13543_v60 = vld [vmem:[%s17997_s0 + $0x28] sm:$0xf] }
  0xf2   :  { %v5212_v37 = vrot.slane %v5210_v31, 4  ;;  %v10095_v39 = vrot.slane %v10063_v17, 9  ;;  %v5217_v57 = vrot.slane %v9938_v15, 5  ;;  %v5220_v40 = vrot.slane %v9939_v16, 5  ;;  %v9945_v62 = vld [vmem:[%s17997_s0 + $0x134] sm:$0x1] }
  0xf3   :  { %v5207_v36 = vsel %vm12935_vm6, %v5205_v29, %v5206_v25  ;;  %v5211_v48 = vsel %vm12935_vm6, %v10094_v33, %v5210_v31  ;;  %v5224_v53 = vrot.slane %v9941_v20, 5  ;;  %v5231_v59 = vrot.slane %v9944_v46, 5  ;;  %v12199_v1 = vld [vmem:[%s17997_s0 + $0x30] sm:$0xf]  ;;  %v13555_v2 = vld [vmem:[%s17997_s0 + $0x34] sm:$0xf] }
  0xf4   :  { %v10129_v38 = vcombine.low %v5204_v28, %v5207_v36  ;;  %v5219_v24 = vrot.slane %v5217_v57, 4  ;;  %v5214_v50 = vsel %vm12935_vm6, %v5212_v37, %v5213_v21  ;;  %v5218_v18 = vsel %vm12935_vm6, %v10095_v39, %v5217_v57  ;;  %v9947_v5 = vld [vmem:[%s17997_s0 + $0x13c] sm:$0xf]  ;;  %v9950_v16 = vld [vmem:[%s17997_s0 + $0x148] sm:$0xf] }
  0xf5   :  { %v9578_v61 = vcombine.low %v12197_v12, %v13543_v60  ;;  %v10130_v0 = vcombine.low %v5211_v48, %v5214_v50  ;;  %v9579_v3 = vcombine.low %v12199_v1, %v13555_v2  ;;  %v10096_v4 = vrot.slane %v10064_v51, 9  ;;  %v9948_v17 = vld [vmem:[%s17997_s0 + $0x140] sm:$0x1]  ;;  %v10066_v25 = vld [vmem:[%s17997_s0 + $0x138] sm:$0xe]  ;;  %v12110_v44 = vld [vmem:[%s17997_s0 + $0x108] sm:$0xff]  }
  0xf6   :  { %v5221_v58 = vsel %vm12935_vm6, %v5219_v24, %v5220_v40  ;;  %v5226_v7 = vrot.slane %v5224_v53, 4  ;;  %v5227_v8 = vrot.slane %v9942_v30, 5  ;;  %v10097_v9 = vrot.slane %v10065_v55, 9  ;;  %v13589_v33 = vld [vmem:[%s17997_s0 + $0x40] sm:$0xf] }
  0xf7   :  { %10990 = vmatmul.mubr.msk.bf16.vlgmr.msra.gmra.mrb[0].mxu1 %vm1002_vm3, %v9576_v23  ;;  %v10131_v6 = vcombine.low %v5218_v18, %v5221_v58  ;;  %v5233_v11 = vrot.slane %v5231_v59, 4  ;;  %v5234_v15 = vrot.slane %v9945_v62, 5  ;;  %v5225_v13 = vsel %vm12935_vm6, %v10096_v4, %v5224_v53  ;;  %v9951_v56 = vld [vmem:[%s17997_s0 + $0x14c] sm:$0x1]  ;;  %v12203_v37 = vld [vmem:[%s17997_s0 + $0x48] sm:$0xf] }
  0xf8   :  { %11054 = vmatpush3.bf16.msra.mxu1 %v12196_v47  ;;  %11294 = vmatmul.mubr.msk.bf16.gmra.mrb[32].mxu0 %vm1002_vm3, %v10128_v32  ;;  %v5228_v23 = vsel %vm12935_vm6, %v5226_v7, %v5227_v8  ;;  %v5238_v26 = vrot.slane %v9947_v5, 5  ;;  %v5232_v28 = vsel %vm12935_vm6, %v10097_v9, %v5231_v59  ;;  %v5245_v31 = vrot.slane %v9950_v16, 5  ;;  %v12201_v32 = vld [vmem:[%s17997_s0 + $0x3c] sm:$0xf]  ;;  %v13604_v21 = vld [vmem:[%s17997_s0 + $0x4c] sm:$0xf] }
  0xf9   :  { %10993 = vmatprep.mubr.msk.bf16.mxu1 %vm1002_vm3, %v9577_v35  ;;  %11297 = vmatprep.mubr.msk.bf16.mxu0 %vm1002_vm3, %v10129_v38  ;;  %v5235_v29 = vsel %vm12935_vm6, %v5233_v11, %v5234_v15  ;;  %v9580_v20 = vcombine.low %v12201_v32, %v13589_v33  ;;  %v10067_v35 = vld [vmem:[%s17997_s0 + $0x144] sm:$0xe]  ;;  %v10132_v36 = vcombine.low %v5225_v13, %v5228_v23  ;;  %v9953_v39 = vld [vmem:[%s17997_s0 + $0x154] sm:$0xf]  ;;  %v10098_v40 = vrot.slane %v10066_v25, 9 }
  0xfa   :  { %11055 = vmatprep.subr.bf16.mxu1 %v12073_v45  ;;  %v9581_v38 = vcombine.low %v12203_v37, %v13604_v21  ;;  %v10133_v57 = vcombine.low %v5232_v28, %v5235_v29  ;;  %v5241_v46 = vrot.slane %v9948_v17, 5  ;;  %v10099_v47 = vrot.slane %v10067_v35, 9  ;;  %v9956_v48 = vld [vmem:[%s17997_s0 + $0x160] sm:$0xf]  ;;  %v9954_v50 = vld [vmem:[%s17997_s0 + $0x158] sm:$0x1] }
  0xfb   :  { %v5247_v24 = vrot.slane %v5245_v31, 4  ;;  %v5248_v30 = vrot.slane %v9951_v56, 5  ;;  %v5239_v51 = vsel %vm12935_vm6, %v10098_v40, %v5238_v26  ;;  %v10068_v55 = vld [vmem:[%s17997_s0 + $0x150] sm:$0xe]  ;;  %v5252_v18 = vrot.slane %v9953_v39, 5 }
  0xfc   :  { %11056 = vmatpush3.bf16.msra.mxu1 %v12073_v45  ;;  %v5240_v45 = vrot.slane %v5238_v26, 4  ;;  %v10069_v58 = vld [vmem:[%s17997_s0 + $0x15c] sm:$0xe]  ;;  %v5246_v59 = vsel %vm12935_vm6, %v10099_v47, %v5245_v31  ;;  %v12205_v62 = vld [vmem:[%s17997_s0 + $0x54] sm:$0xf]  ;;  %v10100_v8 = vrot.slane %v10068_v55, 9 }
  0xfd   :  { %11121 = vmatprep.subr.bf16.mxu1 %v13531_v54  ;;  %v5249_v12 = vsel %vm12935_vm6, %v5247_v24, %v5248_v30  ;;  %v12207_v5 = vld [vmem:[%s17997_s0 + $0x60] sm:$0xf]  ;;  %v5255_v9 = vrot.slane %v9954_v50, 5  ;;  %v9959_v11 = vld [vmem:[%s17997_s0 + $0x16c] sm:$0xf]  ;;  %v5254_v16 = vrot.slane %v5252_v18, 4 }
  0xfe   :  { %v5242_v53 = vsel %vm12935_vm6, %v5240_v45, %v5241_v46  ;;  %v10135_v15 = vcombine.low %v5246_v59, %v5249_v12  ;;  %v10101_v17 = vrot.slane %v10069_v58, 9  ;;  %v9962_v13 = vld [vmem:[%s17997_s0 + $0x178] sm:$0xf]  ;;  %v5253_v26 = vsel %vm12935_vm6, %v10100_v8, %v5252_v18  ;;  %v10070_v56 = vld [vmem:[%s17997_s0 + $0x168] sm:$0xe] }
  0xff   :  { %10994 = vmatmul.mubr.msk.bf16.gmra.mrb[4].mxu1 %vm1002_vm3, %v9578_v61  ;;  %v5259_v61 = vrot.slane %v9956_v48, 5  ;;  %v10134_v4 = vcombine.low %v5239_v51, %v5242_v53  ;;  %v5256_v28 = vsel %vm12935_vm6, %v5254_v16, %v5255_v9  ;;  %v5266_v29 = vrot.slane %v9959_v11, 5  ;;  %v13685_v37 = vld [vmem:[%s17997_s0 + $0x70] sm:$0xf]  ;;  %v9963_v39 = vld [vmem:[%s17997_s0 + $0x17c] sm:$0x1] }
 0x100   :  { %11298 = vmatmul.mubr.msk.bf16.gmra.mrb[36].mxu0 %vm1002_vm3, %v10130_v0  ;;  %10997 = vmatprep.mubr.msk.bf16.mxu1 %vm1002_vm3, %v9579_v3  ;;  %v13640_v0 = vld [vmem:[%s17997_s0 + $0x58] sm:$0xf]  ;;  %v9957_v3 = vld [vmem:[%s17997_s0 + $0x164] sm:$0x1]  ;;  %v5273_v35 = vrot.slane %v9962_v13, 5  ;;  %v10136_v40 = vcombine.low %v5253_v26, %v5256_v28  ;;  %v10102_v30 = vrot.slane %v10070_v56, 9 }
 0x101   :  { %11301 = vmatprep.mubr.msk.bf16.mxu0 %vm1002_vm3, %v10131_v6  ;;  %v9582_v1 = vcombine.low %v12205_v62, %v13640_v0  ;;  %v13652_v6 = vld [vmem:[%s17997_s0 + $0x64] sm:$0xf]  ;;  %v5261_v23 = vrot.slane %v5259_v61, 4  ;;  %v5262_v25 = vrot.slane %v9957_v3, 5  ;;  %v5260_v31 = vsel %vm12935_vm6, %v10101_v17, %v5259_v61  ;;  %v12211_v45 = vld [vmem:[%s17997_s0 + $0x78] sm:$0xf] }
 0x102   :  { %v9583_v7 = vcombine.low %v12207_v5, %v13652_v6  ;;  %v13700_v46 = vld [vmem:[%s17997_s0 + $0x7c] sm:$0xf]  ;;  %v5268_v48 = vrot.slane %v5266_v29, 4  ;;  %v5275_v53 = vrot.slane %v5273_v35, 4  ;;  %v5276_v55 = vrot.slane %v9963_v39, 5 }
 0x103   :  { %v5263_v32 = vsel %vm12935_vm6, %v5261_v23, %v5262_v25  ;;  %v9585_v47 = vcombine.low %v12211_v45, %v13700_v46  ;;  %v9965_v18 = vld [vmem:[%s17997_s0 + $0x184] sm:$0xf]  ;;  %v9968_v58 = vld [vmem:[%s17997_s0 + $0x190] sm:$0xf]  ;;  %v5267_v59 = vsel %vm12935_vm6, %v10102_v30, %v5266_v29  ;;  %v9966_v3 = vld [vmem:[%s17997_s0 + $0x188] sm:$0x1] }
 0x104   :  { %v10137_v24 = vcombine.low %v5260_v31, %v5263_v32  ;;  %v5280_v61 = vrot.slane %v9965_v18, 5  ;;  %v5287_v5 = vrot.slane %v9968_v58, 5  ;;  %v13733_v8 = vld [vmem:[%s17997_s0 + $0x88] sm:$0xf]  ;;  %v9969_v11 = vld [vmem:[%s17997_s0 + $0x194] sm:$0x1] }
 0x105   :  { %v12215_v17 = vld [vmem:[%s17997_s0 + $0x90] sm:$0xf]  ;;  %v13748_v13 = vld [vmem:[%s17997_s0 + $0x94] sm:$0xf]  ;;  %v5283_v29 = vrot.slane %v9966_v3, 5 }
 0x106   :  { %v9587_v23 = vcombine.low %v12215_v17, %v13748_v13  ;;  %v5282_v28 = vrot.slane %v5280_v61, 4  ;;  %v5289_v32 = vrot.slane %v5287_v5, 4  ;;  %v9971_v56 = vld [vmem:[%s17997_s0 + $0x19c] sm:$0xf]  ;;  %v10074_v45 = vld [vmem:[%s17997_s0 + $0x198] sm:$0xe] }
 0x107   :  { %10998 = vmatmul.mubr.msk.bf16.gmra.mrb[8].mxu1 %vm1002_vm3, %v9580_v20  ;;  %v9960_v20 = vld [vmem:[%s17997_s0 + $0x170] sm:$0x1]  ;;  %v10106_v18 = vrot.slane %v10074_v45, 9  ;;  %v12083_v45 = vld [vmem:[%s17997_s0 + $0x48] sm:$0xff]  }
 0x108   :  { %11302 = vmatmul.mubr.msk.bf16.gmra.mrb[40].mxu0 %vm1002_vm3, %v10132_v36  ;;  %11001 = vmatprep.mubr.msk.bf16.mxu1 %vm1002_vm3, %v9581_v38  ;;  %v12209_v36 = vld [vmem:[%s17997_s0 + $0x6c] sm:$0xf]  ;;  %v5269_v50 = vrot.slane %v9960_v20, 5  ;;  %v5290_v20 = vrot.slane %v9969_v11, 5  ;;  %v12074_v11 = vld [vmem:[%s17997_s0 + $0x18] sm:$0xff]  }
 0x109   :  { %11305 = vmatprep.mubr.msk.bf16.mxu0 %vm1002_vm3, %v10133_v57  ;;  %v9584_v38 = vcombine.low %v12209_v36, %v13685_v37  ;;  %v10071_v57 = vld [vmem:[%s17997_s0 + $0x174] sm:$0xe]  ;;  %v5284_v36 = vsel %vm12935_vm6, %v5282_v28, %v5283_v29 }
 0x10a   :  { %v10103_v51 = vrot.slane %v10071_v57, 9  ;;  %v5270_v12 = vsel %vm12935_vm6, %v5268_v48, %v5269_v50  ;;  %v5291_v57 = vsel %vm12935_vm6, %v5289_v32, %v5290_v20  ;;  %v12219_v50 = vld [vmem:[%s17997_s0 + $0xa8] sm:$0xf]  ;;  %v12079_v29 = vld [vmem:[%s17997_s0 + $0x30] sm:$0xff]   ;;  %v12125_v20 = vld [vmem:[%s17996_s1 + $0x80] sm:$0xff]  }
 0x10b   :  { %v10138_v16 = vcombine.low %v5267_v59, %v5270_v12  ;;  %v12229_v32 = vld [vmem:[%s17996_s1 + $0x70] sm:$0xff]  }
 0x10c   :  { %v5274_v62 = vsel %vm12935_vm6, %v10103_v51, %v5273_v35  ;;  %v13787_v51 = vld [vmem:[%s17997_s0 + $0xac] sm:$0xf] }
 0x10f   :  { %11002 = vmatmul.mubr.msk.bf16.gmra.mrb[12].mxu1 %vm1002_vm3, %v9582_v1  ;;  %v5277_v1 = vsel %vm12935_vm6, %v5275_v53, %v5276_v55  ;;  %v9589_v53 = vcombine.low %v12219_v50, %v13787_v51  ;;  %v12085_v50 = vld [vmem:[%s17997_s0 + $0x54] sm:$0xff]  }
 0x110   :  { %11306 = vmatmul.mubr.msk.bf16.gmra.mrb[44].mxu0 %vm1002_vm3, %v10134_v4  ;;  %11005 = vmatprep.mubr.msk.bf16.mxu1 %vm1002_vm3, %v9583_v7  ;;  %v10072_v4 = vld [vmem:[%s17997_s0 + $0x180] sm:$0xe]  ;;  %v12213_v7 = vld [vmem:[%s17997_s0 + $0x84] sm:$0xf]  ;;  %v10139_v25 = vcombine.low %v5274_v62, %v5277_v1  ;;  %v12221_v62 = vld [vmem:[%s17997_s0 + $0xb4] sm:$0xf] }
 0x111   :  { %11309 = vmatprep.mubr.msk.bf16.mxu0 %vm1002_vm3, %v10135_v15  ;;  %v9586_v9 = vcombine.low %v12213_v7, %v13733_v8  ;;  %v10073_v15 = vld [vmem:[%s17997_s0 + $0x18c] sm:$0xe]  ;;  %v10104_v26 = vrot.slane %v10072_v4, 9  ;;  %v13804_v1 = vld [vmem:[%s17997_s0 + $0xb8] sm:$0xf] }
 0x112   :  { %v10105_v31 = vrot.slane %v10073_v15, 9  ;;  %v9590_v3 = vcombine.low %v12221_v62, %v13804_v1  ;;  %v13813_v7 = vld [vmem:[%s17997_s0 + $0xdc] sm:$0xf]  ;;  %v12225_v15 = vld [vmem:[%s17997_s0 + $0xe4] sm:$0xf]  ;;  %v12089_v62 = vld [vmem:[%s17997_s0 + $0x6c] sm:$0xff]  }
 0x113   :  { %v5281_v35 = vsel %vm12935_vm6, %v10104_v26, %v5280_v61  ;;  %v13841_v26 = vld [vmem:[%s17997_s0 + $0xf4] sm:$0xf] }
 0x114   :  { %v5288_v39 = vsel %vm12935_vm6, %v10105_v31, %v5287_v5  ;;  %v10140_v48 = vcombine.low %v5281_v35, %v5284_v36  ;;  %v12223_v5 = vld [vmem:[%s17997_s0 + $0xd8] sm:$0xf]  ;;  %v13866_v35 = vld [vmem:[%s17997_s0 + $0x100] sm:$0xf] }
 0x115   :  { %v10141_v55 = vcombine.low %v5288_v39, %v5291_v57  ;;  %v12108_v31 = vld [vmem:[%s17996_s1 + $0x78] sm:$0xff]   ;;  %v12232_v39 = vld [vmem:[%s17997_s0 + $0x108] sm:$0xf]  ;;  %v13878_v57 = vld [vmem:[%s17997_s0 + $0x10c] sm:$0xf] }
 0x117   :  { %11006 = vmatmul.mubr.msk.bf16.gmra.mrb[16].mxu1 %vm1002_vm3, %v9584_v38  ;;  %v5294_v38 = vrot.slane %v9971_v56, 5  ;;  %v12230_v56 = vld [vmem:[%s17997_s0 + $0xfc] sm:$0xf] }
 0x118   :  { %11310 = vmatmul.mubr.msk.bf16.gmra.mrb[48].mxu0 %vm1002_vm3, %v10136_v40  ;;  %11009 = vmatprep.mubr.msk.bf16.mxu1 %vm1002_vm3, %v9585_v47  ;;  %v9972_v40 = vld [vmem:[%s17997_s0 + $0x1a0] sm:$0x1]  ;;  %v12217_v47 = vld [vmem:[%s17997_s0 + $0x9c] sm:$0xf]  ;;  %v9594_v36 = vcombine.low %v12230_v56, %v13866_v35  ;;  %v2053_v56 = vrot.slane %v13481_v22, 5 }
 0x119   :  { %11313 = vmatprep.mubr.msk.bf16.mxu0 %vm1002_vm3, %v10137_v24  ;;  %v13778_v24 = vld [vmem:[%s17997_s0 + $0xa0] sm:$0xf]  ;;  %v5296_v58 = vrot.slane %v5294_v38, 4  ;;  %v5297_v59 = vrot.slane %v9972_v40, 5  ;;  %v5295_v12 = vsel %vm12935_vm6, %v10106_v18, %v5294_v38  ;;  %v9595_v40 = vcombine.low %v12232_v39, %v13878_v57  ;;  %v1946_v39 = vld [vmem:[%s17997_s0 + $0xc] sm:$0xe] }
 0x11a   :  { %v9588_v30 = vcombine.low %v12217_v47, %v13778_v24  ;;  %v12081_v38 = vld [vmem:[%s17997_s0 + $0x3c] sm:$0xff]   ;;  %v12234_v47 = vld [vmem:[%s17997_s0 + $0x114] sm:$0xf] }
 0x11b   :  { %v5298_v61 = vsel %vm12935_vm6, %v5296_v58, %v5297_v59  ;;  %v12087_v58 = vld [vmem:[%s17997_s0 + $0x60] sm:$0xff]   ;;  %v12238_v59 = vld [vmem:[%s17997_s0 + $0x12c] sm:$0xf] }
 0x11c   :  { %v10142_v4 = vcombine.low %v5295_v12, %v5298_v61  ;;  %v13922_v12 = vld [vmem:[%s17997_s0 + $0x130] sm:$0xf] }
 0x11d   :  { %v9598_v61 = vcombine.low %v12238_v59, %v13922_v12 }
 0x11f   :  { %11010 = vmatmul.mubr.msk.bf16.gmra.mrb[20].mxu1 %vm1002_vm3, %v9586_v9  ;;  %v9591_v9 = vcombine.low %v12223_v5, %v13813_v7 }
 0x120   :  { %11314 = vmatmul.mubr.msk.bf16.gmra.mrb[52].mxu0 %vm1002_vm3, %v10138_v16  ;;  %11013 = vmatprep.mubr.msk.bf16.mxu1 %vm1002_vm3, %v9587_v23  ;;  %v13829_v16 = vld [vmem:[%s17997_s0 + $0xe8] sm:$0xf] }
 0x121   :  { %11317 = vmatprep.mubr.msk.bf16.mxu0 %vm1002_vm3, %v10139_v25  ;;  %v9592_v17 = vcombine.low %v12225_v15, %v13829_v16  ;;  %v12077_v23 = vld [vmem:[%s17997_s0 + $0x24] sm:$0xff]   ;;  %v12227_v25 = vld [vmem:[%s17997_s0 + $0xf0] sm:$0xf] }
 0x122   :  { %v9593_v28 = vcombine.low %v12227_v25, %v13841_v26  ;;  %v13950_v15 = vld [vmem:[%s17997_s0 + $0x148] sm:$0xf]  ;;  %v12244_v25 = vld [vmem:[%s17997_s0 + $0x150] sm:$0xf] }
 0x123   :  { %18038 = vst [vmem:[#allocation3_spill] sm:$0xff] %v13950_v15 }
 0x127   :  { %11014 = vmatmul.mubr.msk.bf16.gmra.mrb[24].mxu1 %vm1002_vm3, %v9588_v30  ;;  %v13894_v30 = vld [vmem:[%s17997_s0 + $0x118] sm:$0xf] }
 0x128   :  { %11318 = vmatmul.mubr.msk.bf16.gmra.mrb[56].mxu0 %vm1002_vm3, %v10140_v48  ;;  %11017 = vmatprep.mubr.msk.bf16.mxu1 %vm1002_vm3, %v9589_v53  ;;  %v9596_v48 = vcombine.low %v12234_v47, %v13894_v30  ;;  %v12236_v53 = vld [vmem:[%s17997_s0 + $0x120] sm:$0xf] }
 0x129   :  { %11321 = vmatprep.mubr.msk.bf16.mxu0 %vm1002_vm3, %v10141_v55  ;;  %v13906_v55 = vld [vmem:[%s17997_s0 + $0x124] sm:$0xf] }
 0x12a   :  { %v9597_v18 = vcombine.low %v12236_v53, %v13906_v55  ;;  %v1947_v53 = vld [vmem:[%s17997_s0 + $0x18] sm:$0xe] }
 0x12f   :  { %11018 = vmatmul.mubr.msk.bf16.gmra.mrb[28].mxu1 %vm1002_vm3, %v9590_v3  ;;  %v12240_v3 = vld [vmem:[%s17997_s0 + $0x138] sm:$0xf] }
 0x130   :  { %11322 = vmatmul.mubr.msk.bf16.gmra.mrb[60].mxu0 %vm1002_vm3, %v10142_v4  ;;  %11021 = vmatprep.mubr.msk.bf16.mxu1 %vm1002_vm3, %v9591_v9  ;;  %v13934_v4 = vld [vmem:[%s17997_s0 + $0x13c] sm:$0xf] }
 0x131   :  { %11329 = vmatprep.mubr.msk.bf16.mxu0 %vm1002_vm3, %v12074_v11  ;;  %v9599_v5 = vcombine.low %v12240_v3, %v13934_v4  ;;  %v12091_v9 = vld [vmem:[%s17997_s0 + $0x78] sm:$0xff]   ;;  %v12242_v11 = vld [vmem:[%s17997_s0 + $0x144] sm:$0xf] }
 0x132   :  { %v12097_v3 = vld [vmem:[%s17997_s0 + $0x9c] sm:$0xff]  }
 0x137   :  { %11022 = vmatmul.mubr.msk.bf16.gmra.mrb[32].mxu1 %vm1002_vm3, %v9592_v17  ;;  %v9600_v17 = vcombine.low %v12242_v11, %v13950_v15 }
 0x138   :  { %11330 = vmatmul.mubr.msk.bf16.vlgmr.msra.gmra.mrb[0].mxu0 %vm1002_vm3, %v12077_v23  ;;  %11025 = vmatprep.mubr.msk.bf16.mxu1 %vm1002_vm3, %v9593_v28  ;;  %v12093_v23 = vld [vmem:[%s17997_s0 + $0x84] sm:$0xff]   ;;  %v13962_v28 = vld [vmem:[%s17997_s0 + $0x154] sm:$0xf] }
 0x139   :  { %11394 = vmatpush3.bf16.msra.mxu0 %v12229_v32  ;;  %11333 = vmatprep.mubr.msk.bf16.mxu0 %vm1002_vm3, %v12079_v29  ;;  %18039 = vst [vmem:[#allocation4_spill] sm:$0xff] %v13962_v28  ;;  %v9601_v29 = vcombine.low %v12244_v25, %v13962_v28  ;;  %v4035_v32 = vshll.u32 %v13408_v42, 16 }
 0x13a   :  { %11395 = vmatprep.subr.bf16.mxu0 %v12108_v31 }
 0x13b   :  { %v13989_v47 = vrot.slane %v4035_v32, 5  ;;  %v1948_v32 = vld [vmem:[%s17997_s0 + $0x24] sm:$0xe] }
 0x13d   :  { %11396 = vmatpush3.bf16.msra.mxu0 %v12108_v31  ;;  %v12095_v31 = vld [vmem:[%s17997_s0 + $0x90] sm:$0xff]   ;;  %18040 = vst [vmem:[#allocation5_spill] sm:$0xff] %v13989_v47  ;;  %v12109_v47 = vld [vmem:[%s17997_s0 + $0xfc] sm:$0xff]  }
 0x13e   :  { %11461 = vmatprep.subr.bf16.mxu0 %v12125_v20  ;;  %v4039_v20 = vshrl.u32 %v13408_v42, 16  ;;  %v12246_v42 = vld [vmem:[%s17997_s0 + $0x8] sm:$0x1] }
 0x13f   :  { %11026 = vmatmul.mubr.msk.bf16.gmra.mrb[36].mxu1 %vm1002_vm3, %v9594_v36  ;;  %v1945_v36 = vld [vmem:[%s17997_s0] sm:$0xe]  ;;  %v2049_v22 = vrot.slane %v12246_v42, 5 }
 0x140   :  { %11334 = vmatmul.mubr.msk.bf16.gmra.mrb[4].mxu0 %vm1002_vm3, %v12081_v38  ;;  %11029 = vmatprep.mubr.msk.bf16.mxu1 %vm1002_vm3, %v9595_v40  ;;  %v2046_v38 = vrot.slane %v13431_v52, 5  ;;  %v2060_v40 = vrot.slane %v13497_v34, 5  ;;  %v12247_v52 = vld [vmem:[%s17997_s0 + $0x14] sm:$0x1]  ;;  %v14002_v34 = vld [vmem:[%s17997_s0 + $0x160] sm:$0xf] }
 0x141   :  { %11337 = vmatprep.mubr.msk.bf16.mxu0 %vm1002_vm3, %v12083_v45  ;;  %v2056_v45 = vrot.slane %v12247_v52, 5  ;;  %18042 = vst [vmem:[#allocation7_spill] sm:$0xff] %v14002_v34 }
 0x142   :  { %v2048_v59 = vrot.slane %v2046_v38, 4  ;;  %v2062_v25 = vrot.slane %v2060_v40, 4 }
 0x144   :  { %v14034_v52 = vsel %vm12935_vm6, %v2048_v59, %v2049_v22  ;;  %v9604_v22 = vcombine.low %v13276_v43, %v13283_v63  ;;  %v12253_v43 = vld [vmem:[%s17997_s0 + $0x2c] sm:$0x1] }
 0x145   :  { %v2070_v63 = vrot.slane %v12253_v43, 5  ;;  %v12255_v43 = vld [vmem:[%s17997_s0 + $0x44] sm:$0x1] }
 0x147   :  { %11030 = vmatmul.mubr.msk.bf16.gmra.mrb[40].mxu1 %vm1002_vm3, %v9596_v48  ;;  %v13991_v48 = vrot.slane %v4039_v20, 4  ;;  %v2067_v20 = vrot.slane %v13543_v60, 5 }
 0x148   :  { %11338 = vmatmul.mubr.msk.bf16.gmra.mrb[8].mxu0 %vm1002_vm3, %v12085_v50  ;;  %11033 = vmatprep.mubr.msk.bf16.mxu1 %vm1002_vm3, %v9597_v18  ;;  %v9641_v50 = vrot.slane %v1945_v36, 9  ;;  %v12248_v18 = vld [vmem:[%s17997_s0 + $0x15c] sm:$0xf] }
 0x149   :  { %11341 = vmatprep.mubr.msk.bf16.mxu0 %vm1002_vm3, %v12087_v58  ;;  %18041 = vst [vmem:[#allocation6_spill] sm:$0xff] %v13991_v48  ;;  %v9602_v58 = vcombine.low %v12248_v18, %v14002_v34  ;;  %v1949_v18 = vld [vmem:[%s17997_s0 + $0x30] sm:$0xe]  ;;  %v2069_v59 = vrot.slane %v2067_v20, 4  ;;  %v12267_v34 = vld [vmem:[%s17996_s1 + $0x40] sm:$0xff]  }
 0x14a   :  { %v14029_v42 = vsel %vm12935_vm6, %v9641_v50, %v2046_v38  ;;  %v2074_v38 = vrot.slane %v13555_v2, 5  ;;  %v9644_v50 = vrot.slane %v1948_v32, 9 }
 0x14f   :  { %11034 = vmatmul.mubr.msk.bf16.gmra.mrb[44].mxu1 %vm1002_vm3, %v9598_v61  ;;  %v9642_v61 = vrot.slane %v1946_v39, 9 }
 0x150   :  { %11342 = vmatmul.mubr.msk.bf16.gmra.mrb[12].mxu0 %vm1002_vm3, %v12089_v62  ;;  %11037 = vmatprep.mubr.msk.bf16.mxu1 %vm1002_vm3, %v9599_v5  ;;  %v2055_v62 = vrot.slane %v2053_v56, 4  ;;  %v12250_v5 = vld [vmem:[%s17997_s0 + $0x168] sm:$0xf] }
 0x151   :  { %11345 = vmatprep.mubr.msk.bf16.mxu0 %vm1002_vm3, %v12091_v9  ;;  %v12251_v9 = vld [vmem:[%s17997_s0 + $0x16c] sm:$0xf] }
 0x152   :  { %v9603_v11 = vcombine.low %v12250_v5, %v12251_v9  ;;  %v14042_v60 = vsel %vm12935_vm6, %v2055_v62, %v2056_v45  ;;  %v2081_v62 = vrot.slane %v13589_v33, 5  ;;  %v2076_v5 = vrot.slane %v2074_v38, 4  ;;  %v12254_v9 = vld [vmem:[%s17997_s0 + $0x38] sm:$0x1] }
 0x153   :  { %v12101_v33 = vld [vmem:[%s17997_s0 + $0xb4] sm:$0xff]  }
 0x157   :  { %11038 = vmatmul.mubr.msk.bf16.gmra.mrb[48].mxu1 %vm1002_vm3, %v9600_v17  ;;  %v12099_v17 = vld [vmem:[%s17997_s0 + $0xa8] sm:$0xff]  }
 0x158   :  { %11346 = vmatmul.mubr.msk.bf16.gmra.mrb[16].mxu0 %vm1002_vm3, %v12093_v23  ;;  %11041 = vmatprep.mubr.msk.bf16.mxu1 %vm1002_vm3, %v9601_v29  ;;  %v9643_v23 = vrot.slane %v1947_v53, 9  ;;  %v12252_v29 = vld [vmem:[%s17997_s0 + $0x20] sm:$0x1]  ;;  %v14038_v53 = vsel %vm12935_vm6, %v9642_v61, %v2053_v56  ;;  %v9605_v56 = vcombine.low %v13314_v14, %v13321_v19  ;;  %v1950_v14 = vld [vmem:[%s17997_s0 + $0x3c] sm:$0xe]  ;;  %v9645_v61 = vrot.slane %v1949_v18, 9 }
 0x159   :  { %11349 = vmatprep.mubr.msk.bf16.mxu0 %vm1002_vm3, %v12095_v31  ;;  %v2063_v31 = vrot.slane %v12252_v29, 5  ;;  %v9646_v32 = vrot.slane %v1950_v14, 9  ;;  %v12103_v18 = vld [vmem:[%s17997_s0 + $0xc0] sm:$0xff]   ;;  %v2083_v14 = vrot.slane %v2081_v62, 4 }
 0x15b   :  { %v14063_v2 = vsel %vm12935_vm6, %v2062_v25, %v2063_v31  ;;  %v2095_v25 = vrot.slane %v13640_v0, 5  ;;  %v14094_v31 = vsel %vm12935_vm6, %v9644_v50, %v2067_v20  ;;  %v14102_v0 = vsel %vm12935_vm6, %v2069_v59, %v2070_v63  ;;  %v1953_v20 = vld [vmem:[%s17997_s0 + $0x60] sm:$0xe]  ;;  %v12256_v59 = vld [vmem:[%s17997_s0 + $0x50] sm:$0x1] }
 0x15c   :  { %v14113_v50 = vsel %vm12935_vm6, %v9645_v61, %v2074_v38  ;;  %v2091_v63 = vrot.slane %v12256_v59, 5  ;;  %v12257_v61 = vld [vmem:[%s17997_s0 + $0x5c] sm:$0x1]  ;;  %v14148_v45 = vsel %vm12935_vm6, %v9646_v32, %v2081_v62  ;;  %v18047_v15 = vcombine.low %v14094_v31, %v14102_v0 }
 0x15d   :  { %v2097_v38 = vrot.slane %v2095_v25, 4  ;;  %v2098_v29 = vrot.slane %v12257_v61, 5 }
 0x15f   :  { %11042 = vmatmul.mubr.msk.bf16.gmra.mrb[52].mxu1 %vm1002_vm3, %v9602_v58  ;;  %v14059_v58 = vsel %vm12935_vm6, %v9643_v23, %v2060_v40  ;;  %v1952_v23 = vld [vmem:[%s17997_s0 + $0x54] sm:$0xe]  ;;  %v14168_v62 = vsel %vm12935_vm6, %v2097_v38, %v2098_v29  ;;  %v1956_v29 = vld [vmem:[%s17997_s0 + $0x84] sm:$0xe]  ;;  %v1957_v38 = vld [vmem:[%s17997_s0 + $0x90] sm:$0xe] }
 0x160   :  { %11350 = vmatmul.mubr.msk.bf16.gmra.mrb[20].mxu0 %vm1002_vm3, %v12097_v3  ;;  %11045 = vmatprep.mubr.msk.bf16.mxu1 %vm1002_vm3, %v9603_v11  ;;  %v1951_v3 = vld [vmem:[%s17997_s0 + $0x48] sm:$0xe]  ;;  %v2077_v11 = vrot.slane %v12254_v9, 5  ;;  %v2084_v9 = vrot.slane %v12255_v43, 5  ;;  %v9648_v39 = vrot.slane %v1952_v23, 9  ;;  %v9649_v23 = vrot.slane %v1953_v20, 9 }
 0x161   :  { %11353 = vmatprep.mubr.msk.bf16.mxu0 %vm1002_vm3, %v12099_v17  ;;  %v2088_v17 = vrot.slane %v13604_v21, 5  ;;  %v2102_v21 = vrot.slane %v13652_v6, 5  ;;  %v9647_v36 = vrot.slane %v1951_v3, 9  ;;  %v2109_v6 = vrot.slane %v13685_v37, 5  ;;  %v1954_v3 = vld [vmem:[%s17997_s0 + $0x6c] sm:$0xe] }
 0x162   :  { %v14124_v37 = vsel %vm12935_vm6, %v2076_v5, %v2077_v11  ;;  %v1955_v5 = vld [vmem:[%s17997_s0 + $0x78] sm:$0xe]  ;;  %v2116_v11 = vrot.slane %v13700_v46, 5  ;;  %v9650_v61 = vrot.slane %v1954_v3, 9  ;;  %v12259_v20 = vld [vmem:[%s17997_s0 + $0x74] sm:$0x1]  ;;  %v14152_v46 = vsel %vm12935_vm6, %v2083_v14, %v2084_v9 }
 0x163   :  { %v2090_v43 = vrot.slane %v2088_v17, 4  ;;  %v2104_v59 = vrot.slane %v2102_v21, 4  ;;  %v2112_v19 = vrot.slane %v12259_v20, 5  ;;  %v14164_v20 = vsel %vm12935_vm6, %v9648_v39, %v2095_v25  ;;  %v12105_v9 = vld [vmem:[%s17997_s0 + $0xcc] sm:$0xff]   ;;  %v12260_v39 = vld [vmem:[%s17997_s0 + $0x80] sm:$0x1] }
 0x164   :  { %v9651_v32 = vrot.slane %v1955_v5, 9  ;;  %v2118_v14 = vrot.slane %v2116_v11, 4  ;;  %v2119_v25 = vrot.slane %v12260_v39, 5  ;;  %v9652_v39 = vrot.slane %v1956_v29, 9  ;;  %v12262_v29 = vld [vmem:[%s17997_s0 + $0x98] sm:$0x1] }
 0x165   :  { %v14160_v3 = vsel %vm12935_vm6, %v2090_v43, %v2091_v63  ;;  %v12107_v63 = vld [vmem:[%s17997_s0 + $0xf0] sm:$0xff]   ;;  %v2123_v43 = vrot.slane %v13733_v8, 5  ;;  %v2137_v8 = vrot.slane %v13778_v24, 5  ;;  %v2144_v5 = vrot.slane %v13787_v51, 5 }
 0x166   :  { %v14236_v24 = vsel %vm12935_vm6, %v2118_v14, %v2119_v25  ;;  %v9653_v51 = vrot.slane %v1957_v38, 9  ;;  %v2133_v14 = vrot.slane %v12262_v29, 5  ;;  %v12263_v38 = vld [vmem:[%s17997_s0 + $0xa4] sm:$0x1]  ;;  %v2151_v29 = vrot.slane %v13804_v1, 5 }
 0x167   :  { %11046 = vmatmul.mubr.msk.bf16.gmra.mrb[56].mxu1 %vm1002_vm3, %v9604_v22  ;;  %v12258_v22 = vld [vmem:[%s17997_s0 + $0x68] sm:$0x1] }
 0x168   :  { %11354 = vmatmul.mubr.msk.bf16.gmra.mrb[24].mxu0 %vm1002_vm3, %v12101_v33  ;;  %11049 = vmatprep.mubr.msk.bf16.mxu1 %vm1002_vm3, %v9605_v56  ;;  %v2105_v40 = vrot.slane %v12258_v22, 5  ;;  %v2111_v56 = vrot.slane %v2109_v6, 4 }
 0x169   :  { %11357 = vmatprep.mubr.msk.bf16.mxu0 %vm1002_vm3, %v12103_v18  ;;  %v14156_v18 = vsel %vm12935_vm6, %v9647_v36, %v2088_v17  ;;  %v14175_v36 = vsel %vm12935_vm6, %v9649_v23, %v2102_v21  ;;  %v14192_v21 = vsel %vm12935_vm6, %v9650_v61, %v2109_v6  ;;  %v2130_v23 = vrot.slane %v13748_v13, 5  ;;  %v1959_v6 = vld [vmem:[%s17997_s0 + $0xa8] sm:$0xe] }
 0x16a   :  { %v14179_v17 = vsel %vm12935_vm6, %v2104_v59, %v2105_v40  ;;  %v14196_v40 = vsel %vm12935_vm6, %v2111_v56, %v2112_v19  ;;  %v1958_v19 = vld [vmem:[%s17997_s0 + $0x9c] sm:$0xe]  ;;  %v18043_v61 = vcombine.low %v13346_v41, %v13359_v49  ;;  %v14221_v56 = vsel %vm12935_vm6, %v9651_v32, %v2116_v11  ;;  %v12261_v11 = vld [vmem:[%s17997_s0 + $0x8c] sm:$0x1] }
 0x16b   :  { %v18044_v41 = vcombine.low %v14029_v42, %v14034_v52  ;;  %v2126_v32 = vrot.slane %v12261_v11, 5  ;;  %v2125_v42 = vrot.slane %v2123_v43, 4  ;;  %v2132_v52 = vrot.slane %v2130_v23, 4 }
 0x16c   :  { %v9654_v25 = vrot.slane %v1958_v19, 9  ;;  %v2140_v11 = vrot.slane %v12263_v38, 5  ;;  %v9655_v49 = vrot.slane %v1959_v6, 9  ;;  %v2146_v59 = vrot.slane %v2144_v5, 4  ;;  %v1960_v19 = vld [vmem:[%s17997_s0 + $0xb4] sm:$0xe] }
 0x16d   :  { %v14268_v38 = vsel %vm12935_vm6, %v9652_v39, %v2123_v43  ;;  %v14275_v1 = vsel %vm12935_vm6, %v2125_v42, %v2126_v32  ;;  %v14283_v6 = vsel %vm12935_vm6, %v2132_v52, %v2133_v14  ;;  %v9656_v42 = vrot.slane %v1960_v19, 9  ;;  %v12124_v52 = vld [vmem:[%s17996_s1 + $0x38] sm:$0xff]  }
 0x16e   :  { %v14287_v43 = vsel %vm12935_vm6, %v9654_v25, %v2137_v8  ;;  %v14295_v32 = vsel %vm12935_vm6, %v9655_v49, %v2144_v5  ;;  %v18045_v14 = vcombine.low %v14038_v53, %v14042_v60  ;;  %v2153_v49 = vrot.slane %v2151_v29, 4  ;;  %v1961_v25 = vld [vmem:[%s17997_s0 + $0xd8] sm:$0xe] }
 0x16f   :  { %11050 = vmatmul.mubr.msk.bf16.gmra.mrb[60].mxu1 %vm1002_vm3, %v18043_v61  ;;  %v10312_v61 = vld [vmem:[%s17997_s0 + $0x1c] sm:$0xf]  ;;  %v2158_v60 = vrot.slane %v13813_v7, 5 }
 0x170   :  { %11358 = vmatmul.mubr.msk.bf16.gmra.mrb[28].mxu0 %vm1002_vm3, %v12105_v9  ;;  %11057 = vmatprep.mubr.msk.bf16.mxu1 %vm1002_vm3, %v18044_v41  ;;  %v10311_v9 = vld [vmem:[%s17997_s0 + $0x18] sm:$0xf]  ;;  %v2139_v41 = vrot.slane %v2137_v8, 4  ;;  %v6662_v48 = vshrl.u32 %v10312_v61, 16  ;;  %v10314_v8 = vld [vmem:[%s17997_s0 + $0x24] sm:$0xf] }
 0x171   :  { %11361 = vmatprep.mubr.msk.bf16.mxu0 %vm1002_vm3, %v12107_v63  ;;  %v12264_v63 = vld [vmem:[%s17997_s0 + $0xb0] sm:$0x1]  ;;  %v6649_v22 = vshrl.u32 %v10311_v9, 16  ;;  %v6652_v33 = vshll.u32 %v10311_v9, 16  ;;  %v14279_v9 = vsel %vm12935_vm6, %v9653_v51, %v2130_v23  ;;  %v12265_v23 = vld [vmem:[%s17997_s0 + $0xbc] sm:$0x1] }
 0x172   :  { %v2147_v13 = vrot.slane %v12264_v63, 5  ;;  %v6658_v63 = vshll.u32 %v10312_v61, 16  ;;  %v14291_v39 = vsel %vm12935_vm6, %v2139_v41, %v2140_v11  ;;  %v2154_v51 = vrot.slane %v12265_v23, 5  ;;  %v10317_v23 = vld [vmem:[%s17997_s0 + $0x30] sm:$0xf] }
 0x173   :  { %v6651_v61 = vrot.slane %v6649_v22, 4  ;;  %v6654_v41 = vrot.slane %v6652_v33, 5  ;;  %v18046_v22 = vcombine.low %v14059_v58, %v14063_v2  ;;  %v6676_v33 = vshll.u32 %v10314_v8, 16  ;;  %v12266_v2 = vld [vmem:[%s17997_s0 + $0xe0] sm:$0x1] }
 0x174   :  { %v14312_v5 = vsel %vm12935_vm6, %v2146_v59, %v2147_v13  ;;  %v14322_v11 = vrot.slane %v6658_v63, 5  ;;  %v6664_v59 = vrot.slane %v6662_v48, 4  ;;  %v10315_v13 = vld [vmem:[%s17997_s0 + $0x28] sm:$0xf]  ;;  %v6673_v48 = vshrl.u32 %v10314_v8, 16 }
 0x175   :  { %v14343_v58 = vsel %vm12935_vm6, %v9656_v42, %v2151_v29  ;;  %v2161_v63 = vrot.slane %v12266_v2, 5  ;;  %v14353_v8 = vsel %vm12935_vm6, %v2153_v49, %v2154_v51  ;;  %v1962_v29 = vld [vmem:[%s17997_s0 + $0xe4] sm:$0xe]  ;;  %v6682_v42 = vshll.u32 %v10315_v13, 16  ;;  %v12111_v2 = vld [vmem:[%s17997_s0 + $0x114] sm:$0xff]  }
 0x176   :  { %v2160_v19 = vrot.slane %v2158_v60, 4  ;;  %v6665_v7 = vor.u32 %v6664_v59, %v14322_v11  ;;  %v2165_v49 = vrot.slane %v13829_v16, 5  ;;  %v6700_v53 = vshll.u32 %v10317_v23, 16  ;;  %v12268_v59 = vld [vmem:[%s17997_s0 + $0xec] sm:$0x1] }
 0x177   :  { %11058 = vmatmul.mubr.msk.bf16.vlgmr.msra.gmra.mrb[0].mxu1 %vm1002_vm3, %v18045_v14  ;;  %v6655_v14 = vor.u32 %v6654_v41, %v6651_v61  ;;  %v12112_v61 = vld [vmem:[%s17997_s0 + $0x120] sm:$0xff]   ;;  %v6675_v41 = vrot.slane %v6673_v48, 4  ;;  %v9658_v28 = vrot.slane %v1962_v29, 9  ;;  %v2168_v16 = vrot.slane %v12268_v59, 5 }
 0x178   :  { %11122 = vmatpush3.bf16.msra.mxu1 %v13531_v54  ;;  %11362 = vmatmul.mubr.msk.bf16.gmra.mrb[32].mxu0 %vm1002_vm3, %v12109_v47  ;;  %v10313_v47 = vld [vmem:[%s17997_s0 + $0x20] sm:$0x1]  ;;  %v6697_v54 = vshrl.u32 %v10317_v23, 16  ;;  %v14386_v23 = vrot.slane %v6682_v42, 5  ;;  %v6666_v31 = vrot.slane %v6665_v7, 4 }
 0x179   :  { %11061 = vmatprep.mubr.msk.bf16.mxu1 %vm1002_vm3, %v18046_v22  ;;  %11365 = vmatprep.mubr.msk.bf16.mxu0 %vm1002_vm3, %v12110_v44  ;;  %v9657_v44 = vrot.slane %v1961_v25, 9  ;;  %v6686_v25 = vshrl.u32 %v10315_v13, 16  ;;  %v10318_v22 = vld [vmem:[%s17997_s0 + $0x34] sm:$0xf]  ;;  %v6668_v51 = vshll.u32 %v10313_v47, 16  ;;  %v6678_v13 = vrot.slane %v6676_v33, 5 }
 0x17a   :  { %11123 = vmatprep.subr.bf16.mxu1 %v12124_v52  ;;  %v6710_v47 = vshrl.u32 %v10318_v22, 16  ;;  %v6656_v33 = vrot.slane %v6655_v14, 4  ;;  %v6699_v42 = vrot.slane %v6697_v54, 4 }
 0x17b   :  { %v14381_v48 = vsel %vm12935_vm6, %v9657_v44, %v2158_v60  ;;  %v6688_v29 = vrot.slane %v6686_v25, 4  ;;  %v6670_v0 = vrot.slane %v6668_v51, 5  ;;  %v2167_v60 = vrot.slane %v2165_v49, 4 }
 0x17c   :  { %11124 = vmatpush3.bf16.msra.mxu1 %v12124_v52  ;;  %v6706_v52 = vshll.u32 %v10318_v22, 16  ;;  %v18048_v22 = vcombine.low %v14113_v50, %v14124_v37  ;;  %v6679_v14 = vor.u32 %v6678_v13, %v6675_v41  ;;  %v6702_v25 = vrot.slane %v6700_v53, 5  ;;  %v10320_v50 = vld [vmem:[%s17997_s0 + $0x3c] sm:$0xf] }
 0x17d   :  { %11529 = vmatprep.subr.bf16.mxu1 %v12267_v34  ;;  %v10316_v34 = vld [vmem:[%s17997_s0 + $0x2c] sm:$0x1]  ;;  %v14405_v37 = vsel %vm12935_vm6, %v9658_v28, %v2165_v49  ;;  %v6661_v53 = vsel %vm12458_vm2, %v6656_v33, %v14322_v11  ;;  %v6689_v51 = vor.u32 %v6688_v29, %v14386_v23  ;;  %v2172_v28 = vrot.slane %v13841_v26, 5  ;;  %v10319_v49 = vld [vmem:[%s17997_s0 + $0x38] sm:$0x1] }
 0x17e   :  { %v14407_v7 = vrot.slane %v6706_v52, 5  ;;  %v6671_v41 = vsel %vm12458_vm2, %v6666_v31, %v6670_v0  ;;  %v14429_v13 = vsel %vm12935_vm6, %v2167_v60, %v2168_v16  ;;  %v1963_v11 = vld [vmem:[%s17997_s0 + $0xf0] sm:$0xe]  ;;  %v6721_v26 = vshrl.u32 %v10320_v50, 16  ;;  %v12114_v52 = vld [vmem:[%s17997_s0 + $0x138] sm:$0xff]  }
 0x17f   :  { %11062 = vmatmul.mubr.msk.bf16.gmra.mrb[4].mxu1 %vm1002_vm3, %v18047_v15  ;;  %v14395_v15 = vsel %vm12935_vm6, %v2160_v19, %v2161_v63  ;;  %v6692_v19 = vshll.u32 %v10316_v34, 16  ;;  %v6712_v63 = vrot.slane %v6710_v47, 4  ;;  %v6724_v59 = vshll.u32 %v10320_v50, 16  ;;  %v1964_v16 = vld [vmem:[%s17997_s0 + $0xfc] sm:$0xe] }
 0x180   :  { %11366 = vmatmul.mubr.msk.bf16.gmra.mrb[36].mxu0 %vm1002_vm3, %v12111_v2  ;;  %11065 = vmatprep.mubr.msk.bf16.mxu1 %vm1002_vm3, %v18048_v22  ;;  %v10321_v2 = vld [vmem:[%s17997_s0 + $0x40] sm:$0xf]  ;;  %v6680_v47 = vrot.slane %v6679_v14, 4  ;;  %v6703_v33 = vor.u32 %v6702_v25, %v6699_v42  ;;  %v6716_v0 = vshll.u32 %v10319_v49, 16  ;;  %v2179_v60 = vrot.slane %v13866_v35, 5 }
 0x181   :  { %11369 = vmatprep.mubr.msk.bf16.mxu0 %vm1002_vm3, %v12112_v61  ;;  %v12113_v61 = vld [vmem:[%s17997_s0 + $0x12c] sm:$0xff]   ;;  %v6730_v34 = vshll.u32 %v10321_v2, 16  ;;  %v6734_v29 = vshrl.u32 %v10321_v2, 16  ;;  %v6694_v22 = vrot.slane %v6692_v19, 5  ;;  %v6713_v31 = vor.u32 %v6712_v63, %v14407_v7  ;;  %v12269_v25 = vld [vmem:[%s17997_s0 + $0xf8] sm:$0x1] }
 0x182   :  { %v18049_v50 = vcombine.low %v14148_v45, %v14152_v46  ;;  %v6690_v54 = vrot.slane %v6689_v51, 4  ;;  %v9659_v14 = vrot.slane %v1963_v11, 9  ;;  %v2174_v42 = vrot.slane %v2172_v28, 4 }
 0x183   :  { %v2175_v19 = vrot.slane %v12269_v25, 5  ;;  %v18050_v63 = vcombine.low %v14156_v18, %v14160_v3  ;;  %v14454_v35 = vcombine.low %v6661_v53, %v6671_v41  ;;  %v6723_v46 = vrot.slane %v6721_v26, 4  ;;  %v10323_v18 = vld [vmem:[%s17997_s0 + $0x48] sm:$0xf]  ;;  %v12270_v41 = vld [vmem:[%s17997_s0 + $0x104] sm:$0x1] }
 0x184   :  { %v6726_v2 = vrot.slane %v6724_v59, 5  ;;  %v6704_v51 = vrot.slane %v6703_v33, 4  ;;  %v9660_v49 = vrot.slane %v1964_v16, 9  ;;  %v14459_v11 = vrot.slane %v6730_v34, 5  ;;  %v10322_v59 = vld [vmem:[%s17997_s0 + $0x44] sm:$0x1] }
 0x185   :  { %v6714_v3 = vrot.slane %v6713_v31, 4  ;;  %v2181_v53 = vrot.slane %v2179_v60, 4  ;;  %v2182_v26 = vrot.slane %v12270_v41, 5  ;;  %v6695_v33 = vsel %vm12458_vm2, %v6690_v54, %v6694_v22  ;;  %v10324_v31 = vld [vmem:[%s17997_s0 + $0x4c] sm:$0xf]  ;;  %v12116_v16 = vld [vmem:[%s17997_s0 + $0x150] sm:$0xff]  }
 0x186   :  { %v14477_v34 = vsel %vm12935_vm6, %v9659_v14, %v2172_v28  ;;  %v1965_v54 = vld [vmem:[%s17997_s0 + $0x108] sm:$0xe]  ;;  %v2186_v28 = vrot.slane %v13878_v57, 5  ;;  %v6748_v22 = vshll.u32 %v10323_v18, 16  ;;  %v6709_v14 = vsel %vm12458_vm2, %v6704_v51, %v14407_v7  ;;  %v10325_v41 = vld [vmem:[%s17997_s0 + $0x50] sm:$0x1] }
 0x187   :  { %11066 = vmatmul.mubr.msk.bf16.gmra.mrb[8].mxu1 %vm1002_vm3, %v18049_v50  ;;  %v6736_v50 = vrot.slane %v6734_v29, 4  ;;  %v14481_v29 = vsel %vm12935_vm6, %v2174_v42, %v2175_v19  ;;  %v14501_v42 = vsel %vm12935_vm6, %v9660_v49, %v2179_v60  ;;  %v6740_v19 = vshll.u32 %v10322_v59, 16  ;;  %v12271_v49 = vld [vmem:[%s17997_s0 + $0x110] sm:$0x1] }
 0x188   :  { %11370 = vmatmul.mubr.msk.bf16.gmra.mrb[40].mxu0 %vm1002_vm3, %v12113_v61  ;;  %11069 = vmatprep.mubr.msk.bf16.mxu1 %vm1002_vm3, %v18050_v63  ;;  %v6718_v61 = vrot.slane %v6716_v0, 5  ;;  %v12115_v0 = vld [vmem:[%s17997_s0 + $0x144] sm:$0xff]   ;;  %v14508_v63 = vsel %vm12935_vm6, %v2181_v53, %v2182_v26  ;;  %v9661_v51 = vrot.slane %v1965_v54, 9  ;;  %v2188_v53 = vrot.slane %v2186_v28, 4 }
 0x189   :  { %11373 = vmatprep.mubr.msk.bf16.mxu0 %vm1002_vm3, %v12114_v52  ;;  %v6685_v52 = vsel %vm12458_vm2, %v6680_v47, %v14386_v23  ;;  %v6727_v23 = vor.u32 %v6726_v2, %v6723_v46  ;;  %v6745_v47 = vshrl.u32 %v10323_v18, 16  ;;  %v6737_v25 = vor.u32 %v6736_v50, %v14459_v11 }
 0x18a   :  { %v6719_v57 = vsel %vm12458_vm2, %v6714_v3, %v6718_v61  ;;  %v6754_v46 = vshll.u32 %v10324_v31, 16  ;;  %v6758_v2 = vshrl.u32 %v10324_v31, 16  ;;  %v18051_v18 = vcombine.low %v14164_v20, %v14168_v62  ;;  %v10326_v3 = vld [vmem:[%s17997_s0 + $0x54] sm:$0xf]  ;;  %v10327_v20 = vld [vmem:[%s17997_s0 + $0x58] sm:$0xf] }
 0x18b   :  { %v14514_v7 = vcombine.low %v6685_v52, %v6695_v33  ;;  %v2189_v50 = vrot.slane %v12271_v49, 5  ;;  %v18052_v62 = vcombine.low %v14175_v36, %v14179_v17  ;;  %v14532_v61 = vrot.slane %v6727_v23, 4  ;;  %v10329_v17 = vld [vmem:[%s17997_s0 + $0x60] sm:$0xf]  ;;  %v1966_v49 = vld [vmem:[%s17997_s0 + $0x114] sm:$0xe] }
 0x18c   :  { %v6747_v26 = vrot.slane %v6745_v47, 4  ;;  %v6750_v59 = vrot.slane %v6748_v22, 5  ;;  %v14538_v52 = vcombine.low %v6709_v14, %v6719_v57  ;;  %v14542_v31 = vrot.slane %v6737_v25, 4  ;;  %v10330_v22 = vld [vmem:[%s17997_s0 + $0x64] sm:$0xf]  ;;  %v12117_v57 = vld [vmem:[%s17997_s0 + $0x15c] sm:$0xff]  }
 0x18d   :  { %v14544_v36 = vrot.slane %v6740_v19, 5  ;;  %v6760_v23 = vrot.slane %v6758_v2, 4  ;;  %v6769_v54 = vshrl.u32 %v10326_v3, 16  ;;  %v6772_v47 = vshll.u32 %v10326_v3, 16 }
 0x18e   :  { %v6764_v14 = vshll.u32 %v10325_v41, 16  ;;  %v6778_v25 = vshll.u32 %v10327_v20, 16  ;;  %v6782_v19 = vshrl.u32 %v10327_v20, 16  ;;  %v6793_v3 = vshrl.u32 %v10329_v17, 16 }
 0x18f   :  { %11070 = vmatmul.mubr.msk.bf16.gmra.mrb[12].mxu1 %vm1002_vm3, %v18051_v18  ;;  %v6751_v18 = vor.u32 %v6750_v59, %v6747_v26  ;;  %v6796_v20 = vshll.u32 %v10329_v17, 16  ;;  %v6806_v41 = vshrl.u32 %v10330_v22, 16  ;;  %v18053_v26 = vcombine.low %v14192_v21, %v14196_v40 }
 0x190   :  { %11374 = vmatmul.mubr.msk.bf16.gmra.mrb[44].mxu0 %vm1002_vm3, %v12115_v0  ;;  %11073 = vmatprep.mubr.msk.bf16.mxu1 %vm1002_vm3, %v18052_v62  ;;  %v14549_v0 = vrot.slane %v6754_v46, 5  ;;  %v12118_v46 = vld [vmem:[%s17997_s0 + $0x168] sm:$0xff]   ;;  %v6802_v62 = vshll.u32 %v10330_v22, 16  ;;  %v14588_v59 = vrot.slane %v6764_v14, 5  ;;  %v14590_v17 = vrot.slane %v6778_v25, 5 }
 0x191   :  { %11377 = vmatprep.mubr.msk.bf16.mxu0 %vm1002_vm3, %v12116_v16  ;;  %v14556_v16 = vsel %vm12935_vm6, %v9661_v51, %v2186_v28  ;;  %v14570_v28 = vsel %vm12935_vm6, %v2188_v53, %v2189_v50  ;;  %v2193_v51 = vrot.slane %v13894_v30, 5  ;;  %v10328_v50 = vld [vmem:[%s17997_s0 + $0x5c] sm:$0x1]  ;;  %v6771_v30 = vrot.slane %v6769_v54, 4 }
 0x192   :  { %v6761_v60 = vor.u32 %v6760_v23, %v14549_v0  ;;  %v6774_v53 = vrot.slane %v6772_v47, 5  ;;  %v6784_v22 = vrot.slane %v6782_v19, 4  ;;  %v1967_v23 = vld [vmem:[%s17997_s0 + $0x120] sm:$0xe]  ;;  %v2200_v45 = vrot.slane %v13906_v55, 5 }
 0x193   :  { %v18054_v54 = vcombine.low %v14221_v56, %v14236_v24  ;;  %v6752_v21 = vrot.slane %v6751_v18, 4  ;;  %v9662_v40 = vrot.slane %v1966_v49, 9  ;;  %v2195_v47 = vrot.slane %v2193_v51, 4  ;;  %v12272_v14 = vld [vmem:[%s17997_s0 + $0x11c] sm:$0x1] }
 0x194   :  { %v2196_v25 = vrot.slane %v12272_v14, 5  ;;  %v10331_v19 = vld [vmem:[%s17997_s0 + $0x68] sm:$0x1]  ;;  %v6795_v55 = vrot.slane %v6793_v3, 4  ;;  %v6808_v56 = vrot.slane %v6806_v41, 4  ;;  %v6762_v18 = vrot.slane %v6761_v60, 4 }
 0x195   :  { %v10332_v24 = vld [vmem:[%s17997_s0 + $0x6c] sm:$0xf]  ;;  %v6775_v49 = vor.u32 %v6774_v53, %v6771_v30  ;;  %v9663_v44 = vrot.slane %v1967_v23, 9  ;;  %v6785_v14 = vor.u32 %v6784_v22, %v14590_v17  ;;  %v2202_v2 = vrot.slane %v2200_v45, 4  ;;  %v12120_v22 = vld [vmem:[%s17997_s0 + $0x180] sm:$0xff]  }
 0x196   :  { %v6757_v60 = vsel %vm12458_vm2, %v6752_v21, %v14549_v0  ;;  %v14625_v41 = vsel %vm12935_vm6, %v9662_v40, %v2193_v51  ;;  %v6817_v30 = vshrl.u32 %v10332_v24, 16  ;;  %v6820_v53 = vshll.u32 %v10332_v24, 16  ;;  %v10333_v21 = vld [vmem:[%s17997_s0 + $0x70] sm:$0xf] }
 0x197   :  { %11074 = vmatmul.mubr.msk.bf16.gmra.mrb[16].mxu1 %vm1002_vm3, %v18053_v26  ;;  %v14608_v26 = vrot.slane %v6802_v62, 5  ;;  %v12119_v62 = vld [vmem:[%s17997_s0 + $0x174] sm:$0xff]   ;;  %v14635_v23 = vsel %vm12935_vm6, %v2195_v47, %v2196_v25  ;;  %v2207_v51 = vrot.slane %v13922_v12, 5  ;;  %v6767_v40 = vsel %vm12458_vm2, %v6762_v18, %v14588_v59 }
 0x198   :  { %11378 = vmatmul.mubr.msk.bf16.gmra.mrb[48].mxu0 %vm1002_vm3, %v12117_v57  ;;  %11077 = vmatprep.mubr.msk.bf16.mxu1 %vm1002_vm3, %v18054_v54  ;;  %v6798_v57 = vrot.slane %v6796_v20, 5  ;;  %v6788_v54 = vshll.u32 %v10328_v50, 16  ;;  %v6812_v20 = vshll.u32 %v10331_v19, 16  ;;  %v1968_v50 = vld [vmem:[%s17997_s0 + $0x12c] sm:$0xe]  ;;  %v6776_v24 = vrot.slane %v6775_v49, 4 }
 0x199   :  { %11381 = vmatprep.mubr.msk.bf16.mxu0 %vm1002_vm3, %v12118_v46  ;;  %v12273_v46 = vld [vmem:[%s17997_s0 + $0x128] sm:$0x1]  ;;  %v6809_v0 = vor.u32 %v6808_v56, %v14608_v26  ;;  %v14647_v33 = vsel %vm12935_vm6, %v9663_v44, %v2200_v45  ;;  %v18055_v47 = vcombine.low %v14268_v38, %v14275_v1  ;;  %v6786_v12 = vrot.slane %v6785_v14, 4  ;;  %v10335_v1 = vld [vmem:[%s17997_s0 + $0x78] sm:$0xf] }
 0x19a   :  { %v2203_v3 = vrot.slane %v12273_v46, 5  ;;  %v6799_v19 = vor.u32 %v6798_v57, %v6795_v55  ;;  %v6790_v46 = vrot.slane %v6788_v54, 5  ;;  %v6814_v55 = vrot.slane %v6812_v20, 5  ;;  %v12274_v54 = vld [vmem:[%s17997_s0 + $0x134] sm:$0x1] }
 0x19b   :  { %v9664_v57 = vrot.slane %v1968_v50, 9  ;;  %v18056_v59 = vcombine.low %v14279_v9, %v14283_v6  ;;  %v6819_v44 = vrot.slane %v6817_v30, 4  ;;  %v6822_v45 = vrot.slane %v6820_v53, 5  ;;  %v12121_v53 = vld [vmem:[%s17997_s0 + $0x18c] sm:$0xff]  }
 0x19c   :  { %v14655_v25 = vsel %vm12935_vm6, %v2202_v2, %v2203_v3  ;;  %v6826_v56 = vshll.u32 %v10333_v21, 16  ;;  %v6830_v38 = vshrl.u32 %v10333_v21, 16  ;;  %v6800_v2 = vrot.slane %v6799_v19, 4  ;;  %v10336_v21 = vld [vmem:[%s17997_s0 + $0x7c] sm:$0xf] }
 0x19d   :  { %v6810_v18 = vrot.slane %v6809_v0, 4  ;;  %v2209_v49 = vrot.slane %v2207_v51, 4  ;;  %v2210_v6 = vrot.slane %v12274_v54, 5  ;;  %v18057_v9 = vsel %vm12458_vm2, %v14542_v31, %v14544_v36 }
 0x19e   :  { %v18058_v14 = vsel %vm12458_vm2, %v14532_v61, %v14459_v11  ;;  %v9697_v20 = vcombine.low %v14556_v16, %v14570_v28  ;;  %v9698_v50 = vcombine.low %v14625_v41, %v14635_v23  ;;  %v6781_v30 = vsel %vm12458_vm2, %v6776_v24, %v14590_v17  ;;  %v10334_v11 = vld [vmem:[%s17997_s0 + $0x74] sm:$0x1]  ;;  %v1969_v61 = vld [vmem:[%s17997_s0 + $0x138] sm:$0xe]  ;;  %v10349_v16 = vld [vmem:[%s17997_s0 + $0xb0] sm:$0x1] }
 0x19f   :  { %11078 = vmatmul.mubr.msk.bf16.gmra.mrb[20].mxu1 %vm1002_vm3, %v18055_v47  ;;  %v14679_v3 = vcombine.low %v18058_v14, %v18057_v9  ;;  %v6791_v31 = vsel %vm12458_vm2, %v6786_v12, %v6790_v46  ;;  %v6841_v36 = vshrl.u32 %v10335_v1, 16  ;;  %v14703_v19 = vrot.slane %v6826_v56, 5 }
 0x1a0   :  { %11382 = vmatmul.mubr.msk.bf16.gmra.mrb[52].mxu0 %vm1002_vm3, %v12119_v62  ;;  %11081 = vmatprep.mubr.msk.bf16.mxu1 %vm1002_vm3, %v18056_v59  ;;  %v14683_v62 = vcombine.low %v6757_v60, %v6767_v40  ;;  %v6844_v60 = vshll.u32 %v10335_v1, 16  ;;  %v6832_v0 = vrot.slane %v6830_v38, 4  ;;  %v12122_v40 = vld [vmem:[%s17997_s0 + $0x198] sm:$0xff]   ;;  %v6805_v24 = vsel %vm12458_vm2, %v6800_v2, %v14608_v26  ;;  %v10338_v59 = vld [vmem:[%s17997_s0 + $0x84] sm:$0xf] }
 0x1a1   :  { %11385 = vmatprep.mubr.msk.bf16.mxu0 %vm1002_vm3, %v12120_v22  ;;  %v6823_v22 = vor.u32 %v6822_v45, %v6819_v44  ;;  %v6815_v46 = vsel %vm12458_vm2, %v6810_v18, %v6814_v55  ;;  %v14718_v47 = vsel %vm12935_vm6, %v9664_v57, %v2207_v51  ;;  %v14722_v12 = vsel %vm12935_vm6, %v2209_v49, %v2210_v6  ;;  %v10339_v55 = vld [vmem:[%s17997_s0 + $0x88] sm:$0xf] }
 0x1a2   :  { %v14727_v44 = vcombine.low %v6781_v30, %v6791_v31  ;;  %v6836_v45 = vshll.u32 %v10334_v11, 16  ;;  %v9665_v56 = vrot.slane %v1969_v61, 9  ;;  %v2214_v26 = vrot.slane %v13934_v4, 5  ;;  %v12275_v61 = vld [vmem:[%s17997_s0 + $0x140] sm:$0x1] }
 0x1a3   :  { %v18059_v51 = vcombine.low %v14287_v43, %v14291_v39  ;;  %v6843_v57 = vrot.slane %v6841_v36, 4  ;;  %v6846_v38 = vrot.slane %v6844_v60, 5  ;;  %v6850_v1 = vshll.u32 %v10336_v21, 16  ;;  %v10337_v39 = vld [vmem:[%s17997_s0 + $0x80] sm:$0x1] }
 0x1a4   :  { %v6854_v2 = vshrl.u32 %v10336_v21, 16  ;;  %v18060_v18 = vcombine.low %v14295_v32, %v14312_v5  ;;  %v14742_v4 = vcombine.low %v6805_v24, %v6815_v46  ;;  %v14746_v54 = vrot.slane %v6823_v22, 4  ;;  %v1970_v32 = vld [vmem:[%s17997_s0 + $0x144] sm:$0xe]  ;;  %v10341_v60 = vld [vmem:[%s17997_s0 + $0x90] sm:$0xf] }
 0x1a5   :  { %v6833_v43 = vor.u32 %v6832_v0, %v14703_v19  ;;  %v6865_v5 = vshrl.u32 %v10338_v59, 16  ;;  %v6868_v6 = vshll.u32 %v10338_v59, 16  ;;  %v6874_v9 = vshll.u32 %v10339_v55, 16  ;;  %v18061_v21 = vld [vmem:[#allocation3_spill] sm:$0xff]  ;;  %v10342_v24 = vld [vmem:[%s17997_s0 + $0x94] sm:$0xf] }
 0x1a6   :  { %v6878_v14 = vshrl.u32 %v10339_v55, 16  ;;  %v14756_v30 = vrot.slane %v6836_v45, 5  ;;  %v14760_v31 = vsel %vm12935_vm6, %v9665_v56, %v2214_v26  ;;  %v2216_v11 = vrot.slane %v2214_v26, 4  ;;  %v12123_v46 = vld [vmem:[%s17997_s0 + $0x1a4] sm:$0xff]   ;;  %v10340_v55 = vld [vmem:[%s17997_s0 + $0x8c] sm:$0x1] }
 0x1a7   :  { %11082 = vmatmul.mubr.msk.bf16.gmra.mrb[24].mxu1 %vm1002_vm3, %v18059_v51  ;;  %v2217_v36 = vrot.slane %v12275_v61, 5  ;;  %v14768_v22 = vrot.slane %v6850_v1, 5  ;;  %v6856_v0 = vrot.slane %v6854_v2, 4  ;;  %v6829_v59 = vsel %vm12458_vm2, %v14746_v54, %v14703_v19  ;;  %v10348_v19 = vld [vmem:[%s17997_s0 + $0xac] sm:$0xf] }
 0x1a8   :  { %11386 = vmatmul.mubr.msk.bf16.gmra.mrb[56].mxu0 %vm1002_vm3, %v12121_v53  ;;  %11085 = vmatprep.mubr.msk.bf16.mxu1 %vm1002_vm3, %v18060_v18  ;;  %v6847_v53 = vor.u32 %v6846_v38, %v6843_v57  ;;  %v14781_v45 = vrot.slane %v6833_v43, 4  ;;  %v6860_v56 = vshll.u32 %v10337_v39, 16  ;;  %v9666_v26 = vrot.slane %v1970_v32, 9 }
 0x1a9   :  { %11389 = vmatprep.mubr.msk.bf16.mxu0 %vm1002_vm3, %v12122_v40  ;;  %v2221_v40 = vrot.slane %v18061_v21, 5  ;;  %v6867_v51 = vrot.slane %v6865_v5, 4  ;;  %v6870_v57 = vrot.slane %v6868_v6, 5  ;;  %v14786_v38 = vrot.slane %v6874_v9, 5  ;;  %v12276_v5 = vld [vmem:[%s17997_s0 + $0x14c] sm:$0x1] }
 0x1aa   :  { %v6880_v1 = vrot.slane %v6878_v14, 4  ;;  %v6889_v2 = vshrl.u32 %v10341_v60, 16  ;;  %v6892_v18 = vshll.u32 %v10341_v60, 16  ;;  %v6898_v61 = vshll.u32 %v10342_v24, 16 }
 0x1ab   :  { %v6902_v21 = vshrl.u32 %v10342_v24, 16  ;;  %v18062_v49 = vcombine.low %v14343_v58, %v14353_v8  ;;  %v14792_v43 = vrot.slane %v6847_v53, 4  ;;  %v6857_v39 = vor.u32 %v6856_v0, %v14768_v22  ;;  %v1971_v53 = vld [vmem:[%s17997_s0 + $0x150] sm:$0xe] }
 0x1ac   :  { %v2223_v32 = vrot.slane %v2221_v40, 4  ;;  %v2224_v6 = vrot.slane %v12276_v5, 5  ;;  %v18063_v9 = vcombine.low %v14381_v48, %v14395_v15  ;;  %v6839_v58 = vsel %vm12458_vm2, %v14781_v45, %v14756_v30  ;;  %v18064_v0 = vld [vmem:[#allocation4_spill] sm:$0xff] }
 0x1ad   :  { %v14809_v8 = vsel %vm12935_vm6, %v2216_v11, %v2217_v36  ;;  %v6884_v14 = vshll.u32 %v10340_v55, 16  ;;  %v14817_v48 = vsel %vm12935_vm6, %v9666_v26, %v2221_v40  ;;  %v6871_v15 = vor.u32 %v6870_v57, %v6867_v51  ;;  %v10344_v36 = vld [vmem:[%s17997_s0 + $0x9c] sm:$0xf]  ;;  %v10343_v51 = vld [vmem:[%s17997_s0 + $0x98] sm:$0x1] }
 0x1ae   :  { %v6881_v60 = vor.u32 %v6880_v1, %v14786_v38  ;;  %v2228_v11 = vrot.slane %v18064_v0, 5  ;;  %v6891_v24 = vrot.slane %v6889_v2, 4  ;;  %v6853_v40 = vsel %vm12458_vm2, %v14792_v43, %v14768_v22  ;;  %v1972_v57 = vld [vmem:[%s17997_s0 + $0x15c] sm:$0xe]  ;;  %v18065_v1 = vld [vmem:[#allocation7_spill] sm:$0xff] }
 0x1af   :  { %11086 = vmatmul.mubr.msk.bf16.gmra.mrb[28].mxu1 %vm1002_vm3, %v18062_v49  ;;  %v14811_v49 = vrot.slane %v6860_v56, 5  ;;  %v6904_v56 = vrot.slane %v6902_v21, 4  ;;  %v6858_v26 = vrot.slane %v6857_v39, 4  ;;  %v14835_v55 = vsel %vm12935_vm6, %v2223_v32, %v2224_v6  ;;  %v10345_v22 = vld [vmem:[%s17997_s0 + $0xa0] sm:$0xf] }
 0x1b0   :  { %11390 = vmatmul.mubr.msk.bf16.gmra.mrb[60].mxu0 %vm1002_vm3, %v12123_v46  ;;  %11089 = vmatprep.mubr.msk.bf16.mxu1 %vm1002_vm3, %v18063_v9  ;;  %v6894_v46 = vrot.slane %v6892_v18, 5  ;;  %v2235_v2 = vrot.slane %v18065_v1, 5  ;;  %v6886_v18 = vrot.slane %v6884_v14, 5  ;;  %v6913_v21 = vshrl.u32 %v10344_v36, 16  ;;  %v12277_v6 = vld [vmem:[%s17997_s0 + $0x158] sm:$0x1] }
 0x1b1   :  { %11397 = vmatprep.mubr.msk.bf16.mxu0 %vm1002_vm3, %v14454_v35  ;;  %v14827_v35 = vrot.slane %v6898_v61, 5  ;;  %v9667_v61 = vrot.slane %v1971_v53, 9  ;;  %v6916_v43 = vshll.u32 %v10344_v36, 16  ;;  %v6872_v39 = vrot.slane %v6871_v15, 4  ;;  %v12127_v53 = vld [vmem:[%s17996_s1 + $0x88] sm:$0xff]  }
 0x1b2   :  { %v6882_v32 = vrot.slane %v6881_v60, 4  ;;  %v2230_v5 = vrot.slane %v2228_v11, 4  ;;  %v2231_v9 = vrot.slane %v12277_v6, 5  ;;  %v6895_v0 = vor.u32 %v6894_v46, %v6891_v24  ;;  %v12278_v60 = vld [vmem:[%s17997_s0 + $0x164] sm:$0x1] }
 0x1b3   :  { %v6905_v17 = vor.u32 %v6904_v56, %v14827_v35  ;;  %v6908_v1 = vshll.u32 %v10343_v51, 16  ;;  %v9668_v14 = vrot.slane %v1972_v57, 9  ;;  %v18066_v36 = vcombine.low %v14405_v37, %v14429_v13  ;;  %v10346_v51 = vld [vmem:[%s17997_s0 + $0xa4] sm:$0x1] }
 0x1b4   :  { %v2237_v15 = vrot.slane %v2235_v2, 4  ;;  %v2238_v6 = vrot.slane %v12278_v60, 5  ;;  %v6922_v24 = vshll.u32 %v10345_v22, 16  ;;  %v6926_v46 = vshrl.u32 %v10345_v22, 16 }
 0x1b5   :  { %v18067_v56 = vcombine.low %v14477_v34, %v14481_v29  ;;  %v6863_v37 = vsel %vm12458_vm2, %v6858_v26, %v14811_v49  ;;  %v14872_v13 = vsel %vm12935_vm6, %v9667_v61, %v2228_v11  ;;  %v6915_v57 = vrot.slane %v6913_v21, 4  ;;  %v12279_v34 = vld [vmem:[%s17996_s1 + $0x80] sm:$0xff]  }
 0x1b6   :  { %v6918_v22 = vrot.slane %v6916_v43, 5  ;;  %v6877_v29 = vsel %vm12458_vm2, %v6872_v39, %v14786_v38  ;;  %v6887_v49 = vsel %vm12458_vm2, %v6882_v32, %v6886_v18  ;;  %v14893_v11 = vsel %vm12935_vm6, %v2230_v5, %v2231_v9  ;;  %v10347_v38 = vld [vmem:[%s17997_s0 + $0xa8] sm:$0xf] }
 0x1b7   :  { %11090 = vmatmul.mubr.msk.bf16.gmra.mrb[32].mxu1 %vm1002_vm3, %v18066_v36  ;;  %v14895_v26 = vrot.slane %v6895_v0, 4  ;;  %v14897_v61 = vrot.slane %v6905_v17, 4  ;;  %v14899_v21 = vrot.slane %v6908_v1, 5  ;;  %v14910_v18 = vsel %vm12935_vm6, %v2237_v15, %v2238_v6  ;;  %v1973_v0 = vld [vmem:[%s17997_s0 + $0x168] sm:$0xe] }
 0x1b8   :  { %11398 = vmatmul.mubr.msk.bf16.vlgmr.msra.gmra.mrb[0].mxu0 %vm1002_vm3, %v14514_v7  ;;  %11093 = vmatprep.mubr.msk.bf16.mxu1 %vm1002_vm3, %v18067_v56  ;;  %v18068_v7 = vld [vmem:[#allocation2_spill] sm:$0xff]  ;;  %v14912_v43 = vrot.slane %v6922_v24, 5  ;;  %v6928_v39 = vrot.slane %v6926_v46, 4  ;;  %v6932_v17 = vshll.u32 %v10346_v51, 16  ;;  %v9701_v32 = vcombine.low %v14760_v31, %v14809_v8  ;;  %v10350_v15 = vld [vmem:[%s17997_s0 + $0xb4] sm:$0xf] }
 0x1b9   :  { %v18069_v36 = vshll.u32 %v18068_v7, 16  ;;  %11462 = vmatpush3.bf16.msra.mxu0 %v12279_v34  ;;  %11401 = vmatprep.mubr.msk.bf16.mxu0 %vm1002_vm3, %v14538_v52  ;;  %v14903_v52 = vsel %vm12935_vm6, %v9668_v14, %v2235_v2  ;;  %v14924_v2 = vcombine.low %v6829_v59, %v6839_v58  ;;  %v6919_v9 = vor.u32 %v6918_v22, %v6915_v57  ;;  %v10353_v57 = vld [vmem:[%s17997_s0 + $0xc0] sm:$0xf]  ;;  %v10354_v34 = vld [vmem:[%s17997_s0 + $0xc4] sm:$0xf] }
 0x1ba   :  { %11463 = vmatprep.subr.bf16.mxu0 %v12127_v53  ;;  %v14933_v1 = vcombine.low %v6853_v40, %v6863_v37  ;;  %v6937_v54 = vshrl.u32 %v10347_v38, 16  ;;  %v6940_v59 = vshll.u32 %v10347_v38, 16  ;;  %v14940_v45 = vcombine.low %v6877_v29, %v6887_v49  ;;  %v12280_v37 = vld [vmem:[%s17997_s0 + $0x16c] sm:$0xf] }
 0x1bb   :  { %v14879_v60 = vrot.slane %v18069_v36, 5  ;;  %v6901_v58 = vsel %vm12458_vm2, %v14895_v26, %v14827_v35  ;;  %v6911_v40 = vsel %vm12458_vm2, %v14897_v61, %v14899_v21  ;;  %v18070_v6 = vcombine.low %v14501_v42, %v14508_v63  ;;  %v12281_v63 = vld [vmem:[%s17997_s0 + $0x170] sm:$0x1] }
 0x1bc   :  { %v6929_v24 = vor.u32 %v6928_v39, %v14912_v43  ;;  %v14963_v46 = vrot.slane %v6932_v17, 5  ;;  %v9669_v56 = vrot.slane %v1973_v0, 9  ;;  %v2242_v51 = vrot.slane %v12280_v37, 5 }
 0x1bd   :  { %11464 = vmatpush3.bf16.msra.mxu0 %v12127_v53  ;;  %v10351_v53 = vld [vmem:[%s17997_s0 + $0xb8] sm:$0xf]  ;;  %v14977_v42 = vrot.slane %v6919_v9, 4  ;;  %v2245_v22 = vrot.slane %v12281_v63, 5  ;;  %v6946_v7 = vshll.u32 %v10348_v19, 16  ;;  %v6950_v36 = vshrl.u32 %v10348_v19, 16 }
 0x1be   :  { %v6939_v28 = vrot.slane %v6937_v54, 4  ;;  %v6964_v29 = vshll.u32 %v10350_v15, 16  ;;  %v6970_v49 = vshll.u32 %v10351_v53, 16  ;;  %v6974_v38 = vshrl.u32 %v10351_v53, 16 }
 0x1bf   :  { %11094 = vmatmul.mubr.msk.bf16.gmra.mrb[36].mxu1 %vm1002_vm3, %v18070_v6  ;;  %v6985_v39 = vshrl.u32 %v10353_v57, 16  ;;  %v6988_v17 = vshll.u32 %v10353_v57, 16  ;;  %v14992_v9 = vsel %vm12935_vm6, %v9669_v56, %v2242_v51  ;;  %v2244_v0 = vrot.slane %v2242_v51, 4 }
 0x1c0   :  { %11402 = vmatmul.mubr.msk.bf16.gmra.mrb[4].mxu0 %vm1002_vm3, %v14679_v3  ;;  %11097 = vmatprep.mubr.msk.bf16.mxu1 %vm1002_vm3, %v9697_v20  ;;  %v6942_v3 = vrot.slane %v6940_v59, 5  ;;  %v6961_v20 = vshrl.u32 %v10350_v15, 16  ;;  %v6994_v19 = vshll.u32 %v10354_v34, 16  ;;  %v6998_v6 = vshrl.u32 %v10354_v34, 16  ;;  %v1974_v59 = vld [vmem:[%s17997_s0 + $0x174] sm:$0xe] }
 0x1c1   :  { %11405 = vmatprep.mubr.msk.bf16.mxu0 %vm1002_vm3, %v14683_v62  ;;  %v14994_v62 = vrot.slane %v6929_v24, 4  ;;  %v14996_v37 = vrot.slane %v6946_v7, 5  ;;  %v6952_v63 = vrot.slane %v6950_v36, 4  ;;  %v6956_v54 = vshll.u32 %v10349_v16, 16  ;;  %v10352_v24 = vld [vmem:[%s17997_s0 + $0xbc] sm:$0x1] }
 0x1c2   :  { %v6943_v53 = vor.u32 %v6942_v3, %v6939_v28  ;;  %v6963_v56 = vrot.slane %v6961_v20, 4  ;;  %v6966_v51 = vrot.slane %v6964_v29, 5  ;;  %v15008_v57 = vrot.slane %v6970_v49, 5  ;;  %v12282_v28 = vld [vmem:[%s17997_s0 + $0x178] sm:$0xf] }
 0x1c3   :  { %v6976_v7 = vrot.slane %v6974_v38, 4  ;;  %v6987_v36 = vrot.slane %v6985_v39, 4  ;;  %v6990_v34 = vrot.slane %v6988_v17, 5  ;;  %v9670_v16 = vrot.slane %v1974_v59, 9  ;;  %v10355_v20 = vld [vmem:[%s17997_s0 + $0xc8] sm:$0x1] }
 0x1c4   :  { %v2249_v3 = vrot.slane %v12282_v28, 5  ;;  %v15020_v29 = vrot.slane %v6994_v19, 5  ;;  %v7000_v49 = vrot.slane %v6998_v6, 4  ;;  %v18071_v41 = vcombine.low %v14647_v33, %v14655_v25  ;;  %v12284_v6 = vld [vmem:[%s17997_s0 + $0x17c] sm:$0x1] }
 0x1c5   :  { %v6953_v38 = vor.u32 %v6952_v63, %v14996_v37  ;;  %v15037_v39 = vrot.slane %v6956_v54, 5  ;;  %v15044_v33 = vrot.slane %v6943_v53, 4  ;;  %v6967_v25 = vor.u32 %v6966_v51, %v6963_v56  ;;  %v12285_v28 = vld [vmem:[%s17997_s0 + $0x190] sm:$0xf] }
 0x1c6   :  { %v6980_v17 = vshll.u32 %v10352_v24, 16  ;;  %v2252_v63 = vrot.slane %v12284_v6, 5  ;;  %v6991_v54 = vor.u32 %v6990_v34, %v6987_v36  ;;  %v7004_v59 = vshll.u32 %v10355_v20, 16  ;;  %v1976_v24 = vld [vmem:[%s17997_s0 + $0x18c] sm:$0xe] }
 0x1c7   :  { %11098 = vmatmul.mubr.msk.bf16.gmra.mrb[40].mxu1 %vm1002_vm3, %v9698_v50  ;;  %v15034_v50 = vsel %vm12935_vm6, %v2244_v0, %v2245_v22  ;;  %v1975_v22 = vld [vmem:[%s17997_s0 + $0x180] sm:$0xe]  ;;  %v12283_v0 = vld [vmem:[%s17997_s0 + $0x184] sm:$0xf]  ;;  %v15058_v53 = vsel %vm12935_vm6, %v9670_v16, %v2249_v3  ;;  %v2251_v56 = vrot.slane %v2249_v3, 4  ;;  %v7001_v51 = vor.u32 %v7000_v49, %v15020_v29 }
 0x1c8   :  { %11406 = vmatmul.mubr.msk.bf16.gmra.mrb[8].mxu0 %vm1002_vm3, %v14727_v44  ;;  %11101 = vmatprep.mubr.msk.bf16.mxu1 %vm1002_vm3, %v18071_v41  ;;  %v10356_v44 = vld [vmem:[%s17997_s0 + $0xcc] sm:$0xf]  ;;  %v2256_v19 = vrot.slane %v12283_v0, 5  ;;  %v2263_v41 = vrot.slane %v12285_v28, 5  ;;  %v6954_v0 = vrot.slane %v6953_v38, 4  ;;  %v6968_v3 = vrot.slane %v6967_v25, 4 }
 0x1c9   :  { %11409 = vmatprep.mubr.msk.bf16.mxu0 %vm1002_vm3, %v14742_v4  ;;  %v6977_v4 = vor.u32 %v6976_v7, %v15008_v57  ;;  %v9671_v7 = vrot.slane %v1975_v22, 9  ;;  %v10357_v36 = vld [vmem:[%s17997_s0 + $0xd0] sm:$0xf]  ;;  %v7009_v34 = vshrl.u32 %v10356_v44, 16  ;;  %v7012_v16 = vshll.u32 %v10356_v44, 16 }
 0x1ca   :  { %v6982_v20 = vrot.slane %v6980_v17, 5  ;;  %v2258_v49 = vrot.slane %v2256_v19, 4  ;;  %v12286_v6 = vld [vmem:[%s17997_s0 + $0x188] sm:$0x1]  ;;  %v6992_v5 = vrot.slane %v6991_v54, 4  ;;  %v7006_v15 = vrot.slane %v7004_v59, 5 }
 0x1cb   :  { %v2259_v14 = vrot.slane %v12286_v6, 5  ;;  %v6978_v30 = vrot.slane %v6977_v4, 4  ;;  %v9672_v28 = vrot.slane %v1976_v24, 9  ;;  %v18072_v38 = vcombine.low %v14718_v47, %v14722_v12  ;;  %v12287_v44 = vld [vmem:[%s17997_s0 + $0x194] sm:$0x1] }
 0x1cc   :  { %v7002_v22 = vrot.slane %v7001_v51, 4  ;;  %v2265_v23 = vrot.slane %v2263_v41, 4  ;;  %v2266_v25 = vrot.slane %v12287_v44, 5  ;;  %v7018_v17 = vshll.u32 %v10357_v36, 16  ;;  %v10358_v12 = vld [vmem:[%s17997_s0 + $0xd4] sm:$0x1] }
 0x1cd   :  { %v6949_v47 = vsel %vm12458_vm2, %v15044_v33, %v14996_v37  ;;  %v7011_v4 = vrot.slane %v7009_v34, 4  ;;  %v7014_v54 = vrot.slane %v7012_v16, 5  ;;  %v7022_v59 = vshrl.u32 %v10357_v36, 16  ;;  %v10365_v34 = vld [vmem:[%s17997_s0 + $0x108] sm:$0xf] }
 0x1ce   :  { %v6959_v31 = vsel %vm12458_vm2, %v6954_v0, %v15037_v39  ;;  %v15100_v8 = vsel %vm12935_vm6, %v2251_v56, %v2252_v63  ;;  %v6983_v37 = vsel %vm12458_vm2, %v6978_v30, %v6982_v20  ;;  %v15116_v39 = vsel %vm12935_vm6, %v2258_v49, %v2259_v14  ;;  %v10368_v6 = vld [vmem:[%s17997_s0 + $0x114] sm:$0xf] }
 0x1cf   :  { %11102 = vmatmul.mubr.msk.bf16.gmra.mrb[44].mxu1 %vm1002_vm3, %v18072_v38  ;;  %v6997_v33 = vsel %vm12458_vm2, %v6992_v5, %v15020_v29  ;;  %v7007_v63 = vsel %vm12458_vm2, %v7002_v22, %v7006_v15  ;;  %v15132_v30 = vsel %vm12935_vm6, %v2265_v23, %v2266_v25  ;;  %v15134_v14 = vrot.slane %v7018_v17, 5 }
 0x1d0   :  { %11410 = vmatmul.mubr.msk.bf16.gmra.mrb[12].mxu0 %vm1002_vm3, %v14924_v2  ;;  %11105 = vmatprep.mubr.msk.bf16.mxu1 %vm1002_vm3, %v9701_v32  ;;  %v6973_v2 = vsel %vm12458_vm2, %v6968_v3, %v15008_v57  ;;  %v15107_v32 = vsel %vm12935_vm6, %v9671_v7, %v2256_v19  ;;  %v15123_v57 = vsel %vm12935_vm6, %v9672_v28, %v2263_v41  ;;  %v10360_v19 = vld [vmem:[%s17997_s0 + $0xf4] sm:$0xf]  ;;  %v7028_v56 = vshll.u32 %v10358_v12, 16 }
 0x1d1   :  { %11413 = vmatprep.mubr.msk.bf16.mxu0 %vm1002_vm3, %v14933_v1  ;;  %v10359_v1 = vld [vmem:[%s17997_s0 + $0xf0] sm:$0xf]  ;;  %v7015_v51 = vor.u32 %v7014_v54, %v7011_v4  ;;  %v7024_v5 = vrot.slane %v7022_v59, 4  ;;  %v10421_v15 = vcombine.low %v6901_v58, %v6911_v40  ;;  %v9705_v23 = vcombine.low %v14992_v9, %v15034_v50  ;;  %v10362_v58 = vld [vmem:[%s17997_s0 + $0xfc] sm:$0xf] }
 0x1d2   :  { %v7033_v29 = vshrl.u32 %v10359_v1, 16  ;;  %v7036_v24 = vshll.u32 %v10359_v1, 16  ;;  %v7042_v41 = vshll.u32 %v10360_v19, 16  ;;  %v7046_v0 = vshrl.u32 %v10360_v19, 16  ;;  %v10363_v40 = vld [vmem:[%s17997_s0 + $0x100] sm:$0xf] }
 0x1d3   :  { %v18073_v7 = vsel %vm12458_vm2, %v14994_v62, %v14963_v46  ;;  %v18074_v61 = vsel %vm12458_vm2, %v14977_v42, %v14912_v43  ;;  %v10423_v36 = vcombine.low %v6949_v47, %v6959_v31  ;;  %v9706_v35 = vcombine.low %v15058_v53, %v15100_v8  ;;  %v10361_v50 = vld [vmem:[%s17997_s0 + $0xf8] sm:$0x1]  ;;  %v10364_v19 = vld [vmem:[%s17997_s0 + $0x104] sm:$0x1] }
 0x1d4   :  { %v10422_v21 = vcombine.low %v18074_v61, %v18073_v7  ;;  %v9707_v26 = vcombine.low %v15107_v32, %v15116_v39  ;;  %v18075_v46 = vcombine.low %v14817_v48, %v14835_v55  ;;  %v15172_v43 = vcombine.low %v6973_v2, %v6983_v37  ;;  %v10366_v48 = vld [vmem:[%s17997_s0 + $0x10c] sm:$0xf]  ;;  %v10370_v61 = vld [vmem:[%s17997_s0 + $0x11c] sm:$0x1] }
 0x1d5   :  { %v15174_v42 = vcombine.low %v6997_v33, %v7007_v63  ;;  %v9708_v9 = vcombine.low %v15123_v57, %v15132_v30  ;;  %v15178_v62 = vrot.slane %v7028_v56, 5  ;;  %v18076_v55 = vcombine.low %v14872_v13, %v14893_v11  ;;  %v10369_v13 = vld [vmem:[%s17997_s0 + $0x118] sm:$0xf] }
 0x1d6   :  { %v15195_v16 = vrot.slane %v7015_v51, 4  ;;  %v7025_v3 = vor.u32 %v7024_v5, %v15134_v14  ;;  %v7035_v20 = vrot.slane %v7033_v29, 4  ;;  %v7038_v49 = vrot.slane %v7036_v24, 5  ;;  %v10367_v29 = vld [vmem:[%s17997_s0 + $0x110] sm:$0x1] }
 0x1d7   :  { %11106 = vmatmul.mubr.msk.bf16.gmra.mrb[48].mxu1 %vm1002_vm3, %v18075_v46  ;;  %v15202_v28 = vrot.slane %v7042_v41, 5  ;;  %v7057_v38 = vshrl.u32 %v10362_v58, 16  ;;  %v7060_v22 = vshll.u32 %v10362_v58, 16  ;;  %v7066_v11 = vshll.u32 %v10363_v40, 16 }
 0x1d8   :  { %11414 = vmatmul.mubr.msk.bf16.gmra.mrb[16].mxu0 %vm1002_vm3, %v14940_v45  ;;  %11109 = vmatprep.mubr.msk.bf16.mxu1 %vm1002_vm3, %v18076_v55  ;;  %v7048_v45 = vrot.slane %v7046_v0, 4  ;;  %v7070_v44 = vshrl.u32 %v10363_v40, 16  ;;  %v7081_v25 = vshrl.u32 %v10365_v34, 16  ;;  %v7084_v17 = vshll.u32 %v10365_v34, 16  ;;  %v10371_v34 = vld [vmem:[%s17997_s0 + $0x120] sm:$0xf] }
 0x1d9   :  { %11417 = vmatprep.mubr.msk.bf16.mxu0 %vm1002_vm3, %v10421_v15  ;;  %v7090_v47 = vshll.u32 %v10366_v48, 16  ;;  %v7094_v12 = vshrl.u32 %v10366_v48, 16  ;;  %v7105_v4 = vshrl.u32 %v10368_v6, 16  ;;  %v7108_v54 = vshll.u32 %v10368_v6, 16 }
 0x1da   :  { %v7026_v59 = vrot.slane %v7025_v3, 4  ;;  %v7052_v31 = vshll.u32 %v10361_v50, 16  ;;  %v7114_v2 = vshll.u32 %v10369_v13, 16  ;;  %v7118_v1 = vshrl.u32 %v10369_v13, 16 }
 0x1db   :  { %v7039_v37 = vor.u32 %v7038_v49, %v7035_v20  ;;  %v7049_v33 = vor.u32 %v7048_v45, %v15202_v28  ;;  %v7059_v63 = vrot.slane %v7057_v38, 4  ;;  %v7062_v56 = vrot.slane %v7060_v22, 5 }
 0x1dc   :  { %v15211_v51 = vrot.slane %v7066_v11, 5  ;;  %v7072_v5 = vrot.slane %v7070_v44, 4  ;;  %v7083_v24 = vrot.slane %v7081_v25, 4  ;;  %v7086_v15 = vrot.slane %v7084_v17, 5 }
 0x1dd   :  { %v18077_v41 = vcombine.low %v14903_v52, %v14910_v18  ;;  %v15220_v0 = vrot.slane %v7090_v47, 5  ;;  %v7096_v7 = vrot.slane %v7094_v12, 4  ;;  %v7107_v58 = vrot.slane %v7105_v4, 4  ;;  %v10374_v12 = vld [vmem:[%s17997_s0 + $0x12c] sm:$0xf] }
 0x1de   :  { %v7110_v40 = vrot.slane %v7108_v54, 5  ;;  %v7021_v52 = vsel %vm12458_vm2, %v15195_v16, %v15134_v14  ;;  %v7054_v18 = vrot.slane %v7052_v31, 5  ;;  %v15231_v46 = vrot.slane %v7114_v2, 5  ;;  %v10372_v14 = vld [vmem:[%s17997_s0 + $0x124] sm:$0xf] }
 0x1df   :  { %11110 = vmatmul.mubr.msk.bf16.gmra.mrb[52].mxu1 %vm1002_vm3, %v18077_v41  ;;  %v7120_v50 = vrot.slane %v7118_v1, 4  ;;  %v7050_v48 = vrot.slane %v7049_v33, 4  ;;  %v7076_v55 = vshll.u32 %v10364_v19, 16  ;;  %v7063_v16 = vor.u32 %v7062_v56, %v7059_v63  ;;  %v10375_v2 = vld [vmem:[%s17997_s0 + $0x130] sm:$0xf] }
 0x1e0   :  { %11418 = vmatmul.mubr.msk.bf16.gmra.mrb[20].mxu0 %vm1002_vm3, %v10422_v21  ;;  %11113 = vmatprep.mubr.msk.bf16.mxu1 %vm1002_vm3, %v9705_v23  ;;  %v7031_v21 = vsel %vm12458_vm2, %v7026_v59, %v15178_v62  ;;  %v7040_v23 = vrot.slane %v7039_v37, 4  ;;  %v7073_v3 = vor.u32 %v7072_v5, %v15211_v51  ;;  %v7087_v20 = vor.u32 %v7086_v15, %v7083_v24  ;;  %v10377_v19 = vld [vmem:[%s17997_s0 + $0x138] sm:$0xf]  ;;  %v10373_v56 = vld [vmem:[%s17997_s0 + $0x128] sm:$0x1] }
 0x1e1   :  { %11421 = vmatprep.mubr.msk.bf16.mxu0 %vm1002_vm3, %v10423_v36  ;;  %v7100_v49 = vshll.u32 %v10367_v29, 16  ;;  %v7097_v6 = vor.u32 %v7096_v7, %v15220_v0  ;;  %v7111_v45 = vor.u32 %v7110_v40, %v7107_v58  ;;  %v7124_v36 = vshll.u32 %v10370_v61, 16  ;;  %v12126_v58 = vld [vmem:[%s17997_s0 + $0xc] sm:$0xff]  }
 0x1e2   :  { %v7129_v38 = vshrl.u32 %v10371_v34, 16  ;;  %v7121_v22 = vor.u32 %v7120_v50, %v15231_v46  ;;  %v7132_v62 = vshll.u32 %v10371_v34, 16  ;;  %v7138_v13 = vshll.u32 %v10372_v14, 16  ;;  %v10376_v50 = vld [vmem:[%s17997_s0 + $0x134] sm:$0x1] }
 0x1e3   :  { %v7142_v11 = vshrl.u32 %v10372_v14, 16  ;;  %v10426_v44 = vcombine.low %v7021_v52, %v7031_v21  ;;  %v7045_v25 = vsel %vm12458_vm2, %v7040_v23, %v15202_v28  ;;  %v7055_v17 = vsel %vm12458_vm2, %v7050_v48, %v7054_v18  ;;  %v18078_v48 = vld [vmem:[#allocation6_spill] sm:$0xff] }
 0x1e4   :  { %v7078_v47 = vrot.slane %v7076_v55, 5  ;;  %v7064_v4 = vrot.slane %v7063_v16, 4  ;;  %v7074_v54 = vrot.slane %v7073_v3, 4  ;;  %v7088_v59 = vrot.slane %v7087_v20, 4  ;;  %v18079_v55 = vld [vmem:[#allocation5_spill] sm:$0xff] }
 0x1e5   :  { %v7102_v31 = vrot.slane %v7100_v49, 5  ;;  %v7098_v28 = vrot.slane %v7097_v6, 4  ;;  %v7112_v1 = vrot.slane %v7111_v45, 4  ;;  %v7126_v37 = vrot.slane %v7124_v36, 5  ;;  %v9928_v6 = vld [vmem:[%s17997_s0 + $0xf0] sm:$0xf] }
 0x1e6   :  { %v7131_v33 = vrot.slane %v7129_v38, 4  ;;  %v7122_v63 = vrot.slane %v7121_v22, 4  ;;  %v7134_v53 = vrot.slane %v7132_v62, 5  ;;  %v15270_v8 = vrot.slane %v7138_v13, 5  ;;  %v10380_v62 = vld [vmem:[%s17997_s0 + $0x144] sm:$0xf] }
 0x1e7   :  { %11114 = vmatmul.mubr.msk.bf16.gmra.mrb[56].mxu1 %vm1002_vm3, %v9706_v35  ;;  %v7144_v35 = vrot.slane %v7142_v11, 4  ;;  %v7153_v5 = vshrl.u32 %v10374_v12, 16  ;;  %v7156_v29 = vshll.u32 %v10374_v12, 16  ;;  %v7166_v24 = vshrl.u32 %v10375_v2, 16  ;;  %v12128_v12 = vld [vmem:[%s17997_s0 + $0x18] sm:$0xff]  }
 0x1e8   :  { %11422 = vmatmul.mubr.msk.bf16.gmra.mrb[24].mxu0 %vm1002_vm3, %v15172_v43  ;;  %11117 = vmatprep.mubr.msk.bf16.mxu1 %vm1002_vm3, %v9707_v26  ;;  %v7162_v43 = vshll.u32 %v10375_v2, 16  ;;  %v10427_v15 = vcombine.low %v7045_v25, %v7055_v17  ;;  %v7069_v32 = vsel %vm12458_vm2, %v7064_v4, %v15211_v51  ;;  %v7177_v39 = vshrl.u32 %v10377_v19, 16  ;;  %v10378_v51 = vld [vmem:[%s17997_s0 + $0x13c] sm:$0xf]  ;;  %v10381_v17 = vld [vmem:[%s17997_s0 + $0x148] sm:$0xf] }
 0x1e9   :  { %11425 = vmatprep.mubr.msk.bf16.mxu0 %vm1002_vm3, %v15174_v42  ;;  %v7180_v26 = vshll.u32 %v10377_v19, 16  ;;  %v7079_v41 = vsel %vm12458_vm2, %v7074_v54, %v7078_v47  ;;  %v7093_v42 = vsel %vm12458_vm2, %v7088_v59, %v15220_v0  ;;  %v7103_v7 = vsel %vm12458_vm2, %v7098_v28, %v7102_v31  ;;  %v10383_v31 = vld [vmem:[%s17997_s0 + $0x150] sm:$0xf]  ;;  %v10379_v28 = vld [vmem:[%s17997_s0 + $0x140] sm:$0x1] }
 0x1ea   :  { %v7117_v61 = vsel %vm12458_vm2, %v7112_v1, %v15231_v46  ;;  %v7127_v40 = vsel %vm12458_vm2, %v7122_v63, %v7126_v37  ;;  %v7135_v52 = vor.u32 %v7134_v53, %v7131_v33  ;;  %v7145_v0 = vor.u32 %v7144_v35, %v15270_v8 }
 0x1eb   :  { %v7148_v18 = vshll.u32 %v10373_v56, 16  ;;  %v7155_v46 = vrot.slane %v7153_v5, 4  ;;  %v7158_v34 = vrot.slane %v7156_v29, 5  ;;  %v15302_v21 = vrot.slane %v7162_v43, 5  ;;  %v12129_v56 = vld [vmem:[%s17997_s0 + $0x24] sm:$0xff]  }
 0x1ec   :  { %v7168_v23 = vrot.slane %v7166_v24, 4  ;;  %v18080_v14 = vor.u32 %v18078_v48, %v18079_v55  ;;  %v7179_v3 = vrot.slane %v7177_v39, 4  ;;  %v7182_v20 = vrot.slane %v7180_v26, 5  ;;  %v10384_v29 = vld [vmem:[%s17997_s0 + $0x154] sm:$0xf] }
 0x1ed   :  { %v7186_v49 = vshll.u32 %v10378_v51, 16  ;;  %v10428_v45 = vcombine.low %v7069_v32, %v7079_v41  ;;  %v10429_v36 = vcombine.low %v7093_v42, %v7103_v7  ;;  %v15316_v38 = vcombine.low %v7117_v61, %v7127_v40  ;;  %v10386_v41 = vld [vmem:[%s17997_s0 + $0x15c] sm:$0xf]  ;;  %v12288_v40 = vld [vmem:[%s17996_s1 + $0x40] sm:$0xff]  }
 0x1ee   :  { %v15307_v16 = vrot.slane %v18080_v14, 4  ;;  %v7190_v22 = vshrl.u32 %v10378_v51, 16  ;;  %v15323_v13 = vrot.slane %v7135_v52, 4  ;;  %v15325_v11 = vrot.slane %v7145_v0, 4  ;;  %v10387_v51 = vld [vmem:[%s17997_s0 + $0x160] sm:$0xf] }
 0x1ef   :  { %11118 = vmatmul.mubr.msk.bf16.gmra.mrb[60].mxu1 %vm1002_vm3, %v9708_v9  ;;  %v15327_v57 = vrot.slane %v7148_v18, 5  ;;  %v7172_v30 = vshll.u32 %v10376_v50, 16  ;;  %v7159_v9 = vor.u32 %v7158_v34, %v7155_v46  ;;  %v7169_v25 = vor.u32 %v7168_v23, %v15302_v21  ;;  %v10382_v52 = vld [vmem:[%s17997_s0 + $0x14c] sm:$0x1] }
 0x1f0   :  { %11426 = vmatmul.mubr.msk.bf16.gmra.mrb[28].mxu0 %vm1002_vm3, %v10426_v44  ;;  %11125 = vmatprep.mubr.msk.bf16.mxu1 %vm1002_vm3, %v12126_v58  ;;  %v4026_v47 = vshrl.u32 %v9928_v6, 16  ;;  %v4029_v44 = vshll.u32 %v9928_v6, 16  ;;  %v7183_v4 = vor.u32 %v7182_v20, %v7179_v3  ;;  %v15337_v54 = vrot.slane %v7186_v49, 5  ;;  %v12289_v49 = vld [vmem:[%s17996_s1 + $0x48] sm:$0xff]  }
 0x1f1   :  { %11429 = vmatprep.mubr.msk.bf16.mxu0 %vm1002_vm3, %v10427_v15  ;;  %v7201_v59 = vshrl.u32 %v10380_v62, 16  ;;  %v4048_v2 = vsel %vm12458_vm2, %v15307_v16, %v14879_v60  ;;  %v7192_v1 = vrot.slane %v7190_v22, 4  ;;  %v7204_v37 = vshll.u32 %v10380_v62, 16 }
 0x1f2   :  { %v4028_v33 = vrot.slane %v4026_v47, 4  ;;  %v4031_v19 = vrot.slane %v4029_v44, 5  ;;  %v7141_v63 = vsel %vm12458_vm2, %v15323_v13, %v15270_v8  ;;  %v7151_v53 = vsel %vm12458_vm2, %v15325_v11, %v15327_v57 }
 0x1f3   :  { %v7210_v35 = vshll.u32 %v10381_v17, 16  ;;  %v7214_v60 = vshrl.u32 %v10381_v17, 16  ;;  %v15360_v5 = vrot.slane %v7172_v30, 5  ;;  %v7225_v43 = vshrl.u32 %v10383_v31, 16  ;;  %v10385_v30 = vld [vmem:[%s17997_s0 + $0x158] sm:$0x1] }
 0x1f4   :  { %v7228_v24 = vshll.u32 %v10383_v31, 16  ;;  %v4032_v8 = vor.u32 %v4031_v19, %v4028_v33  ;;  %v15365_v15 = vrot.slane %v7159_v9, 4  ;;  %v15367_v32 = vrot.slane %v7169_v25, 4  ;;  %v10388_v19 = vld [vmem:[%s17997_s0 + $0x164] sm:$0x1] }
 0x1f5   :  { %v15369_v39 = vrot.slane %v7183_v4, 4  ;;  %v7196_v26 = vshll.u32 %v10379_v28, 16  ;;  %v7193_v42 = vor.u32 %v7192_v1, %v15337_v54  ;;  %v7203_v7 = vrot.slane %v7201_v59, 4  ;;  %v10389_v4 = vld [vmem:[%s17997_s0 + $0x168] sm:$0xf] }
 0x1f6   :  { %v7206_v61 = vrot.slane %v7204_v37, 5  ;;  %v4033_v58 = vrot.slane %v4032_v8, 4  ;;  %v15386_v0 = vrot.slane %v7210_v35, 5  ;;  %v7216_v18 = vrot.slane %v7214_v60, 4  ;;  %v10390_v28 = vld [vmem:[%s17997_s0 + $0x16c] sm:$0xf] }
 0x1f7   :  { %11126 = vmatmul.mubr.msk.bf16.vlgmr.msra.gmra.mrb[0].mxu1 %vm1002_vm3, %v12128_v12  ;;  %v7234_v50 = vshll.u32 %v10384_v29, 16  ;;  %v7238_v46 = vshrl.u32 %v10384_v29, 16  ;;  %v7227_v34 = vrot.slane %v7225_v43, 4  ;;  %v7230_v23 = vrot.slane %v7228_v24, 5 }
 0x1f8   :  { %11531 = vmatpush3.bf16.msra.mxu1 %v12288_v40  ;;  %11430 = vmatmul.mubr.msk.bf16.gmra.mrb[32].mxu0 %vm1002_vm3, %v10428_v45  ;;  %v7249_v48 = vshrl.u32 %v10386_v41, 16  ;;  %v4038_v14 = vsel %vm12458_vm2, %v4033_v58, %v18079_v55  ;;  %v7252_v16 = vshll.u32 %v10386_v41, 16  ;;  %v7258_v3 = vshll.u32 %v10387_v51, 16  ;;  %v12130_v45 = vld [vmem:[%s17997_s0 + $0x30] sm:$0xff]   ;;  %v12131_v55 = vld [vmem:[%s17997_s0 + $0x3c] sm:$0xff]  }
 0x1f9   :  { %11129 = vmatprep.mubr.msk.bf16.mxu1 %vm1002_vm3, %v12129_v56  ;;  %11433 = vmatprep.mubr.msk.bf16.mxu0 %vm1002_vm3, %v10429_v36  ;;  %v7262_v20 = vshrl.u32 %v10387_v51, 16  ;;  %v15396_v6 = vcombine.low %v4038_v14, %v4048_v2  ;;  %v7194_v36 = vrot.slane %v7193_v42, 4  ;;  %v7198_v22 = vrot.slane %v7196_v26, 5  ;;  %v10391_v42 = vld [vmem:[%s17997_s0 + $0x170] sm:$0x1] }
 0x1fa   :  { %11530 = vmatprep.subr.bf16.mxu1 %v12289_v49  ;;  %v7207_v62 = vor.u32 %v7206_v61, %v7203_v7  ;;  %v7220_v13 = vshll.u32 %v10382_v52, 16  ;;  %v10431_v11 = vcombine.low %v7141_v63, %v7151_v53  ;;  %v7217_v57 = vor.u32 %v7216_v18, %v15386_v0  ;;  %v10393_v7 = vld [vmem:[%s17997_s0 + $0x178] sm:$0xf] }
 0x1fb   :  { %v15408_v9 = vrot.slane %v7234_v50, 5  ;;  %v7240_v25 = vrot.slane %v7238_v46, 4  ;;  %v7165_v17 = vsel %vm12458_vm2, %v15365_v15, %v15302_v21  ;;  %v7175_v47 = vsel %vm12458_vm2, %v15367_v32, %v15360_v5  ;;  %v12132_v15 = vld [vmem:[%s17997_s0 + $0x48] sm:$0xff]   ;;  %v12133_v61 = vld [vmem:[%s17997_s0 + $0x54] sm:$0xff]  }
 0x1fc   :  { %11532 = vmatpush3.bf16.msra.mxu1 %v12289_v49  ;;  %v7189_v44 = vsel %vm12458_vm2, %v15369_v39, %v15337_v54  ;;  %v7231_v12 = vor.u32 %v7230_v23, %v7227_v34  ;;  %v7251_v59 = vrot.slane %v7249_v48, 4  ;;  %v7254_v31 = vrot.slane %v7252_v16, 5  ;;  %v10396_v23 = vld [vmem:[%s17997_s0 + $0x184] sm:$0xf] }
 0x1fd   :  { %v15425_v2 = vrot.slane %v7258_v3, 5  ;;  %v7264_v21 = vrot.slane %v7262_v20, 4  ;;  %v7199_v1 = vsel %vm12458_vm2, %v7194_v36, %v7198_v22  ;;  %v7208_v54 = vrot.slane %v7207_v62, 4 }
 0x1fe   :  { %v7222_v37 = vrot.slane %v7220_v13, 5  ;;  %v7244_v33 = vshll.u32 %v10385_v30, 16  ;;  %v7218_v63 = vrot.slane %v7217_v57, 4  ;;  %v7241_v53 = vor.u32 %v7240_v25, %v15408_v9  ;;  %v12134_v25 = vld [vmem:[%s17997_s0 + $0x60] sm:$0xff]  }
 0x1ff   :  { %11130 = vmatmul.mubr.msk.bf16.gmra.mrb[4].mxu1 %vm1002_vm3, %v12130_v45  ;;  %v7273_v35 = vshrl.u32 %v10389_v4, 16  ;;  %v7276_v60 = vshll.u32 %v10389_v4, 16  ;;  %v7282_v56 = vshll.u32 %v10390_v28, 16  ;;  %v7286_v5 = vshrl.u32 %v10390_v28, 16  ;;  %v10398_v28 = vld [vmem:[%s17997_s0 + $0x18c] sm:$0xf] }
 0x200   :  { %11434 = vmatmul.mubr.msk.bf16.gmra.mrb[36].mxu0 %vm1002_vm3, %v15316_v38  ;;  %11133 = vmatprep.mubr.msk.bf16.mxu1 %vm1002_vm3, %v12131_v55  ;;  %v7232_v29 = vrot.slane %v7231_v12, 4  ;;  %v7255_v43 = vor.u32 %v7254_v31, %v7251_v59  ;;  %v7265_v24 = vor.u32 %v7264_v21, %v15425_v2  ;;  %v7268_v8 = vshll.u32 %v10388_v19, 16  ;;  %v10392_v38 = vld [vmem:[%s17997_s0 + $0x174] sm:$0xf]  ;;  %v10394_v12 = vld [vmem:[%s17997_s0 + $0x17c] sm:$0x1] }
 0x201   :  { %11437 = vmatprep.mubr.msk.bf16.mxu0 %vm1002_vm3, %v10431_v11  ;;  %v10432_v32 = vcombine.low %v7165_v17, %v7175_v47  ;;  %v10433_v39 = vcombine.low %v7189_v44, %v7199_v1  ;;  %v7213_v26 = vsel %vm12458_vm2, %v7208_v54, %v15386_v0  ;;  %v7246_v41 = vrot.slane %v7244_v33, 5  ;;  %v10395_v0 = vld [vmem:[%s17997_s0 + $0x180] sm:$0xf] }
 0x202   :  { %v7223_v51 = vsel %vm12458_vm2, %v7218_v63, %v7222_v37  ;;  %v7242_v58 = vrot.slane %v7241_v53, 4  ;;  %v7275_v40 = vrot.slane %v7273_v35, 4  ;;  %v7278_v52 = vrot.slane %v7276_v60, 5  ;;  %v10397_v37 = vld [vmem:[%s17997_s0 + $0x188] sm:$0x1] }
 0x203   :  { %v15465_v18 = vrot.slane %v7282_v56, 5  ;;  %v7288_v50 = vrot.slane %v7286_v5, 4  ;;  %v7297_v46 = vshrl.u32 %v10392_v38, 16  ;;  %v7300_v34 = vshll.u32 %v10392_v38, 16  ;;  %v10399_v56 = vld [vmem:[%s17997_s0 + $0x190] sm:$0xf] }
 0x204   :  { %v7237_v48 = vsel %vm12458_vm2, %v7232_v29, %v15408_v9  ;;  %v7256_v14 = vrot.slane %v7255_v43, 4  ;;  %v7266_v16 = vrot.slane %v7265_v24, 4  ;;  %v7270_v3 = vrot.slane %v7268_v8, 5  ;;  %v10401_v38 = vld [vmem:[%s17997_s0 + $0x198] sm:$0xf] }
 0x205   :  { %v7306_v20 = vshll.u32 %v10393_v7, 16  ;;  %v7310_v49 = vshrl.u32 %v10393_v7, 16  ;;  %v7321_v45 = vshrl.u32 %v10395_v0, 16  ;;  %v7324_v36 = vshll.u32 %v10395_v0, 16 }
 0x206   :  { %v7247_v22 = vsel %vm12458_vm2, %v7242_v58, %v7246_v41  ;;  %v7292_v62 = vshll.u32 %v10391_v42, 16  ;;  %v7330_v13 = vshll.u32 %v10396_v23, 16  ;;  %v7334_v55 = vshrl.u32 %v10396_v23, 16 }
 0x207   :  { %11134 = vmatmul.mubr.msk.bf16.gmra.mrb[8].mxu1 %vm1002_vm3, %v12132_v15  ;;  %v7279_v11 = vor.u32 %v7278_v52, %v7275_v40  ;;  %v7289_v57 = vor.u32 %v7288_v50, %v15465_v18  ;;  %v7299_v30 = vrot.slane %v7297_v46, 4  ;;  %v7302_v9 = vrot.slane %v7300_v34, 5  ;;  %v10402_v15 = vld [vmem:[%s17997_s0 + $0x19c] sm:$0xf] }
 0x208   :  { %11438 = vmatmul.mubr.msk.bf16.gmra.mrb[40].mxu0 %vm1002_vm3, %v10432_v32  ;;  %11137 = vmatprep.mubr.msk.bf16.mxu1 %vm1002_vm3, %v12133_v61  ;;  %v10434_v17 = vcombine.low %v7213_v26, %v7223_v51  ;;  %v7261_v47 = vsel %vm12458_vm2, %v7256_v14, %v15425_v2  ;;  %v7271_v44 = vsel %vm12458_vm2, %v7266_v16, %v7270_v3  ;;  %v15491_v4 = vrot.slane %v7306_v20, 5  ;;  %v12135_v2 = vld [vmem:[%s17997_s0 + $0x6c] sm:$0xff]   ;;  %v12136_v50 = vld [vmem:[%s17997_s0 + $0x78] sm:$0xff]  }
 0x209   :  { %11441 = vmatprep.mubr.msk.bf16.mxu0 %vm1002_vm3, %v10433_v39  ;;  %v7312_v59 = vrot.slane %v7310_v49, 4  ;;  %v7323_v31 = vrot.slane %v7321_v45, 4  ;;  %v7326_v21 = vrot.slane %v7324_v36, 5  ;;  %v10435_v1 = vcombine.low %v7237_v48, %v7247_v22  ;;  %v10400_v45 = vld [vmem:[%s17997_s0 + $0x194] sm:$0x1] }
 0x20a   :  { %v7294_v54 = vrot.slane %v7292_v62, 5  ;;  %v15502_v33 = vrot.slane %v7330_v13, 5  ;;  %v7336_v19 = vrot.slane %v7334_v55, 4  ;;  %v7280_v63 = vrot.slane %v7279_v11, 4  ;;  %v10404_v36 = vld [vmem:[%s17997_s0 + $0x1a4] sm:$0xf] }
 0x20b   :  { %v7290_v53 = vrot.slane %v7289_v57, 4  ;;  %v7303_v35 = vor.u32 %v7302_v9, %v7299_v30  ;;  %v7316_v60 = vshll.u32 %v10394_v12, 16  ;;  %v10436_v5 = vcombine.low %v7261_v47, %v7271_v44  ;;  %v10405_v11 = vld [vmem:[%s17997_s0 + $0x1a8] sm:$0xf] }
 0x20c   :  { %v7313_v29 = vor.u32 %v7312_v59, %v15491_v4  ;;  %v7327_v43 = vor.u32 %v7326_v21, %v7323_v31  ;;  %v7340_v24 = vshll.u32 %v10397_v37, 16  ;;  %v7345_v8 = vshrl.u32 %v10398_v28, 16 }
 0x20d   :  { %v7337_v32 = vor.u32 %v7336_v19, %v15502_v33  ;;  %v7348_v39 = vshll.u32 %v10398_v28, 16  ;;  %v7354_v26 = vshll.u32 %v10399_v56, 16  ;;  %v7358_v41 = vshrl.u32 %v10399_v56, 16 }
 0x20e   :  { %v7285_v42 = vsel %vm12458_vm2, %v7280_v63, %v15465_v18  ;;  %v7295_v7 = vsel %vm12458_vm2, %v7290_v53, %v7294_v54  ;;  %v7304_v61 = vrot.slane %v7303_v35, 4  ;;  %v7318_v51 = vrot.slane %v7316_v60, 5  ;;  %v12137_v18 = vld [vmem:[%s17997_s0 + $0x84] sm:$0xff]   ;;  %v12138_v54 = vld [vmem:[%s17997_s0 + $0x90] sm:$0xff]  }
 0x20f   :  { %11138 = vmatmul.mubr.msk.bf16.gmra.mrb[12].mxu1 %vm1002_vm3, %v12134_v25  ;;  %v7369_v58 = vshrl.u32 %v10401_v38, 16  ;;  %v7372_v40 = vshll.u32 %v10401_v38, 16  ;;  %v7378_v52 = vshll.u32 %v10402_v15, 16  ;;  %v7382_v0 = vshrl.u32 %v10402_v15, 16  ;;  %v10403_v25 = vld [vmem:[%s17997_s0 + $0x1a0] sm:$0x1] }
 0x210   :  { %11442 = vmatmul.mubr.msk.bf16.gmra.mrb[44].mxu0 %vm1002_vm3, %v10434_v17  ;;  %11141 = vmatprep.mubr.msk.bf16.mxu1 %vm1002_vm3, %v12135_v2  ;;  %v7314_v46 = vrot.slane %v7313_v29, 4  ;;  %v7328_v34 = vrot.slane %v7327_v43, 4  ;;  %v7342_v23 = vrot.slane %v7340_v24, 5  ;;  %v7347_v48 = vrot.slane %v7345_v8, 4  ;;  %v10406_v38 = vld [vmem:[%s17997_s0 + $0x1ac] sm:$0x1] }
 0x211   :  { %11445 = vmatprep.mubr.msk.bf16.mxu0 %vm1002_vm3, %v10435_v1  ;;  %v7338_v14 = vrot.slane %v7337_v32, 4  ;;  %v7350_v16 = vrot.slane %v7348_v39, 5  ;;  %v7356_v3 = vrot.slane %v7354_v26, 5  ;;  %v7360_v20 = vrot.slane %v7358_v41, 4 }
 0x212   :  { %v10437_v49 = vcombine.low %v7285_v42, %v7295_v7  ;;  %v7371_v22 = vrot.slane %v7369_v58, 4  ;;  %v7374_v62 = vrot.slane %v7372_v40, 5  ;;  %v7380_v13 = vrot.slane %v7378_v52, 5  ;;  %v12140_v58 = vld [vmem:[%s17997_s0 + $0xa8] sm:$0xff]   ;;  %v10477_v40 = vld [vmem:[%s17997_s0 + $0x18] sm:$0xe] }
 0x213   :  { %v7384_v55 = vrot.slane %v7382_v0, 4  ;;  %v7309_v57 = vsel %vm12458_vm2, %v7304_v61, %v15491_v4  ;;  %v7319_v30 = vsel %vm12458_vm2, %v7314_v46, %v7318_v51  ;;  %v7333_v9 = vsel %vm12458_vm2, %v7328_v34, %v15502_v33  ;;  %v12139_v33 = vld [vmem:[%s17997_s0 + $0x9c] sm:$0xff]   ;;  %v12141_v0 = vld [vmem:[%s17997_s0 + $0xb4] sm:$0xff]  }
 0x214   :  { %v7343_v17 = vsel %vm12458_vm2, %v7338_v14, %v7342_v23  ;;  %v7351_v47 = vor.u32 %v7350_v16, %v7347_v48  ;;  %v7361_v44 = vor.u32 %v7360_v20, %v7356_v3  ;;  %v7364_v12 = vshll.u32 %v10400_v45, 16  ;;  %v12290_v61 = vld [vmem:[%s17997_s0 + $0x1c] sm:$0xf]  ;;  %v12291_v14 = vld [vmem:[%s17997_s0 + $0x20] sm:$0x1] }
 0x215   :  { %v7393_v4 = vshrl.u32 %v10404_v36, 16  ;;  %v7396_v59 = vshll.u32 %v10404_v36, 16  ;;  %v7402_v31 = vshll.u32 %v10405_v11, 16  ;;  %v7406_v21 = vshrl.u32 %v10405_v11, 16  ;;  %v10478_v36 = vld [vmem:[%s17997_s0 + $0x24] sm:$0xe] }
 0x216   :  { %v7375_v28 = vor.u32 %v7374_v62, %v7371_v22  ;;  %v7385_v2 = vor.u32 %v7384_v55, %v7380_v13  ;;  %v7388_v1 = vshll.u32 %v10403_v25, 16  ;;  %v10438_v37 = vcombine.low %v7309_v57, %v7319_v30  ;;  %v12142_v11 = vld [vmem:[%s17997_s0 + $0xc0] sm:$0xff]   ;;  %v10479_v57 = vld [vmem:[%s17997_s0 + $0x30] sm:$0xe] }
 0x217   :  { %11142 = vmatmul.mubr.msk.bf16.gmra.mrb[16].mxu1 %vm1002_vm3, %v12136_v50  ;;  %v10439_v19 = vcombine.low %v7333_v9, %v7343_v17  ;;  %v7352_v63 = vrot.slane %v7351_v47, 4  ;;  %v7362_v53 = vrot.slane %v7361_v44, 4  ;;  %v7366_v35 = vrot.slane %v7364_v12, 5  ;;  %v12143_v9 = vld [vmem:[%s17997_s0 + $0xe4] sm:$0xff]   ;;  %v12294_v47 = vld [vmem:[%s17997_s0 + $0x2c] sm:$0x1] }
 0x218   :  { %11446 = vmatmul.mubr.msk.bf16.gmra.mrb[48].mxu0 %vm1002_vm3, %v10436_v5  ;;  %11145 = vmatprep.mubr.msk.bf16.mxu1 %vm1002_vm3, %v12137_v18  ;;  %v7395_v60 = vrot.slane %v7393_v4, 4  ;;  %v7398_v56 = vrot.slane %v7396_v59, 5  ;;  %v7404_v5 = vrot.slane %v7402_v31, 5  ;;  %v7408_v29 = vrot.slane %v7406_v21, 4  ;;  %v12295_v31 = vld [vmem:[%s17997_s0 + $0x38] sm:$0x1] }
 0x219   :  { %11449 = vmatprep.mubr.msk.bf16.mxu0 %vm1002_vm3, %v10437_v49  ;;  %v7376_v43 = vrot.slane %v7375_v28, 4  ;;  %v7386_v24 = vrot.slane %v7385_v2, 4  ;;  %v7390_v8 = vrot.slane %v7388_v1, 5  ;;  %v7357_v15 = vsel %vm12458_vm2, %v7352_v63, %v7356_v3  ;;  %v12292_v3 = vld [vmem:[%s17997_s0 + $0x28] sm:$0xf] }
 0x21a   :  { %v7367_v32 = vsel %vm12458_vm2, %v7362_v53, %v7366_v35  ;;  %v7399_v39 = vor.u32 %v7398_v56, %v7395_v60  ;;  %v7409_v26 = vor.u32 %v7408_v29, %v7404_v5  ;;  %v7412_v41 = vshll.u32 %v10406_v38, 16  ;;  %v10480_v28 = vld [vmem:[%s17997_s0 + $0x3c] sm:$0xe]  ;;  %v12296_v2 = vld [vmem:[%s17997_s0 + $0x40] sm:$0xf] }
 0x21b   :  { %v7381_v42 = vsel %vm12458_vm2, %v7376_v43, %v7380_v13  ;;  %v7391_v7 = vsel %vm12458_vm2, %v7386_v24, %v7390_v8  ;;  %v8108_v51 = vrot.slane %v12290_v61, 5  ;;  %v10440_v52 = vcombine.low %v7357_v15, %v7367_v32  ;;  %v12293_v13 = vld [vmem:[%s17997_s0 + $0x34] sm:$0xf]  ;;  %v12298_v35 = vld [vmem:[%s17997_s0 + $0x58] sm:$0xf]  ;;  %v12145_v15 = vld [vmem:[%s17997_s0 + $0xfc] sm:$0xff]  }
 0x21c   :  { %v10441_v50 = vcombine.low %v7381_v42, %v7391_v7  ;;  %v7400_v46 = vrot.slane %v7399_v39, 4  ;;  %v7410_v34 = vrot.slane %v7409_v26, 4  ;;  %v7414_v23 = vrot.slane %v7412_v41, 5  ;;  %v10482_v53 = vld [vmem:[%s17997_s0 + $0x54] sm:$0xe] }
 0x21d   :  { %v10509_v48 = vrot.slane %v10477_v40, 9  ;;  %v8110_v18 = vrot.slane %v8108_v51, 4  ;;  %v8111_v16 = vrot.slane %v12291_v14, 5  ;;  %v8115_v20 = vrot.slane %v12292_v3, 5  ;;  %v12299_v43 = vld [vmem:[%s17997_s0 + $0x44] sm:$0x1] }
 0x21e   :  { %v7405_v49 = vsel %vm12458_vm2, %v7400_v46, %v7404_v5  ;;  %v7415_v45 = vsel %vm12458_vm2, %v7410_v34, %v7414_v23  ;;  %v8122_v55 = vrot.slane %v12293_v13, 5  ;;  %v10510_v25 = vrot.slane %v10478_v36, 9  ;;  %v12144_v8 = vld [vmem:[%s17997_s0 + $0xf0] sm:$0xff]   ;;  %v10483_v40 = vld [vmem:[%s17997_s0 + $0x60] sm:$0xe] }
 0x21f   :  { %11146 = vmatmul.mubr.msk.bf16.gmra.mrb[20].mxu1 %vm1002_vm3, %v12138_v54  ;;  %v8109_v22 = vsel %vm12935_vm6, %v10509_v48, %v8108_v51  ;;  %v8112_v62 = vsel %vm12935_vm6, %v8110_v18, %v8111_v16  ;;  %v10442_v30 = vcombine.low %v7405_v49, %v7415_v45  ;;  %v8117_v17 = vrot.slane %v8115_v20, 4  ;;  %v12300_v42 = vld [vmem:[%s17997_s0 + $0x50] sm:$0x1]  ;;  %v12301_v51 = vld [vmem:[%s17997_s0 + $0x5c] sm:$0x1] }
 0x220   :  { %11450 = vmatmul.mubr.msk.bf16.gmra.mrb[52].mxu0 %vm1002_vm3, %v10438_v37  ;;  %11149 = vmatprep.mubr.msk.bf16.mxu1 %vm1002_vm3, %v12139_v33  ;;  %v8118_v44 = vrot.slane %v12294_v47, 5  ;;  %v10545_v12 = vcombine.low %v8109_v22, %v8112_v62  ;;  %v10511_v4 = vrot.slane %v10479_v57, 9  ;;  %v8124_v59 = vrot.slane %v8122_v55, 4  ;;  %v10481_v33 = vld [vmem:[%s17997_s0 + $0x48] sm:$0xe] }
 0x221   :  { %11453 = vmatprep.mubr.msk.bf16.mxu0 %vm1002_vm3, %v10439_v19  ;;  %v8125_v21 = vrot.slane %v12295_v31, 5  ;;  %v8129_v1 = vrot.slane %v12296_v2, 5  ;;  %v8116_v54 = vsel %vm12935_vm6, %v10510_v25, %v8115_v20  ;;  %v12297_v19 = vld [vmem:[%s17997_s0 + $0x4c] sm:$0xf]  ;;  %v8143_v60 = vrot.slane %v12298_v35, 5 }
 0x222   :  { %v8119_v37 = vsel %vm12935_vm6, %v8117_v17, %v8118_v44  ;;  %v8136_v63 = vrot.slane %v12297_v19, 5  ;;  %v8123_v56 = vsel %vm12935_vm6, %v10511_v4, %v8122_v55  ;;  %v10512_v29 = vrot.slane %v10480_v28, 9  ;;  %v10484_v46 = vld [vmem:[%s17997_s0 + $0x6c] sm:$0xe]  ;;  %v12303_v34 = vld [vmem:[%s17997_s0 + $0x70] sm:$0xf] }
 0x223   :  { %v8126_v5 = vsel %vm12935_vm6, %v8124_v59, %v8125_v21  ;;  %v8132_v24 = vrot.slane %v12299_v43, 5  ;;  %v10546_v38 = vcombine.low %v8116_v54, %v8119_v37  ;;  %v8131_v32 = vrot.slane %v8129_v1, 4  ;;  %v12304_v18 = vld [vmem:[%s17997_s0 + $0x7c] sm:$0xf]  ;;  %v10485_v45 = vld [vmem:[%s17997_s0 + $0x78] sm:$0xe] }
 0x224   :  { %v10513_v39 = vrot.slane %v10481_v33, 9  ;;  %v10514_v26 = vrot.slane %v10482_v53, 9  ;;  %v8138_v41 = vrot.slane %v8136_v63, 4  ;;  %v8139_v7 = vrot.slane %v12300_v42, 5  ;;  %v12305_v62 = vld [vmem:[%s17997_s0 + $0x68] sm:$0x1] }
 0x225   :  { %v8145_v61 = vrot.slane %v8143_v60, 4  ;;  %v8157_v23 = vrot.slane %v12303_v34, 5  ;;  %v8130_v48 = vsel %vm12935_vm6, %v10512_v29, %v8129_v1  ;;  %v8164_v14 = vrot.slane %v12304_v18, 5  ;;  %v10486_v25 = vld [vmem:[%s17997_s0 + $0x84] sm:$0xe]  ;;  %v12146_v44 = vld [vmem:[%s17997_s0 + $0x108] sm:$0xff]  }
 0x226   :  { %v8133_v16 = vsel %vm12935_vm6, %v8131_v32, %v8132_v24  ;;  %v15695_v3 = vsel %vm12935_vm6, %v10513_v39, %v8136_v63  ;;  %v15699_v20 = vsel %vm12935_vm6, %v10514_v26, %v8143_v60  ;;  %v10515_v49 = vrot.slane %v10483_v40, 9  ;;  %v12307_v17 = vld [vmem:[%s17997_s0 + $0x88] sm:$0xf]  ;;  %v12308_v59 = vld [vmem:[%s17997_s0 + $0x80] sm:$0x1]  ;;  %v12147_v63 = vld [vmem:[%s17997_s0 + $0x114] sm:$0xff]  }
 0x227   :  { %11150 = vmatmul.mubr.msk.bf16.gmra.mrb[24].mxu1 %vm1002_vm3, %v12140_v58  ;;  %v8146_v58 = vrot.slane %v12301_v51, 5  ;;  %v8140_v36 = vsel %vm12935_vm6, %v8138_v41, %v8139_v7  ;;  %v8153_v13 = vrot.slane %v12305_v62, 5  ;;  %v10516_v55 = vrot.slane %v10484_v46, 9  ;;  %v10487_v2 = vld [vmem:[%s17997_s0 + $0x90] sm:$0xe] }
 0x228   :  { %11454 = vmatmul.mubr.msk.bf16.gmra.mrb[56].mxu0 %vm1002_vm3, %v10440_v52  ;;  %11153 = vmatprep.mubr.msk.bf16.mxu1 %vm1002_vm3, %v12141_v0  ;;  %v10547_v52 = vcombine.low %v8123_v56, %v8126_v5  ;;  %v12302_v0 = vld [vmem:[%s17997_s0 + $0x64] sm:$0xf]  ;;  %v8159_v57 = vrot.slane %v8157_v23, 4  ;;  %v8171_v47 = vrot.slane %v12307_v17, 5  ;;  %v8166_v4 = vrot.slane %v8164_v14, 4 }
 0x229   :  { %11457 = vmatprep.mubr.msk.bf16.mxu0 %vm1002_vm3, %v10441_v50  ;;  %v8150_v50 = vrot.slane %v12302_v0, 5  ;;  %v15710_v22 = vsel %vm12935_vm6, %v8145_v61, %v8146_v58  ;;  %v8167_v31 = vrot.slane %v12308_v59, 5  ;;  %v10548_v21 = vcombine.low %v8130_v48, %v8133_v16  ;;  %v12309_v1 = vld [vmem:[%s17997_s0 + $0x94] sm:$0xf]  ;;  %v10488_v37 = vld [vmem:[%s17997_s0 + $0x9c] sm:$0xe] }
 0x22a   :  { %v10549_v28 = vcombine.low %v15695_v3, %v8140_v36  ;;  %v8178_v54 = vrot.slane %v12309_v1, 5  ;;  %v12310_v33 = vld [vmem:[%s17997_s0 + $0xa0] sm:$0xf]  ;;  %v10550_v53 = vcombine.low %v15699_v20, %v15710_v22  ;;  %v15755_v60 = vsel %vm12935_vm6, %v10516_v55, %v8157_v23  ;;  %v12311_v24 = vld [vmem:[%s17997_s0 + $0x8c] sm:$0x1] }
 0x22b   :  { %v8185_v19 = vrot.slane %v12310_v33, 5  ;;  %v15751_v35 = vsel %vm12935_vm6, %v10515_v49, %v8150_v50  ;;  %v10518_v56 = vrot.slane %v10486_v25, 9  ;;  %v8173_v43 = vrot.slane %v8171_v47, 4  ;;  %v12312_v42 = vld [vmem:[%s17997_s0 + $0x98] sm:$0x1] }
 0x22c   :  { %v15777_v32 = vsel %vm12935_vm6, %v8166_v4, %v8167_v31  ;;  %v10519_v39 = vrot.slane %v10487_v2, 9  ;;  %v10520_v26 = vrot.slane %v10488_v37, 9  ;;  %v8180_v41 = vrot.slane %v8178_v54, 4  ;;  %v12313_v51 = vld [vmem:[%s17997_s0 + $0xa4] sm:$0x1] }
 0x22d   :  { %v8181_v7 = vrot.slane %v12312_v42, 5  ;;  %v8187_v61 = vrot.slane %v8185_v19, 4  ;;  %v8188_v58 = vrot.slane %v12313_v51, 5  ;;  %v10489_v0 = vld [vmem:[%s17997_s0 + $0xa8] sm:$0xe] }
 0x22e   :  { %v12314_v48 = vld [vmem:[%s17997_s0 + $0xac] sm:$0xf]  ;;  %v15817_v36 = vsel %vm12935_vm6, %v10519_v39, %v8178_v54  ;;  %v15821_v62 = vsel %vm12935_vm6, %v10520_v26, %v8185_v19  ;;  %v12316_v17 = vld [vmem:[%s17997_s0 + $0xb8] sm:$0xf]  ;;  %v12317_v59 = vld [vmem:[%s17997_s0 + $0xb0] sm:$0x1] }
 0x22f   :  { %11154 = vmatmul.mubr.msk.bf16.gmra.mrb[28].mxu1 %vm1002_vm3, %v12142_v11  ;;  %v8152_v11 = vrot.slane %v8150_v50, 4  ;;  %v10490_v50 = vld [vmem:[%s17997_s0 + $0xb4] sm:$0xe]  ;;  %v8192_v18 = vrot.slane %v12314_v48, 5  ;;  %v15828_v55 = vsel %vm12935_vm6, %v8180_v41, %v8181_v7  ;;  %v8195_v31 = vrot.slane %v12317_v59, 5 }
 0x230   :  { %11458 = vmatmul.mubr.msk.bf16.gmra.mrb[60].mxu0 %vm1002_vm3, %v10442_v30  ;;  %11157 = vmatprep.mubr.msk.bf16.mxu1 %vm1002_vm3, %v12143_v9  ;;  %v12306_v30 = vld [vmem:[%s17997_s0 + $0x74] sm:$0x1]  ;;  %v10555_v1 = vcombine.low %v15817_v36, %v15828_v55  ;;  %v12318_v37 = vld [vmem:[%s17997_s0 + $0xc4] sm:$0xf]  ;;  %v12319_v19 = vld [vmem:[%s17997_s0 + $0xd0] sm:$0xf] }
 0x231   :  { %11465 = vmatprep.mubr.msk.bf16.mxu0 %vm1002_vm3, %v10545_v12  ;;  %v8160_v9 = vrot.slane %v12306_v30, 5  ;;  %v10517_v12 = vrot.slane %v10485_v45, 9  ;;  %v15759_v5 = vsel %vm12935_vm6, %v8152_v11, %v8153_v13  ;;  %v12148_v13 = vld [vmem:[%s17997_s0 + $0x120] sm:$0xff]   ;;  %v15832_v11 = vsel %vm12935_vm6, %v8187_v61, %v8188_v58  ;;  %v10493_v7 = vld [vmem:[%s17997_s0 + $0xf0] sm:$0xe] }
 0x232   :  { %v10551_v40 = vcombine.low %v15751_v35, %v15759_v5  ;;  %v10522_v30 = vrot.slane %v10490_v50, 9  ;;  %v8194_v4 = vrot.slane %v8192_v18, 4  ;;  %v10556_v54 = vcombine.low %v15821_v62, %v15832_v11  ;;  %v9931_v35 = vld [vmem:[%s17997_s0 + $0xfc] sm:$0xf]  ;;  %v12322_v61 = vld [vmem:[%s17997_s0 + $0xf4] sm:$0xf] }
 0x233   :  { %v15763_v29 = vsel %vm12935_vm6, %v8159_v57, %v8160_v9  ;;  %v10521_v57 = vrot.slane %v10489_v0, 9  ;;  %v12149_v9 = vld [vmem:[%s17997_s0 + $0x12c] sm:$0xff]   ;;  %v8206_v33 = vrot.slane %v12318_v37, 5  ;;  %v8220_v51 = vrot.slane %v12322_v61, 5  ;;  %v12323_v50 = vld [vmem:[%s17997_s0 + $0xc8] sm:$0x1] }
 0x234   :  { %v10552_v49 = vcombine.low %v15755_v60, %v15763_v29  ;;  %v15895_v20 = vsel %vm12935_vm6, %v8194_v4, %v8195_v31  ;;  %v4053_v58 = vshll.u32 %v9931_v35, 16  ;;  %v12327_v31 = vld [vmem:[%s17997_s0 + $0x100] sm:$0xf]  ;;  %v12340_v62 = vld [vmem:[%s17997_s0 + $0x130] sm:$0xf] }
 0x235   :  { %v8208_v0 = vrot.slane %v8206_v33, 4  ;;  %v4155_v11 = vshll.u32 %v12340_v62, 16 }
 0x236   :  { %v4055_v37 = vrot.slane %v4053_v58, 5  ;;  %v12152_v58 = vld [vmem:[%s17997_s0 + $0x150] sm:$0xff]  }
 0x237   :  { %11158 = vmatmul.mubr.msk.bf16.gmra.mrb[32].mxu1 %vm1002_vm3, %v12144_v8  ;;  %v8174_v8 = vrot.slane %v12311_v24, 5 }
 0x238   :  { %11466 = vmatmul.mubr.msk.bf16.vlgmr.msra.gmra.mrb[0].mxu0 %vm1002_vm3, %v10546_v38  ;;  %11161 = vmatprep.mubr.msk.bf16.mxu1 %vm1002_vm3, %v12145_v15  ;;  %v9925_v38 = vld [vmem:[%s17997_s0 + $0xe4] sm:$0xf]  ;;  %v15773_v15 = vsel %vm12935_vm6, %v10517_v12, %v8164_v14  ;;  %v12315_v14 = vld [vmem:[%s17997_s0 + $0xe8] sm:$0xf] }
 0x239   :  { %11469 = vmatprep.mubr.msk.bf16.mxu0 %vm1002_vm3, %v10547_v52  ;;  %v15792_v52 = vsel %vm12935_vm6, %v10518_v56, %v8171_v47  ;;  %v4002_v46 = vshrl.u32 %v9925_v38, 16  ;;  %v4005_v34 = vshll.u32 %v9925_v38, 16  ;;  %v15803_v23 = vsel %vm12935_vm6, %v8173_v43, %v8174_v8  ;;  %v12320_v43 = vld [vmem:[%s17997_s0 + $0xbc] sm:$0x1]  ;;  %v10492_v8 = vld [vmem:[%s17997_s0 + $0xcc] sm:$0xe] }
 0x23a   :  { %v4011_v16 = vshll.u32 %v12315_v14, 16  ;;  %v4015_v3 = vshrl.u32 %v12315_v14, 16  ;;  %v10553_v45 = vcombine.low %v15773_v15, %v15777_v32  ;;  %v10554_v25 = vcombine.low %v15792_v52, %v15803_v23  ;;  %v12321_v38 = vld [vmem:[%s17997_s0 + $0xec] sm:$0x1]  ;;  %v12324_v14 = vld [vmem:[%s17997_s0 + $0xd4] sm:$0x1] }
 0x23b   :  { %v8199_v47 = vrot.slane %v12316_v17, 5  ;;  %v4007_v12 = vrot.slane %v4005_v34, 5  ;;  %v15866_v56 = vsel %vm12935_vm6, %v10521_v57, %v8192_v18  ;;  %v8202_v24 = vrot.slane %v12320_v43, 5  ;;  %v12151_v18 = vld [vmem:[%s17997_s0 + $0x144] sm:$0xff]   ;;  %v12325_v57 = vld [vmem:[%s17997_s0 + $0xf8] sm:$0x1] }
 0x23c   :  { %v4017_v2 = vrot.slane %v4015_v3, 4  ;;  %v4021_v39 = vshll.u32 %v12321_v38, 16  ;;  %v10524_v34 = vrot.slane %v10492_v8, 9  ;;  %v8222_v17 = vrot.slane %v8220_v51, 4  ;;  %v12329_v15 = vld [vmem:[%s17997_s0 + $0x10c] sm:$0xf] }
 0x23d   :  { %v15870_v5 = vsel %vm12935_vm6, %v10522_v30, %v8199_v47  ;;  %v8201_v26 = vrot.slane %v8199_v47, 4  ;;  %v8223_v30 = vrot.slane %v12325_v57, 5  ;;  %v10494_v47 = vld [vmem:[%s17997_s0 + $0xfc] sm:$0xe]  ;;  %v8234_v32 = vrot.slane %v12329_v15, 5 }
 0x23e   :  { %v4023_v3 = vrot.slane %v4021_v39, 5  ;;  %v12335_v15 = vld [vmem:[%s17997_s0 + $0x118] sm:$0xf] }
 0x23f   :  { %11162 = vmatmul.mubr.msk.bf16.gmra.mrb[36].mxu1 %vm1002_vm3, %v12146_v44  ;;  %v4004_v44 = vrot.slane %v4002_v46, 4  ;;  %v8209_v46 = vrot.slane %v12323_v50, 5 }
 0x240   :  { %11470 = vmatmul.mubr.msk.bf16.gmra.mrb[4].mxu0 %vm1002_vm3, %v10548_v21  ;;  %11165 = vmatprep.mubr.msk.bf16.mxu1 %vm1002_vm3, %v12147_v63  ;;  %v10491_v21 = vld [vmem:[%s17997_s0 + $0xc0] sm:$0xe]  ;;  %v8213_v63 = vrot.slane %v12319_v19, 5  ;;  %v10557_v19 = vcombine.low %v15866_v56, %v15895_v20 }
 0x241   :  { %11473 = vmatprep.mubr.msk.bf16.mxu0 %vm1002_vm3, %v10549_v28  ;;  %v15848_v28 = vrot.slane %v4011_v16, 5  ;;  %v10523_v41 = vrot.slane %v10491_v21, 9  ;;  %v4008_v42 = vor.u32 %v4007_v12, %v4004_v44  ;;  %v8216_v16 = vrot.slane %v12324_v14, 5  ;;  %v12326_v44 = vld [vmem:[%s17997_s0 + $0x100] sm:$0xf] }
 0x242   :  { %v8215_v48 = vrot.slane %v8213_v63, 4  ;;  %v4059_v12 = vshll.u32 %v12326_v44, 16  ;;  %v4063_v4 = vshrl.u32 %v12326_v44, 16  ;;  %v8227_v21 = vrot.slane %v12327_v31, 5  ;;  %v12330_v14 = vld [vmem:[%s17997_s0 + $0x104] sm:$0x1] }
 0x243   :  { %v4018_v22 = vor.u32 %v4017_v2, %v15848_v28  ;;  %v15930_v43 = vsel %vm12935_vm6, %v10523_v41, %v8206_v33  ;;  %v15934_v8 = vsel %vm12935_vm6, %v8208_v0, %v8209_v46  ;;  %v15939_v38 = vsel %vm12935_vm6, %v10524_v34, %v8213_v63  ;;  %v12156_v56 = vld [vmem:[%s17997_s0 + $0x180] sm:$0xff]  }
 0x244   :  { %v15943_v39 = vsel %vm12935_vm6, %v8215_v48, %v8216_v16  ;;  %v10526_v33 = vrot.slane %v10494_v47, 9  ;;  %v15962_v41 = vsel %vm12935_vm6, %v8222_v17, %v8223_v30  ;;  %v8229_v29 = vrot.slane %v8227_v21, 4  ;;  %v12153_v48 = vld [vmem:[%s17997_s0 + $0x15c] sm:$0xff]  }
 0x245   :  { %v4019_v59 = vrot.slane %v4018_v22, 4  ;;  %v10559_v0 = vcombine.low %v15930_v43, %v15934_v8  ;;  %v10560_v50 = vcombine.low %v15939_v38, %v15943_v39  ;;  %v4069_v16 = vshll.u32 %v12330_v14, 16  ;;  %v12155_v14 = vld [vmem:[%s17997_s0 + $0x174] sm:$0xff]   ;;  %v12345_v43 = vld [vmem:[%s17997_s0 + $0x13c] sm:$0xf] }
 0x246   :  { %v15994_v34 = vsel %vm12935_vm6, %v10526_v33, %v8227_v21  ;;  %v8236_v44 = vrot.slane %v8234_v32, 4  ;;  %v10496_v21 = vld [vmem:[%s17997_s0 + $0x114] sm:$0xe]  ;;  %v12333_v33 = vld [vmem:[%s17997_s0 + $0x118] sm:$0xf]  ;;  %v4179_v8 = vshll.u32 %v12345_v43, 16 }
 0x247   :  { %11166 = vmatmul.mubr.msk.bf16.gmra.mrb[40].mxu1 %vm1002_vm3, %v12148_v13  ;;  %v10525_v13 = vrot.slane %v10493_v7, 9  ;;  %v4065_v7 = vrot.slane %v4063_v4, 4  ;;  %v4024_v60 = vsel %vm12458_vm2, %v4019_v59, %v4023_v3 }
 0x248   :  { %11474 = vmatmul.mubr.msk.bf16.gmra.mrb[8].mxu0 %vm1002_vm3, %v10550_v53  ;;  %11169 = vmatprep.mubr.msk.bf16.mxu1 %vm1002_vm3, %v12149_v9  ;;  %v4050_v53 = vshrl.u32 %v9931_v35, 16  ;;  %v4009_v9 = vrot.slane %v4008_v42, 4  ;;  %v15926_v35 = vsel %vm12935_vm6, %v8201_v26, %v8202_v24  ;;  %v9934_v26 = vld [vmem:[%s17997_s0 + $0x108] sm:$0xf]  ;;  %v15964_v42 = vrot.slane %v4059_v12, 5 }
 0x249   :  { %11477 = vmatprep.mubr.msk.bf16.mxu0 %vm1002_vm3, %v10551_v40  ;;  %v12150_v40 = vld [vmem:[%s17997_s0 + $0x138] sm:$0xff]   ;;  %v15947_v24 = vsel %vm12935_vm6, %v10525_v13, %v8220_v51  ;;  %v10495_v51 = vld [vmem:[%s17997_s0 + $0x108] sm:$0xe]  ;;  %v10558_v22 = vcombine.low %v15870_v5, %v15926_v35  ;;  %v9937_v13 = vld [vmem:[%s17997_s0 + $0x114] sm:$0xf] }
 0x24a   :  { %v4052_v2 = vrot.slane %v4050_v53, 4  ;;  %v4014_v63 = vsel %vm12458_vm2, %v4009_v9, %v15848_v28  ;;  %v4077_v53 = vshll.u32 %v9934_v26, 16  ;;  %v10561_v46 = vcombine.low %v15947_v24, %v15962_v41  ;;  %v12331_v9 = vld [vmem:[%s17997_s0 + $0x10c] sm:$0xf]  ;;  %v12332_v12 = vld [vmem:[%s17997_s0 + $0x110] sm:$0x1] }
 0x24b   :  { %v10527_v3 = vrot.slane %v10495_v51, 9  ;;  %v4083_v17 = vshll.u32 %v12331_v9, 16  ;;  %v4087_v47 = vshrl.u32 %v12331_v9, 16  ;;  %v8237_v4 = vrot.slane %v12332_v12, 5  ;;  %v9940_v51 = vld [vmem:[%s17997_s0 + $0x120] sm:$0xf] }
 0x24c   :  { %v4056_v61 = vor.u32 %v4055_v37, %v4052_v2  ;;  %v4079_v31 = vrot.slane %v4077_v53, 5  ;;  %v4098_v2 = vshrl.u32 %v9937_v13, 16  ;;  %v4101_v37 = vshll.u32 %v9937_v13, 16  ;;  %v12336_v13 = vld [vmem:[%s17997_s0 + $0x124] sm:$0xf] }
 0x24d   :  { %v16050_v23 = vrot.slane %v4083_v17, 5  ;;  %v16060_v36 = vsel %vm12935_vm6, %v8236_v44, %v8237_v4  ;;  %v4131_v9 = vshll.u32 %v12336_v13, 16  ;;  %v4135_v17 = vshrl.u32 %v12336_v13, 16  ;;  %v12352_v24 = vld [vmem:[%s17997_s0 + $0x14c] sm:$0x1] }
 0x24e   :  { %v16012_v30 = vrot.slane %v4056_v61, 4  ;;  %v4100_v53 = vrot.slane %v4098_v2, 4  ;;  %v8272_v41 = vrot.slane %v12352_v24, 5 }
 0x24f   :  { %11170 = vmatmul.mubr.msk.bf16.gmra.mrb[44].mxu1 %vm1002_vm3, %v12150_v40  ;;  %v15999_v40 = vcombine.low %v4014_v63, %v4024_v60  ;;  %v4111_v63 = vshrl.u32 %v12333_v33, 16 }
 0x250   :  { %11478 = vmatmul.mubr.msk.bf16.gmra.mrb[12].mxu0 %vm1002_vm3, %v10552_v49  ;;  %11173 = vmatprep.mubr.msk.bf16.mxu1 %vm1002_vm3, %v12151_v18  ;;  %v12328_v49 = vld [vmem:[%s17997_s0 + $0x104] sm:$0x1]  ;;  %v4066_v18 = vor.u32 %v4065_v7, %v15964_v42  ;;  %v4062_v52 = vsel %vm12458_vm2, %v16012_v30, %v15964_v42 }
 0x251   :  { %11481 = vmatprep.mubr.msk.bf16.mxu0 %vm1002_vm3, %v10553_v45  ;;  %v8230_v28 = vrot.slane %v12328_v49, 5  ;;  %v4074_v45 = vshrl.u32 %v9934_v26, 16  ;;  %v4107_v26 = vshll.u32 %v12333_v33, 16  ;;  %v16040_v49 = vsel %vm12935_vm6, %v10527_v3, %v8234_v32 }
 0x252   :  { %v16034_v60 = vrot.slane %v4066_v18, 4  ;;  %v8241_v32 = vrot.slane %v12335_v15, 5  ;;  %v4113_v18 = vrot.slane %v4111_v63, 4  ;;  %v4125_v3 = vshll.u32 %v9940_v51, 16 }
 0x253   :  { %v16010_v57 = vsel %vm12935_vm6, %v8229_v29, %v8230_v28  ;;  %v4076_v59 = vrot.slane %v4074_v45, 4  ;;  %v16036_v29 = vrot.slane %v4069_v16, 5  ;;  %v12334_v28 = vld [vmem:[%s17997_s0 + $0x110] sm:$0x1]  ;;  %v12154_v45 = vld [vmem:[%s17997_s0 + $0x168] sm:$0xff]   ;;  %v4122_v16 = vshrl.u32 %v9940_v51, 16 }
 0x254   :  { %v10562_v7 = vcombine.low %v15994_v34, %v16010_v57  ;;  %v4093_v61 = vshll.u32 %v12334_v28, 16  ;;  %v10563_v44 = vcombine.low %v16040_v49, %v16060_v36  ;;  %v12339_v28 = vld [vmem:[%s17997_s0 + $0x124] sm:$0xf]  ;;  %v4137_v15 = vrot.slane %v4135_v17, 4 }
 0x255   :  { %v4080_v55 = vor.u32 %v4079_v31, %v4076_v59  ;;  %v8243_v31 = vrot.slane %v8241_v32, 4  ;;  %v4124_v51 = vrot.slane %v4122_v16, 4 }
 0x256   :  { %v16083_v4 = vrot.slane %v4093_v61, 5  ;;  %v8248_v61 = vrot.slane %v12339_v28, 5 }
 0x257   :  { %11174 = vmatmul.mubr.msk.bf16.gmra.mrb[48].mxu1 %vm1002_vm3, %v12152_v58  ;;  %v4103_v58 = vrot.slane %v4101_v37, 5  ;;  %v16085_v59 = vrot.slane %v4080_v55, 4  ;;  %v12338_v37 = vld [vmem:[%s17997_s0 + $0x11c] sm:$0x1]  ;;  %v4127_v55 = vrot.slane %v4125_v3, 5 }
 0x258   :  { %11482 = vmatmul.mubr.msk.bf16.gmra.mrb[16].mxu0 %vm1002_vm3, %v10554_v25  ;;  %11177 = vmatprep.mubr.msk.bf16.mxu1 %vm1002_vm3, %v12153_v48  ;;  %v4089_v25 = vrot.slane %v4087_v47, 4  ;;  %v16068_v48 = vrot.slane %v4107_v26, 5  ;;  %v4072_v47 = vsel %vm12458_vm2, %v16034_v60, %v16036_v29  ;;  %v4117_v33 = vshll.u32 %v12338_v37, 16  ;;  %v9943_v26 = vld [vmem:[%s17997_s0 + $0x12c] sm:$0xf] }
 0x259   :  { %11485 = vmatprep.mubr.msk.bf16.mxu0 %vm1002_vm3, %v10555_v1  ;;  %v10528_v1 = vrot.slane %v10496_v21, 9  ;;  %v12337_v21 = vld [vmem:[%s17997_s0 + $0x11c] sm:$0x1]  ;;  %v4104_v60 = vor.u32 %v4103_v58, %v4100_v53  ;;  %v8250_v16 = vrot.slane %v8248_v61, 4  ;;  %v12341_v3 = vld [vmem:[%s17997_s0 + $0x128] sm:$0x1]  ;;  %v16140_v17 = vcombine.low %v4062_v52, %v4072_v47 }
 0x25a   :  { %v4090_v12 = vor.u32 %v4089_v25, %v16050_v23  ;;  %v8244_v2 = vrot.slane %v12337_v21, 5  ;;  %v4114_v29 = vor.u32 %v4113_v18, %v16068_v48  ;;  %v10497_v25 = vld [vmem:[%s17997_s0 + $0x120] sm:$0xe]  ;;  %v4119_v18 = vrot.slane %v4117_v33, 5  ;;  %v12342_v21 = vld [vmem:[%s17997_s0 + $0x128] sm:$0x1] }
 0x25b   :  { %v16099_v63 = vsel %vm12935_vm6, %v10528_v1, %v8241_v32  ;;  %v16113_v1 = vrot.slane %v4131_v9, 5  ;;  %v4146_v32 = vshrl.u32 %v9943_v26, 16  ;;  %v4105_v20 = vrot.slane %v4104_v60, 4  ;;  %v12157_v9 = vld [vmem:[%s17997_s0 + $0x18c] sm:$0xff]  }
 0x25c   :  { %v4091_v53 = vrot.slane %v4090_v12, 4  ;;  %v16124_v58 = vsel %vm12935_vm6, %v8243_v31, %v8244_v2  ;;  %v8251_v13 = vrot.slane %v12341_v3, 5  ;;  %v4128_v12 = vor.u32 %v4127_v55, %v4124_v51  ;;  %v10498_v37 = vld [vmem:[%s17997_s0 + $0x12c] sm:$0xe]  ;;  %v12343_v55 = vld [vmem:[%s17997_s0 + $0x130] sm:$0xf] }
 0x25d   :  { %v4138_v31 = vor.u32 %v4137_v15, %v16113_v1  ;;  %v4141_v2 = vshll.u32 %v12342_v21, 16  ;;  %v4148_v33 = vrot.slane %v4146_v32, 4  ;;  %v16149_v60 = vrot.slane %v4155_v11, 5 }
 0x25e   :  { %v4086_v42 = vsel %vm12458_vm2, %v16085_v59, %v16050_v23  ;;  %v4096_v30 = vsel %vm12458_vm2, %v4091_v53, %v16083_v4  ;;  %v10564_v52 = vcombine.low %v16099_v63, %v16124_v58  ;;  %v4110_v23 = vsel %vm12458_vm2, %v4105_v20, %v16068_v48 }
 0x25f   :  { %11178 = vmatmul.mubr.msk.bf16.gmra.mrb[52].mxu1 %vm1002_vm3, %v12154_v45  ;;  %v4149_v45 = vshll.u32 %v9943_v26, 16  ;;  %v16175_v59 = vsel %vm12935_vm6, %v8250_v16, %v8251_v13  ;;  %v10530_v28 = vrot.slane %v10498_v37, 9  ;;  %v16184_v51 = vrot.slane %v4138_v31, 4  ;;  %v10499_v37 = vld [vmem:[%s17997_s0 + $0x138] sm:$0xe] }
 0x260   :  { %11486 = vmatmul.mubr.msk.bf16.gmra.mrb[20].mxu0 %vm1002_vm3, %v10556_v54  ;;  %11181 = vmatprep.mubr.msk.bf16.mxu1 %vm1002_vm3, %v12155_v14  ;;  %v4159_v54 = vshrl.u32 %v12340_v62, 16  ;;  %v10529_v14 = vrot.slane %v10497_v25, 9  ;;  %v9946_v25 = vld [vmem:[%s17997_s0 + $0x138] sm:$0xf]  ;;  %v16186_v48 = vrot.slane %v4141_v2, 5  ;;  %v8255_v15 = vrot.slane %v12343_v55, 5 }
 0x261   :  { %11489 = vmatprep.mubr.msk.bf16.mxu0 %vm1002_vm3, %v10557_v19  ;;  %v4115_v19 = vrot.slane %v4114_v29, 4  ;;  %v4151_v26 = vrot.slane %v4149_v45, 5  ;;  %v4170_v45 = vshrl.u32 %v9946_v25, 16  ;;  %v16199_v62 = vcombine.low %v4086_v42, %v4096_v30 }
 0x262   :  { %v4161_v29 = vrot.slane %v4159_v54, 4  ;;  %v16162_v47 = vsel %vm12935_vm6, %v10529_v14, %v8248_v61  ;;  %v16182_v61 = vrot.slane %v4128_v12, 4  ;;  %v4173_v54 = vshll.u32 %v9946_v25, 16  ;;  %v12346_v14 = vld [vmem:[%s17997_s0 + $0x134] sm:$0x1] }
 0x263   :  { %v4120_v4 = vsel %vm12458_vm2, %v4115_v19, %v4119_v18  ;;  %v4152_v5 = vor.u32 %v4151_v26, %v4148_v33  ;;  %v10565_v11 = vcombine.low %v16162_v47, %v16175_v59  ;;  %v16213_v18 = vsel %vm12935_vm6, %v10530_v28, %v8255_v15  ;;  %v9949_v19 = vld [vmem:[%s17997_s0 + $0x144] sm:$0xf]  ;;  %v12349_v28 = vld [vmem:[%s17997_s0 + $0x148] sm:$0xf] }
 0x264   :  { %v4162_v35 = vor.u32 %v4161_v29, %v16149_v60  ;;  %v16209_v53 = vcombine.low %v4110_v23, %v4120_v4  ;;  %v4183_v20 = vshrl.u32 %v12345_v43, 16  ;;  %v4134_v16 = vsel %vm12458_vm2, %v16182_v61, %v16113_v1  ;;  %v10500_v29 = vld [vmem:[%s17997_s0 + $0x144] sm:$0xe]  ;;  %v12348_v23 = vld [vmem:[%s17997_s0 + $0x148] sm:$0xf] }
 0x265   :  { %v4144_v3 = vsel %vm12458_vm2, %v16184_v51, %v16186_v48  ;;  %v8257_v13 = vrot.slane %v8255_v15, 4  ;;  %v4153_v31 = vrot.slane %v4152_v5, 4  ;;  %v4172_v33 = vrot.slane %v4170_v45, 4  ;;  %v12350_v5 = vld [vmem:[%s17997_s0 + $0x140] sm:$0x1] }
 0x266   :  { %v4163_v21 = vrot.slane %v4162_v35, 4  ;;  %v4175_v1 = vrot.slane %v4173_v54, 5  ;;  %v16235_v26 = vrot.slane %v4179_v8, 5  ;;  %v4194_v42 = vshrl.u32 %v9949_v19, 16  ;;  %v12361_v47 = vld [vmem:[%s17997_s0 + $0x164] sm:$0x1] }
 0x267   :  { %11182 = vmatmul.mubr.msk.bf16.gmra.mrb[56].mxu1 %vm1002_vm3, %v12156_v56  ;;  %v8258_v56 = vrot.slane %v12346_v14, 5  ;;  %v4197_v30 = vshll.u32 %v9949_v19, 16  ;;  %v4185_v25 = vrot.slane %v4183_v20, 4  ;;  %v8269_v4 = vrot.slane %v12348_v23, 5 }
 0x268   :  { %11490 = vmatmul.mubr.msk.bf16.gmra.mrb[24].mxu0 %vm1002_vm3, %v10558_v22  ;;  %11185 = vmatprep.mubr.msk.bf16.mxu1 %vm1002_vm3, %v12157_v9  ;;  %v12344_v22 = vld [vmem:[%s17997_s0 + $0x134] sm:$0x1]  ;;  %v12347_v9 = vld [vmem:[%s17997_s0 + $0x13c] sm:$0xf]  ;;  %v4203_v61 = vshll.u32 %v12349_v28, 16  ;;  %v4207_v51 = vshrl.u32 %v12349_v28, 16  ;;  %v4158_v38 = vsel %vm12458_vm2, %v4153_v31, %v16149_v60  ;;  %v16281_v14 = vcombine.low %v4134_v16, %v4144_v3 }
 0x269   :  { %11493 = vmatprep.mubr.msk.bf16.mxu0 %vm1002_vm3, %v10559_v0  ;;  %v4165_v32 = vshll.u32 %v12344_v22, 16  ;;  %v12158_v0 = vld [vmem:[%s17997_s0 + $0x198] sm:$0xff]   ;;  %v8262_v12 = vrot.slane %v12347_v9, 5  ;;  %v16255_v48 = vsel %vm12935_vm6, %v8257_v13, %v8258_v56  ;;  %v10531_v55 = vrot.slane %v10499_v37, 9  ;;  %v9952_v60 = vld [vmem:[%s17997_s0 + $0x150] sm:$0xf] }
 0x26a   :  { %v8265_v35 = vrot.slane %v12350_v5, 5  ;;  %v10532_v22 = vrot.slane %v10500_v29, 9  ;;  %v4199_v45 = vrot.slane %v4197_v30, 5  ;;  %v4186_v54 = vor.u32 %v4185_v25, %v16235_v26  ;;  %v10501_v16 = vld [vmem:[%s17997_s0 + $0x150] sm:$0xe] }
 0x26b   :  { %v4167_v2 = vrot.slane %v4165_v32, 5  ;;  %v8264_v15 = vrot.slane %v8262_v12, 4  ;;  %v4176_v32 = vor.u32 %v4175_v1, %v4172_v33  ;;  %v8271_v43 = vrot.slane %v8269_v4, 4  ;;  %v12353_v37 = vld [vmem:[%s17997_s0 + $0x154] sm:$0xf] }
 0x26c   :  { %v16279_v8 = vrot.slane %v4203_v61, 5  ;;  %v10566_v56 = vcombine.low %v16213_v18, %v16255_v48  ;;  %v16287_v20 = vsel %vm12935_vm6, %v10531_v55, %v8262_v12  ;;  %v4218_v3 = vshrl.u32 %v9952_v60, 16  ;;  %v9955_v1 = vld [vmem:[%s17997_s0 + $0x15c] sm:$0xf]  ;;  %v12354_v25 = vld [vmem:[%s17997_s0 + $0x14c] sm:$0x1] }
 0x26d   :  { %v4168_v39 = vsel %vm12458_vm2, %v4163_v21, %v4167_v2  ;;  %v16291_v19 = vsel %vm12935_vm6, %v8264_v15, %v8265_v35  ;;  %v4221_v31 = vshll.u32 %v9952_v60, 16  ;;  %v16300_v21 = vrot.slane %v4176_v32, 4  ;;  %v12356_v61 = vld [vmem:[%s17997_s0 + $0x154] sm:$0xf]  ;;  %v12357_v35 = vld [vmem:[%s17997_s0 + $0x160] sm:$0xf] }
 0x26e   :  { %v16293_v13 = vcombine.low %v4158_v38, %v4168_v39  ;;  %v16304_v12 = vsel %vm12935_vm6, %v10532_v22, %v8269_v4  ;;  %v8276_v33 = vrot.slane %v12353_v37, 5  ;;  %v4187_v29 = vrot.slane %v4186_v54, 4  ;;  %v12355_v4 = vld [vmem:[%s17997_s0 + $0x158] sm:$0x1]  ;;  %v9958_v54 = vld [vmem:[%s17997_s0 + $0x168] sm:$0xf] }
 0x26f   :  { %11186 = vmatmul.mubr.msk.bf16.gmra.mrb[60].mxu1 %vm1002_vm3, %v12158_v0  ;;  %v4209_v0 = vrot.slane %v4207_v51, 4  ;;  %v4213_v23 = vshll.u32 %v12354_v25, 16  ;;  %v8279_v28 = vrot.slane %v12355_v4, 5  ;;  %v4227_v51 = vshll.u32 %v12356_v61, 16 }
 0x270   :  { %11494 = vmatmul.mubr.msk.bf16.gmra.mrb[28].mxu0 %vm1002_vm3, %v10560_v50  ;;  %11225 = vmatprep.mubr.msk.bf16.mxu1 %vm1002_vm3, %v15999_v40  ;;  %v12351_v50 = vld [vmem:[%s17997_s0 + $0x140] sm:$0x1]  ;;  %v4231_v55 = vshrl.u32 %v12356_v61, 16  ;;  %v4220_v34 = vrot.slane %v4218_v3, 4  ;;  %v4223_v57 = vrot.slane %v4221_v31, 5  ;;  %v8278_v5 = vrot.slane %v8276_v33, 4 }
 0x271   :  { %11497 = vmatprep.mubr.msk.bf16.mxu0 %vm1002_vm3, %v10561_v46  ;;  %v4189_v40 = vshll.u32 %v12351_v50, 16  ;;  %v4196_v46 = vrot.slane %v4194_v42, 4  ;;  %v16316_v42 = vsel %vm12935_vm6, %v8271_v43, %v8272_v41  ;;  %v4210_v30 = vor.u32 %v4209_v0, %v16279_v8  ;;  %v10502_v41 = vld [vmem:[%s17997_s0 + $0x15c] sm:$0xe]  ;;  %v12358_v31 = vld [vmem:[%s17997_s0 + $0x158] sm:$0x1] }
 0x272   :  { %v4251_v38 = vshll.u32 %v12357_v35, 16  ;;  %v4255_v39 = vshrl.u32 %v12357_v35, 16  ;;  %v10567_v50 = vcombine.low %v16287_v20, %v16291_v19  ;;  %v4182_v49 = vsel %vm12458_vm2, %v16300_v21, %v16235_v26  ;;  %v12362_v61 = vld [vmem:[%s17997_s0 + $0x164] sm:$0x1] }
 0x273   :  { %v16295_v9 = vrot.slane %v4189_v40, 5  ;;  %v4200_v2 = vor.u32 %v4199_v45, %v4196_v46  ;;  %v4211_v36 = vrot.slane %v4210_v30, 4  ;;  %v10568_v22 = vcombine.low %v16304_v12, %v16316_v42  ;;  %v12371_v12 = vld [vmem:[%s17997_s0 + $0x184] sm:$0xf] }
 0x274   :  { %v16356_v24 = vrot.slane %v4227_v51, 5  ;;  %v4224_v26 = vor.u32 %v4223_v57, %v4220_v34  ;;  %v4233_v46 = vrot.slane %v4231_v55, 4  ;;  %v16369_v0 = vsel %vm12935_vm6, %v8278_v5, %v8279_v28  ;;  %v9961_v55 = vld [vmem:[%s17997_s0 + $0x174] sm:$0xf]  ;;  %v10503_v34 = vld [vmem:[%s17997_s0 + $0x168] sm:$0xe] }
 0x275   :  { %v4201_v15 = vrot.slane %v4200_v2, 4  ;;  %v4192_v40 = vsel %vm12458_vm2, %v4187_v29, %v16295_v9  ;;  %v16371_v9 = vrot.slane %v4251_v38, 5  ;;  %v4237_v21 = vshll.u32 %v12358_v31, 16  ;;  %v12366_v31 = vld [vmem:[%s17997_s0 + $0x178] sm:$0xf] }
 0x276   :  { %v10534_v2 = vrot.slane %v10502_v41, 9  ;;  %v16396_v25 = vcombine.low %v4182_v49, %v4192_v40  ;;  %v16398_v63 = vrot.slane %v4224_v26, 4  ;;  %v4234_v58 = vor.u32 %v4233_v46, %v16356_v24 }
 0x277   :  { %11226 = vmatmul.mubr.msk.bf16.vlgmr.msra.gmra.mrb[32].mxu1 %vm1002_vm3, %v15396_v6  ;;  %v10533_v6 = vrot.slane %v10501_v16, 9  ;;  %v4206_v43 = vsel %vm12458_vm2, %v4201_v15, %v16279_v8  ;;  %v4257_v16 = vrot.slane %v4255_v39, 4  ;;  %v12359_v8 = vld [vmem:[%s17997_s0 + $0x160] sm:$0xf]  ;;  %v4261_v59 = vshll.u32 %v12361_v47, 16 }
 0x278   :  { %11498 = vmatmul.mubr.msk.bf16.gmra.mrb[32].mxu0 %vm1002_vm3, %v10562_v7  ;;  %11229 = vmatprep.mubr.msk.bf16.mxu1 %vm1002_vm3, %v16140_v17  ;;  %v4242_v7 = vshrl.u32 %v9955_v1, 16  ;;  %v4245_v17 = vshll.u32 %v9955_v1, 16  ;;  %v8283_v37 = vrot.slane %v12359_v8, 5  ;;  %v12360_v1 = vld [vmem:[%s17997_s0 + $0x16c] sm:$0xf]  ;;  %v8286_v51 = vrot.slane %v12362_v61, 5 }
 0x279   :  { %11501 = vmatprep.mubr.msk.bf16.mxu0 %vm1002_vm3, %v10563_v44  ;;  %v4215_v44 = vrot.slane %v4213_v23, 5  ;;  %v16354_v32 = vsel %vm12935_vm6, %v10533_v6, %v8276_v33  ;;  %v4269_v33 = vshll.u32 %v9958_v54, 16  ;;  %v4275_v29 = vshll.u32 %v12360_v1, 16  ;;  %v12363_v39 = vld [vmem:[%s17997_s0 + $0x16c] sm:$0xf] }
 0x27a   :  { %v4244_v45 = vrot.slane %v4242_v7, 4  ;;  %v4247_v60 = vrot.slane %v4245_v17, 5  ;;  %v4279_v30 = vshrl.u32 %v12360_v1, 16  ;;  %v10569_v23 = vcombine.low %v16354_v32, %v16369_v0 }
 0x27b   :  { %v4216_v3 = vsel %vm12458_vm2, %v4211_v36, %v4215_v44  ;;  %v4258_v6 = vor.u32 %v4257_v16, %v16371_v9  ;;  %v16411_v4 = vsel %vm12935_vm6, %v10534_v2, %v8283_v37  ;;  %v8285_v28 = vrot.slane %v8283_v37, 4  ;;  %v12365_v16 = vld [vmem:[%s17997_s0 + $0x170] sm:$0x1] }
 0x27c   :  { %v4271_v7 = vrot.slane %v4269_v33, 5  ;;  %v16422_v17 = vrot.slane %v4275_v29, 5  ;;  %v4281_v15 = vrot.slane %v4279_v30, 4  ;;  %v4230_v5 = vsel %vm12458_vm2, %v16398_v63, %v16356_v24  ;;  %v10504_v24 = vld [vmem:[%s17997_s0 + $0x174] sm:$0xe] }
 0x27d   :  { %v4235_v35 = vrot.slane %v4234_v58, 4  ;;  %v8290_v49 = vrot.slane %v12363_v39, 5  ;;  %v4259_v36 = vrot.slane %v4258_v6, 4  ;;  %v4263_v44 = vrot.slane %v4261_v59, 5  ;;  %v9964_v29 = vld [vmem:[%s17997_s0 + $0x180] sm:$0xf] }
 0x27e   :  { %v4290_v40 = vshrl.u32 %v9961_v55, 16  ;;  %v4293_v41 = vshll.u32 %v9961_v55, 16  ;;  %v16435_v26 = vsel %vm12935_vm6, %v8285_v28, %v8286_v51  ;;  %v10535_v46 = vrot.slane %v10503_v34, 9  ;;  %v12369_v51 = vld [vmem:[%s17997_s0 + $0x17c] sm:$0x1] }
 0x27f   :  { %11230 = vmatmul.mubr.msk.bf16.gmra.mrb[36].mxu1 %vm1002_vm3, %v16199_v62  ;;  %v4266_v62 = vshrl.u32 %v9958_v54, 16  ;;  %v4264_v8 = vsel %vm12458_vm2, %v4259_v36, %v4263_v44  ;;  %v10536_v37 = vrot.slane %v10504_v24, 9  ;;  %v4309_v55 = vshll.u32 %v12369_v51, 16  ;;  %v12378_v51 = vld [vmem:[%s17997_s0 + $0x19c] sm:$0xf] }
 0x280   :  { %11502 = vmatmul.mubr.msk.bf16.gmra.mrb[36].mxu0 %vm1002_vm3, %v10564_v52  ;;  %11233 = vmatprep.mubr.msk.bf16.mxu1 %vm1002_vm3, %v16209_v53  ;;  %v4248_v52 = vor.u32 %v4247_v60, %v4244_v45  ;;  %v16401_v53 = vcombine.low %v4206_v43, %v4216_v3  ;;  %v12364_v45 = vld [vmem:[%s17997_s0 + $0x178] sm:$0xf]  ;;  %v4282_v43 = vor.u32 %v4281_v15, %v16422_v17  ;;  %v4285_v3 = vshll.u32 %v12365_v16, 16  ;;  %v10505_v15 = vld [vmem:[%s17997_s0 + $0x180] sm:$0xe] }
 0x281   :  { %11505 = vmatprep.mubr.msk.bf16.mxu0 %vm1002_vm3, %v10565_v11  ;;  %v4239_v11 = vrot.slane %v4237_v21, 5  ;;  %v4268_v57 = vrot.slane %v4266_v62, 4  ;;  %v4299_v60 = vshll.u32 %v12364_v45, 16  ;;  %v4303_v54 = vshrl.u32 %v12364_v45, 16  ;;  %v12368_v62 = vld [vmem:[%s17997_s0 + $0x17c] sm:$0x1] }
 0x282   :  { %v4249_v38 = vrot.slane %v4248_v52, 4  ;;  %v8297_v21 = vrot.slane %v12366_v31, 5  ;;  %v4292_v20 = vrot.slane %v4290_v40, 4  ;;  %v4295_v19 = vrot.slane %v4293_v41, 5  ;;  %v12373_v16 = vld [vmem:[%s17997_s0 + $0x188] sm:$0x1] }
 0x283   :  { %v4240_v18 = vsel %vm12458_vm2, %v4235_v35, %v4239_v11  ;;  %v16475_v33 = vrot.slane %v4299_v60, 5  ;;  %v4305_v1 = vrot.slane %v4303_v54, 4  ;;  %v4283_v63 = vrot.slane %v4282_v43, 4  ;;  %v12370_v35 = vld [vmem:[%s17997_s0 + $0x184] sm:$0xf] }
 0x284   :  { %v4254_v48 = vsel %vm12458_vm2, %v4249_v38, %v16371_v9  ;;  %v8300_v9 = vrot.slane %v12368_v62, 5  ;;  %v4287_v58 = vrot.slane %v4285_v3, 5  ;;  %v8299_v52 = vrot.slane %v8297_v21, 4 }
 0x285   :  { %v10002_v6 = vcombine.low %v4230_v5, %v4240_v18  ;;  %v10003_v47 = vcombine.low %v4254_v48, %v4264_v8  ;;  %v16482_v59 = vsel %vm12935_vm6, %v10535_v46, %v8290_v49  ;;  %v16490_v28 = vsel %vm12935_vm6, %v10536_v37, %v8297_v21  ;;  %v12374_v37 = vld [vmem:[%s17997_s0 + $0x188] sm:$0x1] }
 0x286   :  { %v4296_v61 = vor.u32 %v4295_v19, %v4292_v20  ;;  %v4314_v34 = vshrl.u32 %v9964_v29, 16  ;;  %v4317_v5 = vshll.u32 %v9964_v29, 16  ;;  %v4323_v38 = vshll.u32 %v12370_v35, 16 }
 0x287   :  { %11234 = vmatmul.mubr.msk.bf16.gmra.mrb[40].mxu1 %vm1002_vm3, %v16281_v14  ;;  %v4272_v14 = vor.u32 %v4271_v7, %v4268_v57  ;;  %v9967_v57 = vld [vmem:[%s17997_s0 + $0x18c] sm:$0xf]  ;;  %v4306_v7 = vor.u32 %v4305_v1, %v16475_v33  ;;  %v4327_v39 = vshrl.u32 %v12370_v35, 16  ;;  %v16520_v36 = vsel %vm12935_vm6, %v8299_v52, %v8300_v9  ;;  %v12375_v1 = vld [vmem:[%s17997_s0 + $0x190] sm:$0xf] }
 0x288   :  { %11506 = vmatmul.mubr.msk.bf16.gmra.mrb[40].mxu0 %vm1002_vm3, %v10566_v56  ;;  %11237 = vmatprep.mubr.msk.bf16.mxu1 %vm1002_vm3, %v16293_v13  ;;  %v8292_v56 = vrot.slane %v8290_v49, 4  ;;  %v12367_v13 = vld [vmem:[%s17997_s0 + $0x170] sm:$0x1]  ;;  %v4288_v49 = vsel %vm12458_vm2, %v4283_v63, %v4287_v58  ;;  %v8304_v42 = vrot.slane %v12371_v12, 5  ;;  %v4297_v41 = vrot.slane %v4296_v61, 4 }
 0x289   :  { %11509 = vmatprep.mubr.msk.bf16.mxu0 %vm1002_vm3, %v10567_v50  ;;  %v8293_v2 = vrot.slane %v12367_v13, 5  ;;  %v10570_v50 = vcombine.low %v16411_v4, %v16435_v26  ;;  %v4273_v30 = vrot.slane %v4272_v14, 4  ;;  %v4311_v46 = vrot.slane %v4309_v55, 5  ;;  %v12376_v58 = vld [vmem:[%s17997_s0 + $0x19c] sm:$0xf] }
 0x28a   :  { %v10537_v24 = vrot.slane %v10505_v15, 9  ;;  %v4316_v45 = vrot.slane %v4314_v34, 4  ;;  %v4307_v60 = vrot.slane %v4306_v7, 4  ;;  %v4319_v54 = vrot.slane %v4317_v5, 5  ;;  %v12377_v26 = vld [vmem:[%s17997_s0 + $0x194] sm:$0x1] }
 0x28b   :  { %v16486_v11 = vsel %vm12935_vm6, %v8292_v56, %v8293_v2  ;;  %v16532_v14 = vrot.slane %v4323_v38, 5  ;;  %v4329_v43 = vrot.slane %v4327_v39, 4  ;;  %v8307_v3 = vrot.slane %v12373_v16, 5  ;;  %v9970_v56 = vld [vmem:[%s17997_s0 + $0x198] sm:$0xf] }
 0x28c   :  { %v10571_v32 = vcombine.low %v16482_v59, %v16486_v11  ;;  %v10572_v13 = vcombine.low %v16490_v28, %v16520_v36  ;;  %v4302_v2 = vsel %vm12458_vm2, %v4297_v41, %v16475_v33  ;;  %v8305_v8 = vsel %vm12935_vm6, %v10537_v24, %v8304_v42  ;;  %v10506_v33 = vld [vmem:[%s17997_s0 + $0x18c] sm:$0xe]  ;;  %v12379_v15 = vld [vmem:[%s17997_s0 + $0x194] sm:$0x1]  ;;  %v10507_v35 = vld [vmem:[%s17997_s0 + $0x198] sm:$0xe] }
 0x28d   :  { %v4333_v20 = vshll.u32 %v12374_v37, 16  ;;  %v4312_v19 = vsel %vm12458_vm2, %v4307_v60, %v4311_v46  ;;  %v4320_v62 = vor.u32 %v4319_v54, %v4316_v45  ;;  %v4330_v9 = vor.u32 %v4329_v43, %v16532_v14  ;;  %v12381_v43 = vld [vmem:[%s17997_s0 + $0x1a0] sm:$0x1] }
 0x28e   :  { %v8311_v29 = vrot.slane %v12375_v1, 5  ;;  %v4365_v63 = vshll.u32 %v9970_v56, 16  ;;  %v4371_v52 = vshll.u32 %v12376_v58, 16  ;;  %v10538_v61 = vrot.slane %v10506_v33, 9 }
 0x28f   :  { %11238 = vmatmul.mubr.msk.bf16.gmra.mrb[44].mxu1 %vm1002_vm3, %v16396_v25  ;;  %v4278_v25 = vsel %vm12458_vm2, %v4273_v30, %v16422_v17  ;;  %v12372_v17 = vld [vmem:[%s17997_s0 + $0x190] sm:$0xf]  ;;  %v4362_v30 = vshrl.u32 %v9970_v56, 16  ;;  %v4335_v28 = vrot.slane %v4333_v20, 5  ;;  %v8318_v55 = vrot.slane %v12378_v51, 5 }
 0x290   :  { %11510 = vmatmul.mubr.msk.bf16.gmra.mrb[44].mxu0 %vm1002_vm3, %v10568_v22  ;;  %11241 = vmatprep.mubr.msk.bf16.mxu1 %vm1002_vm3, %v16401_v53  ;;  %v4338_v22 = vshrl.u32 %v9967_v57, 16  ;;  %v4341_v53 = vshll.u32 %v9967_v57, 16  ;;  %v4347_v44 = vshll.u32 %v12372_v17, 16  ;;  %v4351_v40 = vshrl.u32 %v12372_v17, 16 }
 0x291   :  { %11513 = vmatprep.mubr.msk.bf16.mxu0 %vm1002_vm3, %v10569_v23  ;;  %v10004_v0 = vcombine.low %v4278_v25, %v4288_v49  ;;  %v8306_v23 = vrot.slane %v8304_v42, 4  ;;  %v4321_v34 = vrot.slane %v4320_v62, 4  ;;  %v4331_v57 = vrot.slane %v4330_v9, 4  ;;  %v12383_v62 = vld [vmem:[%s17997_s0 + $0x1ac] sm:$0x1] }
 0x292   :  { %v4340_v31 = vrot.slane %v4338_v22, 4  ;;  %v4343_v21 = vrot.slane %v4341_v53, 5  ;;  %v16539_v18 = vrot.slane %v4347_v44, 5  ;;  %v4353_v48 = vrot.slane %v4351_v40, 4  ;;  %v12380_v44 = vld [vmem:[%s17997_s0 + $0x1a0] sm:$0x1] }
 0x293   :  { %v8308_v59 = vsel %vm12935_vm6, %v8306_v23, %v8307_v3  ;;  %v8313_v7 = vrot.slane %v8311_v29, 4  ;;  %v8314_v5 = vrot.slane %v12379_v15, 5  ;;  %v4364_v38 = vrot.slane %v4362_v30, 4  ;;  %v12382_v23 = vld [vmem:[%s17997_s0 + $0x1a8] sm:$0xf] }
 0x294   :  { %v4344_v11 = vor.u32 %v4343_v21, %v4340_v31  ;;  %v4354_v4 = vor.u32 %v4353_v48, %v16539_v18  ;;  %v4367_v39 = vrot.slane %v4365_v63, 5  ;;  %v4373_v25 = vrot.slane %v4371_v52, 5  ;;  %v10508_v21 = vld [vmem:[%s17997_s0 + $0x1a4] sm:$0xe] }
 0x295   :  { %v10573_v36 = vcombine.low %v8305_v8, %v8308_v59  ;;  %v10539_v53 = vrot.slane %v10507_v35, 9  ;;  %v8320_v17 = vrot.slane %v8318_v55, 4  ;;  %v8321_v40 = vrot.slane %v12380_v44, 5 }
 0x296   :  { %v4345_v12 = vrot.slane %v4344_v11, 4  ;;  %v4355_v42 = vrot.slane %v4354_v4, 4  ;;  %v4326_v41 = vsel %vm12458_vm2, %v4321_v34, %v16532_v14  ;;  %v8312_v46 = vsel %vm12935_vm6, %v10538_v61, %v8311_v29 }
 0x297   :  { %11242 = vmatmul.mubr.msk.bf16.gmra.mrb[48].mxu1 %vm1002_vm3, %v10002_v6  ;;  %v4375_v6 = vshrl.u32 %v12376_v58, 16  ;;  %v8315_v24 = vsel %vm12935_vm6, %v8313_v7, %v8314_v5  ;;  %v4336_v45 = vsel %vm12458_vm2, %v4331_v57, %v4335_v28  ;;  %v4368_v60 = vor.u32 %v4367_v39, %v4364_v38 }
 0x298   :  { %11514 = vmatmul.mubr.msk.bf16.gmra.mrb[48].mxu0 %vm1002_vm3, %v10570_v50  ;;  %11245 = vmatprep.mubr.msk.bf16.mxu1 %vm1002_vm3, %v10003_v47  ;;  %v4357_v50 = vshll.u32 %v12377_v26, 16  ;;  %v10005_v47 = vcombine.low %v4302_v2, %v4312_v19  ;;  %v4381_v14 = vshll.u32 %v12381_v43, 16  ;;  %v8325_v16 = vrot.slane %v12382_v23, 5 }
 0x299   :  { %11517 = vmatprep.mubr.msk.bf16.mxu0 %vm1002_vm3, %v10571_v32  ;;  %v4377_v49 = vrot.slane %v4375_v6, 4  ;;  %v4350_v32 = vsel %vm12458_vm2, %v4345_v12, %v16539_v18  ;;  %v8319_v3 = vsel %vm12935_vm6, %v10539_v53, %v8318_v55  ;;  %v8322_v31 = vsel %vm12935_vm6, %v8320_v17, %v8321_v40 }
 0x29a   :  { %v4359_v22 = vrot.slane %v4357_v50, 5  ;;  %v10006_v48 = vcombine.low %v4326_v41, %v4336_v45  ;;  %v10574_v18 = vcombine.low %v8312_v46, %v8315_v24  ;;  %v4383_v8 = vrot.slane %v4381_v14, 5 }
 0x29b   :  { %v4378_v54 = vor.u32 %v4377_v49, %v4373_v25  ;;  %v10575_v37 = vcombine.low %v8319_v3, %v8322_v31  ;;  %v10540_v20 = vrot.slane %v10508_v21, 9  ;;  %v8327_v19 = vrot.slane %v8325_v16, 4 }
 0x29c   :  { %v8328_v9 = vrot.slane %v12383_v62, 5 }
 0x29d   :  { %v4379_v2 = vrot.slane %v4378_v54, 4  ;;  %v8326_v29 = vsel %vm12935_vm6, %v10540_v20, %v8325_v16 }
 0x29e   :  { %v8329_v30 = vsel %vm12935_vm6, %v8327_v19, %v8328_v9 }
 0x29f   :  { %11246 = vmatmul.mubr.msk.bf16.gmra.mrb[52].mxu1 %vm1002_vm3, %v10004_v0  ;;  %v4360_v0 = vsel %vm12458_vm2, %v4355_v42, %v4359_v22  ;;  %v4384_v1 = vsel %vm12458_vm2, %v4379_v2, %v4383_v8  ;;  %v10576_v58 = vcombine.low %v8326_v29, %v8329_v30 }
 0x2a0   :  { %11518 = vmatmul.mubr.msk.bf16.gmra.mrb[52].mxu0 %vm1002_vm3, %v10572_v13  ;;  %11249 = vmatprep.mubr.msk.bf16.mxu1 %vm1002_vm3, %v10005_v47  ;;  %v10007_v56 = vcombine.low %v4350_v32, %v4360_v0  ;;  %v4369_v13 = vrot.slane %v4368_v60, 4 }
 0x2a1   :  { %11521 = vmatprep.mubr.msk.bf16.mxu0 %vm1002_vm3, %v10573_v36 }
 0x2a2   :  { %v4374_v33 = vsel %vm12458_vm2, %v4369_v13, %v4373_v25 }
 0x2a3   :  { %v10008_v63 = vcombine.low %v4374_v33, %v4384_v1 }
 0x2a7   :  { %11250 = vmatmul.mubr.msk.bf16.gmra.mrb[56].mxu1 %vm1002_vm3, %v10006_v48 }
 0x2a8   :  { %11522 = vmatmul.mubr.msk.bf16.gmra.mrb[56].mxu0 %vm1002_vm3, %v10574_v18  ;;  %11253 = vmatprep.mubr.msk.bf16.mxu1 %vm1002_vm3, %v10007_v56 }
 0x2a9   :  { %11525 = vmatprep.mubr.msk.bf16.mxu0 %vm1002_vm3, %v10575_v37 }
 0x2af   :  { %11254 = vmatmul.mubr.msk.bf16.gmra.mrb[60].mxu1 %vm1002_vm3, %v10008_v63 }
 0x2b0   :  { %11526 = vmatmul.mubr.msk.bf16.gmra.mrb[60].mxu0 %vm1002_vm3, %v10576_v58 }
 0x2ca   :  { %v11127_v52 = vpop.f32.mrb[0].mxu1 }
 0x2cb   :  { %v3202_v6 = vpop.f32.mrb[1].mxu1 }
 0x2cc   :  { %v11128_v59 = vpop.f32.mrb[2].mxu1 }
 0x2cd   :  { %v3205_v11 = vpop.f32.mrb[3].mxu1 }
 0x2d2   :  { %v11131_v27 = vpop.f32.mrb[4].mxu1 }
 0x2d3   :  { %v3218_v4 = vpop.f32.mrb[5].mxu1 }
 0x2d4   :  { %v11132_v26 = vpop.f32.mrb[6].mxu1 }
 0x2d5   :  { %v3221_v50 = vpop.f32.mrb[7].mxu1 }
 0x2da   :  { %v16639_v47 = vpop.f32.mrb[8].mxu1 }
 0x2db   :  { %v16641_v28 = vpop.f32.mrb[9].mxu1 }
 0x2dc   :  { %v16643_v10 = vpop.f32.mrb[10].mxu1 }
 0x2dd   :  { %v16645_v61 = vpop.f32.mrb[11].mxu1 }
 0x2e2   :  { %v16647_v51 = vpop.f32.mrb[12].mxu1 }
 0x2e3   :  { %v16649_v55 = vpop.f32.mrb[13].mxu1 }
 0x2e4   :  { %v16651_v34 = vpop.f32.mrb[14].mxu1 }
 0x2e5   :  { %v16653_v57 = vpop.f32.mrb[15].mxu1 }
 0x2ea   :  { %v16655_v7 = vpop.f32.mrb[16].mxu1 }
 0x2eb   :  { %v16657_v15 = vpop.f32.mrb[17].mxu1 }
 0x2ec   :  { %v16659_v5 = vpop.f32.mrb[18].mxu1 }
 0x2ed   :  { %v16661_v35 = vpop.f32.mrb[19].mxu1 }
 0x2f2   :  { %v16663_v38 = vpop.f32.mrb[20].mxu1 }
 0x2f3   :  { %v16665_v39 = vpop.f32.mrb[21].mxu1 }
 0x2f4   :  { %v16667_v25 = vpop.f32.mrb[22].mxu1 }
 0x2f5   :  { %v16669_v49 = vpop.f32.mrb[23].mxu1 }
 0x2fa   :  { %v16671_v36 = vpop.f32.mrb[24].mxu1 }
 0x2fb   :  { %v16673_v12 = vpop.f32.mrb[25].mxu1 }
 0x2fc   :  { %v16675_v42 = vpop.f32.mrb[26].mxu1 }
 0x2fd   :  { %v16677_v22 = vpop.f32.mrb[27].mxu1 }
 0x302   :  { %v16679_v53 = vpop.f32.mrb[28].mxu1 }
 0x303   :  { %v16681_v17 = vpop.f32.mrb[29].mxu1 }
 0x304   :  { %v16683_v44 = vpop.f32.mrb[30].mxu1 }
 0x305   :  { %v16685_v40 = vpop.f32.mrb[31].mxu1 }
 0x30b   :  { %v11467_v41 = vpop.f32.mrb[0].mxu0 }
 0x30c   :  { %v16687_v46 = vadd.f32 %v11467_v41, %v11127_v52  ;;  %v8573_v24 = vpop.f32.mrb[1].mxu0 }
 0x30d   :  { %v16689_v45 = vadd.f32 %v8573_v24, %v3202_v6  ;;  %v11468_v60 = vpop.f32.mrb[2].mxu0 }
 0x30e   :  { %v16691_v54 = vadd.f32 %v11468_v60, %v11128_v59  ;;  %v8576_v43 = vpop.f32.mrb[3].mxu0  ;;  %v9027_v0 = vmul.f32 %v16687_v46, %v16687_v46  ;;  %v8895_v48 = vsel %vm1002_vm3, %v16687_v46, 0.0 }
 0x30f   :  { %v9025_v14 = vmul.f32 %v16689_v45, %v16689_v45  ;;  %v16695_v32 = vadd.f32 %v8576_v43, %v3205_v11  ;;  %v8892_v23 = vsel %vm1002_vm3, %v16689_v45, 0.0 }
 0x310   :  { %v9028_v31 = vmul.f32 %v16691_v54, %v16691_v54  ;;  %v9092_v19 = vsel %vm1002_vm3, %v9027_v0, 0.0  ;;  %v8897_v62 = vsel %vm1002_vm3, %v16691_v54, 0.0 }
 0x311   :  { %v8893_v16 = vsel %vm1002_vm3, %v16695_v32, 0.0  ;;  %v9026_v3 = vmul.f32 %v16695_v32, %v16695_v32  ;;  %v9089_v18 = vsel %vm1002_vm3, %v9025_v14, 0.0 }
 0x312   :  { %v8894_v21 = vadd.f32 %v8893_v16, %v8892_v23  ;;  %v9094_v1 = vsel %vm1002_vm3, %v9028_v31, 0.0 }
 0x313   :  { %v9090_v56 = vsel %vm1002_vm3, %v9026_v3, 0.0  ;;  %v11471_v13 = vpop.f32.mrb[4].mxu0 }
 0x314   :  { %v8896_v2 = vadd.f32 %v8895_v48, %v8894_v21  ;;  %v9091_v8 = vadd.f32 %v9090_v56, %v9089_v18  ;;  %v16711_v37 = vadd.f32 %v11471_v13, %v11131_v27  ;;  %v8589_v20 = vpop.f32.mrb[5].mxu0 }
 0x315   :  { %v16716_v9 = vadd.f32 %v8589_v20, %v3218_v4  ;;  %v11472_v33 = vpop.f32.mrb[6].mxu0 }
 0x316   :  { %v9093_v29 = vadd.f32 %v9092_v19, %v9091_v8  ;;  %v8898_v30 = vadd.f32 %v8897_v62, %v8896_v2  ;;  %v8592_v63 = vpop.f32.mrb[7].mxu0  ;;  %v16723_v6 = vadd.f32 %v11472_v33, %v11132_v26  ;;  %v9031_v24 = vmul.f32 %v16711_v37, %v16711_v37 }
 0x317   :  { %v8899_v58 = vsel %vm1002_vm3, %v16716_v9, 0.0  ;;  %v9029_v52 = vmul.f32 %v16716_v9, %v16716_v9  ;;  %v16725_v59 = vadd.f32 %v8592_v63, %v3221_v50  ;;  %v8903_v26 = vsel %vm1002_vm3, %v16711_v37, 0.0 }
 0x318   :  { %v8900_v11 = vadd.f32 %v8899_v58, %v8898_v30  ;;  %v9095_v27 = vadd.f32 %v9094_v1, %v9093_v29  ;;  %v9032_v0 = vmul.f32 %v16723_v6, %v16723_v6  ;;  %v8905_v21 = vsel %vm1002_vm3, %v16723_v6, 0.0 }
 0x319   :  { %v9096_v4 = vsel %vm1002_vm3, %v9029_v52, 0.0  ;;  %v8901_v41 = vsel %vm1002_vm3, %v16725_v59, 0.0  ;;  %v9030_v14 = vmul.f32 %v16725_v59, %v16725_v59  ;;  %v9100_v13 = vsel %vm1002_vm3, %v9031_v24, 0.0 }
 0x31a   :  { %v9097_v60 = vadd.f32 %v9096_v4, %v9095_v27  ;;  %v8902_v43 = vadd.f32 %v8901_v41, %v8900_v11 }
 0x31b   :  { %v11475_v50 = vpop.f32.mrb[8].mxu0  ;;  %v9098_v16 = vsel %vm1002_vm3, %v9030_v14, 0.0 }
 0x31c   :  { %v8904_v23 = vadd.f32 %v8903_v26, %v8902_v43  ;;  %v16740_v3 = vadd.f32 %v11475_v50, %v16639_v47  ;;  %v8605_v31 = vpop.f32.mrb[9].mxu0  ;;  %v9099_v48 = vadd.f32 %v9098_v16, %v9097_v60 }
 0x31d   :  { %v16745_v18 = vadd.f32 %v8605_v31, %v16641_v28  ;;  %v11476_v56 = vpop.f32.mrb[10].mxu0  ;;  %v9102_v28 = vsel %vm1002_vm3, %v9032_v0, 0.0 }
 0x31e   :  { %v8906_v2 = vadd.f32 %v8905_v21, %v8904_v23  ;;  %v16749_v8 = vadd.f32 %v11476_v56, %v16643_v10  ;;  %v8608_v20 = vpop.f32.mrb[11].mxu0  ;;  %v9101_v19 = vadd.f32 %v9100_v13, %v9099_v48  ;;  %v9035_v58 = vmul.f32 %v16740_v3, %v16740_v3 }
 0x31f   :  { %v8907_v47 = vsel %vm1002_vm3, %v16745_v18, 0.0  ;;  %v9033_v62 = vmul.f32 %v16745_v18, %v16745_v18  ;;  %v16756_v33 = vadd.f32 %v8608_v20, %v16645_v61  ;;  %v8911_v61 = vsel %vm1002_vm3, %v16740_v3, 0.0 }
 0x320   :  { %v8908_v1 = vadd.f32 %v8907_v47, %v8906_v2  ;;  %v9103_v29 = vadd.f32 %v9102_v28, %v9101_v19  ;;  %v9036_v41 = vmul.f32 %v16749_v8, %v16749_v8  ;;  %v8913_v14 = vsel %vm1002_vm3, %v16749_v8, 0.0 }
 0x321   :  { %v9104_v30 = vsel %vm1002_vm3, %v9033_v62, 0.0  ;;  %v8909_v10 = vsel %vm1002_vm3, %v16756_v33, 0.0  ;;  %v9034_v63 = vmul.f32 %v16756_v33, %v16756_v33  ;;  %v9108_v23 = vsel %vm1002_vm3, %v9035_v58, 0.0 }
 0x322   :  { %v8910_v52 = vadd.f32 %v8909_v10, %v8908_v1  ;;  %v9105_v11 = vadd.f32 %v9104_v30, %v9103_v29 }
 0x323   :  { %v9106_v27 = vsel %vm1002_vm3, %v9034_v63, 0.0  ;;  %v11479_v4 = vpop.f32.mrb[12].mxu0 }
 0x324   :  { %v8912_v24 = vadd.f32 %v8911_v61, %v8910_v52  ;;  %v16772_v60 = vadd.f32 %v11479_v4, %v16647_v51  ;;  %v8621_v43 = vpop.f32.mrb[13].mxu0  ;;  %v9107_v26 = vadd.f32 %v9106_v27, %v9105_v11 }
 0x325   :  { %v16777_v50 = vadd.f32 %v8621_v43, %v16649_v55  ;;  %v11480_v0 = vpop.f32.mrb[14].mxu0  ;;  %v9110_v55 = vsel %vm1002_vm3, %v9036_v41, 0.0 }
 0x326   :  { %v8914_v16 = vadd.f32 %v8913_v14, %v8912_v24  ;;  %v16781_v31 = vadd.f32 %v11480_v0, %v16651_v34  ;;  %v8624_v21 = vpop.f32.mrb[15].mxu0  ;;  %v9109_v48 = vadd.f32 %v9108_v23, %v9107_v26  ;;  %v9039_v62 = vmul.f32 %v16772_v60, %v16772_v60 }
 0x327   :  { %v8915_v51 = vsel %vm1002_vm3, %v16777_v50, 0.0  ;;  %v9037_v56 = vmul.f32 %v16777_v50, %v16777_v50  ;;  %v16788_v13 = vadd.f32 %v8624_v21, %v16653_v57  ;;  %v8919_v57 = vsel %vm1002_vm3, %v16772_v60, 0.0 }
 0x328   :  { %v8916_v2 = vadd.f32 %v8915_v51, %v8914_v16  ;;  %v9111_v20 = vadd.f32 %v9110_v55, %v9109_v48  ;;  %v9040_v10 = vmul.f32 %v16781_v31, %v16781_v31  ;;  %v8921_v61 = vsel %vm1002_vm3, %v16781_v31, 0.0 }
 0x329   :  { %v9112_v19 = vsel %vm1002_vm3, %v9037_v56, 0.0  ;;  %v8917_v34 = vsel %vm1002_vm3, %v16788_v13, 0.0  ;;  %v9038_v47 = vmul.f32 %v16788_v13, %v16788_v13  ;;  %v9116_v41 = vsel %vm1002_vm3, %v9039_v62, 0.0 }
 0x32a   :  { %v8918_v28 = vadd.f32 %v8917_v34, %v8916_v2  ;;  %v9113_v1 = vadd.f32 %v9112_v19, %v9111_v20 }
 0x32b   :  { %v9114_v29 = vsel %vm1002_vm3, %v9038_v47, 0.0  ;;  %v11483_v30 = vpop.f32.mrb[16].mxu0 }
 0x32c   :  { %v8920_v63 = vadd.f32 %v8919_v57, %v8918_v28  ;;  %v16804_v58 = vadd.f32 %v11483_v30, %v16655_v7  ;;  %v8637_v52 = vpop.f32.mrb[17].mxu0  ;;  %v9115_v11 = vadd.f32 %v9114_v29, %v9113_v1 }
 0x32d   :  { %v16809_v27 = vadd.f32 %v8637_v52, %v16657_v15  ;;  %v11484_v4 = vpop.f32.mrb[18].mxu0  ;;  %v9118_v15 = vsel %vm1002_vm3, %v9040_v10, 0.0 }
 0x32e   :  { %v8922_v24 = vadd.f32 %v8921_v61, %v8920_v63  ;;  %v16813_v43 = vadd.f32 %v11484_v4, %v16659_v5  ;;  %v8640_v14 = vpop.f32.mrb[19].mxu0  ;;  %v9117_v26 = vadd.f32 %v9116_v41, %v9115_v11  ;;  %v9043_v56 = vmul.f32 %v16804_v58, %v16804_v58 }
 0x32f   :  { %v8923_v7 = vsel %vm1002_vm3, %v16809_v27, 0.0  ;;  %v9041_v0 = vmul.f32 %v16809_v27, %v16809_v27  ;;  %v16820_v23 = vadd.f32 %v8640_v14, %v16661_v35  ;;  %v8927_v35 = vsel %vm1002_vm3, %v16804_v58, 0.0 }
 0x330   :  { %v8924_v16 = vadd.f32 %v8923_v7, %v8922_v24  ;;  %v9119_v21 = vadd.f32 %v9118_v15, %v9117_v26  ;;  %v9044_v34 = vmul.f32 %v16813_v43, %v16813_v43  ;;  %v8929_v57 = vsel %vm1002_vm3, %v16813_v43, 0.0 }
 0x331   :  { %v9120_v48 = vsel %vm1002_vm3, %v9041_v0, 0.0  ;;  %v8925_v5 = vsel %vm1002_vm3, %v16820_v23, 0.0  ;;  %v9042_v51 = vmul.f32 %v16820_v23, %v16820_v23  ;;  %v9124_v10 = vsel %vm1002_vm3, %v9043_v56, 0.0 }
 0x332   :  { %v8926_v55 = vadd.f32 %v8925_v5, %v8924_v16  ;;  %v9121_v2 = vadd.f32 %v9120_v48, %v9119_v21 }
 0x333   :  { %v9122_v20 = vsel %vm1002_vm3, %v9042_v51, 0.0  ;;  %v11487_v19 = vpop.f32.mrb[20].mxu0 }
 0x334   :  { %v8928_v47 = vadd.f32 %v8927_v35, %v8926_v55  ;;  %v16836_v62 = vadd.f32 %v11487_v19, %v16663_v38  ;;  %v8653_v28 = vpop.f32.mrb[21].mxu0  ;;  %v9123_v1 = vadd.f32 %v9122_v20, %v9121_v2 }
 0x335   :  { %v16841_v29 = vadd.f32 %v8653_v28, %v16665_v39  ;;  %v11488_v30 = vpop.f32.mrb[22].mxu0  ;;  %v9126_v39 = vsel %vm1002_vm3, %v9044_v34, 0.0 }
 0x336   :  { %v8930_v63 = vadd.f32 %v8929_v57, %v8928_v47  ;;  %v16845_v52 = vadd.f32 %v11488_v30, %v16667_v25  ;;  %v8656_v61 = vpop.f32.mrb[23].mxu0  ;;  %v9125_v11 = vadd.f32 %v9124_v10, %v9123_v1  ;;  %v9047_v0 = vmul.f32 %v16836_v62, %v16836_v62 }
 0x337   :  { %v8931_v38 = vsel %vm1002_vm3, %v16841_v29, 0.0  ;;  %v9045_v4 = vmul.f32 %v16841_v29, %v16841_v29  ;;  %v16852_v41 = vadd.f32 %v8656_v61, %v16669_v49  ;;  %v8935_v49 = vsel %vm1002_vm3, %v16836_v62, 0.0 }
 0x338   :  { %v8932_v24 = vadd.f32 %v8931_v38, %v8930_v63  ;;  %v9127_v14 = vadd.f32 %v9126_v39, %v9125_v11  ;;  %v9048_v5 = vmul.f32 %v16845_v52, %v16845_v52  ;;  %v8937_v35 = vsel %vm1002_vm3, %v16845_v52, 0.0 }
 0x339   :  { %v9128_v26 = vsel %vm1002_vm3, %v9045_v4, 0.0  ;;  %v8933_v25 = vsel %vm1002_vm3, %v16852_v41, 0.0  ;;  %v9046_v7 = vmul.f32 %v16852_v41, %v16852_v41  ;;  %v9132_v34 = vsel %vm1002_vm3, %v9047_v0, 0.0 }
 0x33a   :  { %v8934_v15 = vadd.f32 %v8933_v25, %v8932_v24  ;;  %v9129_v16 = vadd.f32 %v9128_v26, %v9127_v14 }
 0x33b   :  { %v9130_v21 = vsel %vm1002_vm3, %v9046_v7, 0.0  ;;  %v11491_v48 = vpop.f32.mrb[24].mxu0 }
 0x33c   :  { %v8936_v51 = vadd.f32 %v8935_v49, %v8934_v15  ;;  %v16868_v56 = vadd.f32 %v11491_v48, %v16671_v36  ;;  %v8669_v55 = vpop.f32.mrb[25].mxu0  ;;  %v9131_v2 = vadd.f32 %v9130_v21, %v9129_v16 }
 0x33d   :  { %v16873_v20 = vadd.f32 %v8669_v55, %v16673_v12  ;;  %v11492_v19 = vpop.f32.mrb[26].mxu0  ;;  %v9134_v12 = vsel %vm1002_vm3, %v9048_v5, 0.0 }
 0x33e   :  { %v8938_v47 = vadd.f32 %v8937_v35, %v8936_v51  ;;  %v16877_v28 = vadd.f32 %v11492_v19, %v16675_v42  ;;  %v8672_v57 = vpop.f32.mrb[27].mxu0  ;;  %v9133_v1 = vadd.f32 %v9132_v34, %v9131_v2  ;;  %v9051_v4 = vmul.f32 %v16868_v56, %v16868_v56 }
 0x33f   :  { %v8939_v36 = vsel %vm1002_vm3, %v16873_v20, 0.0  ;;  %v9049_v30 = vmul.f32 %v16873_v20, %v16873_v20  ;;  %v16884_v10 = vadd.f32 %v8672_v57, %v16677_v22  ;;  %v8943_v22 = vsel %vm1002_vm3, %v16868_v56, 0.0 }
 0x340   :  { %v8940_v63 = vadd.f32 %v8939_v36, %v8938_v47  ;;  %v9135_v61 = vadd.f32 %v9134_v12, %v9133_v1  ;;  %v9052_v25 = vmul.f32 %v16877_v28, %v16877_v28  ;;  %v8945_v49 = vsel %vm1002_vm3, %v16877_v28, 0.0 }
 0x341   :  { %v9136_v11 = vsel %vm1002_vm3, %v9049_v30, 0.0  ;;  %v8941_v42 = vsel %vm1002_vm3, %v16884_v10, 0.0  ;;  %v9050_v38 = vmul.f32 %v16884_v10, %v16884_v10  ;;  %v9140_v5 = vsel %vm1002_vm3, %v9051_v4, 0.0 }
 0x342   :  { %v8942_v39 = vadd.f32 %v8941_v42, %v8940_v63  ;;  %v9137_v24 = vadd.f32 %v9136_v11, %v9135_v61 }
 0x343   :  { %v9138_v14 = vsel %vm1002_vm3, %v9050_v38, 0.0  ;;  %v11495_v26 = vpop.f32.mrb[28].mxu0 }
 0x344   :  { %v8944_v7 = vadd.f32 %v8943_v22, %v8942_v39  ;;  %v16900_v0 = vadd.f32 %v11495_v26, %v16679_v53  ;;  %v8685_v15 = vpop.f32.mrb[29].mxu0  ;;  %v9139_v16 = vadd.f32 %v9138_v14, %v9137_v24 }
 0x345   :  { %v16905_v21 = vadd.f32 %v8685_v15, %v16681_v17  ;;  %v11496_v48 = vpop.f32.mrb[30].mxu0  ;;  %v9142_v17 = vsel %vm1002_vm3, %v9052_v25, 0.0 }
 0x346   :  { %v8946_v51 = vadd.f32 %v8945_v49, %v8944_v7  ;;  %v16909_v55 = vadd.f32 %v11496_v48, %v16683_v44  ;;  %v8688_v35 = vpop.f32.mrb[31].mxu0  ;;  %v9141_v2 = vadd.f32 %v9140_v5, %v9139_v16  ;;  %v9055_v30 = vmul.f32 %v16900_v0, %v16900_v0 }
 0x347   :  { %v8947_v53 = vsel %vm1002_vm3, %v16905_v21, 0.0  ;;  %v9053_v19 = vmul.f32 %v16905_v21, %v16905_v21  ;;  %v16916_v34 = vadd.f32 %v8688_v35, %v16685_v40  ;;  %v8951_v40 = vsel %vm1002_vm3, %v16900_v0, 0.0 }
 0x348   :  { %v8948_v47 = vadd.f32 %v8947_v53, %v8946_v51  ;;  %v9143_v57 = vadd.f32 %v9142_v17, %v9141_v2  ;;  %v9056_v4 = vmul.f32 %v16909_v55, %v16909_v55  ;;  %v8953_v26 = vsel %vm1002_vm3, %v16909_v55, 0.0 }
 0x349   :  { %v9144_v1 = vsel %vm1002_vm3, %v9053_v19, 0.0  ;;  %v8949_v44 = vsel %vm1002_vm3, %v16916_v34, 0.0  ;;  %v9054_v36 = vmul.f32 %v16916_v34, %v16916_v34  ;;  %v9148_v16 = vsel %vm1002_vm3, %v9055_v30, 0.0 }
 0x34a   :  { %v8950_v12 = vadd.f32 %v8949_v44, %v8948_v47  ;;  %v11227_v63 = vpop.f32.mrb[32].mxu1  ;;  %v9145_v61 = vadd.f32 %v9144_v1, %v9143_v57  ;;  %v9150_v17 = vsel %vm1002_vm3, %v9056_v4, 0.0 }
 0x34b   :  { %v9146_v11 = vsel %vm1002_vm3, %v9054_v36, 0.0  ;;  %v11499_v42 = vpop.f32.mrb[32].mxu0  ;;  %v4756_v38 = vpop.f32.mrb[33].mxu1 }
 0x34c   :  { %v8952_v39 = vadd.f32 %v8951_v40, %v8950_v12  ;;  %v16931_v22 = vadd.f32 %v11499_v42, %v11227_v63  ;;  %v8701_v24 = vpop.f32.mrb[33].mxu0  ;;  %v11228_v14 = vpop.f32.mrb[34].mxu1  ;;  %v9147_v25 = vadd.f32 %v9146_v11, %v9145_v61 }
 0x34d   :  { %v16935_v7 = vadd.f32 %v8701_v24, %v4756_v38  ;;  %v11500_v15 = vpop.f32.mrb[34].mxu0  ;;  %v4759_v49 = vpop.f32.mrb[35].mxu1 }
 0x34e   :  { %v8954_v48 = vadd.f32 %v8953_v26, %v8952_v39  ;;  %v16938_v5 = vadd.f32 %v11500_v15, %v11228_v14  ;;  %v8704_v51 = vpop.f32.mrb[35].mxu0  ;;  %v9149_v35 = vadd.f32 %v9148_v16, %v9147_v25  ;;  %v9059_v30 = vmul.f32 %v16931_v22, %v16931_v22 }
 0x34f   :  { %v8955_v2 = vsel %vm1002_vm3, %v16935_v7, 0.0  ;;  %v9057_v53 = vmul.f32 %v16935_v7, %v16935_v7  ;;  %v16944_v19 = vadd.f32 %v8704_v51, %v4759_v49  ;;  %v8959_v40 = vsel %vm1002_vm3, %v16931_v22, 0.0 }
 0x350   :  { %v8956_v47 = vadd.f32 %v8955_v2, %v8954_v48  ;;  %v9151_v57 = vadd.f32 %v9150_v17, %v9149_v35  ;;  %v9060_v4 = vmul.f32 %v16938_v5, %v16938_v5  ;;  %v8961_v25 = vsel %vm1002_vm3, %v16938_v5, 0.0 }
 0x351   :  { %v9152_v1 = vsel %vm1002_vm3, %v9057_v53, 0.0  ;;  %v8957_v44 = vsel %vm1002_vm3, %v16944_v19, 0.0  ;;  %v9058_v36 = vmul.f32 %v16944_v19, %v16944_v19  ;;  %v9156_v51 = vsel %vm1002_vm3, %v9059_v30, 0.0 }
 0x352   :  { %v8958_v12 = vadd.f32 %v8957_v44, %v8956_v47  ;;  %v11231_v63 = vpop.f32.mrb[36].mxu1  ;;  %v9153_v61 = vadd.f32 %v9152_v1, %v9151_v57  ;;  %v9158_v44 = vsel %vm1002_vm3, %v9060_v4, 0.0 }
 0x353   :  { %v9154_v11 = vsel %vm1002_vm3, %v9058_v36, 0.0  ;;  %v11503_v42 = vpop.f32.mrb[36].mxu0  ;;  %v4772_v38 = vpop.f32.mrb[37].mxu1 }
 0x354   :  { %v8960_v39 = vadd.f32 %v8959_v40, %v8958_v12  ;;  %v16959_v24 = vadd.f32 %v11503_v42, %v11231_v63  ;;  %v8717_v14 = vpop.f32.mrb[37].mxu0  ;;  %v11232_v26 = vpop.f32.mrb[38].mxu1  ;;  %v9155_v15 = vadd.f32 %v9154_v11, %v9153_v61 }
 0x355   :  { %v16963_v49 = vadd.f32 %v8717_v14, %v4772_v38  ;;  %v11504_v16 = vpop.f32.mrb[38].mxu0  ;;  %v4775_v48 = vpop.f32.mrb[39].mxu1 }
 0x356   :  { %v8962_v35 = vadd.f32 %v8961_v25, %v8960_v39  ;;  %v16966_v2 = vadd.f32 %v11504_v16, %v11232_v26  ;;  %v8720_v53 = vpop.f32.mrb[39].mxu0  ;;  %v9157_v17 = vadd.f32 %v9156_v51, %v9155_v15  ;;  %v9063_v61 = vmul.f32 %v16959_v24, %v16959_v24 }
 0x357   :  { %v8963_v47 = vsel %vm1002_vm3, %v16963_v49, 0.0  ;;  %v9061_v57 = vmul.f32 %v16963_v49, %v16963_v49  ;;  %v16972_v1 = vadd.f32 %v8720_v53, %v4775_v48  ;;  %v8967_v38 = vsel %vm1002_vm3, %v16959_v24, 0.0 }
 0x358   :  { %v8964_v36 = vadd.f32 %v8963_v47, %v8962_v35  ;;  %v9159_v12 = vadd.f32 %v9158_v44, %v9157_v17  ;;  %v9064_v25 = vmul.f32 %v16966_v2, %v16966_v2  ;;  %v8969_v35 = vsel %vm1002_vm3, %v16966_v2, 0.0 }
 0x359   :  { %v9160_v63 = vsel %vm1002_vm3, %v9061_v57, 0.0  ;;  %v8965_v30 = vsel %vm1002_vm3, %v16972_v1, 0.0  ;;  %v9062_v40 = vmul.f32 %v16972_v1, %v16972_v1  ;;  %v9164_v44 = vsel %vm1002_vm3, %v9063_v61, 0.0 }
 0x35a   :  { %v8966_v11 = vadd.f32 %v8965_v30, %v8964_v36  ;;  %v11235_v42 = vpop.f32.mrb[40].mxu1  ;;  %v9161_v39 = vadd.f32 %v9160_v63, %v9159_v12 }
 0x35b   :  { %v9162_v4 = vsel %vm1002_vm3, %v9062_v40, 0.0  ;;  %v11507_v14 = vpop.f32.mrb[40].mxu0  ;;  %v4788_v26 = vpop.f32.mrb[41].mxu1 }
 0x35c   :  { %v8968_v15 = vadd.f32 %v8967_v38, %v8966_v11  ;;  %v16987_v16 = vadd.f32 %v11507_v14, %v11235_v42  ;;  %v8733_v48 = vpop.f32.mrb[41].mxu0  ;;  %v11236_v51 = vpop.f32.mrb[42].mxu1  ;;  %v9163_v53 = vadd.f32 %v9162_v4, %v9161_v39  ;;  %v9166_v38 = vsel %vm1002_vm3, %v9064_v25, 0.0 }
 0x35d   :  { %v16991_v17 = vadd.f32 %v8733_v48, %v4788_v26  ;;  %v11508_v47 = vpop.f32.mrb[42].mxu0  ;;  %v4791_v57 = vpop.f32.mrb[43].mxu1 }
 0x35e   :  { %18081 = vst [vmem:[#allocation3_spill] sm:$0xff] %v16987_v16  ;;  %v8970_v36 = vadd.f32 %v8969_v35, %v8968_v15  ;;  %v16994_v12 = vadd.f32 %v11508_v47, %v11236_v51  ;;  %v8736_v63 = vpop.f32.mrb[43].mxu0  ;;  %v9165_v30 = vadd.f32 %v9164_v44, %v9163_v53  ;;  %v9067_v15 = vmul.f32 %v16987_v16, %v16987_v16 }
 0x35f   :  { %18082 = vst [vmem:[#allocation4_spill] sm:$0xff] %v16991_v17  ;;  %v8971_v40 = vsel %vm1002_vm3, %v16991_v17, 0.0  ;;  %v9065_v11 = vmul.f32 %v16991_v17, %v16991_v17  ;;  %v17000_v42 = vadd.f32 %v8736_v63, %v4791_v57  ;;  %v8975_v35 = vsel %vm1002_vm3, %v16987_v16, 0.0 }
 0x360   :  { %18083 = vst [vmem:[#allocation7_spill] sm:$0xff] %v16994_v12  ;;  %v8972_v39 = vadd.f32 %v8971_v40, %v8970_v36  ;;  %v9167_v4 = vadd.f32 %v9166_v38, %v9165_v30  ;;  %v9068_v44 = vmul.f32 %v16994_v12, %v16994_v12 }
 0x361   :  { %18084 = vst [vmem:[#allocation2_spill] sm:$0xff] %v17000_v42  ;;  %v9168_v14 = vsel %vm1002_vm3, %v9065_v11, 0.0  ;;  %v8973_v61 = vsel %vm1002_vm3, %v17000_v42, 0.0  ;;  %v9066_v26 = vmul.f32 %v17000_v42, %v17000_v42  ;;  %v8977_v11 = vsel %vm1002_vm3, %v16994_v12, 0.0 }
 0x362   :  { %v8974_v48 = vadd.f32 %v8973_v61, %v8972_v39  ;;  %v11239_v51 = vpop.f32.mrb[44].mxu1  ;;  %v9169_v53 = vadd.f32 %v9168_v14, %v9167_v4  ;;  %v9172_v14 = vsel %vm1002_vm3, %v9067_v15, 0.0 }
 0x363   :  { %v9170_v25 = vsel %vm1002_vm3, %v9066_v26, 0.0  ;;  %v11511_v47 = vpop.f32.mrb[44].mxu0  ;;  %v4804_v57 = vpop.f32.mrb[45].mxu1 }
 0x364   :  { %v8976_v36 = vadd.f32 %v8975_v35, %v8974_v48  ;;  %v17015_v63 = vadd.f32 %v11511_v47, %v11239_v51  ;;  %v8749_v30 = vpop.f32.mrb[45].mxu0  ;;  %v11240_v40 = vpop.f32.mrb[46].mxu1  ;;  %v9171_v38 = vadd.f32 %v9170_v25, %v9169_v53  ;;  %v9174_v53 = vsel %vm1002_vm3, %v9068_v44, 0.0 }
 0x365   :  { %v17019_v39 = vadd.f32 %v8749_v30, %v4804_v57  ;;  %v11512_v61 = vpop.f32.mrb[46].mxu0  ;;  %v4807_v4 = vpop.f32.mrb[47].mxu1 }
 0x366   :  { %18085 = vst [vmem:[#allocation6_spill] sm:$0xff] %v17015_v63  ;;  %v8978_v26 = vadd.f32 %v8977_v11, %v8976_v36  ;;  %v17022_v16 = vadd.f32 %v11512_v61, %v11240_v40  ;;  %v8752_v42 = vpop.f32.mrb[47].mxu0  ;;  %v9173_v17 = vadd.f32 %v9172_v14, %v9171_v38  ;;  %v9071_v30 = vmul.f32 %v17015_v63, %v17015_v63 }
 0x367   :  { %18086 = vst [vmem:[#allocation5_spill] sm:$0xff] %v17019_v39  ;;  %v8979_v48 = vsel %vm1002_vm3, %v17019_v39, 0.0  ;;  %v9069_v51 = vmul.f32 %v17019_v39, %v17019_v39  ;;  %v17028_v35 = vadd.f32 %v8752_v42, %v4807_v4  ;;  %v8983_v42 = vsel %vm1002_vm3, %v17015_v63, 0.0 }
 0x368   :  { %18087 = vst [vmem:[#allocation8_spill] sm:$0xff] %v17022_v16  ;;  %v8980_v25 = vadd.f32 %v8979_v48, %v8978_v26  ;;  %v9175_v47 = vadd.f32 %v9174_v53, %v9173_v17  ;;  %v9072_v4 = vmul.f32 %v17022_v16, %v17022_v16  ;;  %v8985_v53 = vsel %vm1002_vm3, %v17022_v16, 0.0 }
 0x369   :  { %18088 = vst [vmem:[#allocation9_spill] sm:$0xff] %v17028_v35  ;;  %v9176_v57 = vsel %vm1002_vm3, %v9069_v51, 0.0  ;;  %v8981_v15 = vsel %vm1002_vm3, %v17028_v35, 0.0  ;;  %v9070_v36 = vmul.f32 %v17028_v35, %v17028_v35 }
 0x36a   :  { %v8982_v40 = vadd.f32 %v8981_v15, %v8980_v25  ;;  %v11243_v11 = vpop.f32.mrb[48].mxu1  ;;  %v9177_v38 = vadd.f32 %v9176_v57, %v9175_v47  ;;  %v9180_v57 = vsel %vm1002_vm3, %v9071_v30, 0.0 }
 0x36b   :  { %v9178_v44 = vsel %vm1002_vm3, %v9070_v36, 0.0  ;;  %v11515_v17 = vpop.f32.mrb[48].mxu0  ;;  %v4820_v61 = vpop.f32.mrb[49].mxu1 }
 0x36c   :  { %v8984_v14 = vadd.f32 %v8983_v42, %v8982_v40  ;;  %v17043_v26 = vadd.f32 %v11515_v17, %v11243_v11  ;;  %v8765_v48 = vpop.f32.mrb[49].mxu0  ;;  %v11244_v51 = vpop.f32.mrb[50].mxu1  ;;  %v9179_v25 = vadd.f32 %v9178_v44, %v9177_v38  ;;  %v9182_v38 = vsel %vm1002_vm3, %v9072_v4, 0.0 }
 0x36d   :  { %v17047_v15 = vadd.f32 %v8765_v48, %v4820_v61  ;;  %v11516_v63 = vpop.f32.mrb[50].mxu0  ;;  %v4823_v47 = vpop.f32.mrb[51].mxu1 }
 0x36e   :  { %18089 = vst [vmem:[#allocation10_spill] sm:$0xff] %v17043_v26  ;;  %v8986_v36 = vadd.f32 %v8985_v53, %v8984_v14  ;;  %v17050_v35 = vadd.f32 %v11516_v63, %v11244_v51  ;;  %v8768_v39 = vpop.f32.mrb[51].mxu0  ;;  %v9181_v12 = vadd.f32 %v9180_v57, %v9179_v25  ;;  %v9075_v14 = vmul.f32 %v17043_v26, %v17043_v26 }
 0x36f   :  { %18090 = vst [vmem:[#allocation11_spill] sm:$0xff] %v17047_v15  ;;  %v8987_v40 = vsel %vm1002_vm3, %v17047_v15, 0.0  ;;  %v9073_v11 = vmul.f32 %v17047_v15, %v17047_v15  ;;  %v17056_v42 = vadd.f32 %v8768_v39, %v4823_v47  ;;  %v8991_v39 = vsel %vm1002_vm3, %v17043_v26, 0.0 }
 0x370   :  { %18091 = vst [vmem:[#allocation12_spill] sm:$0xff] %v17050_v35  ;;  %v8988_v44 = vadd.f32 %v8987_v40, %v8986_v36  ;;  %v9183_v17 = vadd.f32 %v9182_v38, %v9181_v12  ;;  %v9076_v47 = vmul.f32 %v17050_v35, %v17050_v35  ;;  %v8993_v38 = vsel %vm1002_vm3, %v17050_v35, 0.0 }
 0x371   :  { %18092 = vst [vmem:[#allocation13_spill] sm:$0xff] %v17056_v42  ;;  %v9184_v61 = vsel %vm1002_vm3, %v9073_v11, 0.0  ;;  %v8989_v63 = vsel %vm1002_vm3, %v17056_v42, 0.0  ;;  %v9074_v30 = vmul.f32 %v17056_v42, %v17056_v42 }
 0x372   :  { %v8990_v48 = vadd.f32 %v8989_v63, %v8988_v44  ;;  %v11247_v51 = vpop.f32.mrb[52].mxu1  ;;  %v9185_v53 = vadd.f32 %v9184_v61, %v9183_v17  ;;  %v9188_v61 = vsel %vm1002_vm3, %v9075_v14, 0.0 }
 0x373   :  { %v9186_v4 = vsel %vm1002_vm3, %v9074_v30, 0.0  ;;  %v11519_v12 = vpop.f32.mrb[52].mxu0  ;;  %v4836_v25 = vpop.f32.mrb[53].mxu1 }
 0x374   :  { %v8992_v57 = vadd.f32 %v8991_v39, %v8990_v48  ;;  %v17071_v36 = vadd.f32 %v11519_v12, %v11247_v51  ;;  %v8781_v40 = vpop.f32.mrb[53].mxu0  ;;  %v11248_v11 = vpop.f32.mrb[54].mxu1  ;;  %v9187_v44 = vadd.f32 %v9186_v4, %v9185_v53  ;;  %v9190_v53 = vsel %vm1002_vm3, %v9076_v47, 0.0 }
 0x375   :  { %v17075_v63 = vadd.f32 %v8781_v40, %v4836_v25  ;;  %v11520_v26 = vpop.f32.mrb[54].mxu0  ;;  %v4839_v17 = vpop.f32.mrb[55].mxu1 }
 0x376   :  { %18093 = vst [vmem:[#allocation14_spill] sm:$0xff] %v17071_v36  ;;  %v8994_v30 = vadd.f32 %v8993_v38, %v8992_v57  ;;  %v17078_v42 = vadd.f32 %v11520_v26, %v11248_v11  ;;  %v8784_v15 = vpop.f32.mrb[55].mxu0  ;;  %v9189_v16 = vadd.f32 %v9188_v61, %v9187_v44  ;;  %v9079_v57 = vmul.f32 %v17071_v36, %v17071_v36 }
 0x377   :  { %18094 = vst [vmem:[#allocation15_spill] sm:$0xff] %v17075_v63  ;;  %v8995_v48 = vsel %vm1002_vm3, %v17075_v63, 0.0  ;;  %v9077_v51 = vmul.f32 %v17075_v63, %v17075_v63  ;;  %v17084_v39 = vadd.f32 %v8784_v15, %v4839_v17  ;;  %v8999_v15 = vsel %vm1002_vm3, %v17071_v36, 0.0 }
 0x378   :  { %18095 = vst [vmem:[#allocation16_spill] sm:$0xff] %v17078_v42  ;;  %v8996_v4 = vadd.f32 %v8995_v48, %v8994_v30  ;;  %v9191_v12 = vadd.f32 %v9190_v53, %v9189_v16  ;;  %v9080_v17 = vmul.f32 %v17078_v42, %v17078_v42  ;;  %v9001_v53 = vsel %vm1002_vm3, %v17078_v42, 0.0 }
 0x379   :  { %18096 = vst [vmem:[#allocation17_spill] sm:$0xff] %v17084_v39  ;;  %v9192_v25 = vsel %vm1002_vm3, %v9077_v51, 0.0  ;;  %v8997_v26 = vsel %vm1002_vm3, %v17084_v39, 0.0  ;;  %v9078_v14 = vmul.f32 %v17084_v39, %v17084_v39 }
 0x37a   :  { %v8998_v40 = vadd.f32 %v8997_v26, %v8996_v4  ;;  %v11251_v11 = vpop.f32.mrb[56].mxu1  ;;  %v9193_v38 = vadd.f32 %v9192_v25, %v9191_v12  ;;  %v9196_v25 = vsel %vm1002_vm3, %v9079_v57, 0.0 }
 0x37b   :  { %v9194_v47 = vsel %vm1002_vm3, %v9078_v14, 0.0  ;;  %v11523_v16 = vpop.f32.mrb[56].mxu0  ;;  %v4852_v44 = vpop.f32.mrb[57].mxu1 }
 0x37c   :  { %v9000_v61 = vadd.f32 %v8999_v15, %v8998_v40  ;;  %v17099_v30 = vadd.f32 %v11523_v16, %v11251_v11  ;;  %v8797_v48 = vpop.f32.mrb[57].mxu0  ;;  %v11252_v51 = vpop.f32.mrb[58].mxu1  ;;  %v9195_v4 = vadd.f32 %v9194_v47, %v9193_v38  ;;  %v9198_v38 = vsel %vm1002_vm3, %v9080_v17, 0.0 }
 0x37d   :  { %v17103_v26 = vadd.f32 %v8797_v48, %v4852_v44  ;;  %v11524_v36 = vpop.f32.mrb[58].mxu0  ;;  %v4855_v12 = vpop.f32.mrb[59].mxu1 }
 0x37e   :  { %18097 = vst [vmem:[#allocation18_spill] sm:$0xff] %v17099_v30  ;;  %v9002_v14 = vadd.f32 %v9001_v53, %v9000_v61  ;;  %v17106_v39 = vadd.f32 %v11524_v36, %v11252_v51  ;;  %v8800_v63 = vpop.f32.mrb[59].mxu0  ;;  %v9197_v35 = vadd.f32 %v9196_v25, %v9195_v4  ;;  %v9083_v61 = vmul.f32 %v17099_v30, %v17099_v30 }
 0x37f   :  { %18098 = vst [vmem:[#allocation19_spill] sm:$0xff] %v17103_v26  ;;  %v9003_v40 = vsel %vm1002_vm3, %v17103_v26, 0.0  ;;  %v9081_v11 = vmul.f32 %v17103_v26, %v17103_v26  ;;  %v17112_v15 = vadd.f32 %v8800_v63, %v4855_v12  ;;  %v9007_v63 = vsel %vm1002_vm3, %v17099_v30, 0.0 }
 0x380   :  { %18099 = vst [vmem:[#allocation20_spill] sm:$0xff] %v17106_v39  ;;  %v9004_v47 = vadd.f32 %v9003_v40, %v9002_v14  ;;  %v9199_v16 = vadd.f32 %v9198_v38, %v9197_v35  ;;  %v9084_v12 = vmul.f32 %v17106_v39, %v17106_v39  ;;  %v9009_v38 = vsel %vm1002_vm3, %v17106_v39, 0.0 }
 0x381   :  { %18100 = vst [vmem:[#allocation21_spill] sm:$0xff] %v17112_v15  ;;  %v9200_v44 = vsel %vm1002_vm3, %v9081_v11, 0.0  ;;  %v9005_v36 = vsel %vm1002_vm3, %v17112_v15, 0.0  ;;  %v9082_v57 = vmul.f32 %v17112_v15, %v17112_v15 }
 0x382   :  { %v9006_v48 = vadd.f32 %v9005_v36, %v9004_v47  ;;  %v11255_v51 = vpop.f32.mrb[60].mxu1  ;;  %v9201_v53 = vadd.f32 %v9200_v44, %v9199_v16  ;;  %v9204_v44 = vsel %vm1002_vm3, %v9083_v61, 0.0 }
 0x383   :  { %v9202_v17 = vsel %vm1002_vm3, %v9082_v57, 0.0  ;;  %v11527_v35 = vpop.f32.mrb[60].mxu0  ;;  %v4868_v4 = vpop.f32.mrb[61].mxu1 }
 0x384   :  { %v9008_v25 = vadd.f32 %v9007_v63, %v9006_v48  ;;  %v17127_v14 = vadd.f32 %v11527_v35, %v11255_v51  ;;  %v8813_v40 = vpop.f32.mrb[61].mxu0  ;;  %v11256_v11 = vpop.f32.mrb[62].mxu1  ;;  %v9203_v47 = vadd.f32 %v9202_v17, %v9201_v53  ;;  %v9206_v53 = vsel %vm1002_vm3, %v9084_v12, 0.0 }
 0x385   :  { %v17131_v36 = vadd.f32 %v8813_v40, %v4868_v4  ;;  %v11528_v15 = vpop.f32.mrb[62].mxu0  ;;  %v4871_v16 = vpop.f32.mrb[63].mxu1 }
 0x386   :  { %18101 = vst [vmem:[#allocation22_spill] sm:$0xff] %v17127_v14  ;;  %v9010_v57 = vadd.f32 %v9009_v38, %v9008_v25  ;;  %v17134_v26 = vadd.f32 %v11528_v15, %v11256_v11  ;;  %v8816_v42 = vpop.f32.mrb[63].mxu0  ;;  %v9205_v30 = vadd.f32 %v9204_v44, %v9203_v47  ;;  %v9087_v25 = vmul.f32 %v17127_v14, %v17127_v14 }
 0x387   :  { %18102 = vst [vmem:[#allocation23_spill] sm:$0xff] %v17131_v36  ;;  %v9011_v48 = vsel %vm1002_vm3, %v17131_v36, 0.0  ;;  %v9085_v51 = vmul.f32 %v17131_v36, %v17131_v36  ;;  %v17140_v63 = vadd.f32 %v8816_v42, %v4871_v16  ;;  %v9015_v42 = vsel %vm1002_vm3, %v17127_v14, 0.0 }
 0x388   :  { %18103 = vst [vmem:[#allocation24_spill] sm:$0xff] %v17134_v26  ;;  %v9012_v17 = vadd.f32 %v9011_v48, %v9010_v57  ;;  %v9207_v35 = vadd.f32 %v9206_v53, %v9205_v30  ;;  %v9088_v30 = vmul.f32 %v17134_v26, %v17134_v26  ;;  %v9017_v47 = vsel %vm1002_vm3, %v17134_v26, 0.0 }
 0x389   :  { %18104 = vst [vmem:[#allocation25_spill] sm:$0xff] %v17140_v63  ;;  %v9208_v4 = vsel %vm1002_vm3, %v9085_v51, 0.0  ;;  %v9013_v15 = vsel %vm1002_vm3, %v17140_v63, 0.0  ;;  %v9086_v61 = vmul.f32 %v17140_v63, %v17140_v63  ;;  %v9212_v44 = vsel %vm1002_vm3, %v9087_v25, 0.0 }
 0x38a   :  { %v9014_v40 = vadd.f32 %v9013_v15, %v9012_v17  ;;  %v9209_v11 = vadd.f32 %v9208_v4, %v9207_v35  ;;  %v9214_v51 = vsel %vm1002_vm3, %v9088_v30, 0.0  ;;  %v9234_v30 = vlaneseq }
 0x38b   :  { %v9210_v12 = vsel %vm1002_vm3, %v9086_v61, 0.0 }
 0x38c   :  { %v9016_v38 = vadd.f32 %v9015_v42, %v9014_v40  ;;  %v9211_v16 = vadd.f32 %v9210_v12, %v9209_v11 }
 0x38e   :  { %v9018_v57 = vadd.f32 %v9017_v47, %v9016_v38  ;;  %v9213_v48 = vadd.f32 %v9212_v44, %v9211_v16  ;;  %v17159_v16 = vshrl.u32 %v9234_v30, 7  ;;  %v9226_v44 = vld [vmem:[%s17998_s2] sm:$0x1]  ;;  %v18112_v30 = vld [vmem:[#allocation8_spill] sm:$0xff] }
 0x390   :  { %v9019_v53 = vrot.slane %v9018_v57, 4  ;;  %v9215_v17 = vadd.f32 %v9214_v51, %v9213_v48 }
 0x392   :  { %v9020_v15 = vadd.f32 %v9019_v53, %v9018_v57  ;;  %v9216_v35 = vrot.slane %v9215_v17, 4  ;;  %v18032_v57 = vsub.s32 0, %v17159_v16 }
 0x394   :  { %v9021_v4 = vrot.slane %v9020_v15, 2  ;;  %v9217_v61 = vadd.f32 %v9216_v35, %v9215_v17 }
 0x396   :  { %v9022_v14 = vadd.f32 %v9021_v4, %v9020_v15  ;;  %v9218_v63 = vrot.slane %v9217_v61, 2  ;;  %v18105_v4 = vld [vmem:[#allocation4_spill] sm:$0xff] }
 0x398   :  { %v9023_v36 = vrot.slane %v9022_v14, 1  ;;  %v9219_v40 = vadd.f32 %v9218_v63, %v9217_v61  ;;  %v18106_v61 = vld [vmem:[#allocation2_spill] sm:$0xff] }
 0x39a   :  { %v9024_v42 = vadd.f32 %v9023_v36, %v9022_v14  ;;  %v9220_v39 = vrot.slane %v9219_v40, 1 }
 0x39c   :  { %v9222_v26 = vmul.f32 0.001953125, %v9024_v42  ;;  %v9221_v11 = vadd.f32 %v9220_v39, %v9219_v40  ;;  %v17168_v39 = vld [vmem:[%s17999_s3] sm:$0x1]  ;;  %v18107_v40 = vld [vmem:[#allocation3_spill] sm:$0xff] }
 0x39d   :  { %v18108_v42 = vld [vmem:[#allocation7_spill] sm:$0xff] }
 0x39e   :  { %v9224_v12 = vmul.f32 %v9222_v26, %v9222_v26  ;;  %v9223_v25 = vmul.f32 0.001953125, %v9221_v11  ;;  %v18109_v11 = vld [vmem:[#allocation5_spill] sm:$0xff] }
 0x3a0   :  { %v9225_v38 = vsub.f32 %v9223_v25, %v9224_v12  ;;  %v18110_v12 = vld [vmem:[#allocation9_spill] sm:$0xff] }
 0x3a2   :  { %v9227_v47 = vadd.f32 1e-05, %v9225_v38  ;;  %v18111_v38 = vld [vmem:[#allocation6_spill] sm:$0xff] }
 0x3a4   :  { %12159 = vrsqrt.f32 %v9227_v47 }
 0x3ae   :  { %v12160_v48 = vpop.eup %12159 }
 0x3af   :  { %v9229_v63 = vmul.f32 %v12160_v48, %v9226_v44  ;;  %v18114_v48 = vld [vmem:[#allocation11_spill] sm:$0xff] }
 0x3b1   :  { %v17170_v14 = vmul.f32 %v9229_v63, %v9222_v26  ;;  %v17174_v36 = vrot.slane %v9229_v63, %v18032_v57  ;;  %v18128_v57 = vld [vmem:[#allocation25_spill] sm:$0xff] }
 0x3b3   :  { %v9232_v51 = vsub.f32 %v17168_v39, %v17170_v14  ;;  %v17180_v53 = vmul.f32 %v16689_v45, %v17174_v36  ;;  %v17184_v17 = vmul.f32 %v16695_v32, %v17174_v36  ;;  %v17188_v15 = vmul.f32 %v16687_v46, %v17174_v36  ;;  %v18116_v39 = vld [vmem:[#allocation13_spill] sm:$0xff] }
 0x3b4   :  { %v17192_v26 = vmul.f32 %v16691_v54, %v17174_v36  ;;  %v17196_v35 = vmul.f32 %v16716_v9, %v17174_v36  ;;  %v17200_v45 = vmul.f32 %v16725_v59, %v17174_v36  ;;  %v17204_v32 = vmul.f32 %v16711_v37, %v17174_v36 }
 0x3b5   :  { %v17208_v46 = vmul.f32 %v16723_v6, %v17174_v36  ;;  %v17212_v54 = vmul.f32 %v16745_v18, %v17174_v36  ;;  %v17216_v9 = vmul.f32 %v16756_v33, %v17174_v36  ;;  %v17220_v59 = vmul.f32 %v16740_v3, %v17174_v36 }
 0x3b6   :  { %v17224_v37 = vmul.f32 %v16749_v8, %v17174_v36  ;;  %v17228_v6 = vmul.f32 %v16777_v50, %v17174_v36  ;;  %v17232_v18 = vmul.f32 %v16788_v13, %v17174_v36  ;;  %v17236_v33 = vmul.f32 %v16772_v60, %v17174_v36 }
 0x3b7   :  { %v17240_v3 = vmul.f32 %v16781_v31, %v17174_v36  ;;  %v17244_v8 = vmul.f32 %v16809_v27, %v17174_v36  ;;  %v17248_v50 = vmul.f32 %v16820_v23, %v17174_v36  ;;  %v17252_v13 = vmul.f32 %v16804_v58, %v17174_v36 }
 0x3b8   :  { %v17256_v60 = vmul.f32 %v16813_v43, %v17174_v36  ;;  %v17260_v31 = vmul.f32 %v16841_v29, %v17174_v36  ;;  %v17264_v27 = vmul.f32 %v16852_v41, %v17174_v36  ;;  %v17268_v23 = vmul.f32 %v16836_v62, %v17174_v36 }
 0x3b9   :  { %v17272_v58 = vmul.f32 %v16845_v52, %v17174_v36  ;;  %v17276_v43 = vmul.f32 %v16873_v20, %v17174_v36  ;;  %v17280_v29 = vmul.f32 %v16884_v10, %v17174_v36  ;;  %v17284_v41 = vmul.f32 %v16868_v56, %v17174_v36 }
 0x3ba   :  { %v17288_v62 = vmul.f32 %v16877_v28, %v17174_v36  ;;  %v17292_v52 = vmul.f32 %v16905_v21, %v17174_v36  ;;  %v17296_v20 = vmul.f32 %v16916_v34, %v17174_v36  ;;  %v17300_v10 = vmul.f32 %v16900_v0, %v17174_v36 }
 0x3bb   :  { %v17304_v56 = vmul.f32 %v16909_v55, %v17174_v36  ;;  %v17308_v28 = vmul.f32 %v16935_v7, %v17174_v36  ;;  %v17312_v21 = vmul.f32 %v16944_v19, %v17174_v36  ;;  %v17316_v34 = vmul.f32 %v16931_v22, %v17174_v36 }
 0x3bc   :  { %v17320_v0 = vmul.f32 %v16938_v5, %v17174_v36  ;;  %v17324_v55 = vmul.f32 %v16963_v49, %v17174_v36  ;;  %v17328_v7 = vmul.f32 %v16972_v1, %v17174_v36  ;;  %v17332_v19 = vmul.f32 %v16959_v24, %v17174_v36 }
 0x3bd   :  { %v17336_v22 = vmul.f32 %v16966_v2, %v17174_v36  ;;  %v17340_v5 = vmul.f32 %v18105_v4, %v17174_v36  ;;  %v17344_v49 = vmul.f32 %v18106_v61, %v17174_v36  ;;  %v17348_v1 = vmul.f32 %v18107_v40, %v17174_v36  ;;  %v18118_v4 = vld [vmem:[#allocation10_spill] sm:$0xff]  ;;  %v18120_v40 = vld [vmem:[#allocation12_spill] sm:$0xff] }
 0x3be   :  { %v17352_v24 = vmul.f32 %v18108_v42, %v17174_v36  ;;  %v17356_v2 = vmul.f32 %v18109_v11, %v17174_v36  ;;  %v17360_v25 = vmul.f32 %v18110_v12, %v17174_v36  ;;  %v17364_v47 = vmul.f32 %v18111_v38, %v17174_v36  ;;  %v18122_v11 = vld [vmem:[#allocation18_spill] sm:$0xff]  ;;  %v18124_v38 = vld [vmem:[#allocation20_spill] sm:$0xff] }
 0x3bf   :  { %v17368_v44 = vmul.f32 %v18112_v30, %v17174_v36  ;;  %v17372_v63 = vmul.f32 %v18114_v48, %v17174_v36  ;;  %v17376_v14 = vmul.f32 %v18116_v39, %v17174_v36  ;;  %v17380_v61 = vmul.f32 %v18118_v4, %v17174_v36  ;;  %v18126_v48 = vld [vmem:[#allocation23_spill] sm:$0xff] }
 0x3c0   :  { %v17384_v42 = vmul.f32 %v18120_v40, %v17174_v36  ;;  %v17388_v12 = vmul.f32 %v18122_v11, %v17174_v36  ;;  %v17392_v30 = vmul.f32 %v18124_v38, %v17174_v36  ;;  %v17396_v39 = vmul.f32 %v18126_v48, %v17174_v36  ;;  %v18134_v38 = vld [vmem:[#allocation24_spill] sm:$0xff] }
 0x3c1   :  { %18113 = vst [vmem:[#allocation4_spill] sm:$0xff] %v17368_v44  ;;  %18115 = vst [vmem:[#allocation2_spill] sm:$0xff] %v17372_v63  ;;  %v17400_v4 = vmul.f32 %v18128_v57, %v17174_v36  ;;  %v18135_v48 = vsub.s32 0, %v17159_v16  ;;  %v18136_v57 = vld [vmem:[#allocation14_spill] sm:$0xff]  ;;  %v18138_v63 = vld [vmem:[#allocation19_spill] sm:$0xff] }
 0x3c2   :  { %18117 = vst [vmem:[#allocation3_spill] sm:$0xff] %v17376_v14  ;;  %18119 = vst [vmem:[#allocation7_spill] sm:$0xff] %v17380_v61  ;;  %v18130_v61 = vld [vmem:[#allocation22_spill] sm:$0xff]  ;;  %v18139_v44 = vld [vmem:[#allocation21_spill] sm:$0xff] }
 0x3c3   :  { %18121 = vst [vmem:[#allocation5_spill] sm:$0xff] %v17384_v42  ;;  %18123 = vst [vmem:[#allocation9_spill] sm:$0xff] %v17388_v12  ;;  %v17404_v40 = vmul.f32 %v18130_v61, %v17174_v36  ;;  %v18132_v42 = vld [vmem:[#allocation15_spill] sm:$0xff]  ;;  %v18133_v12 = vld [vmem:[#allocation17_spill] sm:$0xff] }
 0x3c4   :  { %18125 = vst [vmem:[#allocation6_spill] sm:$0xff] %v17392_v30  ;;  %18127 = vst [vmem:[#allocation8_spill] sm:$0xff] %v17396_v39  ;;  %v9291_v11 = vmul.f32 %v18132_v42, %v17174_v36  ;;  %v9292_v14 = vmul.f32 %v18133_v12, %v17174_v36  ;;  %v17412_v30 = vmul.f32 %v18134_v38, %v17174_v36  ;;  %v18137_v61 = vld [vmem:[#allocation16_spill] sm:$0xff] }
 0x3c5   :  { %18129 = vst [vmem:[#allocation11_spill] sm:$0xff] %v17400_v4  ;;  %18131 = vst [vmem:[#allocation13_spill] sm:$0xff] %v17404_v40  ;;  %v17416_v39 = vrot.slane %v9232_v51, %v18135_v48  ;;  %v9293_v4 = vmul.f32 %v18136_v57, %v17174_v36  ;;  %v9294_v40 = vmul.f32 %v18137_v61, %v17174_v36 }
 0x3c6   :  { %v9295_v42 = vmul.f32 %v18138_v63, %v17174_v36  ;;  %v9296_v12 = vmul.f32 %v18139_v44, %v17174_v36 }
 0x3c7   :  { %v17428_v38 = vadd.f32 %v17416_v39, %v17180_v53  ;;  %v17432_v16 = vadd.f32 %v17416_v39, %v17184_v17  ;;  %v17436_v51 = vadd.f32 %v17416_v39, %v17188_v15  ;;  %v17440_v48 = vadd.f32 %v17416_v39, %v17192_v26 }
 0x3c8   :  { %v17444_v63 = vadd.f32 %v17416_v39, %v17196_v35  ;;  %v17448_v36 = vadd.f32 %v17416_v39, %v17200_v45  ;;  %v17452_v53 = vadd.f32 %v17416_v39, %v17204_v32  ;;  %v17456_v17 = vadd.f32 %v17416_v39, %v17208_v46  ;;  %v18143_v44 = vld [vmem:[#allocation2_spill] sm:$0xff] }
 0x3c9   :  { %v17460_v15 = vadd.f32 %v17416_v39, %v17212_v54  ;;  %v17464_v26 = vadd.f32 %v17416_v39, %v17216_v9  ;;  %v17468_v35 = vadd.f32 %v17416_v39, %v17220_v59  ;;  %v17472_v45 = vadd.f32 %v17416_v39, %v17224_v37  ;;  %v18144_v57 = vld [vmem:[#allocation3_spill] sm:$0xff] }
 0x3ca   :  { %v17476_v32 = vadd.f32 %v17416_v39, %v17228_v6  ;;  %v17480_v46 = vadd.f32 %v17416_v39, %v17232_v18  ;;  %v17484_v54 = vadd.f32 %v17416_v39, %v17236_v33  ;;  %v17488_v9 = vadd.f32 %v17416_v39, %v17240_v3  ;;  %v18146_v61 = vld [vmem:[#allocation7_spill] sm:$0xff] }
 0x3cb   :  { %v17492_v59 = vadd.f32 %v17416_v39, %v17244_v8  ;;  %v17496_v37 = vadd.f32 %v17416_v39, %v17248_v50  ;;  %v17500_v6 = vadd.f32 %v17416_v39, %v17252_v13  ;;  %v17504_v18 = vadd.f32 %v17416_v39, %v17256_v60 }
 0x3cc   :  { %v17508_v33 = vadd.f32 %v17416_v39, %v17260_v31  ;;  %v17512_v3 = vadd.f32 %v17416_v39, %v17264_v27  ;;  %v17516_v8 = vadd.f32 %v17416_v39, %v17268_v23  ;;  %v17520_v50 = vadd.f32 %v17416_v39, %v17272_v58 }
 0x3cd   :  { %v17524_v13 = vadd.f32 %v17416_v39, %v17276_v43  ;;  %v17528_v60 = vadd.f32 %v17416_v39, %v17280_v29  ;;  %v17532_v31 = vadd.f32 %v17416_v39, %v17284_v41  ;;  %v17536_v27 = vadd.f32 %v17416_v39, %v17288_v62 }
 0x3ce   :  { %v17540_v23 = vadd.f32 %v17416_v39, %v17292_v52  ;;  %v17544_v58 = vadd.f32 %v17416_v39, %v17296_v20  ;;  %v17548_v43 = vadd.f32 %v17416_v39, %v17300_v10  ;;  %v17552_v29 = vadd.f32 %v17416_v39, %v17304_v56 }
 0x3cf   :  { %v17556_v41 = vadd.f32 %v17416_v39, %v17308_v28  ;;  %v17560_v62 = vadd.f32 %v17416_v39, %v17312_v21  ;;  %v17564_v52 = vadd.f32 %v17416_v39, %v17316_v34  ;;  %v17568_v20 = vadd.f32 %v17416_v39, %v17320_v0 }
 0x3d0   :  { %v17572_v10 = vadd.f32 %v17416_v39, %v17324_v55  ;;  %v17576_v56 = vadd.f32 %v17416_v39, %v17328_v7  ;;  %v17580_v28 = vadd.f32 %v17416_v39, %v17332_v19  ;;  %v17584_v21 = vadd.f32 %v17416_v39, %v17336_v22 }
 0x3d1   :  { %v17588_v34 = vadd.f32 %v17416_v39, %v17340_v5  ;;  %v17592_v0 = vadd.f32 %v17416_v39, %v17344_v49  ;;  %v17596_v55 = vadd.f32 %v17416_v39, %v17348_v1  ;;  %v17600_v7 = vadd.f32 %v17416_v39, %v17352_v24  ;;  %v18142_v49 = vld [vmem:[#allocation4_spill] sm:$0xff] }
 0x3d2   :  { %v17604_v19 = vadd.f32 %v17416_v39, %v17356_v2  ;;  %v17608_v22 = vadd.f32 %v17416_v39, %v17360_v25  ;;  %v17612_v5 = vadd.f32 %v17416_v39, %v17364_v47  ;;  %v17616_v1 = vadd.f32 %v17416_v39, %v18142_v49 }
 0x3d3   :  { %v17620_v24 = vadd.f32 %v17416_v39, %v18143_v44  ;;  %v17624_v2 = vadd.f32 %v17416_v39, %v18144_v57  ;;  %v17628_v25 = vadd.f32 %v17416_v39, %v18146_v61  ;;  %v17638_v49 = vadd.f32 %v17416_v39, %v9292_v14 }
 0x3d4   :  { %18140 = vst [vmem:[#allocation10_spill] sm:$0xff] %v17608_v22  ;;  %18141 = vst [vmem:[#allocation12_spill] sm:$0xff] %v17612_v5  ;;  %v18147_v22 = vld [vmem:[#allocation5_spill] sm:$0xff]  ;;  %v17635_v5 = vadd.f32 %v17416_v39, %v9291_v11  ;;  %v17641_v44 = vadd.f32 %v17416_v39, %v9293_v4  ;;  %v17644_v57 = vadd.f32 %v17416_v39, %v9294_v40  ;;  %v18153_v11 = vld [vmem:[#allocation6_spill] sm:$0xff] }
 0x3d5   :  { %18145 = vst [vmem:[#allocation18_spill] sm:$0xff] %v17624_v2  ;;  %v17632_v47 = vadd.f32 %v17416_v39, %v18147_v22  ;;  %18149 = vst [vmem:[#allocation23_spill] sm:$0xff] %v17638_v49  ;;  %v17647_v2 = vadd.f32 %v17416_v39, %v9295_v42  ;;  %v17650_v61 = vadd.f32 %v17416_v39, %v9296_v12  ;;  %v18151_v22 = vld [vmem:[#allocation9_spill] sm:$0xff]  ;;  %v18155_v49 = vld [vmem:[#allocation8_spill] sm:$0xff] }
 0x3d6   :  { %18150 = vst [vmem:[#allocation25_spill] sm:$0xff] %v17644_v57  ;;  %v17658_v14 = vadd.f32 %v17416_v39, %v18153_v11  ;;  %v17662_v4 = vadd.f32 %v17416_v39, %v18155_v49  ;;  %v18157_v40 = vld [vmem:[#allocation11_spill] sm:$0xff]  ;;  %v18159_v42 = vld [vmem:[#allocation13_spill] sm:$0xff]  ;;  %v9374_v11 = vmax.f32 %v17432_v16, 0.0  ;;  %v9376_v49 = vmax.f32 %v17440_v48, 0.0 }
 0x3d7   :  { %18148 = vst [vmem:[#allocation20_spill] sm:$0xff] %v17632_v47  ;;  %v17654_v47 = vadd.f32 %v17416_v39, %v18151_v22  ;;  %v17666_v57 = vadd.f32 %v17416_v39, %v18157_v40  ;;  %v17670_v12 = vadd.f32 %v17416_v39, %v18159_v42  ;;  %v17674_v22 = vadd.f32 %v17416_v39, %v17412_v30 }
 0x3d8   :  { %18154 = vst [vmem:[#allocation15_spill] sm:$0xff] %v17658_v14  ;;  %18156 = vst [vmem:[#allocation17_spill] sm:$0xff] %v17662_v4  ;;  %v9375_v14 = vmax.f32 %v17436_v51, 0.0  ;;  %v9377_v4 = vmax.f32 %v17444_v63, 0.0  ;;  %v9378_v40 = vmax.f32 %v17448_v36, 0.0  ;;  %v9380_v42 = vmax.f32 %v17456_v17, 0.0 }
 0x3d9   :  { %18152 = vst [vmem:[#allocation22_spill] sm:$0xff] %v17654_v47  ;;  %18158 = vst [vmem:[#allocation24_spill] sm:$0xff] %v17666_v57  ;;  %v9373_v47 = vmax.f32 %v17428_v38, 0.0  ;;  %v9379_v57 = vmax.f32 %v17452_v53, 0.0  ;;  %v9382_v30 = vmax.f32 %v17464_v26, 0.0  ;;  %v9383_v39 = vmax.f32 %v17468_v35, 0.0 }
 0x3da   :  { %18160 = vst [vmem:[#allocation14_spill] sm:$0xff] %v17670_v12  ;;  %v9381_v12 = vmax.f32 %v17460_v15, 0.0  ;;  %v9384_v38 = vmax.f32 %v17472_v45, 0.0  ;;  %9438 = vst.msk [vmem:[%s18000_s4 + $0x8] sm:$0xff] %vm1002_vm3, %v9374_v11  ;;  %v9385_v16 = vmax.f32 %v17476_v32, 0.0  ;;  %v9386_v51 = vmax.f32 %v17480_v46, 0.0 }
 0x3db   :  { %9437 = vst.msk [vmem:[%s18000_s4] sm:$0xff] %vm1002_vm3, %v9373_v47  ;;  %9439 = vst.msk [vmem:[%s18000_s4 + $0x10] sm:$0xff] %vm1002_vm3, %v9375_v14  ;;  %v9387_v48 = vmax.f32 %v17484_v54, 0.0  ;;  %v9388_v63 = vmax.f32 %v17488_v9, 0.0  ;;  %v9389_v36 = vmax.f32 %v17492_v59, 0.0  ;;  %v9390_v53 = vmax.f32 %v17496_v37, 0.0 }
 0x3dc   :  { %9440 = vst.msk [vmem:[%s18000_s4 + $0x18] sm:$0xff] %vm1002_vm3, %v9376_v49  ;;  %9441 = vst.msk [vmem:[%s18000_s4 + $0x20] sm:$0xff] %vm1002_vm3, %v9377_v4  ;;  %v9391_v17 = vmax.f32 %v17500_v6, 0.0  ;;  %v9392_v15 = vmax.f32 %v17504_v18, 0.0  ;;  %v9393_v26 = vmax.f32 %v17508_v33, 0.0  ;;  %v9394_v35 = vmax.f32 %v17512_v3, 0.0 }
 0x3dd   :  { %9442 = vst.msk [vmem:[%s18000_s4 + $0x28] sm:$0xff] %vm1002_vm3, %v9378_v40  ;;  %9443 = vst.msk [vmem:[%s18000_s4 + $0x30] sm:$0xff] %vm1002_vm3, %v9379_v57  ;;  %v9395_v45 = vmax.f32 %v17516_v8, 0.0  ;;  %v9396_v32 = vmax.f32 %v17520_v50, 0.0  ;;  %v9397_v46 = vmax.f32 %v17524_v13, 0.0  ;;  %v9398_v54 = vmax.f32 %v17528_v60, 0.0 }
 0x3de   :  { %9444 = vst.msk [vmem:[%s18000_s4 + $0x38] sm:$0xff] %vm1002_vm3, %v9380_v42  ;;  %9445 = vst.msk [vmem:[%s18000_s4 + $0x40] sm:$0xff] %vm1002_vm3, %v9381_v12  ;;  %v9399_v9 = vmax.f32 %v17532_v31, 0.0  ;;  %v9400_v59 = vmax.f32 %v17536_v27, 0.0  ;;  %v9401_v37 = vmax.f32 %v17540_v23, 0.0  ;;  %v9402_v6 = vmax.f32 %v17544_v58, 0.0 }
 0x3df   :  { %9446 = vst.msk [vmem:[%s18000_s4 + $0x48] sm:$0xff] %vm1002_vm3, %v9382_v30  ;;  %9447 = vst.msk [vmem:[%s18000_s4 + $0x50] sm:$0xff] %vm1002_vm3, %v9383_v39  ;;  %v9403_v18 = vmax.f32 %v17548_v43, 0.0  ;;  %v9404_v33 = vmax.f32 %v17552_v29, 0.0  ;;  %v9405_v3 = vmax.f32 %v17556_v41, 0.0  ;;  %v9406_v8 = vmax.f32 %v17560_v62, 0.0 }
 0x3e0   :  { %9448 = vst.msk [vmem:[%s18000_s4 + $0x58] sm:$0xff] %vm1002_vm3, %v9384_v38  ;;  %9449 = vst.msk [vmem:[%s18000_s4 + $0x60] sm:$0xff] %vm1002_vm3, %v9385_v16  ;;  %v9407_v50 = vmax.f32 %v17564_v52, 0.0  ;;  %v9408_v13 = vmax.f32 %v17568_v20, 0.0  ;;  %v9409_v60 = vmax.f32 %v17572_v10, 0.0  ;;  %v9410_v31 = vmax.f32 %v17576_v56, 0.0 }
 0x3e1   :  { %9450 = vst.msk [vmem:[%s18000_s4 + $0x68] sm:$0xff] %vm1002_vm3, %v9386_v51  ;;  %9451 = vst.msk [vmem:[%s18000_s4 + $0x70] sm:$0xff] %vm1002_vm3, %v9387_v48  ;;  %v9411_v27 = vmax.f32 %v17580_v28, 0.0  ;;  %v9412_v23 = vmax.f32 %v17584_v21, 0.0  ;;  %v9413_v58 = vmax.f32 %v17588_v34, 0.0  ;;  %v9414_v43 = vmax.f32 %v17592_v0, 0.0 }
 0x3e2   :  { %9452 = vst.msk [vmem:[%s18000_s4 + $0x78] sm:$0xff] %vm1002_vm3, %v9388_v63  ;;  %9453 = vst.msk [vmem:[%s18000_s4 + $0x80] sm:$0xff] %vm1002_vm3, %v9389_v36  ;;  %v9415_v29 = vmax.f32 %v17596_v55, 0.0  ;;  %v9416_v41 = vmax.f32 %v17600_v7, 0.0  ;;  %v9417_v62 = vmax.f32 %v17604_v19, 0.0  ;;  %v18161_v52 = vld [vmem:[#allocation10_spill] sm:$0xff] }
 0x3e3   :  { %9454 = vst.msk [vmem:[%s18000_s4 + $0x88] sm:$0xff] %vm1002_vm3, %v9390_v53  ;;  %9455 = vst.msk [vmem:[%s18000_s4 + $0x90] sm:$0xff] %vm1002_vm3, %v9391_v17  ;;  %v9418_v20 = vmax.f32 %v18161_v52, 0.0  ;;  %v18162_v10 = vld [vmem:[#allocation12_spill] sm:$0xff]  ;;  %v9420_v28 = vmax.f32 %v17616_v1, 0.0  ;;  %v9421_v21 = vmax.f32 %v17620_v24, 0.0 }
 0x3e4   :  { %9456 = vst.msk [vmem:[%s18000_s4 + $0x98] sm:$0xff] %vm1002_vm3, %v9392_v15  ;;  %9457 = vst.msk [vmem:[%s18000_s4 + $0xa0] sm:$0xff] %vm1002_vm3, %v9393_v26  ;;  %v9419_v56 = vmax.f32 %v18162_v10, 0.0  ;;  %v18163_v34 = vld [vmem:[#allocation18_spill] sm:$0xff]  ;;  %v9423_v55 = vmax.f32 %v17628_v25, 0.0  ;;  %v18164_v7 = vld [vmem:[#allocation20_spill] sm:$0xff] }
 0x3e5   :  { %9458 = vst.msk [vmem:[%s18000_s4 + $0xa8] sm:$0xff] %vm1002_vm3, %v9394_v35  ;;  %9459 = vst.msk [vmem:[%s18000_s4 + $0xb0] sm:$0xff] %vm1002_vm3, %v9395_v45  ;;  %v9422_v0 = vmax.f32 %v18163_v34, 0.0  ;;  %v9424_v19 = vmax.f32 %v18164_v7, 0.0  ;;  %v9425_v1 = vmax.f32 %v17635_v5, 0.0  ;;  %v18165_v24 = vld [vmem:[#allocation23_spill] sm:$0xff] }
 0x3e6   :  { %9460 = vst.msk [vmem:[%s18000_s4 + $0xb8] sm:$0xff] %vm1002_vm3, %v9396_v32  ;;  %9461 = vst.msk [vmem:[%s18000_s4 + $0xc0] sm:$0xff] %vm1002_vm3, %v9397_v46  ;;  %v9426_v25 = vmax.f32 %v18165_v24, 0.0  ;;  %v9427_v47 = vmax.f32 %v17641_v44, 0.0  ;;  %v18166_v57 = vld [vmem:[#allocation25_spill] sm:$0xff]  ;;  %v9429_v5 = vmax.f32 %v17647_v2, 0.0 }
 0x3e7   :  { %9462 = vst.msk [vmem:[%s18000_s4 + $0xc8] sm:$0xff] %vm1002_vm3, %v9398_v54  ;;  %9463 = vst.msk [vmem:[%s18000_s4 + $0xd0] sm:$0xff] %vm1002_vm3, %v9399_v9  ;;  %v9428_v14 = vmax.f32 %v18166_v57, 0.0  ;;  %v9430_v44 = vmax.f32 %v17650_v61, 0.0  ;;  %v18167_v4 = vld [vmem:[#allocation22_spill] sm:$0xff]  ;;  %v18168_v11 = vld [vmem:[#allocation15_spill] sm:$0xff] }
 0x3e8   :  { %9464 = vst.msk [vmem:[%s18000_s4 + $0xd8] sm:$0xff] %vm1002_vm3, %v9400_v59  ;;  %9465 = vst.msk [vmem:[%s18000_s4 + $0xe0] sm:$0xff] %vm1002_vm3, %v9401_v37  ;;  %v9431_v12 = vmax.f32 %v18167_v4, 0.0  ;;  %v9432_v49 = vmax.f32 %v18168_v11, 0.0  ;;  %v18169_v2 = vld [vmem:[#allocation17_spill] sm:$0xff]  ;;  %v18170_v40 = vld [vmem:[#allocation24_spill] sm:$0xff] }
 0x3e9   :  { %9466 = vst.msk [vmem:[%s18000_s4 + $0xe8] sm:$0xff] %vm1002_vm3, %v9402_v6  ;;  %9467 = vst.msk [vmem:[%s18000_s4 + $0xf0] sm:$0xff] %vm1002_vm3, %v9403_v18  ;;  %v9433_v61 = vmax.f32 %v18169_v2, 0.0  ;;  %v9434_v42 = vmax.f32 %v18170_v40, 0.0  ;;  %v18171_v30 = vld [vmem:[#allocation14_spill] sm:$0xff]  ;;  %v9436_v38 = vmax.f32 %v17674_v22, 0.0 }
 0x3ea   :  { %9468 = vst.msk [vmem:[%s18000_s4 + $0xf8] sm:$0xff] %vm1002_vm3, %v9404_v33  ;;  %9469 = vst.msk [vmem:[%s18000_s4 + $0x100] sm:$0xff] %vm1002_vm3, %v9405_v3  ;;  %v9435_v39 = vmax.f32 %v18171_v30, 0.0 }
 0x3eb   :  { %9470 = vst.msk [vmem:[%s18000_s4 + $0x108] sm:$0xff] %vm1002_vm3, %v9406_v8  ;;  %9471 = vst.msk [vmem:[%s18000_s4 + $0x110] sm:$0xff] %vm1002_vm3, %v9407_v50 }
 0x3ec   :  { %9472 = vst.msk [vmem:[%s18000_s4 + $0x118] sm:$0xff] %vm1002_vm3, %v9408_v13  ;;  %9473 = vst.msk [vmem:[%s18000_s4 + $0x120] sm:$0xff] %vm1002_vm3, %v9409_v60 }
 0x3ed   :  { %9474 = vst.msk [vmem:[%s18000_s4 + $0x128] sm:$0xff] %vm1002_vm3, %v9410_v31  ;;  %9475 = vst.msk [vmem:[%s18000_s4 + $0x130] sm:$0xff] %vm1002_vm3, %v9411_v27 }
 0x3ee   :  { %9476 = vst.msk [vmem:[%s18000_s4 + $0x138] sm:$0xff] %vm1002_vm3, %v9412_v23  ;;  %9477 = vst.msk [vmem:[%s18000_s4 + $0x140] sm:$0xff] %vm1002_vm3, %v9413_v58 }
 0x3ef   :  { %9478 = vst.msk [vmem:[%s18000_s4 + $0x148] sm:$0xff] %vm1002_vm3, %v9414_v43  ;;  %9479 = vst.msk [vmem:[%s18000_s4 + $0x150] sm:$0xff] %vm1002_vm3, %v9415_v29 }
 0x3f0   :  { %9480 = vst.msk [vmem:[%s18000_s4 + $0x158] sm:$0xff] %vm1002_vm3, %v9416_v41  ;;  %9481 = vst.msk [vmem:[%s18000_s4 + $0x160] sm:$0xff] %vm1002_vm3, %v9417_v62 }
 0x3f1   :  { %9482 = vst.msk [vmem:[%s18000_s4 + $0x168] sm:$0xff] %vm1002_vm3, %v9418_v20  ;;  %9483 = vst.msk [vmem:[%s18000_s4 + $0x170] sm:$0xff] %vm1002_vm3, %v9419_v56 }
 0x3f2   :  { %9484 = vst.msk [vmem:[%s18000_s4 + $0x178] sm:$0xff] %vm1002_vm3, %v9420_v28  ;;  %9485 = vst.msk [vmem:[%s18000_s4 + $0x180] sm:$0xff] %vm1002_vm3, %v9421_v21 }
 0x3f3   :  { %9486 = vst.msk [vmem:[%s18000_s4 + $0x188] sm:$0xff] %vm1002_vm3, %v9422_v0  ;;  %9487 = vst.msk [vmem:[%s18000_s4 + $0x190] sm:$0xff] %vm1002_vm3, %v9423_v55 }
 0x3f4   :  { %9488 = vst.msk [vmem:[%s18000_s4 + $0x198] sm:$0xff] %vm1002_vm3, %v9424_v19  ;;  %9489 = vst.msk [vmem:[%s18000_s4 + $0x1a0] sm:$0xff] %vm1002_vm3, %v9425_v1 }
 0x3f5   :  { %9490 = vst.msk [vmem:[%s18000_s4 + $0x1a8] sm:$0xff] %vm1002_vm3, %v9426_v25  ;;  %9491 = vst.msk [vmem:[%s18000_s4 + $0x1b0] sm:$0xff] %vm1002_vm3, %v9427_v47 }
 0x3f6   :  { %9492 = vst.msk [vmem:[%s18000_s4 + $0x1b8] sm:$0xff] %vm1002_vm3, %v9428_v14  ;;  %9493 = vst.msk [vmem:[%s18000_s4 + $0x1c0] sm:$0xff] %vm1002_vm3, %v9429_v5 }
 0x3f7   :  { %9494 = vst.msk [vmem:[%s18000_s4 + $0x1c8] sm:$0xff] %vm1002_vm3, %v9430_v44  ;;  %9495 = vst.msk [vmem:[%s18000_s4 + $0x1d0] sm:$0xff] %vm1002_vm3, %v9431_v12 }
 0x3f8   :  { %9496 = vst.msk [vmem:[%s18000_s4 + $0x1d8] sm:$0xff] %vm1002_vm3, %v9432_v49  ;;  %9497 = vst.msk [vmem:[%s18000_s4 + $0x1e0] sm:$0xff] %vm1002_vm3, %v9433_v61 }
 0x3f9   :  { %9498 = vst.msk [vmem:[%s18000_s4 + $0x1e8] sm:$0xff] %vm1002_vm3, %v9434_v42  ;;  %9499 = vst.msk [vmem:[%s18000_s4 + $0x1f0] sm:$0xff] %vm1002_vm3, %v9435_v39 }
 0x3fa   :  { %9500 = vst.msk [vmem:[%s18000_s4 + $0x1f8] sm:$0xff] %vm1002_vm3, %v9436_v38 }

</bundles_post_ra>
